<compile_context>
chip_gen: v6e
topology: v6e:2x2x1
jax: 0.10.0
libtpu: 0.0.40
codegen_flags: <defaults>
</compile_context>

<pallas_src>
import functools

import jax
import jax.numpy as jnp
from jax.experimental import pallas as pl
from jax.experimental.pallas import tpu as pltpu

HEADS = 8
DIM_HEAD = 128
INNER = HEADS * DIM_HEAD          # 1024
SCALE = DIM_HEAD ** (-0.5)
LN_EPS = 1e-5


# ----------------------------------------------------------------------------- kernel
def _atnet_kernel(B, T, D,
                  x_ref, ppack_ref, sqkv_ref, wqkv_ref, wout_ref, wbd_ref, blin_ref,
                  o_ref, qkv_ref, merged_ref):
    """One ATULayer per grid step (grid axis = layer index).

    x_ref:     (B*T, D)        f32  network input (consumed only at layer 0)
    ppack_ref: (4, D)          f32  rows: [LayerNorm gamma, LayerNorm beta, to_out bias,
                                           to_out per-column dequant scale]
    sqkv_ref:  (1, 3*INNER)    f32  per-output-column dequant scales for wqkv
                                    (attention 1/sqrt(dh) pre-folded into the q columns)
    wqkv_ref:  (D, 3*INNER)    int8 to_qkv weight (x @ W convention)
    wout_ref:  (INNER, D)      int8 to_out weight
    wbd_ref:   (B*T, B*T)      f32  block-diagonal temporal Linear weight
    blin_ref:  (B*T, 1)        f32  temporal Linear bias (tiled over batch)
    o_ref:     (B*T, D)        f32  resident output block = carried activation
    qkv_ref:   (B*T, 3*INNER)  f32  VMEM scratch
    merged_ref:(B*T, INNER)    f32  VMEM scratch (concatenated head outputs)
    """
    BT = B * T

    # ---- layer 0: load the input activation into the resident output block ----
    @pl.when(pl.program_id(0) == 0)
    def _():
        o_ref[...] = x_ref[...]

    h = o_ref[...]                                                 # (BT, D) carried act.

    gamma = ppack_ref[0:1, :]                                      # (1, D)
    beta = ppack_ref[1:2, :]
    bout = ppack_ref[2:3, :]
    sout = ppack_ref[3:4, :]

    # ---- PreNorm: LayerNorm over the feature dim D (f32) ----
    mu = jnp.mean(h, axis=-1, keepdims=True)
    hc = h - mu
    var = jnp.mean(hc * hc, axis=-1, keepdims=True)
    y_bf = (hc * jax.lax.rsqrt(var + LN_EPS) * gamma + beta).astype(jnp.bfloat16)

    # ---- to_qkv: int8 weight streamed from HBM, dequantized exactly to bf16 in column
    #      chunks (bounds the VMEM temps), f32 accumulation, per-column scale on the
    #      accumulator, result parked in VMEM scratch ----
    for part in range(3):                                          # q / k / v chunks
        c0 = part * INNER
        w_bf = wqkv_ref[:, c0:c0 + INNER].astype(jnp.float32).astype(jnp.bfloat16)
        qkv_ref[:, c0:c0 + INNER] = (
            jnp.dot(y_bf, w_bf, preferred_element_type=jnp.float32)
            * sqkv_ref[:, c0:c0 + INNER])

    # ---- multi-head self-attention per (batch, head); head outputs go to merged scratch ----
    for b in range(B):
        r0 = b * T
        for hd in range(HEADS):
            lo = hd * DIM_HEAD
            q_h = qkv_ref[r0:r0 + T, lo:lo + DIM_HEAD]                          # (T, dh)
            k_h = qkv_ref[r0:r0 + T, INNER + lo:INNER + lo + DIM_HEAD]          # (T, dh)
            v_h = qkv_ref[r0:r0 + T, 2 * INNER + lo:2 * INNER + lo + DIM_HEAD]  # (T, dh)

            dots = jax.lax.dot_general(q_h, k_h, (((1,), (1,)), ((), ())),
                                       preferred_element_type=jnp.float32)      # (T, T)
            m = jnp.max(dots, axis=-1, keepdims=True)
            e = jnp.exp(dots - m)
            attn = e * pl.reciprocal(jnp.sum(e, axis=-1, keepdims=True), approx=True)
            merged_ref[r0:r0 + T, lo:lo + DIM_HEAD] = jnp.dot(
                attn, v_h, preferred_element_type=jnp.float32)                  # (T, dh)

    # ---- output projection (int8 -> bf16 weight), dequant on accumulator, bias, residual ----
    wo_bf = wout_ref[...].astype(jnp.float32).astype(jnp.bfloat16)
    out = (jnp.dot(merged_ref[...].astype(jnp.bfloat16), wo_bf,
                   preferred_element_type=jnp.float32) * sout + bout + h)       # (BT, D)

    # ---- temporal Linear(T,T): one block-diagonal (BT,BT) matmul + bias + Tanh ----
    o_ref[...] = jnp.tanh(
        jnp.dot(wbd_ref[...], out, preferred_element_type=jnp.float32) + blin_ref[...])


# ----------------------------------------------------------------------------- wrapper
@jax.jit
def atnet_forward(x, params):
    """ATNet.forward.  x: (N, M, C, T, V) -> (N, M, C, T, V)."""
    N, M, C, T, V = x.shape
    D = C * V
    B = N * M
    BT = B * T
    L = params["wqkv_i8"].shape[0]

    # (N,M,C,T,V) -> (N,M,T,C,V) -> (BT, C*V)  (the composite permute+reshape in PyTorch)
    h = jnp.transpose(x, (0, 1, 3, 2, 4)).reshape(BT, D).astype(jnp.float32)

    # pack the small per-layer f32 params into one streamed block: [gamma, beta, bout, sout]
    ppack = jnp.stack([params["gamma"], params["beta"],
                       params["bout"], params["sout"]], axis=1)                 # (L, 4, D)

    # per-output-column dequant scales for wqkv; fold 1/sqrt(dh) into the q columns.
    col_fold = jnp.concatenate([jnp.full((INNER,), SCALE, jnp.float32),
                                jnp.ones((2 * INNER,), jnp.float32)])
    sqkv = (params["sqkv"] * col_fold[None, :]).reshape(L, 1, 3 * INNER)        # (L,1,3*INNER)

    # temporal Linear(T,T) -> block-diagonal (BT,BT) weight per layer; bias tiled over batch.
    eye_b = jnp.eye(B, dtype=jnp.float32)
    wbd = jax.vmap(lambda w: jnp.kron(eye_b, w))(params["wlin"])                # (L, BT, BT)
    blin = jnp.tile(params["blin"], (1, B))[..., None]                          # (L, BT, 1)

    kernel = functools.partial(_atnet_kernel, B, T, D)

    flops = L * (2 * BT * D * 3 * INNER + 2 * BT * INNER * D
                 + B * HEADS * 4 * T * T * DIM_HEAD + 2 * BT * BT * D)
    transcend = L * (BT * D + B * HEADS * T * T + BT)
    bytes_acc = (L * (D * 3 * INNER + INNER * D)                                 # int8 weights
                 + L * 4 * (4 * D + 3 * INNER + BT * BT + BT)                    # f32 side params
                 + 2 * BT * D * 4)                                               # activations

    out = pl.pallas_call(
        kernel,
        out_shape=jax.ShapeDtypeStruct((BT, D), jnp.float32),
        grid_spec=pltpu.PrefetchScalarGridSpec(
            num_scalar_prefetch=0,
            grid=(L,),
            in_specs=[
                pl.BlockSpec((BT, D), lambda l: (0, 0)),                     # x (layer 0 only)
                pl.BlockSpec((None, 4, D), lambda l: (l, 0, 0)),             # gamma/beta/bout/sout
                pl.BlockSpec((None, 1, 3 * INNER), lambda l: (l, 0, 0)),     # qkv dequant scales
                pl.BlockSpec((None, D, 3 * INNER), lambda l: (l, 0, 0)),     # wqkv (int8)
                pl.BlockSpec((None, INNER, D), lambda l: (l, 0, 0)),         # wout (int8)
                pl.BlockSpec((None, BT, BT), lambda l: (l, 0, 0)),           # block-diag wlin
                pl.BlockSpec((None, BT, 1), lambda l: (l, 0, 0)),            # blin
            ],
            # Constant block index -> output stays resident in VMEM across the layer grid
            # (it carries the activation) and is written back to HBM once at the end.
            out_specs=pl.BlockSpec((BT, D), lambda l: (0, 0)),
            scratch_shapes=[
                pltpu.VMEM((BT, 3 * INNER), jnp.float32),   # qkv
                pltpu.VMEM((BT, INNER), jnp.float32),       # merged head outputs
            ],
        ),
        compiler_params=pltpu.CompilerParams(
            dimension_semantics=("arbitrary",),
            vmem_limit_bytes=32 * 1024 * 1024,
        ),
        cost_estimate=pl.CostEstimate(flops=flops, transcendentals=transcend,
                                      bytes_accessed=bytes_acc),
    )(h, ppack, sqkv, params["wqkv_i8"], params["wout_i8"], wbd, blin)

    # (BT, C*V) -> (N,M,T,C,V) -> (N,M,C,T,V)  (the final permute in PyTorch)
    return out.reshape(N, M, T, C, V).transpose(0, 1, 3, 2, 4)


# ----------------------------------------------------------------------------- reference
def ref_atnet(x, params):
    N, M, C, T, V = x.shape
    B, D = N * M, C * V
    h = jnp.transpose(x, (0, 1, 3, 2, 4)).reshape(B, T, D).astype(jnp.float32)
    L = params["wqkv_i8"].shape[0]
    for l in range(L):
        gamma, beta = params["gamma"][l], params["beta"][l]
        wqkv = params["wqkv_i8"][l].astype(jnp.float32) * params["sqkv"][l][None, :]
        wout = params["wout_i8"][l].astype(jnp.float32) * params["sout"][l][None, :]
        bout = params["bout"][l]
        wlin = params["wlin"][l]
        blin = params["blin"][l]

        mu = h.mean(-1, keepdims=True)
        var = ((h - mu) ** 2).mean(-1, keepdims=True)
        y = (h - mu) / jnp.sqrt(var + LN_EPS) * gamma + beta
        qkv = y @ wqkv
        q, k, v = jnp.split(qkv, 3, axis=-1)

        def heads(t):
            return t.reshape(B, T, HEADS, DIM_HEAD).transpose(0, 2, 1, 3)

        q, k, v = map(heads, (q, k, v))
        dots = jnp.einsum("bhid,bhjd->bhij", q, k) * SCALE
        attn = jax.nn.softmax(dots, axis=-1)
        o = jnp.einsum("bhij,bhjd->bhid", attn, v).transpose(0, 2, 1, 3).reshape(B, T, INNER)
        o = o @ wout + bout + h
        z = jnp.einsum("st,btd->bsd", wlin, o) + blin[None, :, None]
        h = jnp.tanh(z)
    return h.reshape(N, M, T, C, V).transpose(0, 1, 3, 2, 4)


# ----------------------------------------------------------------------------- setup
def _quantize_cols(key, shape, std):
    """Symmetric per-output-column int8 quantization of a random f32 weight."""
    w = jax.random.normal(key, shape, jnp.float32) * std
    amax = jnp.max(jnp.abs(w), axis=0)
    scale = (jnp.maximum(amax, 1e-8) / 127.0).astype(jnp.float32)
    wq = jnp.clip(jnp.round(w / scale), -127, 127).astype(jnp.int8)
    return wq, scale


def init_params(key, layers, T, D):
    gammas, betas, wqs, sqs, wos, sos, bouts, wlins, blins = ([] for _ in range(9))
    for k in jax.random.split(key, layers):
        k0, k1, k2, k3 = jax.random.split(k, 4)
        gammas.append(jnp.ones((D,), jnp.float32))                 # LayerNorm(960).weight
        betas.append(jnp.zeros((D,), jnp.float32))                 # LayerNorm(960).bias
        wq, sq = _quantize_cols(k0, (D, 3 * INNER), 0.02)          # to_qkv (int8 + scales)
        wo, so = _quantize_cols(k1, (INNER, D), 0.02)              # to_out (int8 + scales)
        wqs.append(wq); sqs.append(sq); wos.append(wo); sos.append(so)
        bouts.append(jnp.zeros((D,), jnp.float32))                 # to_out bias
        wlins.append(jax.random.normal(k2, (T, T), jnp.float32) * 0.2)
        blins.append(jax.random.normal(k3, (T,), jnp.float32) * 0.1)
    stack = lambda xs: jnp.stack(xs, axis=0)
    return dict(gamma=stack(gammas), beta=stack(betas),
                wqkv_i8=stack(wqs), sqkv=stack(sqs),
                wout_i8=stack(wos), sout=stack(sos),
                bout=stack(bouts), wlin=stack(wlins), blin=stack(blins))


if __name__ == "__main__":
    # Small shapes consistent with the module: Attention dim is hard-coded to 960 = C*V.
    N, M, C, T, V = 2, 1, 64, 8, 15          # D = C*V = 960
    LAYERS = 2

    key = jax.random.PRNGKey(0)
    kx, kp = jax.random.split(key)
    x = jax.random.normal(kx, (N, M, C, T, V), dtype=jnp.float32)
    params = init_params(kp, LAYERS, T, C * V)

    out = jax.block_until_ready(atnet_forward(x, params))
    assert out.shape == (N, M, C, T, V), out.shape

    # Sanity check against a pure-JAX reference using the same int8-dequantized weights.
    ref = jax.block_until_ready(ref_atnet(x, params))
    err = float(jnp.max(jnp.abs(out - ref)))
    assert jnp.allclose(out, ref, rtol=2e-2, atol=2e-2), err

    print("KERNEL_OK")
</pallas_src>

<mosaic_0001>
module attributes {stable_mosaic.version = 11 : i64} {
  func.func @_atnet_kernel(%arg0: i32, %arg1: memref<16x960xf32, #tpu.memory_space<vmem>>, %arg2: memref<1x4x960xf32, #tpu.memory_space<vmem>>, %arg3: memref<1x1x3072xf32, #tpu.memory_space<vmem>>, %arg4: memref<1x960x3072xi8, #tpu.memory_space<vmem>>, %arg5: memref<1x1024x960xi8, #tpu.memory_space<vmem>>, %arg6: memref<1x16x16xf32, #tpu.memory_space<vmem>>, %arg7: memref<1x16x1xf32, #tpu.memory_space<vmem>>, %arg8: memref<16x960xf32, #tpu.memory_space<vmem>>, %arg9: memref<16x3072xf32, #tpu.memory_space<vmem>>, %arg10: memref<16x1024xf32, #tpu.memory_space<vmem>>) attributes {dimension_semantics = [#tpu.dimension_semantics<arbitrary>], iteration_bounds = array<i64: 2>, scalar_prefetch = 0 : i64, scratch_operands = 2 : i64, tpu.core_type = #tpu.core_type<tc>, window_params = [{pipeline_mode = #tpu.pipeline_mode<synchronous>, transform_indices = @transform_0, window_bounds = array<i64: 16, 960>}, {transform_indices = @transform_1, window_bounds = array<i64: 1, 4, 960>}, {transform_indices = @transform_2, window_bounds = array<i64: 1, 1, 3072>}, {transform_indices = @transform_3, window_bounds = array<i64: 1, 960, 3072>}, {transform_indices = @transform_4, window_bounds = array<i64: 1, 1024, 960>}, {transform_indices = @transform_5, window_bounds = array<i64: 1, 16, 16>}, {transform_indices = @transform_6, window_bounds = array<i64: 1, 16, 1>}, {pipeline_mode = #tpu.pipeline_mode<synchronous>, transform_indices = @transform_7, window_bounds = array<i64: 16, 960>}]} {
    %c0_i32 = arith.constant 0 : i32
    %0 = arith.cmpi eq, %arg0, %c0_i32 : i32
    %1 = arith.extui %0 : i1 to i32
    %c0_i32_0 = arith.constant 0 : i32
    %2 = arith.cmpi ne, %1, %c0_i32_0 : i32
    scf.if %2 {
      %c0_225 = arith.constant 0 : index
      %c0_226 = arith.constant 0 : index
      %340 = vector.load %arg1[%c0_225, %c0_226] : memref<16x960xf32, #tpu.memory_space<vmem>>, vector<16x960xf32>
      %c0_227 = arith.constant 0 : index
      %c0_228 = arith.constant 0 : index
      %341 = vector.load %arg8[%c0_227, %c0_228] : memref<16x960xf32, #tpu.memory_space<vmem>>, vector<16x960xf32>
      tpu.vector_store %arg8[%c0_227, %c0_228], %340 {strides = array<i32>} : memref<16x960xf32, #tpu.memory_space<vmem>>, vector<16x960xf32>,
    } else {
    }
    %c0 = arith.constant 0 : index
    %c0_1 = arith.constant 0 : index
    %3 = vector.load %arg8[%c0, %c0_1] : memref<16x960xf32, #tpu.memory_space<vmem>>, vector<16x960xf32>
    %c0_2 = arith.constant 0 : index
    %c0_3 = arith.constant 0 : index
    %c0_4 = arith.constant 0 : index
    %4 = vector.load %arg2[%c0_2, %c0_3, %c0_4] : memref<1x4x960xf32, #tpu.memory_space<vmem>>, vector<1x1x960xf32>
    %5 = vector.shape_cast %4 : vector<1x1x960xf32> to vector<1x960xf32>
    %c0_5 = arith.constant 0 : index
    %c1 = arith.constant 1 : index
    %c0_6 = arith.constant 0 : index
    %6 = vector.load %arg2[%c0_5, %c1, %c0_6] : memref<1x4x960xf32, #tpu.memory_space<vmem>>, vector<1x1x960xf32>
    %7 = vector.shape_cast %6 : vector<1x1x960xf32> to vector<1x960xf32>
    %c0_7 = arith.constant 0 : index
    %c2 = arith.constant 2 : index
    %c0_8 = arith.constant 0 : index
    %8 = vector.load %arg2[%c0_7, %c2, %c0_8] : memref<1x4x960xf32, #tpu.memory_space<vmem>>, vector<1x1x960xf32>
    %9 = vector.shape_cast %8 : vector<1x1x960xf32> to vector<1x960xf32>
    %c0_9 = arith.constant 0 : index
    %c3 = arith.constant 3 : index
    %c0_10 = arith.constant 0 : index
    %10 = vector.load %arg2[%c0_9, %c3, %c0_10] : memref<1x4x960xf32, #tpu.memory_space<vmem>>, vector<1x1x960xf32>
    %11 = vector.shape_cast %10 : vector<1x1x960xf32> to vector<1x960xf32>
    %cst = arith.constant dense<0.000000e+00> : vector<16xf32>
    %12 = vector.multi_reduction <add>, %3, %cst [1] : vector<16x960xf32> to vector<16xf32>
    %13 = vector.shape_cast %12 : vector<16xf32> to vector<16x1xf32>
    %cst_11 = arith.constant 9.600000e+02 : f32
    %14 = vector.broadcast %cst_11 : f32 to vector<16x1xf32>
    %15 = arith.divf %13, %14 : vector<16x1xf32>
    %16 = vector.broadcast %15 : vector<16x1xf32> to vector<16x960xf32>
    %17 = arith.subf %3, %16 : vector<16x960xf32>
    %18 = arith.mulf %17, %17 : vector<16x960xf32>
    %cst_12 = arith.constant dense<0.000000e+00> : vector<16xf32>
    %19 = vector.multi_reduction <add>, %18, %cst_12 [1] : vector<16x960xf32> to vector<16xf32>
    %20 = vector.shape_cast %19 : vector<16xf32> to vector<16x1xf32>
    %cst_13 = arith.constant 9.600000e+02 : f32
    %21 = vector.broadcast %cst_13 : f32 to vector<16x1xf32>
    %22 = arith.divf %20, %21 : vector<16x1xf32>
    %cst_14 = arith.constant 9.99999974E-6 : f32
    %23 = vector.broadcast %cst_14 : f32 to vector<16x1xf32>
    %24 = arith.addf %22, %23 : vector<16x1xf32>
    %25 = math.rsqrt %24 : vector<16x1xf32>
    %26 = vector.broadcast %25 : vector<16x1xf32> to vector<16x960xf32>
    %27 = arith.mulf %17, %26 : vector<16x960xf32>
    %28 = vector.broadcast %5 : vector<1x960xf32> to vector<16x960xf32>
    %29 = arith.mulf %27, %28 : vector<16x960xf32>
    %30 = vector.broadcast %7 : vector<1x960xf32> to vector<16x960xf32>
    %31 = arith.addf %29, %30 : vector<16x960xf32>
    %32 = arith.truncf %31 : vector<16x960xf32> to vector<16x960xbf16>
    %c0_15 = arith.constant 0 : index
    %c0_16 = arith.constant 0 : index
    %c0_17 = arith.constant 0 : index
    %33 = vector.load %arg4[%c0_15, %c0_16, %c0_17] : memref<1x960x3072xi8, #tpu.memory_space<vmem>>, vector<1x960x1024xi8>
    %34 = vector.shape_cast %33 : vector<1x960x1024xi8> to vector<960x1024xi8>
    %35 = arith.sitofp %34 : vector<960x1024xi8> to vector<960x1024xf32>
    %36 = arith.truncf %35 : vector<960x1024xf32> to vector<960x1024xbf16>
    %cst_18 = arith.constant dense<0.000000e+00> : vector<16x1024xf32>
    %37 = tpu.matmul %32, %36, %cst_18 {dimension_numbers = #tpu.dot_dimension_numbers<[1], [0], [0], [1], [0, 0, 1, 1], [], []>} : vector<16x960xbf16>, vector<960x1024xbf16>, vector<16x1024xf32> -> vector<16x1024xf32>
    %c0_19 = arith.constant 0 : index
    %c0_20 = arith.constant 0 : index
    %c0_21 = arith.constant 0 : index
    %38 = vector.load %arg3[%c0_19, %c0_20, %c0_21] : memref<1x1x3072xf32, #tpu.memory_space<vmem>>, vector<1x1x1024xf32>
    %39 = vector.shape_cast %38 : vector<1x1x1024xf32> to vector<1x1024xf32>
    %40 = vector.broadcast %39 : vector<1x1024xf32> to vector<16x1024xf32>
    %41 = arith.mulf %37, %40 : vector<16x1024xf32>
    %c0_22 = arith.constant 0 : index
    %c0_23 = arith.constant 0 : index
    %42 = vector.load %arg9[%c0_22, %c0_23] : memref<16x3072xf32, #tpu.memory_space<vmem>>, vector<16x1024xf32>
    tpu.vector_store %arg9[%c0_22, %c0_23], %41 {strides = array<i32>} : memref<16x3072xf32, #tpu.memory_space<vmem>>, vector<16x1024xf32>,
    %c0_24 = arith.constant 0 : index
    %c0_25 = arith.constant 0 : index
    %c1024 = arith.constant 1024 : index
    %43 = vector.load %arg4[%c0_24, %c0_25, %c1024] : memref<1x960x3072xi8, #tpu.memory_space<vmem>>, vector<1x960x1024xi8>
    %44 = vector.shape_cast %43 : vector<1x960x1024xi8> to vector<960x1024xi8>
    %45 = arith.sitofp %44 : vector<960x1024xi8> to vector<960x1024xf32>
    %46 = arith.truncf %45 : vector<960x1024xf32> to vector<960x1024xbf16>
    %cst_26 = arith.constant dense<0.000000e+00> : vector<16x1024xf32>
    %47 = tpu.matmul %32, %46, %cst_26 {dimension_numbers = #tpu.dot_dimension_numbers<[1], [0], [0], [1], [0, 0, 1, 1], [], []>} : vector<16x960xbf16>, vector<960x1024xbf16>, vector<16x1024xf32> -> vector<16x1024xf32>
    %c0_27 = arith.constant 0 : index
    %c0_28 = arith.constant 0 : index
    %c1024_29 = arith.constant 1024 : index
    %48 = vector.load %arg3[%c0_27, %c0_28, %c1024_29] : memref<1x1x3072xf32, #tpu.memory_space<vmem>>, vector<1x1x1024xf32>
    %49 = vector.shape_cast %48 : vector<1x1x1024xf32> to vector<1x1024xf32>
    %50 = vector.broadcast %49 : vector<1x1024xf32> to vector<16x1024xf32>
    %51 = arith.mulf %47, %50 : vector<16x1024xf32>
    %c0_30 = arith.constant 0 : index
    %c1024_31 = arith.constant 1024 : index
    %52 = vector.load %arg9[%c0_30, %c1024_31] : memref<16x3072xf32, #tpu.memory_space<vmem>>, vector<16x1024xf32>
    tpu.vector_store %arg9[%c0_30, %c1024_31], %51 {strides = array<i32>} : memref<16x3072xf32, #tpu.memory_space<vmem>>, vector<16x1024xf32>,
    %c0_32 = arith.constant 0 : index
    %c0_33 = arith.constant 0 : index
    %c2048 = arith.constant 2048 : index
    %53 = vector.load %arg4[%c0_32, %c0_33, %c2048] : memref<1x960x3072xi8, #tpu.memory_space<vmem>>, vector<1x960x1024xi8>
    %54 = vector.shape_cast %53 : vector<1x960x1024xi8> to vector<960x1024xi8>
    %55 = arith.sitofp %54 : vector<960x1024xi8> to vector<960x1024xf32>
    %56 = arith.truncf %55 : vector<960x1024xf32> to vector<960x1024xbf16>
    %cst_34 = arith.constant dense<0.000000e+00> : vector<16x1024xf32>
    %57 = tpu.matmul %32, %56, %cst_34 {dimension_numbers = #tpu.dot_dimension_numbers<[1], [0], [0], [1], [0, 0, 1, 1], [], []>} : vector<16x960xbf16>, vector<960x1024xbf16>, vector<16x1024xf32> -> vector<16x1024xf32>
    %c0_35 = arith.constant 0 : index
    %c0_36 = arith.constant 0 : index
    %c2048_37 = arith.constant 2048 : index
    %58 = vector.load %arg3[%c0_35, %c0_36, %c2048_37] : memref<1x1x3072xf32, #tpu.memory_space<vmem>>, vector<1x1x1024xf32>
    %59 = vector.shape_cast %58 : vector<1x1x1024xf32> to vector<1x1024xf32>
    %60 = vector.broadcast %59 : vector<1x1024xf32> to vector<16x1024xf32>
    %61 = arith.mulf %57, %60 : vector<16x1024xf32>
    %c0_38 = arith.constant 0 : index
    %c2048_39 = arith.constant 2048 : index
    %62 = vector.load %arg9[%c0_38, %c2048_39] : memref<16x3072xf32, #tpu.memory_space<vmem>>, vector<16x1024xf32>
    tpu.vector_store %arg9[%c0_38, %c2048_39], %61 {strides = array<i32>} : memref<16x3072xf32, #tpu.memory_space<vmem>>, vector<16x1024xf32>,
    %c0_40 = arith.constant 0 : index
    %c0_41 = arith.constant 0 : index
    %63 = vector.load %arg9[%c0_40, %c0_41] : memref<16x3072xf32, #tpu.memory_space<vmem>>, vector<8x128xf32>
    %c0_42 = arith.constant 0 : index
    %c1024_43 = arith.constant 1024 : index
    %64 = vector.load %arg9[%c0_42, %c1024_43] : memref<16x3072xf32, #tpu.memory_space<vmem>>, vector<8x128xf32>
    %c0_44 = arith.constant 0 : index
    %c2048_45 = arith.constant 2048 : index
    %65 = vector.load %arg9[%c0_44, %c2048_45] : memref<16x3072xf32, #tpu.memory_space<vmem>>, vector<8x128xf32>
    %cst_46 = arith.constant dense<0.000000e+00> : vector<8x8xf32>
    %66 = tpu.matmul %63, %64, %cst_46 {dimension_numbers = #tpu.dot_dimension_numbers<[1], [1], [0], [0], [0, 0, 1, 0], [], []>} : vector<8x128xf32>, vector<8x128xf32>, vector<8x8xf32> -> vector<8x8xf32>
    %cst_47 = arith.constant dense<0xFF800000> : vector<8xf32>
    %67 = vector.multi_reduction <maximumf>, %66, %cst_47 [1] : vector<8x8xf32> to vector<8xf32>
    %68 = vector.shape_cast %67 : vector<8xf32> to vector<8x1xf32>
    %69 = vector.broadcast %68 : vector<8x1xf32> to vector<8x8xf32>
    %70 = arith.subf %66, %69 : vector<8x8xf32>
    %71 = math.exp %70 : vector<8x8xf32>
    %cst_48 = arith.constant dense<0.000000e+00> : vector<8xf32>
    %72 = vector.multi_reduction <add>, %71, %cst_48 [1] : vector<8x8xf32> to vector<8xf32>
    %73 = vector.shape_cast %72 : vector<8xf32> to vector<8x1xf32>
    %74 = tpu.reciprocal %73 {approx = true} : vector<8x1xf32> -> vector<8x1xf32>
    %75 = vector.broadcast %74 : vector<8x1xf32> to vector<8x8xf32>
    %76 = arith.mulf %71, %75 : vector<8x8xf32>
    %cst_49 = arith.constant dense<0.000000e+00> : vector<8x128xf32>
    %77 = tpu.matmul %76, %65, %cst_49 {dimension_numbers = #tpu.dot_dimension_numbers<[1], [0], [0], [1], [0, 0, 1, 1], [], []>} : vector<8x8xf32>, vector<8x128xf32>, vector<8x128xf32> -> vector<8x128xf32>
    %c0_50 = arith.constant 0 : index
    %c0_51 = arith.constant 0 : index
    %78 = vector.load %arg10[%c0_50, %c0_51] : memref<16x1024xf32, #tpu.memory_space<vmem>>, vector<8x128xf32>
    tpu.vector_store %arg10[%c0_50, %c0_51], %77 {strides = array<i32>} : memref<16x1024xf32, #tpu.memory_space<vmem>>, vector<8x128xf32>,
    %c0_52 = arith.constant 0 : index
    %c128 = arith.constant 128 : index
    %79 = vector.load %arg9[%c0_52, %c128] : memref<16x3072xf32, #tpu.memory_space<vmem>>, vector<8x128xf32>
    %c0_53 = arith.constant 0 : index
    %c1152 = arith.constant 1152 : index
    %80 = vector.load %arg9[%c0_53, %c1152] : memref<16x3072xf32, #tpu.memory_space<vmem>>, vector<8x128xf32>
    %c0_54 = arith.constant 0 : index
    %c2176 = arith.constant 2176 : index
    %81 = vector.load %arg9[%c0_54, %c2176] : memref<16x3072xf32, #tpu.memory_space<vmem>>, vector<8x128xf32>
    %cst_55 = arith.constant dense<0.000000e+00> : vector<8x8xf32>
    %82 = tpu.matmul %79, %80, %cst_55 {dimension_numbers = #tpu.dot_dimension_numbers<[1], [1], [0], [0], [0, 0, 1, 0], [], []>} : vector<8x128xf32>, vector<8x128xf32>, vector<8x8xf32> -> vector<8x8xf32>
    %cst_56 = arith.constant dense<0xFF800000> : vector<8xf32>
    %83 = vector.multi_reduction <maximumf>, %82, %cst_56 [1] : vector<8x8xf32> to vector<8xf32>
    %84 = vector.shape_cast %83 : vector<8xf32> to vector<8x1xf32>
    %85 = vector.broadcast %84 : vector<8x1xf32> to vector<8x8xf32>
    %86 = arith.subf %82, %85 : vector<8x8xf32>
    %87 = math.exp %86 : vector<8x8xf32>
    %cst_57 = arith.constant dense<0.000000e+00> : vector<8xf32>
    %88 = vector.multi_reduction <add>, %87, %cst_57 [1] : vector<8x8xf32> to vector<8xf32>
    %89 = vector.shape_cast %88 : vector<8xf32> to vector<8x1xf32>
    %90 = tpu.reciprocal %89 {approx = true} : vector<8x1xf32> -> vector<8x1xf32>
    %91 = vector.broadcast %90 : vector<8x1xf32> to vector<8x8xf32>
    %92 = arith.mulf %87, %91 : vector<8x8xf32>
    %cst_58 = arith.constant dense<0.000000e+00> : vector<8x128xf32>
    %93 = tpu.matmul %92, %81, %cst_58 {dimension_numbers = #tpu.dot_dimension_numbers<[1], [0], [0], [1], [0, 0, 1, 1], [], []>} : vector<8x8xf32>, vector<8x128xf32>, vector<8x128xf32> -> vector<8x128xf32>
    %c0_59 = arith.constant 0 : index
    %c128_60 = arith.constant 128 : index
    %94 = vector.load %arg10[%c0_59, %c128_60] : memref<16x1024xf32, #tpu.memory_space<vmem>>, vector<8x128xf32>
    tpu.vector_store %arg10[%c0_59, %c128_60], %93 {strides = array<i32>} : memref<16x1024xf32, #tpu.memory_space<vmem>>, vector<8x128xf32>,
    %c0_61 = arith.constant 0 : index
    %c256 = arith.constant 256 : index
    %95 = vector.load %arg9[%c0_61, %c256] : memref<16x3072xf32, #tpu.memory_space<vmem>>, vector<8x128xf32>
    %c0_62 = arith.constant 0 : index
    %c1280 = arith.constant 1280 : index
    %96 = vector.load %arg9[%c0_62, %c1280] : memref<16x3072xf32, #tpu.memory_space<vmem>>, vector<8x128xf32>
    %c0_63 = arith.constant 0 : index
    %c2304 = arith.constant 2304 : index
    %97 = vector.load %arg9[%c0_63, %c2304] : memref<16x3072xf32, #tpu.memory_space<vmem>>, vector<8x128xf32>
    %cst_64 = arith.constant dense<0.000000e+00> : vector<8x8xf32>
    %98 = tpu.matmul %95, %96, %cst_64 {dimension_numbers = #tpu.dot_dimension_numbers<[1], [1], [0], [0], [0, 0, 1, 0], [], []>} : vector<8x128xf32>, vector<8x128xf32>, vector<8x8xf32> -> vector<8x8xf32>
    %cst_65 = arith.constant dense<0xFF800000> : vector<8xf32>
    %99 = vector.multi_reduction <maximumf>, %98, %cst_65 [1] : vector<8x8xf32> to vector<8xf32>
    %100 = vector.shape_cast %99 : vector<8xf32> to vector<8x1xf32>
    %101 = vector.broadcast %100 : vector<8x1xf32> to vector<8x8xf32>
    %102 = arith.subf %98, %101 : vector<8x8xf32>
    %103 = math.exp %102 : vector<8x8xf32>
    %cst_66 = arith.constant dense<0.000000e+00> : vector<8xf32>
    %104 = vector.multi_reduction <add>, %103, %cst_66 [1] : vector<8x8xf32> to vector<8xf32>
    %105 = vector.shape_cast %104 : vector<8xf32> to vector<8x1xf32>
    %106 = tpu.reciprocal %105 {approx = true} : vector<8x1xf32> -> vector<8x1xf32>
    %107 = vector.broadcast %106 : vector<8x1xf32> to vector<8x8xf32>
    %108 = arith.mulf %103, %107 : vector<8x8xf32>
    %cst_67 = arith.constant dense<0.000000e+00> : vector<8x128xf32>
    %109 = tpu.matmul %108, %97, %cst_67 {dimension_numbers = #tpu.dot_dimension_numbers<[1], [0], [0], [1], [0, 0, 1, 1], [], []>} : vector<8x8xf32>, vector<8x128xf32>, vector<8x128xf32> -> vector<8x128xf32>
    %c0_68 = arith.constant 0 : index
    %c256_69 = arith.constant 256 : index
    %110 = vector.load %arg10[%c0_68, %c256_69] : memref<16x1024xf32, #tpu.memory_space<vmem>>, vector<8x128xf32>
    tpu.vector_store %arg10[%c0_68, %c256_69], %109 {strides = array<i32>} : memref<16x1024xf32, #tpu.memory_space<vmem>>, vector<8x128xf32>,
    %c0_70 = arith.constant 0 : index
    %c384 = arith.constant 384 : index
    %111 = vector.load %arg9[%c0_70, %c384] : memref<16x3072xf32, #tpu.memory_space<vmem>>, vector<8x128xf32>
    %c0_71 = arith.constant 0 : index
    %c1408 = arith.constant 1408 : index
    %112 = vector.load %arg9[%c0_71, %c1408] : memref<16x3072xf32, #tpu.memory_space<vmem>>, vector<8x128xf32>
    %c0_72 = arith.constant 0 : index
    %c2432 = arith.constant 2432 : index
    %113 = vector.load %arg9[%c0_72, %c2432] : memref<16x3072xf32, #tpu.memory_space<vmem>>, vector<8x128xf32>
    %cst_73 = arith.constant dense<0.000000e+00> : vector<8x8xf32>
    %114 = tpu.matmul %111, %112, %cst_73 {dimension_numbers = #tpu.dot_dimension_numbers<[1], [1], [0], [0], [0, 0, 1, 0], [], []>} : vector<8x128xf32>, vector<8x128xf32>, vector<8x8xf32> -> vector<8x8xf32>
    %cst_74 = arith.constant dense<0xFF800000> : vector<8xf32>
    %115 = vector.multi_reduction <maximumf>, %114, %cst_74 [1] : vector<8x8xf32> to vector<8xf32>
    %116 = vector.shape_cast %115 : vector<8xf32> to vector<8x1xf32>
    %117 = vector.broadcast %116 : vector<8x1xf32> to vector<8x8xf32>
    %118 = arith.subf %114, %117 : vector<8x8xf32>
    %119 = math.exp %118 : vector<8x8xf32>
    %cst_75 = arith.constant dense<0.000000e+00> : vector<8xf32>
    %120 = vector.multi_reduction <add>, %119, %cst_75 [1] : vector<8x8xf32> to vector<8xf32>
    %121 = vector.shape_cast %120 : vector<8xf32> to vector<8x1xf32>
    %122 = tpu.reciprocal %121 {approx = true} : vector<8x1xf32> -> vector<8x1xf32>
    %123 = vector.broadcast %122 : vector<8x1xf32> to vector<8x8xf32>
    %124 = arith.mulf %119, %123 : vector<8x8xf32>
    %cst_76 = arith.constant dense<0.000000e+00> : vector<8x128xf32>
    %125 = tpu.matmul %124, %113, %cst_76 {dimension_numbers = #tpu.dot_dimension_numbers<[1], [0], [0], [1], [0, 0, 1, 1], [], []>} : vector<8x8xf32>, vector<8x128xf32>, vector<8x128xf32> -> vector<8x128xf32>
    %c0_77 = arith.constant 0 : index
    %c384_78 = arith.constant 384 : index
    %126 = vector.load %arg10[%c0_77, %c384_78] : memref<16x1024xf32, #tpu.memory_space<vmem>>, vector<8x128xf32>
    tpu.vector_store %arg10[%c0_77, %c384_78], %125 {strides = array<i32>} : memref<16x1024xf32, #tpu.memory_space<vmem>>, vector<8x128xf32>,
    %c0_79 = arith.constant 0 : index
    %c512 = arith.constant 512 : index
    %127 = vector.load %arg9[%c0_79, %c512] : memref<16x3072xf32, #tpu.memory_space<vmem>>, vector<8x128xf32>
    %c0_80 = arith.constant 0 : index
    %c1536 = arith.constant 1536 : index
    %128 = vector.load %arg9[%c0_80, %c1536] : memref<16x3072xf32, #tpu.memory_space<vmem>>, vector<8x128xf32>
    %c0_81 = arith.constant 0 : index
    %c2560 = arith.constant 2560 : index
    %129 = vector.load %arg9[%c0_81, %c2560] : memref<16x3072xf32, #tpu.memory_space<vmem>>, vector<8x128xf32>
    %cst_82 = arith.constant dense<0.000000e+00> : vector<8x8xf32>
    %130 = tpu.matmul %127, %128, %cst_82 {dimension_numbers = #tpu.dot_dimension_numbers<[1], [1], [0], [0], [0, 0, 1, 0], [], []>} : vector<8x128xf32>, vector<8x128xf32>, vector<8x8xf32> -> vector<8x8xf32>
    %cst_83 = arith.constant dense<0xFF800000> : vector<8xf32>
    %131 = vector.multi_reduction <maximumf>, %130, %cst_83 [1] : vector<8x8xf32> to vector<8xf32>
    %132 = vector.shape_cast %131 : vector<8xf32> to vector<8x1xf32>
    %133 = vector.broadcast %132 : vector<8x1xf32> to vector<8x8xf32>
    %134 = arith.subf %130, %133 : vector<8x8xf32>
    %135 = math.exp %134 : vector<8x8xf32>
    %cst_84 = arith.constant dense<0.000000e+00> : vector<8xf32>
    %136 = vector.multi_reduction <add>, %135, %cst_84 [1] : vector<8x8xf32> to vector<8xf32>
    %137 = vector.shape_cast %136 : vector<8xf32> to vector<8x1xf32>
    %138 = tpu.reciprocal %137 {approx = true} : vector<8x1xf32> -> vector<8x1xf32>
    %139 = vector.broadcast %138 : vector<8x1xf32> to vector<8x8xf32>
    %140 = arith.mulf %135, %139 : vector<8x8xf32>
    %cst_85 = arith.constant dense<0.000000e+00> : vector<8x128xf32>
    %141 = tpu.matmul %140, %129, %cst_85 {dimension_numbers = #tpu.dot_dimension_numbers<[1], [0], [0], [1], [0, 0, 1, 1], [], []>} : vector<8x8xf32>, vector<8x128xf32>, vector<8x128xf32> -> vector<8x128xf32>
    %c0_86 = arith.constant 0 : index
    %c512_87 = arith.constant 512 : index
    %142 = vector.load %arg10[%c0_86, %c512_87] : memref<16x1024xf32, #tpu.memory_space<vmem>>, vector<8x128xf32>
    tpu.vector_store %arg10[%c0_86, %c512_87], %141 {strides = array<i32>} : memref<16x1024xf32, #tpu.memory_space<vmem>>, vector<8x128xf32>,
    %c0_88 = arith.constant 0 : index
    %c640 = arith.constant 640 : index
    %143 = vector.load %arg9[%c0_88, %c640] : memref<16x3072xf32, #tpu.memory_space<vmem>>, vector<8x128xf32>
    %c0_89 = arith.constant 0 : index
    %c1664 = arith.constant 1664 : index
    %144 = vector.load %arg9[%c0_89, %c1664] : memref<16x3072xf32, #tpu.memory_space<vmem>>, vector<8x128xf32>
    %c0_90 = arith.constant 0 : index
    %c2688 = arith.constant 2688 : index
    %145 = vector.load %arg9[%c0_90, %c2688] : memref<16x3072xf32, #tpu.memory_space<vmem>>, vector<8x128xf32>
    %cst_91 = arith.constant dense<0.000000e+00> : vector<8x8xf32>
    %146 = tpu.matmul %143, %144, %cst_91 {dimension_numbers = #tpu.dot_dimension_numbers<[1], [1], [0], [0], [0, 0, 1, 0], [], []>} : vector<8x128xf32>, vector<8x128xf32>, vector<8x8xf32> -> vector<8x8xf32>
    %cst_92 = arith.constant dense<0xFF800000> : vector<8xf32>
    %147 = vector.multi_reduction <maximumf>, %146, %cst_92 [1] : vector<8x8xf32> to vector<8xf32>
    %148 = vector.shape_cast %147 : vector<8xf32> to vector<8x1xf32>
    %149 = vector.broadcast %148 : vector<8x1xf32> to vector<8x8xf32>
    %150 = arith.subf %146, %149 : vector<8x8xf32>
    %151 = math.exp %150 : vector<8x8xf32>
    %cst_93 = arith.constant dense<0.000000e+00> : vector<8xf32>
    %152 = vector.multi_reduction <add>, %151, %cst_93 [1] : vector<8x8xf32> to vector<8xf32>
    %153 = vector.shape_cast %152 : vector<8xf32> to vector<8x1xf32>
    %154 = tpu.reciprocal %153 {approx = true} : vector<8x1xf32> -> vector<8x1xf32>
    %155 = vector.broadcast %154 : vector<8x1xf32> to vector<8x8xf32>
    %156 = arith.mulf %151, %155 : vector<8x8xf32>
    %cst_94 = arith.constant dense<0.000000e+00> : vector<8x128xf32>
    %157 = tpu.matmul %156, %145, %cst_94 {dimension_numbers = #tpu.dot_dimension_numbers<[1], [0], [0], [1], [0, 0, 1, 1], [], []>} : vector<8x8xf32>, vector<8x128xf32>, vector<8x128xf32> -> vector<8x128xf32>
    %c0_95 = arith.constant 0 : index
    %c640_96 = arith.constant 640 : index
    %158 = vector.load %arg10[%c0_95, %c640_96] : memref<16x1024xf32, #tpu.memory_space<vmem>>, vector<8x128xf32>
    tpu.vector_store %arg10[%c0_95, %c640_96], %157 {strides = array<i32>} : memref<16x1024xf32, #tpu.memory_space<vmem>>, vector<8x128xf32>,
    %c0_97 = arith.constant 0 : index
    %c768 = arith.constant 768 : index
    %159 = vector.load %arg9[%c0_97, %c768] : memref<16x3072xf32, #tpu.memory_space<vmem>>, vector<8x128xf32>
    %c0_98 = arith.constant 0 : index
    %c1792 = arith.constant 1792 : index
    %160 = vector.load %arg9[%c0_98, %c1792] : memref<16x3072xf32, #tpu.memory_space<vmem>>, vector<8x128xf32>
    %c0_99 = arith.constant 0 : index
    %c2816 = arith.constant 2816 : index
    %161 = vector.load %arg9[%c0_99, %c2816] : memref<16x3072xf32, #tpu.memory_space<vmem>>, vector<8x128xf32>
    %cst_100 = arith.constant dense<0.000000e+00> : vector<8x8xf32>
    %162 = tpu.matmul %159, %160, %cst_100 {dimension_numbers = #tpu.dot_dimension_numbers<[1], [1], [0], [0], [0, 0, 1, 0], [], []>} : vector<8x128xf32>, vector<8x128xf32>, vector<8x8xf32> -> vector<8x8xf32>
    %cst_101 = arith.constant dense<0xFF800000> : vector<8xf32>
    %163 = vector.multi_reduction <maximumf>, %162, %cst_101 [1] : vector<8x8xf32> to vector<8xf32>
    %164 = vector.shape_cast %163 : vector<8xf32> to vector<8x1xf32>
    %165 = vector.broadcast %164 : vector<8x1xf32> to vector<8x8xf32>
    %166 = arith.subf %162, %165 : vector<8x8xf32>
    %167 = math.exp %166 : vector<8x8xf32>
    %cst_102 = arith.constant dense<0.000000e+00> : vector<8xf32>
    %168 = vector.multi_reduction <add>, %167, %cst_102 [1] : vector<8x8xf32> to vector<8xf32>
    %169 = vector.shape_cast %168 : vector<8xf32> to vector<8x1xf32>
    %170 = tpu.reciprocal %169 {approx = true} : vector<8x1xf32> -> vector<8x1xf32>
    %171 = vector.broadcast %170 : vector<8x1xf32> to vector<8x8xf32>
    %172 = arith.mulf %167, %171 : vector<8x8xf32>
    %cst_103 = arith.constant dense<0.000000e+00> : vector<8x128xf32>
    %173 = tpu.matmul %172, %161, %cst_103 {dimension_numbers = #tpu.dot_dimension_numbers<[1], [0], [0], [1], [0, 0, 1, 1], [], []>} : vector<8x8xf32>, vector<8x128xf32>, vector<8x128xf32> -> vector<8x128xf32>
    %c0_104 = arith.constant 0 : index
    %c768_105 = arith.constant 768 : index
    %174 = vector.load %arg10[%c0_104, %c768_105] : memref<16x1024xf32, #tpu.memory_space<vmem>>, vector<8x128xf32>
    tpu.vector_store %arg10[%c0_104, %c768_105], %173 {strides = array<i32>} : memref<16x1024xf32, #tpu.memory_space<vmem>>, vector<8x128xf32>,
    %c0_106 = arith.constant 0 : index
    %c896 = arith.constant 896 : index
    %175 = vector.load %arg9[%c0_106, %c896] : memref<16x3072xf32, #tpu.memory_space<vmem>>, vector<8x128xf32>
    %c0_107 = arith.constant 0 : index
    %c1920 = arith.constant 1920 : index
    %176 = vector.load %arg9[%c0_107, %c1920] : memref<16x3072xf32, #tpu.memory_space<vmem>>, vector<8x128xf32>
    %c0_108 = arith.constant 0 : index
    %c2944 = arith.constant 2944 : index
    %177 = vector.load %arg9[%c0_108, %c2944] : memref<16x3072xf32, #tpu.memory_space<vmem>>, vector<8x128xf32>
    %cst_109 = arith.constant dense<0.000000e+00> : vector<8x8xf32>
    %178 = tpu.matmul %175, %176, %cst_109 {dimension_numbers = #tpu.dot_dimension_numbers<[1], [1], [0], [0], [0, 0, 1, 0], [], []>} : vector<8x128xf32>, vector<8x128xf32>, vector<8x8xf32> -> vector<8x8xf32>
    %cst_110 = arith.constant dense<0xFF800000> : vector<8xf32>
    %179 = vector.multi_reduction <maximumf>, %178, %cst_110 [1] : vector<8x8xf32> to vector<8xf32>
    %180 = vector.shape_cast %179 : vector<8xf32> to vector<8x1xf32>
    %181 = vector.broadcast %180 : vector<8x1xf32> to vector<8x8xf32>
    %182 = arith.subf %178, %181 : vector<8x8xf32>
    %183 = math.exp %182 : vector<8x8xf32>
    %cst_111 = arith.constant dense<0.000000e+00> : vector<8xf32>
    %184 = vector.multi_reduction <add>, %183, %cst_111 [1] : vector<8x8xf32> to vector<8xf32>
    %185 = vector.shape_cast %184 : vector<8xf32> to vector<8x1xf32>
    %186 = tpu.reciprocal %185 {approx = true} : vector<8x1xf32> -> vector<8x1xf32>
    %187 = vector.broadcast %186 : vector<8x1xf32> to vector<8x8xf32>
    %188 = arith.mulf %183, %187 : vector<8x8xf32>
    %cst_112 = arith.constant dense<0.000000e+00> : vector<8x128xf32>
    %189 = tpu.matmul %188, %177, %cst_112 {dimension_numbers = #tpu.dot_dimension_numbers<[1], [0], [0], [1], [0, 0, 1, 1], [], []>} : vector<8x8xf32>, vector<8x128xf32>, vector<8x128xf32> -> vector<8x128xf32>
    %c0_113 = arith.constant 0 : index
    %c896_114 = arith.constant 896 : index
    %190 = vector.load %arg10[%c0_113, %c896_114] : memref<16x1024xf32, #tpu.memory_space<vmem>>, vector<8x128xf32>
    tpu.vector_store %arg10[%c0_113, %c896_114], %189 {strides = array<i32>} : memref<16x1024xf32, #tpu.memory_space<vmem>>, vector<8x128xf32>,
    %c8 = arith.constant 8 : index
    %c0_115 = arith.constant 0 : index
    %191 = vector.load %arg9[%c8, %c0_115] : memref<16x3072xf32, #tpu.memory_space<vmem>>, vector<8x128xf32>
    %c8_116 = arith.constant 8 : index
    %c1024_117 = arith.constant 1024 : index
    %192 = vector.load %arg9[%c8_116, %c1024_117] : memref<16x3072xf32, #tpu.memory_space<vmem>>, vector<8x128xf32>
    %c8_118 = arith.constant 8 : index
    %c2048_119 = arith.constant 2048 : index
    %193 = vector.load %arg9[%c8_118, %c2048_119] : memref<16x3072xf32, #tpu.memory_space<vmem>>, vector<8x128xf32>
    %cst_120 = arith.constant dense<0.000000e+00> : vector<8x8xf32>
    %194 = tpu.matmul %191, %192, %cst_120 {dimension_numbers = #tpu.dot_dimension_numbers<[1], [1], [0], [0], [0, 0, 1, 0], [], []>} : vector<8x128xf32>, vector<8x128xf32>, vector<8x8xf32> -> vector<8x8xf32>
    %cst_121 = arith.constant dense<0xFF800000> : vector<8xf32>
    %195 = vector.multi_reduction <maximumf>, %194, %cst_121 [1] : vector<8x8xf32> to vector<8xf32>
    %196 = vector.shape_cast %195 : vector<8xf32> to vector<8x1xf32>
    %197 = vector.broadcast %196 : vector<8x1xf32> to vector<8x8xf32>
    %198 = arith.subf %194, %197 : vector<8x8xf32>
    %199 = math.exp %198 : vector<8x8xf32>
    %cst_122 = arith.constant dense<0.000000e+00> : vector<8xf32>
    %200 = vector.multi_reduction <add>, %199, %cst_122 [1] : vector<8x8xf32> to vector<8xf32>
    %201 = vector.shape_cast %200 : vector<8xf32> to vector<8x1xf32>
    %202 = tpu.reciprocal %201 {approx = true} : vector<8x1xf32> -> vector<8x1xf32>
    %203 = vector.broadcast %202 : vector<8x1xf32> to vector<8x8xf32>
    %204 = arith.mulf %199, %203 : vector<8x8xf32>
    %cst_123 = arith.constant dense<0.000000e+00> : vector<8x128xf32>
    %205 = tpu.matmul %204, %193, %cst_123 {dimension_numbers = #tpu.dot_dimension_numbers<[1], [0], [0], [1], [0, 0, 1, 1], [], []>} : vector<8x8xf32>, vector<8x128xf32>, vector<8x128xf32> -> vector<8x128xf32>
    %c8_124 = arith.constant 8 : index
    %c0_125 = arith.constant 0 : index
    %206 = vector.load %arg10[%c8_124, %c0_125] : memref<16x1024xf32, #tpu.memory_space<vmem>>, vector<8x128xf32>
    tpu.vector_store %arg10[%c8_124, %c0_125], %205 {strides = array<i32>} : memref<16x1024xf32, #tpu.memory_space<vmem>>, vector<8x128xf32>,
    %c8_126 = arith.constant 8 : index
    %c128_127 = arith.constant 128 : index
    %207 = vector.load %arg9[%c8_126, %c128_127] : memref<16x3072xf32, #tpu.memory_space<vmem>>, vector<8x128xf32>
    %c8_128 = arith.constant 8 : index
    %c1152_129 = arith.constant 1152 : index
    %208 = vector.load %arg9[%c8_128, %c1152_129] : memref<16x3072xf32, #tpu.memory_space<vmem>>, vector<8x128xf32>
    %c8_130 = arith.constant 8 : index
    %c2176_131 = arith.constant 2176 : index
    %209 = vector.load %arg9[%c8_130, %c2176_131] : memref<16x3072xf32, #tpu.memory_space<vmem>>, vector<8x128xf32>
    %cst_132 = arith.constant dense<0.000000e+00> : vector<8x8xf32>
    %210 = tpu.matmul %207, %208, %cst_132 {dimension_numbers = #tpu.dot_dimension_numbers<[1], [1], [0], [0], [0, 0, 1, 0], [], []>} : vector<8x128xf32>, vector<8x128xf32>, vector<8x8xf32> -> vector<8x8xf32>
    %cst_133 = arith.constant dense<0xFF800000> : vector<8xf32>
    %211 = vector.multi_reduction <maximumf>, %210, %cst_133 [1] : vector<8x8xf32> to vector<8xf32>
    %212 = vector.shape_cast %211 : vector<8xf32> to vector<8x1xf32>
    %213 = vector.broadcast %212 : vector<8x1xf32> to vector<8x8xf32>
    %214 = arith.subf %210, %213 : vector<8x8xf32>
    %215 = math.exp %214 : vector<8x8xf32>
    %cst_134 = arith.constant dense<0.000000e+00> : vector<8xf32>
    %216 = vector.multi_reduction <add>, %215, %cst_134 [1] : vector<8x8xf32> to vector<8xf32>
    %217 = vector.shape_cast %216 : vector<8xf32> to vector<8x1xf32>
    %218 = tpu.reciprocal %217 {approx = true} : vector<8x1xf32> -> vector<8x1xf32>
    %219 = vector.broadcast %218 : vector<8x1xf32> to vector<8x8xf32>
    %220 = arith.mulf %215, %219 : vector<8x8xf32>
    %cst_135 = arith.constant dense<0.000000e+00> : vector<8x128xf32>
    %221 = tpu.matmul %220, %209, %cst_135 {dimension_numbers = #tpu.dot_dimension_numbers<[1], [0], [0], [1], [0, 0, 1, 1], [], []>} : vector<8x8xf32>, vector<8x128xf32>, vector<8x128xf32> -> vector<8x128xf32>
    %c8_136 = arith.constant 8 : index
    %c128_137 = arith.constant 128 : index
    %222 = vector.load %arg10[%c8_136, %c128_137] : memref<16x1024xf32, #tpu.memory_space<vmem>>, vector<8x128xf32>
    tpu.vector_store %arg10[%c8_136, %c128_137], %221 {strides = array<i32>} : memref<16x1024xf32, #tpu.memory_space<vmem>>, vector<8x128xf32>,
    %c8_138 = arith.constant 8 : index
    %c256_139 = arith.constant 256 : index
    %223 = vector.load %arg9[%c8_138, %c256_139] : memref<16x3072xf32, #tpu.memory_space<vmem>>, vector<8x128xf32>
    %c8_140 = arith.constant 8 : index
    %c1280_141 = arith.constant 1280 : index
    %224 = vector.load %arg9[%c8_140, %c1280_141] : memref<16x3072xf32, #tpu.memory_space<vmem>>, vector<8x128xf32>
    %c8_142 = arith.constant 8 : index
    %c2304_143 = arith.constant 2304 : index
    %225 = vector.load %arg9[%c8_142, %c2304_143] : memref<16x3072xf32, #tpu.memory_space<vmem>>, vector<8x128xf32>
    %cst_144 = arith.constant dense<0.000000e+00> : vector<8x8xf32>
    %226 = tpu.matmul %223, %224, %cst_144 {dimension_numbers = #tpu.dot_dimension_numbers<[1], [1], [0], [0], [0, 0, 1, 0], [], []>} : vector<8x128xf32>, vector<8x128xf32>, vector<8x8xf32> -> vector<8x8xf32>
    %cst_145 = arith.constant dense<0xFF800000> : vector<8xf32>
    %227 = vector.multi_reduction <maximumf>, %226, %cst_145 [1] : vector<8x8xf32> to vector<8xf32>
    %228 = vector.shape_cast %227 : vector<8xf32> to vector<8x1xf32>
    %229 = vector.broadcast %228 : vector<8x1xf32> to vector<8x8xf32>
    %230 = arith.subf %226, %229 : vector<8x8xf32>
    %231 = math.exp %230 : vector<8x8xf32>
    %cst_146 = arith.constant dense<0.000000e+00> : vector<8xf32>
    %232 = vector.multi_reduction <add>, %231, %cst_146 [1] : vector<8x8xf32> to vector<8xf32>
    %233 = vector.shape_cast %232 : vector<8xf32> to vector<8x1xf32>
    %234 = tpu.reciprocal %233 {approx = true} : vector<8x1xf32> -> vector<8x1xf32>
    %235 = vector.broadcast %234 : vector<8x1xf32> to vector<8x8xf32>
    %236 = arith.mulf %231, %235 : vector<8x8xf32>
    %cst_147 = arith.constant dense<0.000000e+00> : vector<8x128xf32>
    %237 = tpu.matmul %236, %225, %cst_147 {dimension_numbers = #tpu.dot_dimension_numbers<[1], [0], [0], [1], [0, 0, 1, 1], [], []>} : vector<8x8xf32>, vector<8x128xf32>, vector<8x128xf32> -> vector<8x128xf32>
    %c8_148 = arith.constant 8 : index
    %c256_149 = arith.constant 256 : index
    %238 = vector.load %arg10[%c8_148, %c256_149] : memref<16x1024xf32, #tpu.memory_space<vmem>>, vector<8x128xf32>
    tpu.vector_store %arg10[%c8_148, %c256_149], %237 {strides = array<i32>} : memref<16x1024xf32, #tpu.memory_space<vmem>>, vector<8x128xf32>,
    %c8_150 = arith.constant 8 : index
    %c384_151 = arith.constant 384 : index
    %239 = vector.load %arg9[%c8_150, %c384_151] : memref<16x3072xf32, #tpu.memory_space<vmem>>, vector<8x128xf32>
    %c8_152 = arith.constant 8 : index
    %c1408_153 = arith.constant 1408 : index
    %240 = vector.load %arg9[%c8_152, %c1408_153] : memref<16x3072xf32, #tpu.memory_space<vmem>>, vector<8x128xf32>
    %c8_154 = arith.constant 8 : index
    %c2432_155 = arith.constant 2432 : index
    %241 = vector.load %arg9[%c8_154, %c2432_155] : memref<16x3072xf32, #tpu.memory_space<vmem>>, vector<8x128xf32>
    %cst_156 = arith.constant dense<0.000000e+00> : vector<8x8xf32>
    %242 = tpu.matmul %239, %240, %cst_156 {dimension_numbers = #tpu.dot_dimension_numbers<[1], [1], [0], [0], [0, 0, 1, 0], [], []>} : vector<8x128xf32>, vector<8x128xf32>, vector<8x8xf32> -> vector<8x8xf32>
    %cst_157 = arith.constant dense<0xFF800000> : vector<8xf32>
    %243 = vector.multi_reduction <maximumf>, %242, %cst_157 [1] : vector<8x8xf32> to vector<8xf32>
    %244 = vector.shape_cast %243 : vector<8xf32> to vector<8x1xf32>
    %245 = vector.broadcast %244 : vector<8x1xf32> to vector<8x8xf32>
    %246 = arith.subf %242, %245 : vector<8x8xf32>
    %247 = math.exp %246 : vector<8x8xf32>
    %cst_158 = arith.constant dense<0.000000e+00> : vector<8xf32>
    %248 = vector.multi_reduction <add>, %247, %cst_158 [1] : vector<8x8xf32> to vector<8xf32>
    %249 = vector.shape_cast %248 : vector<8xf32> to vector<8x1xf32>
    %250 = tpu.reciprocal %249 {approx = true} : vector<8x1xf32> -> vector<8x1xf32>
    %251 = vector.broadcast %250 : vector<8x1xf32> to vector<8x8xf32>
    %252 = arith.mulf %247, %251 : vector<8x8xf32>
    %cst_159 = arith.constant dense<0.000000e+00> : vector<8x128xf32>
    %253 = tpu.matmul %252, %241, %cst_159 {dimension_numbers = #tpu.dot_dimension_numbers<[1], [0], [0], [1], [0, 0, 1, 1], [], []>} : vector<8x8xf32>, vector<8x128xf32>, vector<8x128xf32> -> vector<8x128xf32>
    %c8_160 = arith.constant 8 : index
    %c384_161 = arith.constant 384 : index
    %254 = vector.load %arg10[%c8_160, %c384_161] : memref<16x1024xf32, #tpu.memory_space<vmem>>, vector<8x128xf32>
    tpu.vector_store %arg10[%c8_160, %c384_161], %253 {strides = array<i32>} : memref<16x1024xf32, #tpu.memory_space<vmem>>, vector<8x128xf32>,
    %c8_162 = arith.constant 8 : index
    %c512_163 = arith.constant 512 : index
    %255 = vector.load %arg9[%c8_162, %c512_163] : memref<16x3072xf32, #tpu.memory_space<vmem>>, vector<8x128xf32>
    %c8_164 = arith.constant 8 : index
    %c1536_165 = arith.constant 1536 : index
    %256 = vector.load %arg9[%c8_164, %c1536_165] : memref<16x3072xf32, #tpu.memory_space<vmem>>, vector<8x128xf32>
    %c8_166 = arith.constant 8 : index
    %c2560_167 = arith.constant 2560 : index
    %257 = vector.load %arg9[%c8_166, %c2560_167] : memref<16x3072xf32, #tpu.memory_space<vmem>>, vector<8x128xf32>
    %cst_168 = arith.constant dense<0.000000e+00> : vector<8x8xf32>
    %258 = tpu.matmul %255, %256, %cst_168 {dimension_numbers = #tpu.dot_dimension_numbers<[1], [1], [0], [0], [0, 0, 1, 0], [], []>} : vector<8x128xf32>, vector<8x128xf32>, vector<8x8xf32> -> vector<8x8xf32>
    %cst_169 = arith.constant dense<0xFF800000> : vector<8xf32>
    %259 = vector.multi_reduction <maximumf>, %258, %cst_169 [1] : vector<8x8xf32> to vector<8xf32>
    %260 = vector.shape_cast %259 : vector<8xf32> to vector<8x1xf32>
    %261 = vector.broadcast %260 : vector<8x1xf32> to vector<8x8xf32>
    %262 = arith.subf %258, %261 : vector<8x8xf32>
    %263 = math.exp %262 : vector<8x8xf32>
    %cst_170 = arith.constant dense<0.000000e+00> : vector<8xf32>
    %264 = vector.multi_reduction <add>, %263, %cst_170 [1] : vector<8x8xf32> to vector<8xf32>
    %265 = vector.shape_cast %264 : vector<8xf32> to vector<8x1xf32>
    %266 = tpu.reciprocal %265 {approx = true} : vector<8x1xf32> -> vector<8x1xf32>
    %267 = vector.broadcast %266 : vector<8x1xf32> to vector<8x8xf32>
    %268 = arith.mulf %263, %267 : vector<8x8xf32>
    %cst_171 = arith.constant dense<0.000000e+00> : vector<8x128xf32>
    %269 = tpu.matmul %268, %257, %cst_171 {dimension_numbers = #tpu.dot_dimension_numbers<[1], [0], [0], [1], [0, 0, 1, 1], [], []>} : vector<8x8xf32>, vector<8x128xf32>, vector<8x128xf32> -> vector<8x128xf32>
    %c8_172 = arith.constant 8 : index
    %c512_173 = arith.constant 512 : index
    %270 = vector.load %arg10[%c8_172, %c512_173] : memref<16x1024xf32, #tpu.memory_space<vmem>>, vector<8x128xf32>
    tpu.vector_store %arg10[%c8_172, %c512_173], %269 {strides = array<i32>} : memref<16x1024xf32, #tpu.memory_space<vmem>>, vector<8x128xf32>,
    %c8_174 = arith.constant 8 : index
    %c640_175 = arith.constant 640 : index
    %271 = vector.load %arg9[%c8_174, %c640_175] : memref<16x3072xf32, #tpu.memory_space<vmem>>, vector<8x128xf32>
    %c8_176 = arith.constant 8 : index
    %c1664_177 = arith.constant 1664 : index
    %272 = vector.load %arg9[%c8_176, %c1664_177] : memref<16x3072xf32, #tpu.memory_space<vmem>>, vector<8x128xf32>
    %c8_178 = arith.constant 8 : index
    %c2688_179 = arith.constant 2688 : index
    %273 = vector.load %arg9[%c8_178, %c2688_179] : memref<16x3072xf32, #tpu.memory_space<vmem>>, vector<8x128xf32>
    %cst_180 = arith.constant dense<0.000000e+00> : vector<8x8xf32>
    %274 = tpu.matmul %271, %272, %cst_180 {dimension_numbers = #tpu.dot_dimension_numbers<[1], [1], [0], [0], [0, 0, 1, 0], [], []>} : vector<8x128xf32>, vector<8x128xf32>, vector<8x8xf32> -> vector<8x8xf32>
    %cst_181 = arith.constant dense<0xFF800000> : vector<8xf32>
    %275 = vector.multi_reduction <maximumf>, %274, %cst_181 [1] : vector<8x8xf32> to vector<8xf32>
    %276 = vector.shape_cast %275 : vector<8xf32> to vector<8x1xf32>
    %277 = vector.broadcast %276 : vector<8x1xf32> to vector<8x8xf32>
    %278 = arith.subf %274, %277 : vector<8x8xf32>
    %279 = math.exp %278 : vector<8x8xf32>
    %cst_182 = arith.constant dense<0.000000e+00> : vector<8xf32>
    %280 = vector.multi_reduction <add>, %279, %cst_182 [1] : vector<8x8xf32> to vector<8xf32>
    %281 = vector.shape_cast %280 : vector<8xf32> to vector<8x1xf32>
    %282 = tpu.reciprocal %281 {approx = true} : vector<8x1xf32> -> vector<8x1xf32>
    %283 = vector.broadcast %282 : vector<8x1xf32> to vector<8x8xf32>
    %284 = arith.mulf %279, %283 : vector<8x8xf32>
    %cst_183 = arith.constant dense<0.000000e+00> : vector<8x128xf32>
    %285 = tpu.matmul %284, %273, %cst_183 {dimension_numbers = #tpu.dot_dimension_numbers<[1], [0], [0], [1], [0, 0, 1, 1], [], []>} : vector<8x8xf32>, vector<8x128xf32>, vector<8x128xf32> -> vector<8x128xf32>
    %c8_184 = arith.constant 8 : index
    %c640_185 = arith.constant 640 : index
    %286 = vector.load %arg10[%c8_184, %c640_185] : memref<16x1024xf32, #tpu.memory_space<vmem>>, vector<8x128xf32>
    tpu.vector_store %arg10[%c8_184, %c640_185], %285 {strides = array<i32>} : memref<16x1024xf32, #tpu.memory_space<vmem>>, vector<8x128xf32>,
    %c8_186 = arith.constant 8 : index
    %c768_187 = arith.constant 768 : index
    %287 = vector.load %arg9[%c8_186, %c768_187] : memref<16x3072xf32, #tpu.memory_space<vmem>>, vector<8x128xf32>
    %c8_188 = arith.constant 8 : index
    %c1792_189 = arith.constant 1792 : index
    %288 = vector.load %arg9[%c8_188, %c1792_189] : memref<16x3072xf32, #tpu.memory_space<vmem>>, vector<8x128xf32>
    %c8_190 = arith.constant 8 : index
    %c2816_191 = arith.constant 2816 : index
    %289 = vector.load %arg9[%c8_190, %c2816_191] : memref<16x3072xf32, #tpu.memory_space<vmem>>, vector<8x128xf32>
    %cst_192 = arith.constant dense<0.000000e+00> : vector<8x8xf32>
    %290 = tpu.matmul %287, %288, %cst_192 {dimension_numbers = #tpu.dot_dimension_numbers<[1], [1], [0], [0], [0, 0, 1, 0], [], []>} : vector<8x128xf32>, vector<8x128xf32>, vector<8x8xf32> -> vector<8x8xf32>
    %cst_193 = arith.constant dense<0xFF800000> : vector<8xf32>
    %291 = vector.multi_reduction <maximumf>, %290, %cst_193 [1] : vector<8x8xf32> to vector<8xf32>
    %292 = vector.shape_cast %291 : vector<8xf32> to vector<8x1xf32>
    %293 = vector.broadcast %292 : vector<8x1xf32> to vector<8x8xf32>
    %294 = arith.subf %290, %293 : vector<8x8xf32>
    %295 = math.exp %294 : vector<8x8xf32>
    %cst_194 = arith.constant dense<0.000000e+00> : vector<8xf32>
    %296 = vector.multi_reduction <add>, %295, %cst_194 [1] : vector<8x8xf32> to vector<8xf32>
    %297 = vector.shape_cast %296 : vector<8xf32> to vector<8x1xf32>
    %298 = tpu.reciprocal %297 {approx = true} : vector<8x1xf32> -> vector<8x1xf32>
    %299 = vector.broadcast %298 : vector<8x1xf32> to vector<8x8xf32>
    %300 = arith.mulf %295, %299 : vector<8x8xf32>
    %cst_195 = arith.constant dense<0.000000e+00> : vector<8x128xf32>
    %301 = tpu.matmul %300, %289, %cst_195 {dimension_numbers = #tpu.dot_dimension_numbers<[1], [0], [0], [1], [0, 0, 1, 1], [], []>} : vector<8x8xf32>, vector<8x128xf32>, vector<8x128xf32> -> vector<8x128xf32>
    %c8_196 = arith.constant 8 : index
    %c768_197 = arith.constant 768 : index
    %302 = vector.load %arg10[%c8_196, %c768_197] : memref<16x1024xf32, #tpu.memory_space<vmem>>, vector<8x128xf32>
    tpu.vector_store %arg10[%c8_196, %c768_197], %301 {strides = array<i32>} : memref<16x1024xf32, #tpu.memory_space<vmem>>, vector<8x128xf32>,
    %c8_198 = arith.constant 8 : index
    %c896_199 = arith.constant 896 : index
    %303 = vector.load %arg9[%c8_198, %c896_199] : memref<16x3072xf32, #tpu.memory_space<vmem>>, vector<8x128xf32>
    %c8_200 = arith.constant 8 : index
    %c1920_201 = arith.constant 1920 : index
    %304 = vector.load %arg9[%c8_200, %c1920_201] : memref<16x3072xf32, #tpu.memory_space<vmem>>, vector<8x128xf32>
    %c8_202 = arith.constant 8 : index
    %c2944_203 = arith.constant 2944 : index
    %305 = vector.load %arg9[%c8_202, %c2944_203] : memref<16x3072xf32, #tpu.memory_space<vmem>>, vector<8x128xf32>
    %cst_204 = arith.constant dense<0.000000e+00> : vector<8x8xf32>
    %306 = tpu.matmul %303, %304, %cst_204 {dimension_numbers = #tpu.dot_dimension_numbers<[1], [1], [0], [0], [0, 0, 1, 0], [], []>} : vector<8x128xf32>, vector<8x128xf32>, vector<8x8xf32> -> vector<8x8xf32>
    %cst_205 = arith.constant dense<0xFF800000> : vector<8xf32>
    %307 = vector.multi_reduction <maximumf>, %306, %cst_205 [1] : vector<8x8xf32> to vector<8xf32>
    %308 = vector.shape_cast %307 : vector<8xf32> to vector<8x1xf32>
    %309 = vector.broadcast %308 : vector<8x1xf32> to vector<8x8xf32>
    %310 = arith.subf %306, %309 : vector<8x8xf32>
    %311 = math.exp %310 : vector<8x8xf32>
    %cst_206 = arith.constant dense<0.000000e+00> : vector<8xf32>
    %312 = vector.multi_reduction <add>, %311, %cst_206 [1] : vector<8x8xf32> to vector<8xf32>
    %313 = vector.shape_cast %312 : vector<8xf32> to vector<8x1xf32>
    %314 = tpu.reciprocal %313 {approx = true} : vector<8x1xf32> -> vector<8x1xf32>
    %315 = vector.broadcast %314 : vector<8x1xf32> to vector<8x8xf32>
    %316 = arith.mulf %311, %315 : vector<8x8xf32>
    %cst_207 = arith.constant dense<0.000000e+00> : vector<8x128xf32>
    %317 = tpu.matmul %316, %305, %cst_207 {dimension_numbers = #tpu.dot_dimension_numbers<[1], [0], [0], [1], [0, 0, 1, 1], [], []>} : vector<8x8xf32>, vector<8x128xf32>, vector<8x128xf32> -> vector<8x128xf32>
    %c8_208 = arith.constant 8 : index
    %c896_209 = arith.constant 896 : index
    %318 = vector.load %arg10[%c8_208, %c896_209] : memref<16x1024xf32, #tpu.memory_space<vmem>>, vector<8x128xf32>
    tpu.vector_store %arg10[%c8_208, %c896_209], %317 {strides = array<i32>} : memref<16x1024xf32, #tpu.memory_space<vmem>>, vector<8x128xf32>,
    %c0_210 = arith.constant 0 : index
    %c0_211 = arith.constant 0 : index
    %c0_212 = arith.constant 0 : index
    %319 = vector.load %arg5[%c0_210, %c0_211, %c0_212] : memref<1x1024x960xi8, #tpu.memory_space<vmem>>, vector<1x1024x960xi8>
    %320 = vector.shape_cast %319 : vector<1x1024x960xi8> to vector<1024x960xi8>
    %321 = arith.sitofp %320 : vector<1024x960xi8> to vector<1024x960xf32>
    %322 = arith.truncf %321 : vector<1024x960xf32> to vector<1024x960xbf16>
    %c0_213 = arith.constant 0 : index
    %c0_214 = arith.constant 0 : index
    %323 = vector.load %arg10[%c0_213, %c0_214] : memref<16x1024xf32, #tpu.memory_space<vmem>>, vector<16x1024xf32>
    %324 = arith.truncf %323 : vector<16x1024xf32> to vector<16x1024xbf16>
    %cst_215 = arith.constant dense<0.000000e+00> : vector<16x960xf32>
    %325 = tpu.matmul %324, %322, %cst_215 {dimension_numbers = #tpu.dot_dimension_numbers<[1], [0], [0], [1], [0, 0, 1, 1], [], []>} : vector<16x1024xbf16>, vector<1024x960xbf16>, vector<16x960xf32> -> vector<16x960xf32>
    %326 = vector.broadcast %11 : vector<1x960xf32> to vector<16x960xf32>
    %327 = arith.mulf %325, %326 : vector<16x960xf32>
    %328 = vector.broadcast %9 : vector<1x960xf32> to vector<16x960xf32>
    %329 = arith.addf %327, %328 : vector<16x960xf32>
    %330 = arith.addf %329, %3 : vector<16x960xf32>
    %c0_216 = arith.constant 0 : index
    %c0_217 = arith.constant 0 : index
    %c0_218 = arith.constant 0 : index
    %331 = vector.load %arg6[%c0_216, %c0_217, %c0_218] : memref<1x16x16xf32, #tpu.memory_space<vmem>>, vector<1x16x16xf32>
    %332 = vector.shape_cast %331 : vector<1x16x16xf32> to vector<16x16xf32>
    %cst_219 = arith.constant dense<0.000000e+00> : vector<16x960xf32>
    %333 = tpu.matmul %332, %330, %cst_219 {dimension_numbers = #tpu.dot_dimension_numbers<[1], [0], [0], [1], [0, 0, 1, 1], [], []>} : vector<16x16xf32>, vector<16x960xf32>, vector<16x960xf32> -> vector<16x960xf32>
    %c0_220 = arith.constant 0 : index
    %c0_221 = arith.constant 0 : index
    %c0_222 = arith.constant 0 : index
    %334 = vector.load %arg7[%c0_220, %c0_221, %c0_222] : memref<1x16x1xf32, #tpu.memory_space<vmem>>, vector<1x16x1xf32>
    %335 = vector.shape_cast %334 : vector<1x16x1xf32> to vector<16x1xf32>
    %336 = vector.broadcast %335 : vector<16x1xf32> to vector<16x960xf32>
    %337 = arith.addf %333, %336 : vector<16x960xf32>
    %338 = math.tanh %337 : vector<16x960xf32>
    %c0_223 = arith.constant 0 : index
    %c0_224 = arith.constant 0 : index
    %339 = vector.load %arg8[%c0_223, %c0_224] : memref<16x960xf32, #tpu.memory_space<vmem>>, vector<16x960xf32>
    tpu.vector_store %arg8[%c0_223, %c0_224], %338 {strides = array<i32>} : memref<16x960xf32, #tpu.memory_space<vmem>>, vector<16x960xf32>,
    return
  }
  func.func @transform_0(%arg0: i32) -> (i32, i32) {
    %c0_i32 = arith.constant 0 : i32
    %c0_i32_0 = arith.constant 0 : i32
    %c0_i32_1 = arith.constant 0 : i32
    return %c0_i32, %c0_i32_0 : i32, i32
  }
  func.func @transform_1(%arg0: i32) -> (i32, i32, i32) {
    %c0_i32 = arith.constant 0 : i32
    %c0_i32_0 = arith.constant 0 : i32
    %c0_i32_1 = arith.constant 0 : i32
    return %arg0, %c0_i32, %c0_i32_0 : i32, i32, i32
  }
  func.func @transform_2(%arg0: i32) -> (i32, i32, i32) {
    %c0_i32 = arith.constant 0 : i32
    %c0_i32_0 = arith.constant 0 : i32
    %c0_i32_1 = arith.constant 0 : i32
    return %arg0, %c0_i32, %c0_i32_0 : i32, i32, i32
  }
  func.func @transform_3(%arg0: i32) -> (i32, i32, i32) {
    %c0_i32 = arith.constant 0 : i32
    %c0_i32_0 = arith.constant 0 : i32
    %c0_i32_1 = arith.constant 0 : i32
    return %arg0, %c0_i32, %c0_i32_0 : i32, i32, i32
  }
  func.func @transform_4(%arg0: i32) -> (i32, i32, i32) {
    %c0_i32 = arith.constant 0 : i32
    %c0_i32_0 = arith.constant 0 : i32
    %c0_i32_1 = arith.constant 0 : i32
    return %arg0, %c0_i32, %c0_i32_0 : i32, i32, i32
  }
  func.func @transform_5(%arg0: i32) -> (i32, i32, i32) {
    %c0_i32 = arith.constant 0 : i32
    %c0_i32_0 = arith.constant 0 : i32
    %c0_i32_1 = arith.constant 0 : i32
    return %arg0, %c0_i32, %c0_i32_0 : i32, i32, i32
  }
  func.func @transform_6(%arg0: i32) -> (i32, i32, i32) {
    %c0_i32 = arith.constant 0 : i32
    %c0_i32_0 = arith.constant 0 : i32
    %c0_i32_1 = arith.constant 0 : i32
    return %arg0, %c0_i32, %c0_i32_0 : i32, i32, i32
  }
  func.func @transform_7(%arg0: i32) -> (i32, i32) {
    %c0_i32 = arith.constant 0 : i32
    %c0_i32_0 = arith.constant 0 : i32
    %c0_i32_1 = arith.constant 0 : i32
    return %c0_i32, %c0_i32_0 : i32, i32
  }
}

</mosaic_0001>

<bundles_post_ra>
// kernel: atnet_forward.1
= control target key start
LH: loop header
LB: loop body
LE: loop exit
PB: predicated region body
PF: predicated region fallthrough
CT: control target
= control target key end

     0   :  { %12 = vsyncpa [#allocation5], 0  ;;  %s13019_s0 = inlined_call_operand.vmem [shape: f32[16,960], index: 0, kind: input, shape index: {}]   ;;  %s13020_s1 = inlined_call_operand.vmem [shape: f32[2,4,960], index: 1, kind: input, shape index: {}]   ;;  %s13021_s2 = inlined_call_operand.vmem [shape: f32[2,1,3072], index: 2, kind: input, shape index: {}]   ;;  %s13022_s3 = inlined_call_operand.hbm [shape: s8[2,960,3072], index: 3, kind: input, shape index: {}]   ;;  %s13023_s4 = inlined_call_operand.vmem [shape: s8[2,1024,960], index: 4, kind: input, shape index: {}]   ;;  %s13024_s5 = inlined_call_operand.vmem [shape: f32[2,16,16], index: 5, kind: input, shape index: {}]   ;;  %s13025_s6 = inlined_call_operand.vmem [shape: f32[2,16,1], index: 6, kind: input, shape index: {}]   ;;  %s13026_s7 = inlined_call_operand.vmem [shape: f32[16,960], index: 7, kind: output, shape index: {}]  }
   0x1   :  { %14 = vsyncpa [#allocation5 + $0x1], 0  ;;  %s10270_s24 = smov 0   ;;  %s10272_s25 = smov 0  }
   0x2   :  { %s10274_s26 = smov 0   ;;  %s10276_s27 = smov 0  }
   0x3 LB: > { %s10289_s28 = sadd.s32 4294967295, %s10222_s27   ;;  %s10292_s29 = sadd.s32 1, %s10222_s27   ;;  %s10222_s27 = sphi %s10276_s27, %s13173_s27   ;;  %s10218_s26 = sphi %s10274_s26, %s13172_s26   ;;  %s10214_s25 = sphi %s10272_s25, %s13171_s25   ;;  %s10210_s24 = sphi %s10270_s24, %s13170_s24  }
   0x4   : > { %s97_s30 = ssub.s32 %s10222_s27, %s10292_s29  ;;  %s100_s8 = sadd.s32 1, %s10218_s26 }
   0x5   : > { %p98_p0 = scmp.eq.s32.totalorder %s97_s30, 0  ;;  %p107_p1 = scmp.ne.s32.totalorder %s10218_s26, %s10214_s25 }
   0x6   : > { %p108_p2 = scmp.eq.s32.totalorder %s10222_s27, 0  ;;  %p113_p3 = scmp.ne.s32.totalorder %s10214_s25, %s10210_s24 }
   0x7   : > { %s10302_s9 = scalar_select %p98_p0, %s10218_s26, %s100_s8  }
   0x8   : > { %p109_p4 = por %p108_p2, %p107_p1  ;;  %p114_p5 = scmp.eq.s32.totalorder %s10289_s28, 0 }
   0x9   : > { %p10003_p6 = scmp.lt.s32.totalorder %s10222_s27, 2  ;;  %s254_s11 = sand.u32 1, %s10218_s26  }
   0xa   : > { %p10306_p7 = por %p114_p5, %p113_p3  ;;  %s9993_s12 = smul.u32 5760, %s254_s11 }
   0xb   : > { %s9994_s13 = smul.u32 92160, %s10222_s27  ;;  %p10312_p8 = pnand %p10003_p6, %p109_p4 }
   0xc   : > { %s13036_s10 = scalar_select %p10306_p7, 1, 0 }
   0xd   : > { %s10319_s17 = scalar_lea.hbm %s13022_s3, %s9994_s13  ;;  %s258_s18 = scalar_lea.vmem [#allocation4], %s9993_s12 }
   0xe   : > { %s265_s19 = sshll.u32 %s258_s18, 4  ;;  %s10324_s20 = scalar_lea.sflag [#allocation5], %s254_s11  ;;  %s10321_s19 = int_to_ptr.vmem [resolvable:$true] %s265_s19 }
   0xf   : > { %s10160_s21 = scalar_lea.hbm %s10319_s17, 92160  ;;  %p10162_p11 = pneg %p10312_p8 }
  0x10   : > { %p10161_p10 = scmp.ne.s32.totalorder %s10319_s17, %s10160_s21  ;;  %s10165_s24 = scalar_lea.hbm %s13022_s3, 184320 }
  0x11   : > { %p10166_p0 = scmp.lt.s32.totalorder %s10319_s17, %s13022_s3  ;;  %p10167_p1 = scmp.lt.s32.totalorder %s10165_s24, %s10160_s21 }
  0x12   : > { %p10163_p12 = pnand %p10162_p11, %p10161_p10 }
  0x13   : > { %p10168_p2 = por %p10167_p1, %p10166_p0 }
  0x14   : > { %p10164_p13 = pneg %p10163_p12 }
  0x16   : > { %p10169_p3 = pnand %p10168_p2, %p10164_p13 }
  0x18   : > { %10172 = shalt.err (!%p10169_p3)
}
  0x19   : > { %s10173_s11 = scalar_lea.vmem %s10321_s19, 92160  ;;  %s10224_s12 = smov [#allocation4]  }
  0x1a   : > { %p10174_p4 = scmp.ne.s32.totalorder %s10321_s19, %s10173_s11  ;;  %s10178_s13 = sshll.u32 %s10224_s12, 4  ;;  %s10179_s13 = int_to_ptr.vmem [resolvable:$false] %s10178_s13 }
  0x1b   : > { %s10180_s15 = scalar_lea.vmem %s10179_s13, 184320  ;;  %p10181_p10 = scmp.lt.s32.totalorder %s10321_s19, %s10179_s13 }
  0x1c   : > { %p10176_p5 = pnand %p10174_p4, %p10162_p11  ;;  %p10182_p12 = scmp.lt.s32.totalorder %s10180_s15, %s10173_s11 }
  0x1e   : > { %p10177_p6 = pneg %p10176_p5  ;;  %p10183_p9 = por %p10182_p12, %p10181_p10 }
  0x20   : > { %p10184_p7 = pnand %p10183_p9, %p10177_p6 }
  0x22   : > { %10187 = shalt.err (!%p10184_p7)
}
  0x23   : > { %s10225_s16 = smov 3072   ;;  %s10226_s18 = smov 192  }
  0x24   : > { %10002 = dma.hbm_to_vmem [thread:$0]  (!%p10312_p8), %s10319_s17, 92160, %s10321_s19, %s10324_s20, %s10225_s16, %s10225_s16, %s10226_s18  }
  0x25   : > { %p297_p11 = scmp.lt.s32.totalorder %s10222_s27, 3  ;;  %p13038_p13 = scmp.ge.s32.totalorder %s10222_s27, 1 }
  0x27   : > { %p298_p0 = pnand %p13038_p13, %p297_p11 }
  0x29   : > { %301 = sbr.rel (%p298_p0) target bundleno = 3483 (0xd9b), region = 48 }
  0x2e   : > { %s303_s21 = sand.u32 1, %s10214_s25   ;;  %p13039_p7 = scmp.ne.s32.totalorder %s13036_s10, 0 }
  0x2f   : > { %s9995_s22 = smul.u32 5760, %s303_s21  ;;  %s304_s23 = scalar_lea.sflag [#allocation5], %s303_s21 }
  0x31   : > { %s10349_s24 = scalar_lea.vmem [#allocation4], %s9995_s22 }
  0x32   : > { %10205 = dma.done.wait (%p13039_p7), %s304_s23, 92160  }
  0x33   : > { %10207 = vsyncadd (%p13039_p7), %s304_s23, 4294875136  ;;  %p357_p9 = scmp.lt.s32.totalorder %s10289_s28, 1  ;;  %p9723_p8 = scmp.ne.s32.totalorder %s10289_s28, 0 }
  0x35   : > { %s358_s14 = scalar_select %p357_p9, %s10289_s28, 1 }
  0x37   : > { %s9765_s17 = sshll.u32 %s358_s14, 5  ;;  %s9996_s27 = smul.u32 24, %s358_s14 }
  0x38   : > { %s10360_s30 = scalar_lea.vmem %s13020_s1, %s9765_s17  ;;  %s9766_s8 = sshll.u32 %s358_s14, 11 }
  0x39   : > { %s10365_s13 = scalar_lea.vmem %s13021_s2, %s9996_s27  ;;  %s10370_s16 = scalar_lea.vmem %s13023_s4, %s9766_s8 }
  0x3a   : > { %s9767_s18 = sshll.u32 %s358_s14, 4  ;;  %385 = sbr.rel (%p9723_p8) target bundleno = 72 (0x48), region = 56 }
  0x3b   : > { %s10375_s23 = scalar_lea.vmem %s13024_s5, %s9767_s18  ;;  %s10380_s20 = scalar_lea.vmem %s13025_s6, %s9767_s18 }
  0x3f   : > { %v386_v0 = vld [vmem:[%s13019_s0] sm:$0xff]  ;;  %v387_v1 = vld [vmem:[%s13019_s0 + $0x8] sm:$0xff]  ;;  %v388_v2 = vld [vmem:[%s13019_s0 + $0x10] sm:$0xff]  ;;  %vm409_vm0 = vcmask 523264  }
  0x40   : > { %402 = vst [vmem:[%s13026_s7] sm:$0xff] %v386_v0  ;;  %403 = vst [vmem:[%s13026_s7 + $0x8] sm:$0xff] %v387_v1  ;;  %v389_v3 = vld [vmem:[%s13019_s0 + $0x18] sm:$0xff]  ;;  %v390_v4 = vld [vmem:[%s13019_s0 + $0x20] sm:$0xff] }
  0x41   : > { %404 = vst [vmem:[%s13026_s7 + $0x10] sm:$0xff] %v388_v2  ;;  %v391_v5 = vld [vmem:[%s13019_s0 + $0x28] sm:$0xff]  ;;  %405 = vst [vmem:[%s13026_s7 + $0x18] sm:$0xff] %v389_v3  ;;  %v392_v6 = vld [vmem:[%s13019_s0 + $0x30] sm:$0xff] }
  0x42   : > { %406 = vst [vmem:[%s13026_s7 + $0x20] sm:$0xff] %v390_v4  ;;  %407 = vst [vmem:[%s13026_s7 + $0x28] sm:$0xff] %v391_v5  ;;  %v393_v7 = vld [vmem:[%s13019_s0 + $0x38] sm:$0xff]  ;;  %v394_v8 = vld [vmem:[%s13019_s0 + $0x40] sm:$0xff] }
  0x43   : > { %408 = vst [vmem:[%s13026_s7 + $0x30] sm:$0xff] %v392_v6  ;;  %410 = vst.msk [vmem:[%s13026_s7 + $0x38] sm:$0xff] %vm409_vm0, %v393_v7  ;;  %v395_v9 = vld [vmem:[%s13019_s0 + $0x48] sm:$0xff]  ;;  %v396_v10 = vld [vmem:[%s13019_s0 + $0x50] sm:$0xff] }
  0x44   : > { %411 = vst [vmem:[%s13026_s7 + $0x40] sm:$0xff] %v394_v8  ;;  %v397_v11 = vld [vmem:[%s13019_s0 + $0x58] sm:$0xff]  ;;  %412 = vst [vmem:[%s13026_s7 + $0x48] sm:$0xff] %v395_v9  ;;  %v398_v12 = vld [vmem:[%s13019_s0 + $0x60] sm:$0xff] }
  0x45   : > { %413 = vst [vmem:[%s13026_s7 + $0x50] sm:$0xff] %v396_v10  ;;  %414 = vst [vmem:[%s13026_s7 + $0x58] sm:$0xff] %v397_v11  ;;  %v399_v13 = vld [vmem:[%s13019_s0 + $0x68] sm:$0xff]  ;;  %v400_v14 = vld [vmem:[%s13019_s0 + $0x70] sm:$0xff] }
  0x46   : > { %415 = vst [vmem:[%s13026_s7 + $0x60] sm:$0xff] %v398_v12  ;;  %416 = vst [vmem:[%s13026_s7 + $0x68] sm:$0xff] %v399_v13  ;;  %v401_v15 = vld [vmem:[%s13019_s0 + $0x78] sm:$0xff] }
  0x47   : > { %417 = vst [vmem:[%s13026_s7 + $0x70] sm:$0xff] %v400_v14  ;;  %418 = vst.msk [vmem:[%s13026_s7 + $0x78] sm:$0xff] %vm409_vm0, %v401_v15 }
  0x48 PF: > { %v10484_v16 = vld [vmem:[%s13026_s7] sm:$0xff]  ;;  %v10489_v17 = vld [vmem:[%s13026_s7 + $0x8] sm:$0xff]  ;;  %v10494_v18 = vld [vmem:[%s13026_s7 + $0x10] sm:$0xff]  ;;  %vm448_vm1 = vcmask 523264   ;;  %vm10228_vm2 = vmmov 0   ;;  %vm5184_vm3 = vcmask 64512  }
  0x49   : > { %v442_v19 = vadd.f32 %v10489_v17, %v10484_v16  ;;  %v10501_v20 = vld [vmem:[%s13026_s7 + $0x18] sm:$0xff]  ;;  %v10522_v25 = vld [vmem:[%s13026_s7 + $0x20] sm:$0xff]  ;;  %v10535_v29 = vld [vmem:[%s13026_s7 + $0x28] sm:$0xff]  ;;  %vm9264_vm4 = vcmask 130048  }
  0x4a   : > { %v10541_v31 = vld [vmem:[%s13026_s7 + $0x38] sm:$0xff]  ;;  %v10552_v34 = vld [vmem:[%s13026_s7 + $0x30] sm:$0xff]  ;;  %v687_v48 = vld [vmem:[%s10349_s24 + $0x248] sm:$0xff] }
  0x4b   : > { %v10506_v21 = vld [vmem:[%s13026_s7 + $0x40] sm:$0xff]  ;;  %v443_v22 = vadd.f32 %v442_v19, %v10494_v18  ;;  %v10512_v23 = vld [vmem:[%s13026_s7 + $0x48] sm:$0xff]  ;;  %v449_v38 = vsel %vm448_vm1, %v10541_v31, 0.0  ;;  %v951_v51 = vunpack.c.l.s8.bf16 %v687_v48  ;;  %v959_v52 = vunpack.c.h.s8.bf16 %v687_v48 }
  0x4c   : > { %v10517_v24 = vld [vmem:[%s13026_s7 + $0x50] sm:$0xff]  ;;  %v453_v26 = vadd.f32 %v10512_v23, %v10506_v21  ;;  %v10530_v28 = vld [vmem:[%s13026_s7 + $0x58] sm:$0xff]  ;;  %v751_v49 = vld [vmem:[%s10349_s24 + $0x848] sm:$0xff] }
  0x4d   : > { %v444_v27 = vadd.f32 %v443_v22, %v10501_v20  ;;  %v10547_v33 = vld [vmem:[%s13026_s7 + $0x60] sm:$0xff]  ;;  %v10559_v37 = vld [vmem:[%s13026_s7 + $0x68] sm:$0xff]  ;;  %v1079_v53 = vunpack.c.l.s8.bf16 %v751_v49  ;;  %v1087_v54 = vunpack.c.h.s8.bf16 %v751_v49  ;;  %1385 = vmatprep.subr.bf16.mxu0 %v959_v52 }
  0x4e   : > { %v454_v30 = vadd.f32 %v453_v26, %v10517_v24  ;;  %v10566_v39 = vld [vmem:[%s13026_s7 + $0x78] sm:$0xff]  ;;  %v10573_v42 = vld [vmem:[%s13026_s7 + $0x70] sm:$0xff]  ;;  %v686_v50 = vld [vmem:[%s10349_s24 + $0x240] sm:$0xff] }
  0x4f   : > { %v445_v32 = vadd.f32 %v444_v27, %v10522_v25  ;;  %v459_v45 = vsel %vm448_vm1, %v10566_v39, 0.0  ;;  %v750_v55 = vld [vmem:[%s10349_s24 + $0x840] sm:$0xff]  ;;  %v958_v56 = vunpack.c.h.s8.bf16 %v686_v50  ;;  %v679_v58 = vld [vmem:[%s10349_s24 + $0x188] sm:$0xff]  ;;  %1428 = vmatprep.subr.bf16.mxu1 %v1087_v54  ;;  %v950_v60 = vunpack.c.l.s8.bf16 %v686_v50 }
  0x50   : > { %v455_v35 = vadd.f32 %v454_v30, %v10530_v28  ;;  %v1086_v57 = vunpack.c.h.s8.bf16 %v750_v55  ;;  %v743_v59 = vld [vmem:[%s10349_s24 + $0x788] sm:$0xff]  ;;  %v1078_v61 = vunpack.c.l.s8.bf16 %v750_v55  ;;  %v943_v62 = vunpack.c.h.s8.bf16 %v679_v58  ;;  %v678_v0 = vld [vmem:[%s10349_s24 + $0x180] sm:$0xff] }
  0x51   : > { %v446_v36 = vadd.f32 %v445_v32, %v10535_v29  ;;  %1386 = vmatpush1.bf16.msra.mxu0 %v958_v56  ;;  %v1071_v63 = vunpack.c.h.s8.bf16 %v743_v59  ;;  %v742_v1 = vld [vmem:[%s10349_s24 + $0x780] sm:$0xff]  ;;  %v942_v2 = vunpack.c.h.s8.bf16 %v678_v0  ;;  %v935_v4 = vunpack.c.l.s8.bf16 %v679_v58  ;;  %v671_v6 = vld [vmem:[%s10349_s24 + $0xc8] sm:$0xff] }
  0x52   : > { %v456_v40 = vadd.f32 %v455_v35, %v10547_v33  ;;  %1429 = vmatpush1.bf16.msra.mxu1 %v1086_v57  ;;  %1387 = vmatprep.subr.bf16.mxu0 %v951_v51  ;;  %v1070_v3 = vunpack.c.h.s8.bf16 %v742_v1  ;;  %v1063_v5 = vunpack.c.l.s8.bf16 %v743_v59  ;;  %v735_v7 = vld [vmem:[%s10349_s24 + $0x6c8] sm:$0xff]  ;;  %v934_v8 = vunpack.c.l.s8.bf16 %v678_v0  ;;  %v670_v12 = vld [vmem:[%s10349_s24 + $0xc0] sm:$0xff] }
  0x53   : > { %v447_v41 = vadd.f32 %v446_v36, %v10552_v34  ;;  %1430 = vmatprep.subr.bf16.mxu1 %v1079_v53  ;;  %v1062_v9 = vunpack.c.l.s8.bf16 %v742_v1  ;;  %v927_v10 = vunpack.c.h.s8.bf16 %v671_v6  ;;  %v1055_v11 = vunpack.c.h.s8.bf16 %v735_v7  ;;  %v734_v13 = vld [vmem:[%s10349_s24 + $0x6c0] sm:$0xff]  ;;  %v663_v26 = vld [vmem:[%s10349_s24 + $0x8] sm:$0xff] }
  0x54   : > { %v457_v43 = vadd.f32 %v456_v40, %v10559_v37  ;;  %v926_v14 = vunpack.c.h.s8.bf16 %v670_v12  ;;  %v1054_v15 = vunpack.c.h.s8.bf16 %v734_v13  ;;  %v919_v19 = vunpack.c.l.s8.bf16 %v671_v6  ;;  %v727_v27 = vld [vmem:[%s10349_s24 + $0x608] sm:$0xff]  ;;  %v726_v40 = vld [vmem:[%s10349_s24 + $0x600] sm:$0xff] }
  0x55   : > { %v450_v44 = vadd.f32 %v449_v38, %v447_v41  ;;  %1388 = vmatpush1.bf16.msra.mxu0 %v950_v60  ;;  %v1047_v22 = vunpack.c.l.s8.bf16 %v735_v7  ;;  %v918_v30 = vunpack.c.l.s8.bf16 %v670_v12  ;;  %v1046_v32 = vunpack.c.l.s8.bf16 %v734_v13  ;;  %v662_v38 = vld [vmem:[%s10349_s24] sm:$0xff] }
  0x56   : > { %v458_v46 = vadd.f32 %v457_v43, %v10573_v42  ;;  %1431 = vmatpush1.bf16.msra.mxu1 %v1078_v61  ;;  %1389 = vmatprep.subr.bf16.mxu0 %v943_v62  ;;  %v911_v35 = vunpack.c.h.s8.bf16 %v663_v26  ;;  %v1039_v36 = vunpack.c.h.s8.bf16 %v727_v27  ;;  %v910_v41 = vunpack.c.h.s8.bf16 %v662_v38  ;;  %v10604_v52 = vld [vmem:[%s10349_s24 + $0x540] sm:$0xff] }
  0x57   : > { %451 = vadd.xlane.f32.xlu0 %v450_v44  ;;  %1432 = vmatprep.subr.bf16.mxu1 %v1071_v63  ;;  %v1038_v43 = vunpack.c.h.s8.bf16 %v726_v40  ;;  %v903_v44 = vunpack.c.l.s8.bf16 %v663_v26  ;;  %v902_v48 = vunpack.c.l.s8.bf16 %v662_v38  ;;  %v1030_v49 = vunpack.c.l.s8.bf16 %v726_v40  ;;  %v10607_v53 = vld [vmem:[%s10349_s24 + $0xb40] sm:$0xff] }
  0x58   : > { %v460_v47 = vadd.f32 %v459_v45, %v458_v46  ;;  %v1031_v45 = vunpack.c.l.s8.bf16 %v727_v27  ;;  %v10596_v46 = vld [vmem:[%s10349_s24 + $0x548] sm:$0xff]  ;;  %v1022_v54 = vunpack.c.h.s8.bf16 %v10604_v52  ;;  %v1150_v55 = vunpack.c.h.s8.bf16 %v10607_v53 }
  0x59   : > { %1390 = vmatpush1.bf16.msra.mxu0 %v942_v2  ;;  %v1023_v50 = vunpack.c.h.s8.bf16 %v10596_v46 }
  0x5a   : > { %1433 = vmatpush1.bf16.msra.mxu1 %v1070_v3  ;;  %1391 = vmatprep.subr.bf16.mxu0 %v935_v4 }
  0x5b   : > { %461 = vadd.xlane.f32.xlu0 %v460_v47  ;;  %1434 = vmatprep.subr.bf16.mxu1 %v1063_v5  ;;  %v10599_v47 = vld [vmem:[%s10349_s24 + $0xb48] sm:$0xff] }
  0x5c   : > { %v1151_v51 = vunpack.c.h.s8.bf16 %v10599_v47 }
  0x5d   : > { %1392 = vmatpush1.bf16.msra.mxu0 %v934_v8 }
  0x5e   : > { %1435 = vmatpush1.bf16.msra.mxu1 %v1062_v9  ;;  %1393 = vmatprep.subr.bf16.mxu0 %v927_v10 }
  0x5f   : > { %1436 = vmatprep.subr.bf16.mxu1 %v1055_v11 }
  0x61   : > { %1394 = vmatpush1.bf16.msra.mxu0 %v926_v14 }
  0x62   : > { %1437 = vmatpush1.bf16.msra.mxu1 %v1054_v15  ;;  %1395 = vmatprep.subr.bf16.mxu0 %v919_v19 }
  0x63   : > { %1438 = vmatprep.subr.bf16.mxu1 %v1047_v22 }
  0x65   : > { %1396 = vmatpush1.bf16.msra.mxu0 %v918_v30 }
  0x66   : > { %1439 = vmatpush1.bf16.msra.mxu1 %v1046_v32  ;;  %1397 = vmatprep.subr.bf16.mxu0 %v911_v35 }
  0x67   : > { %1440 = vmatprep.subr.bf16.mxu1 %v1039_v36 }
  0x69   : > { %1398 = vmatpush1.bf16.msra.mxu0 %v910_v41 }
  0x6a   : > { %1441 = vmatpush1.bf16.msra.mxu1 %v1038_v43  ;;  %1399 = vmatprep.subr.bf16.mxu0 %v903_v44  ;;  %v1015_v44 = vunpack.c.l.s8.bf16 %v10596_v46 }
  0x6b   : > { %1442 = vmatprep.subr.bf16.mxu1 %v1031_v45  ;;  %v1143_v45 = vunpack.c.l.s8.bf16 %v10599_v47 }
  0x6d   : > { %1400 = vmatpush1.bf16.msra.mxu0 %v902_v48  ;;  %v1014_v48 = vunpack.c.l.s8.bf16 %v10604_v52 }
  0x6e   : > { %1443 = vmatpush1.bf16.msra.mxu1 %v1030_v49  ;;  %1401 = vmatprep.subr.bf16.mxu0 %v1023_v50  ;;  %v1142_v49 = vunpack.c.l.s8.bf16 %v10607_v53  ;;  %v711_v50 = vld [vmem:[%s10349_s24 + $0x488] sm:$0xff] }
  0x6f   : > { %1444 = vmatprep.subr.bf16.mxu1 %v1151_v51  ;;  %v775_v51 = vld [vmem:[%s10349_s24 + $0xa88] sm:$0xff]  ;;  %v999_v47 = vunpack.c.l.s8.bf16 %v711_v50 }
  0x70   : > { %v1127_v52 = vunpack.c.l.s8.bf16 %v775_v51  ;;  %v703_v53 = vld [vmem:[%s10349_s24 + $0x3c8] sm:$0xff] }
  0x71   : > { %1402 = vmatpush2.bf16.msra.mxu0 %v1022_v54  ;;  %v1007_v54 = vunpack.c.h.s8.bf16 %v711_v50 }
  0x72   : > { %1445 = vmatpush2.bf16.msra.mxu1 %v1150_v55  ;;  %1403 = vmatprep.subr.bf16.mxu0 %v1015_v44  ;;  %v1135_v55 = vunpack.c.h.s8.bf16 %v775_v51  ;;  %v10723_v51 = vld [vmem:[%s10360_s30] ss:$4 sm:$0xff] }
  0x73   : > { %1446 = vmatprep.subr.bf16.mxu1 %v1143_v45 }
  0x75   : > { %1404 = vmatpush2.bf16.msra.mxu0 %v1014_v48 }
  0x76   : > { %1447 = vmatpush2.bf16.msra.mxu1 %v1142_v49  ;;  %1405 = vmatprep.subr.bf16.mxu0 %v1007_v54 }
  0x77   : > { %1448 = vmatprep.subr.bf16.mxu1 %v1135_v55 }
  0xe0   : > { %v452_v56 = vpop.xlane.xlu0 %451 }
  0xe1   : > { %v464_v57 = vmul.f32 0.0010416667, %v452_v56  ;;  %v710_v56 = vld [vmem:[%s10349_s24 + $0x480] sm:$0xff] }
  0xe3   : > { %v10612_v58 = vsub.f32 %v10484_v16, %v464_v57  ;;  %v10615_v59 = vsub.f32 %v10489_v17, %v464_v57  ;;  %v10618_v60 = vsub.f32 %v10494_v18, %v464_v57  ;;  %v10621_v63 = vsub.f32 %v10501_v20, %v464_v57 }
  0xe4   : > { %v462_v61 = vpop.xlane.xlu0 %461  ;;  %v10628_v16 = vsub.f32 %v10522_v25, %v464_v57  ;;  %v10642_v4 = vsub.f32 %v10535_v29, %v464_v57  ;;  %v10647_v6 = vsub.f32 %v10541_v31, %v464_v57 }
  0xe5   : > { %v465_v62 = vmul.f32 0.0010416667, %v462_v61  ;;  %v482_v0 = vmul.f32 %v10612_v58, %v10612_v58  ;;  %v483_v1 = vmul.f32 %v10615_v59, %v10615_v59  ;;  %v484_v17 = vmul.f32 %v10618_v60, %v10618_v60 }
  0xe6   : > { %v485_v25 = vmul.f32 %v10621_v63, %v10621_v63  ;;  %v486_v29 = vmul.f32 %v10628_v16, %v10628_v16  ;;  %v487_v10 = vmul.f32 %v10642_v4, %v10642_v4  ;;  %v489_v12 = vmul.f32 %v10647_v6, %v10647_v6 }
  0xe7   : > { %v498_v2 = vadd.f32 %v483_v1, %v482_v0  ;;  %v10633_v18 = vsub.f32 %v10506_v21, %v465_v62  ;;  %v10636_v3 = vsub.f32 %v10512_v23, %v465_v62  ;;  %v10639_v20 = vsub.f32 %v10517_v24, %v465_v62 }
  0xe8   : > { %v10650_v7 = vsub.f32 %v10530_v28, %v465_v62  ;;  %v10657_v24 = vsub.f32 %v10552_v34, %v464_v57  ;;  %v10662_v9 = vsub.f32 %v10547_v33, %v465_v62  ;;  %v10671_v34 = vsub.f32 %v10559_v37, %v465_v62  ;;  %v774_v57 = vld [vmem:[%s10349_s24 + $0xa80] sm:$0xff] }
  0xe9   : > { %v499_v5 = vadd.f32 %v498_v2, %v484_v17  ;;  %v490_v21 = vmul.f32 %v10633_v18, %v10633_v18  ;;  %v491_v23 = vmul.f32 %v10636_v3, %v10636_v3  ;;  %v492_v28 = vmul.f32 %v10639_v20, %v10639_v20 }
  0xea   : > { %v493_v13 = vmul.f32 %v10650_v7, %v10650_v7  ;;  %v488_v33 = vmul.f32 %v10657_v24, %v10657_v24  ;;  %v10678_v19 = vsub.f32 %v10566_v39, %v465_v62  ;;  %v10681_v22 = vsub.f32 %v10573_v42, %v465_v62  ;;  %v767_v62 = vld [vmem:[%s10349_s24 + $0x9c8] sm:$0xff] }
  0xeb   : > { %v500_v8 = vadd.f32 %v499_v5, %v485_v25  ;;  %v508_v31 = vadd.f32 %v491_v23, %v490_v21  ;;  %v494_v26 = vmul.f32 %v10662_v9, %v10662_v9  ;;  %v504_v30 = vsel %vm448_vm1, %v489_v12, 0.0  ;;  %v702_v25 = vld [vmem:[%s10349_s24 + $0x3c0] sm:$0xff] }
  0xec   : > { %v495_v32 = vmul.f32 %v10671_v34, %v10671_v34  ;;  %v497_v38 = vmul.f32 %v10678_v19, %v10678_v19  ;;  %v496_v39 = vmul.f32 %v10681_v22, %v10681_v22  ;;  %v1006_v61 = vunpack.c.h.s8.bf16 %v710_v56  ;;  %v766_v5 = vld [vmem:[%s10349_s24 + $0x9c0] sm:$0xff] }
  0xed   : > { %v501_v11 = vadd.f32 %v500_v8, %v486_v29  ;;  %v509_v14 = vadd.f32 %v508_v31, %v492_v28  ;;  %v1134_v46 = vunpack.c.h.s8.bf16 %v774_v57  ;;  %v998_v0 = vunpack.c.l.s8.bf16 %v710_v56  ;;  %v695_v28 = vld [vmem:[%s10349_s24 + $0x308] sm:$0xff] }
  0xee   : > { %v514_v41 = vsel %vm448_vm1, %v497_v38, 0.0  ;;  %1406 = vmatpush2.bf16.msra.mxu0 %v1006_v61  ;;  %v1126_v1 = vunpack.c.l.s8.bf16 %v774_v57  ;;  %v991_v17 = vunpack.c.h.s8.bf16 %v703_v53  ;;  %v1119_v2 = vunpack.c.h.s8.bf16 %v767_v62  ;;  %v759_v31 = vld [vmem:[%s10349_s24 + $0x908] sm:$0xff] }
  0xef   : > { %v502_v15 = vadd.f32 %v501_v11, %v487_v10  ;;  %v510_v27 = vadd.f32 %v509_v14, %v493_v13  ;;  %1449 = vmatpush2.bf16.msra.mxu1 %v1134_v46  ;;  %1407 = vmatprep.subr.bf16.mxu0 %v999_v47  ;;  %v990_v21 = vunpack.c.h.s8.bf16 %v702_v25  ;;  %v1118_v23 = vunpack.c.h.s8.bf16 %v766_v5  ;;  %v694_v14 = vld [vmem:[%s10349_s24 + $0x300] sm:$0xff] }
  0xf0   : > { %1450 = vmatprep.subr.bf16.mxu1 %v1127_v52  ;;  %v983_v29 = vunpack.c.l.s8.bf16 %v703_v53  ;;  %v1111_v8 = vunpack.c.l.s8.bf16 %v767_v62  ;;  %v982_v10 = vunpack.c.l.s8.bf16 %v702_v25  ;;  %v1110_v11 = vunpack.c.l.s8.bf16 %v766_v5  ;;  %v10744_v47 = vld [vmem:[%s10360_s30 + $0x1] ss:$4 sm:$0xff] }
  0xf1   : > { %v503_v37 = vadd.f32 %v502_v15, %v488_v33  ;;  %v511_v35 = vadd.f32 %v510_v27, %v494_v26  ;;  %v975_v12 = vunpack.c.h.s8.bf16 %v695_v28  ;;  %v1103_v13 = vunpack.c.h.s8.bf16 %v759_v31  ;;  %v758_v33 = vld [vmem:[%s10349_s24 + $0x900] sm:$0xff] }
  0xf2   : > { %1408 = vmatpush2.bf16.msra.mxu0 %v998_v0  ;;  %v974_v15 = vunpack.c.h.s8.bf16 %v694_v14  ;;  %v1102_v26 = vunpack.c.h.s8.bf16 %v758_v33  ;;  %v967_v27 = vunpack.c.l.s8.bf16 %v695_v28 }
  0xf3   : > { %v505_v36 = vadd.f32 %v504_v30, %v503_v37  ;;  %v512_v42 = vadd.f32 %v511_v35, %v495_v32  ;;  %1451 = vmatpush2.bf16.msra.mxu1 %v1126_v1  ;;  %1409 = vmatprep.subr.bf16.mxu0 %v991_v17  ;;  %v1095_v37 = vunpack.c.l.s8.bf16 %v759_v31  ;;  %v966_v30 = vunpack.c.l.s8.bf16 %v694_v14  ;;  %v10710_v35 = vld [vmem:[%s10349_s24 + $0xe48] sm:$0xff]  ;;  %v10775_v31 = vld [vmem:[%s10349_s24 + $0xe40] sm:$0xff] }
  0xf4   : > { %1452 = vmatprep.subr.bf16.mxu1 %v1119_v2  ;;  %v1094_v32 = vunpack.c.l.s8.bf16 %v758_v33  ;;  %v1215_v38 = vunpack.c.h.s8.bf16 %v10710_v35  ;;  %v1214_v14 = vunpack.c.h.s8.bf16 %v10775_v31 }
  0xf5   : > { %506 = vadd.xlane.f32.xlu1 %v505_v36  ;;  %v513_v40 = vadd.f32 %v512_v42, %v496_v39  ;;  %v10713_v36 = vld [vmem:[%s10349_s24 + $0x1448] sm:$0xff] }
  0xf6   : > { %1410 = vmatpush2.bf16.msra.mxu0 %v990_v21  ;;  %v1343_v39 = vunpack.c.h.s8.bf16 %v10713_v36 }
  0xf7   : > { %v515_v43 = vadd.f32 %v514_v41, %v513_v40  ;;  %1453 = vmatpush2.bf16.msra.mxu1 %v1118_v23  ;;  %1411 = vmatprep.subr.bf16.mxu0 %v983_v29 }
  0xf8   : > { %1454 = vmatprep.subr.bf16.mxu1 %v1111_v8 }
  0xf9   : > { %516 = vadd.xlane.f32.xlu1 %v515_v43  ;;  %v541_v43 = vlaneseq }
  0xfa   : > { %1412 = vmatpush2.bf16.msra.mxu0 %v982_v10 }
  0xfb   : > { %1455 = vmatpush2.bf16.msra.mxu1 %v1110_v11  ;;  %1413 = vmatprep.subr.bf16.mxu0 %v975_v12  ;;  %v10717_v49 = vshrl.u32 %v541_v43, 7 }
  0xfc   : > { %1456 = vmatprep.subr.bf16.mxu1 %v1103_v13 }
  0xfd   : > { %v10720_v50 = vsub.s32 1, %v10717_v49  ;;  %v10726_v54 = vsub.s32 3, %v10717_v49  ;;  %v10729_v55 = vsub.s32 0, %v10717_v49  ;;  %v10732_v56 = vsub.s32 2, %v10717_v49 }
  0xfe   : > { %1414 = vmatpush2.bf16.msra.mxu0 %v974_v15  ;;  %v10735_v57 = vsub.s32 5, %v10717_v49  ;;  %v10738_v61 = vsub.s32 7, %v10717_v49  ;;  %v10741_v46 = vsub.s32 4, %v10717_v49 }
  0xff   : > { %1457 = vmatpush2.bf16.msra.mxu1 %v1102_v26  ;;  %1415 = vmatprep.subr.bf16.mxu0 %v967_v27  ;;  %v548_v52 = vrot.slane %v10723_v51, %v10720_v50  ;;  %v556_v53 = vrot.slane %v10723_v51, %v10726_v54  ;;  %v544_v62 = vrot.slane %v10723_v51, %v10729_v55 }
 0x100   : > { %1458 = vmatprep.subr.bf16.mxu1 %v1095_v37  ;;  %13040 = vst [vmem:[#allocation7_spill] sm:$0xff] %v10735_v57  ;;  %13041 = vst [vmem:[#allocation8_spill] sm:$0xff] %v10738_v61  ;;  %v552_v0 = vrot.slane %v10723_v51, %v10732_v56  ;;  %v564_v1 = vrot.slane %v10723_v51, %v10735_v57  ;;  %v605_v2 = vrot.slane %v10744_v47, %v10720_v50 }
 0x101   : > { %13042 = vst [vmem:[#allocation9_spill] sm:$0xff] %v10741_v46  ;;  %v613_v25 = vrot.slane %v10744_v47, %v10726_v54  ;;  %v572_v5 = vrot.slane %v10723_v51, %v10738_v61  ;;  %v560_v21 = vrot.slane %v10723_v51, %v10741_v46  ;;  %v601_v10 = vrot.slane %v10744_v47, %v10729_v55 }
 0x102   : > { %1416 = vmatpush2.bf16.msra.mxu0 %v966_v30  ;;  %v629_v33 = vrot.slane %v10744_v47, %v10738_v61 }
 0x103   : > { %1459 = vmatpush2.bf16.msra.mxu1 %v1094_v32  ;;  %1471 = vmatprep.subr.bf16.mxu0 %v1215_v38 }
 0x104   : > { %1514 = vmatprep.subr.bf16.mxu1 %v1343_v39 }
 0x17e   : > { %v507_v42 = vpop.xlane.xlu1 %506 }
 0x17f   : > { %v518_v40 = vmul.f32 0.0010416667, %v507_v42 }
 0x181   : > { %v520_v41 = vadd.f32 1e-05, %v518_v40 }
 0x182   : > { %v517_v44 = vpop.xlane.xlu1 %516 }
 0x183   : > { %10043 = vrsqrt.f32 %v520_v41  ;;  %v519_v45 = vmul.f32 0.0010416667, %v517_v44 }
 0x185   : > { %v521_v48 = vadd.f32 1e-05, %v519_v45 }
 0x187   : > { %10045 = vrsqrt.f32 %v521_v48 }
 0x190   : > { %v10756_v17 = vpop.eup %10043 }
 0x191   : > { %v525_v23 = vmul.f32 %v10756_v17, %v10615_v59  ;;  %v527_v29 = vmul.f32 %v10756_v17, %v10621_v63  ;;  %v524_v8 = vmul.f32 %v10756_v17, %v10612_v58  ;;  %v526_v28 = vmul.f32 %v10756_v17, %v10618_v60 }
 0x192   : > { %v529_v11 = vmul.f32 %v10756_v17, %v10642_v4  ;;  %v531_v59 = vmul.f32 %v10756_v17, %v10647_v6  ;;  %v528_v63 = vmul.f32 %v10756_v17, %v10628_v16  ;;  %v609_v58 = vrot.slane %v10744_v47, %v10732_v56 }
 0x193   : > { %v582_v12 = vmul.f32 %v548_v52, %v525_v23  ;;  %v584_v13 = vmul.f32 %v556_v53, %v527_v29  ;;  %v621_v60 = vrot.slane %v10744_v47, %v10735_v57  ;;  %v617_v6 = vrot.slane %v10744_v47, %v10741_v46  ;;  %v878_v23 = vld [vmem:[%s10349_s24 + $0x1440] sm:$0xff]  ;;  %v3672_v57 = vld [vmem:[%s10349_s24 + $0x458] sm:$0xff]  ;;  %v5037_v46 = vld [vmem:[%s10365_s13 + $0x10] sm:$0xff] }
 0x194   : > { %v585_v4 = vmul.f32 %v560_v21, %v528_v63  ;;  %v10794_v15 = vpop.eup %10045  ;;  %v581_v16 = vmul.f32 %v544_v62, %v524_v8  ;;  %v583_v26 = vmul.f32 %v552_v0, %v526_v28  ;;  %v586_v27 = vmul.f32 %v564_v1, %v529_v11 }
 0x195   : > { %v588_v37 = vmul.f32 %v572_v5, %v531_v59  ;;  %v533_v30 = vmul.f32 %v10794_v15, %v10636_v3  ;;  %v535_v32 = vmul.f32 %v10794_v15, %v10650_v7  ;;  %v532_v38 = vmul.f32 %v10794_v15, %v10633_v18 }
 0x196   : > { %v534_v39 = vmul.f32 %v10794_v15, %v10639_v20  ;;  %v639_v42 = vadd.f32 %v605_v2, %v582_v12  ;;  %v641_v40 = vadd.f32 %v613_v25, %v584_v13  ;;  %v537_v41 = vmul.f32 %v10794_v15, %v10671_v34  ;;  %v871_v13 = vld [vmem:[%s10349_s24 + $0x1388] sm:$0xff] }
 0x197   : > { %v539_v43 = vmul.f32 %v10794_v15, %v10678_v19  ;;  %v590_v44 = vmul.f32 %v548_v52, %v533_v30  ;;  %v592_v45 = vmul.f32 %v556_v53, %v535_v32  ;;  %v589_v3 = vmul.f32 %v544_v62, %v532_v38  ;;  %v799_v32 = vld [vmem:[%s10349_s24 + $0xcc8] sm:$0xff] }
 0x198   : > { %v591_v48 = vmul.f32 %v552_v0, %v534_v39  ;;  %v638_v7 = vadd.f32 %v601_v10, %v581_v16  ;;  %v640_v29 = vadd.f32 %v609_v58, %v583_v26  ;;  %v594_v8 = vmul.f32 %v564_v1, %v537_v41  ;;  %v806_v26 = vld [vmem:[%s10349_s24 + $0xd80] sm:$0xff]  ;;  %v863_v38 = vld [vmem:[%s10349_s24 + $0x12c8] sm:$0xff] }
 0x199   : > { %v596_v18 = vmul.f32 %v572_v5, %v539_v43  ;;  %v647_v28 = vadd.f32 %v605_v2, %v590_v44  ;;  %v649_v11 = vadd.f32 %v613_v25, %v592_v45  ;;  %v646_v20 = vadd.f32 %v601_v10, %v589_v3  ;;  %v798_v43 = vld [vmem:[%s10349_s24 + $0xcc0] sm:$0xff] }
 0x19a   : > { %v648_v59 = vadd.f32 %v609_v58, %v591_v48  ;;  %v1342_v63 = vunpack.c.h.s8.bf16 %v878_v23  ;;  %v651_v34 = vadd.f32 %v621_v60, %v594_v8  ;;  %v536_v19 = vmul.f32 %v10794_v15, %v10662_v9  ;;  %v807_v9 = vld [vmem:[%s10349_s24 + $0xd88] sm:$0xff]  ;;  %v862_v44 = vld [vmem:[%s10349_s24 + $0x12c0] sm:$0xff] }
 0x19b   : > { %v653_v12 = vadd.f32 %v629_v33, %v596_v18  ;;  %v10811_v52 = vpack.c.bf16 %v647_v28, %v639_v42  ;;  %v10813_v53 = vpack.c.bf16 %v649_v11, %v641_v40  ;;  %v10815_v62 = vpack.c.bf16 %v646_v20, %v638_v7  ;;  %v791_v7 = vld [vmem:[%s10349_s24 + $0xc08] sm:$0xff]  ;;  %v790_v20 = vld [vmem:[%s10349_s24 + $0xc00] sm:$0xff] }
 0x19c   : > { %v10817_v0 = vpack.c.bf16 %v648_v59, %v640_v29  ;;  %v643_v1 = vadd.f32 %v621_v60, %v586_v27  ;;  %v645_v2 = vadd.f32 %v629_v33, %v588_v37  ;;  %v593_v25 = vmul.f32 %v560_v21, %v536_v19  ;;  %v870_v27 = vld [vmem:[%s10349_s24 + $0x1380] sm:$0xff]  ;;  %v855_v29 = vld [vmem:[%s10349_s24 + $0x1208] sm:$0xff] }
 0x19d   : > { %1417 = vmatprep.mubr.bf16.mxu0 %v10811_v52  ;;  %1460 = vmatprep.mubr.bf16.mxu1 %v10813_v53  ;;  %v1207_v5 = vunpack.c.l.s8.bf16 %v10710_v35  ;;  %v1335_v10 = vunpack.c.l.s8.bf16 %v10713_v36  ;;  %v642_v58 = vadd.f32 %v617_v6, %v585_v4  ;;  %v1206_v35 = vunpack.c.l.s8.bf16 %v10775_v31  ;;  %v854_v59 = vld [vmem:[%s10349_s24 + $0x1200] sm:$0xff] }
 0x19e   : > { %1418 = vmatmul.mubr.bf16.vlgmr.msra.gmra.mxu0 %v10815_v62  ;;  %1461 = vmatmul.mubr.bf16.vlgmr.msra.gmra.mxu1 %v10817_v0  ;;  %v10827_v60 = vpack.c.bf16 %v651_v34, %v643_v1  ;;  %v10829_v21 = vpack.c.bf16 %v653_v12, %v645_v2  ;;  %v650_v33 = vadd.f32 %v617_v6, %v593_v25  ;;  %v1334_v16 = vunpack.c.l.s8.bf16 %v878_v23  ;;  %v847_v1 = vld [vmem:[%s10349_s24 + $0x1148] sm:$0xff] }
 0x19f   : > { %1472 = vmatpush1.bf16.msra.mxu0 %v1214_v14  ;;  %1515 = vmatpush1.bf16.msra.mxu1 %v1342_v63  ;;  %v1199_v36 = vunpack.c.h.s8.bf16 %v807_v9  ;;  %v1327_v4 = vunpack.c.h.s8.bf16 %v871_v13  ;;  %v1198_v14 = vunpack.c.h.s8.bf16 %v806_v26  ;;  %v1326_v31 = vunpack.c.h.s8.bf16 %v870_v27  ;;  %v895_v2 = vld [vmem:[%s10349_s24 + $0x15c8] sm:$0xff] }
 0x1a0   : > { %1503 = vmatprep.mubr.bf16.mxu0 %v10827_v60  ;;  %9727 = vmatprep.mubr.msk.bf16.mxu1 %vm448_vm1, %v10829_v21  ;;  %v10837_v37 = vpack.c.bf16 %v650_v33, %v642_v58  ;;  %v1191_v6 = vunpack.c.l.s8.bf16 %v807_v9  ;;  %v1319_v30 = vunpack.c.l.s8.bf16 %v871_v13  ;;  %v1190_v39 = vunpack.c.l.s8.bf16 %v806_v26  ;;  %v846_v13 = vld [vmem:[%s10349_s24 + $0x1140] sm:$0xff]  ;;  %v887_v26 = vld [vmem:[%s10349_s24 + $0x1508] sm:$0xff] }
 0x1a1   : > { %1473 = vmatprep.subr.bf16.mxu0 %v1207_v5  ;;  %1516 = vmatprep.subr.bf16.mxu1 %v1335_v10  ;;  %v1318_v42 = vunpack.c.l.s8.bf16 %v870_v27  ;;  %v1183_v40 = vunpack.c.h.s8.bf16 %v799_v32  ;;  %v1311_v41 = vunpack.c.h.s8.bf16 %v863_v38  ;;  %v1182_v45 = vunpack.c.h.s8.bf16 %v798_v43  ;;  %v894_v58 = vld [vmem:[%s10349_s24 + $0x15c0] sm:$0xff] }
 0x1a2   : > { %v1310_v3 = vunpack.c.h.s8.bf16 %v862_v44  ;;  %v1175_v48 = vunpack.c.l.s8.bf16 %v799_v32  ;;  %v1303_v23 = vunpack.c.l.s8.bf16 %v863_v38  ;;  %v1174_v8 = vunpack.c.l.s8.bf16 %v798_v43  ;;  %v838_v32 = vld [vmem:[%s10349_s24 + $0x1080] sm:$0xff] }
 0x1a3   : > { %1474 = vmatpush1.bf16.msra.mxu0 %v1206_v35  ;;  %1517 = vmatpush1.bf16.msra.mxu1 %v1334_v16  ;;  %v1302_v18 = vunpack.c.l.s8.bf16 %v862_v44  ;;  %v1167_v28 = vunpack.c.h.s8.bf16 %v791_v7  ;;  %v1295_v11 = vunpack.c.h.s8.bf16 %v855_v29  ;;  %v1166_v63 = vunpack.c.h.s8.bf16 %v790_v20  ;;  %v886_v38 = vld [vmem:[%s10349_s24 + $0x1500] sm:$0xff] }
 0x1a4   : > { %1475 = vmatprep.subr.bf16.mxu0 %v1199_v36  ;;  %1518 = vmatprep.subr.bf16.mxu1 %v1327_v4  ;;  %v1294_v34 = vunpack.c.h.s8.bf16 %v854_v59  ;;  %v1159_v12 = vunpack.c.l.s8.bf16 %v791_v7  ;;  %v1287_v19 = vunpack.c.l.s8.bf16 %v855_v29  ;;  %v1158_v25 = vunpack.c.l.s8.bf16 %v790_v20  ;;  %v839_v4 = vld [vmem:[%s10349_s24 + $0x1088] sm:$0xff]  ;;  %v830_v29 = vld [vmem:[%s10349_s24 + $0xfc0] sm:$0xff] }
 0x1a5   : > { %v1286_v5 = vunpack.c.l.s8.bf16 %v854_v59  ;;  %v1279_v10 = vunpack.c.h.s8.bf16 %v847_v1  ;;  %v1375_v9 = vunpack.c.h.s8.bf16 %v895_v2  ;;  %v1278_v33 = vunpack.c.h.s8.bf16 %v846_v13 }
 0x1a6   : > { %v1374_v35 = vunpack.c.h.s8.bf16 %v894_v58  ;;  %v1271_v16 = vunpack.c.l.s8.bf16 %v847_v1  ;;  %v1367_v36 = vunpack.c.l.s8.bf16 %v895_v2  ;;  %v10854_v27 = vsub.s32 6, %v10717_v49 }
 0x1a7   : > { %1476 = vmatpush1.bf16.msra.mxu0 %v1198_v14  ;;  %1519 = vmatpush1.bf16.msra.mxu1 %v1326_v31  ;;  %v1270_v14 = vunpack.c.l.s8.bf16 %v846_v13  ;;  %v1366_v31 = vunpack.c.l.s8.bf16 %v894_v58  ;;  %v1255_v43 = vunpack.c.l.s8.bf16 %v839_v4  ;;  %v1351_v44 = vunpack.c.l.s8.bf16 %v887_v26 }
 0x1a8   : > { %1477 = vmatprep.subr.bf16.mxu0 %v1191_v6  ;;  %1520 = vmatprep.subr.bf16.mxu1 %v1319_v30  ;;  %13043 = vst [vmem:[#allocation10_spill] sm:$0xff] %v10854_v27  ;;  %v1263_v6 = vunpack.c.h.s8.bf16 %v839_v4  ;;  %v1359_v30 = vunpack.c.h.s8.bf16 %v887_v26  ;;  %v568_v49 = vrot.slane %v10723_v51, %v10854_v27  ;;  %v1254_v51 = vunpack.c.l.s8.bf16 %v838_v32 }
 0x1ab   : > { %1478 = vmatpush1.bf16.msra.mxu0 %v1190_v39  ;;  %1521 = vmatpush1.bf16.msra.mxu1 %v1318_v42  ;;  %v538_v39 = vmul.f32 %v10794_v15, %v10681_v22  ;;  %v530_v42 = vmul.f32 %v10756_v17, %v10657_v24  ;;  %v625_v24 = vrot.slane %v10744_v47, %v10854_v27  ;;  %v1350_v17 = vunpack.c.l.s8.bf16 %v886_v38 }
 0x1ac   : > { %1479 = vmatprep.subr.bf16.mxu0 %v1183_v40  ;;  %1522 = vmatprep.subr.bf16.mxu1 %v1311_v41  ;;  %v1262_v40 = vunpack.c.h.s8.bf16 %v838_v32  ;;  %v1358_v41 = vunpack.c.h.s8.bf16 %v886_v38 }
 0x1ad   : > { %v587_v22 = vmul.f32 %v568_v49, %v530_v42  ;;  %v745_v42 = vld [vmem:[%s10349_s24 + $0x798] sm:$0xff] }
 0x1af   : > { %1480 = vmatpush1.bf16.msra.mxu0 %v1182_v45  ;;  %1523 = vmatpush1.bf16.msra.mxu1 %v1310_v3  ;;  %v595_v45 = vmul.f32 %v568_v49, %v538_v39  ;;  %v831_v3 = vld [vmem:[%s10349_s24 + $0xfc8] sm:$0xff]  ;;  %v665_v39 = vld [vmem:[%s10349_s24 + $0x18] sm:$0xff] }
 0x1b0   : > { %1481 = vmatprep.subr.bf16.mxu0 %v1175_v48  ;;  %1524 = vmatprep.subr.bf16.mxu1 %v1303_v23  ;;  %v689_v48 = vld [vmem:[%s10349_s24 + $0x258] sm:$0xff]  ;;  %v1247_v15 = vunpack.c.h.s8.bf16 %v831_v3  ;;  %v1239_v20 = vunpack.c.l.s8.bf16 %v831_v3 }
 0x1b1   : > { %v652_v23 = vadd.f32 %v625_v24, %v595_v45  ;;  %v961_v7 = vunpack.c.h.s8.bf16 %v689_v48  ;;  %v953_v59 = vunpack.c.l.s8.bf16 %v689_v48  ;;  %v744_v45 = vld [vmem:[%s10349_s24 + $0x790] sm:$0xff] }
 0x1b2   : > { %v1072_v48 = vunpack.c.h.s8.bf16 %v744_v45 }
 0x1b3   : > { %1482 = vmatpush1.bf16.msra.mxu0 %v1174_v8  ;;  %1525 = vmatpush1.bf16.msra.mxu1 %v1302_v18  ;;  %v688_v8 = vld [vmem:[%s10349_s24 + $0x250] sm:$0xff]  ;;  %v644_v18 = vadd.f32 %v625_v24, %v587_v22  ;;  %v905_v22 = vunpack.c.l.s8.bf16 %v665_v39  ;;  %v1065_v24 = vunpack.c.l.s8.bf16 %v745_v42 }
 0x1b4   : > { %1483 = vmatprep.subr.bf16.mxu0 %v1167_v28  ;;  %1526 = vmatprep.subr.bf16.mxu1 %v1295_v11  ;;  %v1246_v28 = vunpack.c.h.s8.bf16 %v830_v29  ;;  %v960_v11 = vunpack.c.h.s8.bf16 %v688_v8 }
 0x1b5   : > { %v10870_v47 = vpack.c.bf16 %v652_v23, %v644_v18  ;;  %v1064_v23 = vunpack.c.l.s8.bf16 %v744_v45  ;;  %v736_v18 = vld [vmem:[%s10349_s24 + $0x6d0] sm:$0xff] }
 0x1b6   : > { %v776_v45 = vld [vmem:[%s10349_s24 + $0xa90] sm:$0xff] }
 0x1b7   : > { %1484 = vmatpush1.bf16.msra.mxu0 %v1166_v63  ;;  %1527 = vmatpush1.bf16.msra.mxu1 %v1294_v34  ;;  %v823_v63 = vld [vmem:[%s10349_s24 + $0xf08] sm:$0xff]  ;;  %v681_v34 = vld [vmem:[%s10349_s24 + $0x198] sm:$0xff] }
 0x1b8   : > { %1485 = vmatprep.subr.bf16.mxu0 %v1159_v12  ;;  %1528 = vmatprep.subr.bf16.mxu1 %v1287_v19  ;;  %v1238_v12 = vunpack.c.l.s8.bf16 %v830_v29  ;;  %v952_v19 = vunpack.c.l.s8.bf16 %v688_v8  ;;  %v1231_v1 = vunpack.c.h.s8.bf16 %v823_v63  ;;  %v945_v2 = vunpack.c.h.s8.bf16 %v681_v34  ;;  %v720_v8 = vld [vmem:[%s10349_s24 + $0x550] sm:$0xff] }
 0x1b9   : > { %v1223_v13 = vunpack.c.l.s8.bf16 %v823_v63  ;;  %v937_v58 = vunpack.c.l.s8.bf16 %v681_v34  ;;  %v713_v63 = vld [vmem:[%s10349_s24 + $0x498] sm:$0xff] }
 0x1ba   : > { %v729_v34 = vld [vmem:[%s10349_s24 + $0x618] sm:$0xff] }
 0x1bb   : > { %1486 = vmatpush1.bf16.msra.mxu0 %v1158_v25  ;;  %1529 = vmatpush1.bf16.msra.mxu1 %v1286_v5  ;;  %v822_v25 = vld [vmem:[%s10349_s24 + $0xf00] sm:$0xff]  ;;  %v680_v5 = vld [vmem:[%s10349_s24 + $0x190] sm:$0xff] }
 0x1bc   : > { %1487 = vmatprep.subr.bf16.mxu0 %v1279_v10  ;;  %1538 = vmatprep.subr.bf16.mxu1 %v1375_v9  ;;  %v1230_v10 = vunpack.c.h.s8.bf16 %v822_v25  ;;  %v944_v9 = vunpack.c.h.s8.bf16 %v680_v5 }
 0x1bf   : > { %1488 = vmatpush2.bf16.msra.mxu0 %v1278_v33  ;;  %1539 = vmatpush2.bf16.msra.mxu1 %v1374_v35  ;;  %v673_v33 = vld [vmem:[%s10349_s24 + $0xd8] sm:$0xff] }
 0x1c0   : > { %1489 = vmatprep.subr.bf16.mxu0 %v1271_v16  ;;  %1540 = vmatprep.subr.bf16.mxu1 %v1367_v36  ;;  %v753_v35 = vld [vmem:[%s10349_s24 + $0x858] sm:$0xff]  ;;  %v1222_v16 = vunpack.c.l.s8.bf16 %v822_v25  ;;  %v936_v36 = vunpack.c.l.s8.bf16 %v680_v5  ;;  %v929_v4 = vunpack.c.h.s8.bf16 %v673_v33  ;;  %v921_v32 = vunpack.c.l.s8.bf16 %v673_v33  ;;  %v712_v25 = vld [vmem:[%s10349_s24 + $0x490] sm:$0xff] }
 0x1c1   : > { %v1089_v26 = vunpack.c.h.s8.bf16 %v753_v35  ;;  %v1081_v38 = vunpack.c.l.s8.bf16 %v753_v35  ;;  %v728_v5 = vld [vmem:[%s10349_s24 + $0x610] sm:$0xff]  ;;  %v705_v33 = vld [vmem:[%s10349_s24 + $0x3d8] sm:$0xff] }
 0x1c2   : > { %v785_v35 = vld [vmem:[%s10349_s24 + $0xb58] sm:$0xff] }
 0x1c3   : > { %1490 = vmatpush2.bf16.msra.mxu0 %v1270_v14  ;;  %1541 = vmatpush2.bf16.msra.mxu1 %v1366_v31  ;;  %v672_v14 = vld [vmem:[%s10349_s24 + $0xd0] sm:$0xff] }
 0x1c4   : > { %1491 = vmatprep.subr.bf16.mxu0 %v1263_v6  ;;  %1542 = vmatprep.subr.bf16.mxu1 %v1359_v30  ;;  %v752_v31 = vld [vmem:[%s10349_s24 + $0x850] sm:$0xff]  ;;  %v928_v6 = vunpack.c.h.s8.bf16 %v672_v14  ;;  %v920_v49 = vunpack.c.l.s8.bf16 %v672_v14 }
 0x1c5   : > { %v1088_v30 = vunpack.c.h.s8.bf16 %v752_v31  ;;  %v704_v14 = vld [vmem:[%s10349_s24 + $0x3d0] sm:$0xff] }
 0x1c7   : > { %1492 = vmatpush2.bf16.msra.mxu0 %v1262_v40  ;;  %1543 = vmatpush2.bf16.msra.mxu1 %v1358_v41  ;;  %v1080_v40 = vunpack.c.l.s8.bf16 %v752_v31  ;;  %v913_v41 = vunpack.c.h.s8.bf16 %v665_v39  ;;  %v784_v31 = vld [vmem:[%s10349_s24 + $0xb50] sm:$0xff]  ;;  %v697_v39 = vld [vmem:[%s10349_s24 + $0x318] sm:$0xff] }
 0x1c8   : > { %1493 = vmatprep.subr.bf16.mxu0 %v1255_v43  ;;  %1544 = vmatprep.subr.bf16.mxu1 %v1351_v44  ;;  %v1073_v43 = vunpack.c.h.s8.bf16 %v745_v42  ;;  %v664_v44 = vld [vmem:[%s10349_s24 + $0x10] sm:$0xff]  ;;  %v777_v42 = vld [vmem:[%s10349_s24 + $0xa98] sm:$0xff] }
 0x1c9   : > { %v912_v3 = vunpack.c.h.s8.bf16 %v664_v44 }
 0x1cb   : > { %1494 = vmatpush2.bf16.msra.mxu0 %v1254_v51  ;;  %1545 = vmatpush2.bf16.msra.mxu1 %v1350_v17  ;;  %v721_v51 = vld [vmem:[%s10349_s24 + $0x558] sm:$0xff] }
 0x1cc   : > { %1495 = vmatprep.subr.bf16.mxu0 %v1247_v15  ;;  %1557 = vmatprep.subr.bf16.mxu1 %v961_v7  ;;  %v737_v17 = vld [vmem:[%s10349_s24 + $0x6d8] sm:$0xff]  ;;  %v904_v15 = vunpack.c.l.s8.bf16 %v664_v44  ;;  %v1025_v7 = vunpack.c.h.s8.bf16 %v721_v51  ;;  %v696_v44 = vld [vmem:[%s10349_s24 + $0x310] sm:$0xff] }
 0x1cd   : > { %v1057_v29 = vunpack.c.h.s8.bf16 %v737_v17 }
 0x1ce   : > { %1547 = vmatmul.mubr.bf16.vlgmr.msra.gmra.mxu1 %v10870_v47 }
 0x1cf   : > { %1496 = vmatpush2.bf16.msra.mxu0 %v1246_v28  ;;  %1558 = vmatpush1.bf16.msra.mxu1 %v960_v11  ;;  %v1024_v28 = vunpack.c.h.s8.bf16 %v720_v8  ;;  %v1056_v11 = vunpack.c.h.s8.bf16 %v736_v18 }
 0x1d0   : > { %1589 = vmatprep.mubr.bf16.mxu1 %v10811_v52  ;;  %1497 = vmatprep.subr.bf16.mxu0 %v1239_v20  ;;  %v1017_v20 = vunpack.c.l.s8.bf16 %v721_v51  ;;  %v769_v51 = vld [vmem:[%s10349_s24 + $0x9d8] sm:$0xff] }
 0x1d1   : > { %1559 = vmatprep.subr.bf16.mxu1 %v953_v59  ;;  %v1049_v59 = vunpack.c.l.s8.bf16 %v737_v17  ;;  %v817_v17 = vld [vmem:[%s10349_s24 + $0xe58] sm:$0xff] }
 0x1d3   : > { %1498 = vmatpush2.bf16.msra.mxu0 %v1238_v12  ;;  %1560 = vmatpush1.bf16.msra.mxu1 %v952_v19  ;;  %v1016_v12 = vunpack.c.l.s8.bf16 %v720_v8  ;;  %v1048_v19 = vunpack.c.l.s8.bf16 %v736_v18  ;;  %v768_v8 = vld [vmem:[%s10349_s24 + $0x9d0] sm:$0xff] }
 0x1d4   : > { %1499 = vmatprep.subr.bf16.mxu0 %v1231_v1  ;;  %1561 = vmatprep.subr.bf16.mxu1 %v945_v2  ;;  %v1009_v1 = vunpack.c.h.s8.bf16 %v713_v63  ;;  %v1041_v2 = vunpack.c.h.s8.bf16 %v729_v34  ;;  %v816_v18 = vld [vmem:[%s10349_s24 + $0xe50] sm:$0xff] }
 0x1d7   : > { %1500 = vmatpush2.bf16.msra.mxu0 %v1230_v10  ;;  %1562 = vmatpush1.bf16.msra.mxu1 %v944_v9  ;;  %v1008_v10 = vunpack.c.h.s8.bf16 %v712_v25  ;;  %v1040_v9 = vunpack.c.h.s8.bf16 %v728_v5 }
 0x1d8   : > { %1501 = vmatprep.subr.bf16.mxu0 %v1223_v13  ;;  %1563 = vmatprep.subr.bf16.mxu1 %v937_v58  ;;  %v1001_v13 = vunpack.c.l.s8.bf16 %v713_v63  ;;  %v1033_v58 = vunpack.c.l.s8.bf16 %v729_v34  ;;  %v761_v63 = vld [vmem:[%s10349_s24 + $0x918] sm:$0xff] }
 0x1d9   : > { %v809_v34 = vld [vmem:[%s10349_s24 + $0xd98] sm:$0xff] }
 0x1db   : > { %1502 = vmatpush2.bf16.msra.mxu0 %v1222_v16  ;;  %1564 = vmatpush1.bf16.msra.mxu1 %v936_v36  ;;  %v1000_v16 = vunpack.c.l.s8.bf16 %v712_v25  ;;  %v1032_v36 = vunpack.c.l.s8.bf16 %v728_v5  ;;  %v760_v25 = vld [vmem:[%s10349_s24 + $0x910] sm:$0xff] }
 0x1dc   : > { %1565 = vmatprep.subr.bf16.mxu1 %v929_v4  ;;  %1600 = vmatprep.subr.bf16.mxu0 %v1089_v26  ;;  %v993_v4 = vunpack.c.h.s8.bf16 %v705_v33  ;;  %v1153_v26 = vunpack.c.h.s8.bf16 %v785_v35  ;;  %v808_v5 = vld [vmem:[%s10349_s24 + $0xd90] sm:$0xff] }
 0x1de   : > { %1504 = vmatmul.mubr.bf16.vlgmr.msra.gmra.mxu0 %v10837_v37 }
 0x1df   : > { %1566 = vmatpush1.bf16.msra.mxu1 %v928_v6  ;;  %1601 = vmatpush1.bf16.msra.mxu0 %v1088_v30  ;;  %v992_v6 = vunpack.c.h.s8.bf16 %v704_v14  ;;  %v1152_v30 = vunpack.c.h.s8.bf16 %v784_v31 }
 0x1e0   : > { %1632 = vmatprep.mubr.bf16.mxu0 %v10813_v53  ;;  %1567 = vmatprep.subr.bf16.mxu1 %v921_v32  ;;  %v985_v32 = vunpack.c.l.s8.bf16 %v705_v33  ;;  %v801_v33 = vld [vmem:[%s10349_s24 + $0xcd8] sm:$0xff] }
 0x1e1   : > { %1602 = vmatprep.subr.bf16.mxu0 %v1081_v38  ;;  %v1145_v38 = vunpack.c.l.s8.bf16 %v785_v35  ;;  %v881_v35 = vld [vmem:[%s10349_s24 + $0x1458] sm:$0xff] }
 0x1e3   : > { %1568 = vmatpush1.bf16.msra.mxu1 %v920_v49  ;;  %1603 = vmatpush1.bf16.msra.mxu0 %v1080_v40  ;;  %v984_v49 = vunpack.c.l.s8.bf16 %v704_v14  ;;  %v1144_v40 = vunpack.c.l.s8.bf16 %v784_v31  ;;  %v800_v14 = vld [vmem:[%s10349_s24 + $0xcd0] sm:$0xff] }
 0x1e4   : > { %1569 = vmatprep.subr.bf16.mxu1 %v913_v41  ;;  %1604 = vmatprep.subr.bf16.mxu0 %v1073_v43  ;;  %v977_v41 = vunpack.c.h.s8.bf16 %v697_v39  ;;  %v1137_v43 = vunpack.c.h.s8.bf16 %v777_v42  ;;  %v880_v31 = vld [vmem:[%s10349_s24 + $0x1450] sm:$0xff] }
 0x1e7   : > { %1570 = vmatpush1.bf16.msra.mxu1 %v912_v3  ;;  %1605 = vmatpush1.bf16.msra.mxu0 %v1072_v48  ;;  %v976_v3 = vunpack.c.h.s8.bf16 %v696_v44  ;;  %v1136_v48 = vunpack.c.h.s8.bf16 %v776_v45 }
 0x1e8   : > { %1571 = vmatprep.subr.bf16.mxu1 %v905_v22  ;;  %1606 = vmatprep.subr.bf16.mxu0 %v1065_v24  ;;  %v969_v22 = vunpack.c.l.s8.bf16 %v697_v39  ;;  %v1129_v24 = vunpack.c.l.s8.bf16 %v777_v42  ;;  %v793_v39 = vld [vmem:[%s10349_s24 + $0xc18] sm:$0xff] }
 0x1e9   : > { %v873_v42 = vld [vmem:[%s10349_s24 + $0x1398] sm:$0xff] }
 0x1eb   : > { %1572 = vmatpush1.bf16.msra.mxu1 %v904_v15  ;;  %1607 = vmatpush1.bf16.msra.mxu0 %v1064_v23  ;;  %v968_v15 = vunpack.c.l.s8.bf16 %v696_v44  ;;  %v1128_v23 = vunpack.c.l.s8.bf16 %v776_v45  ;;  %v792_v44 = vld [vmem:[%s10349_s24 + $0xc10] sm:$0xff] }
 0x1ec   : > { %1573 = vmatprep.subr.bf16.mxu1 %v1025_v7  ;;  %1608 = vmatprep.subr.bf16.mxu0 %v1057_v29  ;;  %v1121_v7 = vunpack.c.h.s8.bf16 %v769_v51  ;;  %v1217_v29 = vunpack.c.h.s8.bf16 %v817_v17  ;;  %v872_v45 = vld [vmem:[%s10349_s24 + $0x1390] sm:$0xff] }
 0x1ef   : > { %1574 = vmatpush2.bf16.msra.mxu1 %v1024_v28  ;;  %1609 = vmatpush1.bf16.msra.mxu0 %v1056_v11  ;;  %v1120_v28 = vunpack.c.h.s8.bf16 %v768_v8  ;;  %v1216_v11 = vunpack.c.h.s8.bf16 %v816_v18 }
 0x1f0   : > { %1575 = vmatprep.subr.bf16.mxu1 %v1017_v20  ;;  %1610 = vmatprep.subr.bf16.mxu0 %v1049_v59  ;;  %v1113_v20 = vunpack.c.l.s8.bf16 %v769_v51  ;;  %v1209_v59 = vunpack.c.l.s8.bf16 %v817_v17  ;;  %v849_v51 = vld [vmem:[%s10349_s24 + $0x1158] sm:$0xff] }
 0x1f1   : > { %v865_v17 = vld [vmem:[%s10349_s24 + $0x12d8] sm:$0xff] }
 0x1f3   : > { %1576 = vmatpush2.bf16.msra.mxu1 %v1016_v12  ;;  %1611 = vmatpush1.bf16.msra.mxu0 %v1048_v19  ;;  %v1112_v12 = vunpack.c.l.s8.bf16 %v768_v8  ;;  %v1208_v19 = vunpack.c.l.s8.bf16 %v816_v18  ;;  %v848_v8 = vld [vmem:[%s10349_s24 + $0x1150] sm:$0xff] }
 0x1f4   : > { %1577 = vmatprep.subr.bf16.mxu1 %v1009_v1  ;;  %1612 = vmatprep.subr.bf16.mxu0 %v1041_v2  ;;  %v1105_v1 = vunpack.c.h.s8.bf16 %v761_v63  ;;  %v1201_v2 = vunpack.c.h.s8.bf16 %v809_v34  ;;  %v864_v18 = vld [vmem:[%s10349_s24 + $0x12d0] sm:$0xff] }
 0x1f7   : > { %1578 = vmatpush2.bf16.msra.mxu1 %v1008_v10  ;;  %1613 = vmatpush1.bf16.msra.mxu0 %v1040_v9  ;;  %v1104_v10 = vunpack.c.h.s8.bf16 %v760_v25  ;;  %v1200_v9 = vunpack.c.h.s8.bf16 %v808_v5 }
 0x1f8   : > { %1579 = vmatprep.subr.bf16.mxu1 %v1001_v13  ;;  %1614 = vmatprep.subr.bf16.mxu0 %v1033_v58  ;;  %v1097_v13 = vunpack.c.l.s8.bf16 %v761_v63  ;;  %v1193_v58 = vunpack.c.l.s8.bf16 %v809_v34  ;;  %v841_v63 = vld [vmem:[%s10349_s24 + $0x1098] sm:$0xff] }
 0x1f9   : > { %v857_v34 = vld [vmem:[%s10349_s24 + $0x1218] sm:$0xff] }
 0x1fb   : > { %1580 = vmatpush2.bf16.msra.mxu1 %v1000_v16  ;;  %1615 = vmatpush1.bf16.msra.mxu0 %v1032_v36  ;;  %v1096_v16 = vunpack.c.l.s8.bf16 %v760_v25  ;;  %v1192_v36 = vunpack.c.l.s8.bf16 %v808_v5  ;;  %v840_v25 = vld [vmem:[%s10349_s24 + $0x1090] sm:$0xff] }
 0x1fc   : > { %1581 = vmatprep.subr.bf16.mxu1 %v993_v4  ;;  %1616 = vmatprep.subr.bf16.mxu0 %v1153_v26  ;;  %v1185_v4 = vunpack.c.h.s8.bf16 %v801_v33  ;;  %v1345_v26 = vunpack.c.h.s8.bf16 %v881_v35  ;;  %v856_v5 = vld [vmem:[%s10349_s24 + $0x1210] sm:$0xff] }
 0x1ff   : > { %1582 = vmatpush2.bf16.msra.mxu1 %v992_v6  ;;  %1617 = vmatpush2.bf16.msra.mxu0 %v1152_v30  ;;  %v1184_v6 = vunpack.c.h.s8.bf16 %v800_v14  ;;  %v1344_v30 = vunpack.c.h.s8.bf16 %v880_v31 }
 0x200   : > { %1583 = vmatprep.subr.bf16.mxu1 %v985_v32  ;;  %1618 = vmatprep.subr.bf16.mxu0 %v1145_v38  ;;  %v1177_v32 = vunpack.c.l.s8.bf16 %v801_v33  ;;  %v1337_v38 = vunpack.c.l.s8.bf16 %v881_v35  ;;  %v833_v33 = vld [vmem:[%s10349_s24 + $0xfd8] sm:$0xff] }
 0x201   : > { %v897_v35 = vld [vmem:[%s10349_s24 + $0x15d8] sm:$0xff] }
 0x203   : > { %1584 = vmatpush2.bf16.msra.mxu1 %v984_v49  ;;  %1619 = vmatpush2.bf16.msra.mxu0 %v1144_v40  ;;  %v1176_v49 = vunpack.c.l.s8.bf16 %v800_v14  ;;  %v1336_v40 = vunpack.c.l.s8.bf16 %v880_v31  ;;  %v832_v14 = vld [vmem:[%s10349_s24 + $0xfd0] sm:$0xff] }
 0x204   : > { %1585 = vmatprep.subr.bf16.mxu1 %v977_v41  ;;  %1620 = vmatprep.subr.bf16.mxu0 %v1137_v43  ;;  %v1169_v41 = vunpack.c.h.s8.bf16 %v793_v39  ;;  %v1329_v43 = vunpack.c.h.s8.bf16 %v873_v42  ;;  %v896_v31 = vld [vmem:[%s10349_s24 + $0x15d0] sm:$0xff] }
 0x207   : > { %1586 = vmatpush2.bf16.msra.mxu1 %v976_v3  ;;  %1621 = vmatpush2.bf16.msra.mxu0 %v1136_v48  ;;  %v1168_v3 = vunpack.c.h.s8.bf16 %v792_v44  ;;  %v1328_v48 = vunpack.c.h.s8.bf16 %v872_v45 }
 0x208   : > { %1587 = vmatprep.subr.bf16.mxu1 %v969_v22  ;;  %1622 = vmatprep.subr.bf16.mxu0 %v1129_v24  ;;  %v1161_v22 = vunpack.c.l.s8.bf16 %v793_v39  ;;  %v1321_v24 = vunpack.c.l.s8.bf16 %v873_v42  ;;  %v825_v39 = vld [vmem:[%s10349_s24 + $0xf18] sm:$0xff] }
 0x209   : > { %v889_v42 = vld [vmem:[%s10349_s24 + $0x1518] sm:$0xff] }
 0x20b   : > { %1588 = vmatpush2.bf16.msra.mxu1 %v968_v15  ;;  %1623 = vmatpush2.bf16.msra.mxu0 %v1128_v23  ;;  %v1160_v15 = vunpack.c.l.s8.bf16 %v792_v44  ;;  %v1320_v23 = vunpack.c.l.s8.bf16 %v872_v45  ;;  %v824_v44 = vld [vmem:[%s10349_s24 + $0xf10] sm:$0xff] }
 0x20c   : > { %1624 = vmatprep.subr.bf16.mxu0 %v1121_v7  ;;  %1643 = vmatprep.subr.bf16.mxu1 %v1217_v29  ;;  %v1281_v7 = vunpack.c.h.s8.bf16 %v849_v51  ;;  %v1313_v29 = vunpack.c.h.s8.bf16 %v865_v17  ;;  %v888_v45 = vld [vmem:[%s10349_s24 + $0x1510] sm:$0xff] }
 0x20e   : > { %1590 = vmatmul.mubr.bf16.vlgmr.msra.gmra.mxu1 %v10815_v62 }
 0x20f   : > { %1625 = vmatpush2.bf16.msra.mxu0 %v1120_v28  ;;  %1644 = vmatpush1.bf16.msra.mxu1 %v1216_v11  ;;  %v1280_v28 = vunpack.c.h.s8.bf16 %v848_v8  ;;  %v1312_v11 = vunpack.c.h.s8.bf16 %v864_v18 }
 0x210   : > { %1675 = vmatprep.mubr.bf16.mxu1 %v10827_v60  ;;  %1626 = vmatprep.subr.bf16.mxu0 %v1113_v20  ;;  %v1273_v20 = vunpack.c.l.s8.bf16 %v849_v51  ;;  %v691_v51 = vld [vmem:[%s10349_s24 + $0x268] sm:$0xff] }
 0x211   : > { %1645 = vmatprep.subr.bf16.mxu1 %v1209_v59  ;;  %v1305_v59 = vunpack.c.l.s8.bf16 %v865_v17  ;;  %v755_v17 = vld [vmem:[%s10349_s24 + $0x868] sm:$0xff] }
 0x213   : > { %1627 = vmatpush2.bf16.msra.mxu0 %v1112_v12  ;;  %1646 = vmatpush1.bf16.msra.mxu1 %v1208_v19  ;;  %v1272_v12 = vunpack.c.l.s8.bf16 %v848_v8  ;;  %v1304_v19 = vunpack.c.l.s8.bf16 %v864_v18  ;;  %v690_v8 = vld [vmem:[%s10349_s24 + $0x260] sm:$0xff] }
 0x214   : > { %1628 = vmatprep.subr.bf16.mxu0 %v1105_v1  ;;  %1647 = vmatprep.subr.bf16.mxu1 %v1201_v2  ;;  %v1265_v1 = vunpack.c.h.s8.bf16 %v841_v63  ;;  %v1297_v2 = vunpack.c.h.s8.bf16 %v857_v34  ;;  %v754_v18 = vld [vmem:[%s10349_s24 + $0x860] sm:$0xff] }
 0x217   : > { %1629 = vmatpush2.bf16.msra.mxu0 %v1104_v10  ;;  %1648 = vmatpush1.bf16.msra.mxu1 %v1200_v9  ;;  %v1264_v10 = vunpack.c.h.s8.bf16 %v840_v25  ;;  %v1296_v9 = vunpack.c.h.s8.bf16 %v856_v5 }
 0x218   : > { %1630 = vmatprep.subr.bf16.mxu0 %v1097_v13  ;;  %1649 = vmatprep.subr.bf16.mxu1 %v1193_v58  ;;  %v1257_v13 = vunpack.c.l.s8.bf16 %v841_v63  ;;  %v1289_v58 = vunpack.c.l.s8.bf16 %v857_v34  ;;  %v683_v63 = vld [vmem:[%s10349_s24 + $0x1a8] sm:$0xff] }
 0x219   : > { %v747_v34 = vld [vmem:[%s10349_s24 + $0x7a8] sm:$0xff] }
 0x21b   : > { %1631 = vmatpush2.bf16.msra.mxu0 %v1096_v16  ;;  %1650 = vmatpush1.bf16.msra.mxu1 %v1192_v36  ;;  %v1256_v16 = vunpack.c.l.s8.bf16 %v840_v25  ;;  %v1288_v36 = vunpack.c.l.s8.bf16 %v856_v5  ;;  %v1075_v25 = vunpack.c.h.s8.bf16 %v747_v34  ;;  %v746_v5 = vld [vmem:[%s10349_s24 + $0x7a0] sm:$0xff] }
 0x21c   : > { %1651 = vmatprep.subr.bf16.mxu1 %v1185_v4  ;;  %1686 = vmatprep.subr.bf16.mxu0 %v1345_v26  ;;  %v1249_v4 = vunpack.c.h.s8.bf16 %v833_v33  ;;  %v1377_v26 = vunpack.c.h.s8.bf16 %v897_v35 }
 0x21e   : > { %1633 = vmatmul.mubr.bf16.vlgmr.msra.gmra.mxu0 %v10817_v0 }
 0x21f   : > { %1652 = vmatpush1.bf16.msra.mxu1 %v1184_v6  ;;  %1687 = vmatpush1.bf16.msra.mxu0 %v1344_v30  ;;  %v1248_v6 = vunpack.c.h.s8.bf16 %v832_v14  ;;  %v1376_v30 = vunpack.c.h.s8.bf16 %v896_v31 }
 0x220   : > { %9728 = vmatprep.mubr.msk.bf16.mxu0 %vm448_vm1, %v10829_v21  ;;  %1653 = vmatprep.subr.bf16.mxu1 %v1177_v32  ;;  %v1241_v32 = vunpack.c.l.s8.bf16 %v833_v33  ;;  %v675_v33 = vld [vmem:[%s10349_s24 + $0xe8] sm:$0xff] }
 0x221   : > { %1688 = vmatprep.subr.bf16.mxu0 %v1337_v38  ;;  %v1369_v38 = vunpack.c.l.s8.bf16 %v897_v35  ;;  %v739_v35 = vld [vmem:[%s10349_s24 + $0x6e8] sm:$0xff] }
 0x223   : > { %1654 = vmatpush1.bf16.msra.mxu1 %v1176_v49  ;;  %1689 = vmatpush1.bf16.msra.mxu0 %v1336_v40  ;;  %v1240_v49 = vunpack.c.l.s8.bf16 %v832_v14  ;;  %v1368_v40 = vunpack.c.l.s8.bf16 %v896_v31  ;;  %v1059_v14 = vunpack.c.h.s8.bf16 %v739_v35  ;;  %v738_v31 = vld [vmem:[%s10349_s24 + $0x6e0] sm:$0xff] }
 0x224   : > { %1655 = vmatprep.subr.bf16.mxu1 %v1169_v41  ;;  %1690 = vmatprep.subr.bf16.mxu0 %v1329_v43  ;;  %v1233_v41 = vunpack.c.h.s8.bf16 %v825_v39  ;;  %v1361_v43 = vunpack.c.h.s8.bf16 %v889_v42 }
 0x227   : > { %1656 = vmatpush1.bf16.msra.mxu1 %v1168_v3  ;;  %1691 = vmatpush1.bf16.msra.mxu0 %v1328_v48  ;;  %v1232_v3 = vunpack.c.h.s8.bf16 %v824_v44  ;;  %v1360_v48 = vunpack.c.h.s8.bf16 %v888_v45 }
 0x228   : > { %1657 = vmatprep.subr.bf16.mxu1 %v1161_v22  ;;  %1692 = vmatprep.subr.bf16.mxu0 %v1321_v24  ;;  %v1225_v22 = vunpack.c.l.s8.bf16 %v825_v39  ;;  %v1353_v24 = vunpack.c.l.s8.bf16 %v889_v42  ;;  %v667_v39 = vld [vmem:[%s10349_s24 + $0x28] sm:$0xff] }
 0x22b   : > { %1658 = vmatpush1.bf16.msra.mxu1 %v1160_v15  ;;  %1693 = vmatpush1.bf16.msra.mxu0 %v1320_v23  ;;  %v1224_v15 = vunpack.c.l.s8.bf16 %v824_v44  ;;  %v1352_v23 = vunpack.c.l.s8.bf16 %v888_v45 }
 0x22c   : > { %1659 = vmatprep.subr.bf16.mxu1 %v1281_v7  ;;  %1694 = vmatprep.subr.bf16.mxu0 %v1313_v29  ;;  %v963_v7 = vunpack.c.h.s8.bf16 %v691_v51  ;;  %v1091_v29 = vunpack.c.h.s8.bf16 %v755_v17 }
 0x22f   : > { %1660 = vmatpush2.bf16.msra.mxu1 %v1280_v28  ;;  %1695 = vmatpush1.bf16.msra.mxu0 %v1312_v11  ;;  %v962_v28 = vunpack.c.h.s8.bf16 %v690_v8  ;;  %v1090_v11 = vunpack.c.h.s8.bf16 %v754_v18 }
 0x230   : > { %1661 = vmatprep.subr.bf16.mxu1 %v1273_v20  ;;  %1696 = vmatprep.subr.bf16.mxu0 %v1305_v59  ;;  %v955_v20 = vunpack.c.l.s8.bf16 %v691_v51  ;;  %v1083_v59 = vunpack.c.l.s8.bf16 %v755_v17  ;;  %v730_v51 = vld [vmem:[%s10349_s24 + $0x620] sm:$0xff] }
 0x233   : > { %1662 = vmatpush2.bf16.msra.mxu1 %v1272_v12  ;;  %1697 = vmatpush1.bf16.msra.mxu0 %v1304_v19  ;;  %v954_v12 = vunpack.c.l.s8.bf16 %v690_v8  ;;  %v1082_v19 = vunpack.c.l.s8.bf16 %v754_v18  ;;  %v907_v8 = vunpack.c.l.s8.bf16 %v667_v39 }
 0x234   : > { %1663 = vmatprep.subr.bf16.mxu1 %v1265_v1  ;;  %1698 = vmatprep.subr.bf16.mxu0 %v1297_v2  ;;  %v947_v1 = vunpack.c.h.s8.bf16 %v683_v63  ;;  %v682_v2 = vld [vmem:[%s10349_s24 + $0x1a0] sm:$0xff] }
 0x237   : > { %1664 = vmatpush2.bf16.msra.mxu1 %v1264_v10  ;;  %1699 = vmatpush1.bf16.msra.mxu0 %v1296_v9  ;;  %v946_v10 = vunpack.c.h.s8.bf16 %v682_v2  ;;  %v1074_v9 = vunpack.c.h.s8.bf16 %v746_v5 }
 0x238   : > { %1665 = vmatprep.subr.bf16.mxu1 %v1257_v13  ;;  %1700 = vmatprep.subr.bf16.mxu0 %v1289_v58  ;;  %v939_v13 = vunpack.c.l.s8.bf16 %v683_v63  ;;  %v1067_v58 = vunpack.c.l.s8.bf16 %v747_v34  ;;  %v722_v34 = vld [vmem:[%s10349_s24 + $0x560] sm:$0xff] }
 0x23b   : > { %1666 = vmatpush2.bf16.msra.mxu1 %v1256_v16  ;;  %1701 = vmatpush1.bf16.msra.mxu0 %v1288_v36  ;;  %v938_v16 = vunpack.c.l.s8.bf16 %v682_v2  ;;  %v1066_v36 = vunpack.c.l.s8.bf16 %v746_v5 }
 0x23c   : > { %1667 = vmatprep.subr.bf16.mxu1 %v1249_v4  ;;  %1710 = vmatprep.subr.bf16.mxu0 %v1377_v26  ;;  %v931_v4 = vunpack.c.h.s8.bf16 %v675_v33  ;;  %v674_v26 = vld [vmem:[%s10349_s24 + $0xe0] sm:$0xff] }
 0x23f   : > { %1668 = vmatpush2.bf16.msra.mxu1 %v1248_v6  ;;  %1711 = vmatpush2.bf16.msra.mxu0 %v1376_v30  ;;  %v930_v6 = vunpack.c.h.s8.bf16 %v674_v26  ;;  %v1058_v30 = vunpack.c.h.s8.bf16 %v738_v31 }
 0x240   : > { %1669 = vmatprep.subr.bf16.mxu1 %v1241_v32  ;;  %1712 = vmatprep.subr.bf16.mxu0 %v1369_v38  ;;  %v923_v32 = vunpack.c.l.s8.bf16 %v675_v33  ;;  %v1051_v38 = vunpack.c.l.s8.bf16 %v739_v35  ;;  %v714_v35 = vld [vmem:[%s10349_s24 + $0x4a0] sm:$0xff] }
 0x243   : > { %1670 = vmatpush2.bf16.msra.mxu1 %v1240_v49  ;;  %1713 = vmatpush2.bf16.msra.mxu0 %v1368_v40  ;;  %v731_v40 = vld [vmem:[%s10349_s24 + $0x628] sm:$0xff] }
 0x244   : > { %1671 = vmatprep.subr.bf16.mxu1 %v1233_v41  ;;  %1714 = vmatprep.subr.bf16.mxu0 %v1361_v43  ;;  %v922_v43 = vunpack.c.l.s8.bf16 %v674_v26  ;;  %v1035_v18 = vunpack.c.l.s8.bf16 %v731_v40 }
 0x247   : > { %1672 = vmatpush2.bf16.msra.mxu1 %v1232_v3  ;;  %1715 = vmatpush2.bf16.msra.mxu0 %v1360_v48  ;;  %v1050_v3 = vunpack.c.l.s8.bf16 %v738_v31  ;;  %v915_v48 = vunpack.c.h.s8.bf16 %v667_v39 }
 0x248   : > { %1673 = vmatprep.subr.bf16.mxu1 %v1225_v22  ;;  %1716 = vmatprep.subr.bf16.mxu0 %v1353_v24  ;;  %v666_v22 = vld [vmem:[%s10349_s24 + $0x20] sm:$0xff]  ;;  %v1043_v24 = vunpack.c.h.s8.bf16 %v731_v40 }
 0x249   : > { %v770_v40 = vld [vmem:[%s10349_s24 + $0x9e0] sm:$0xff] }
 0x24b   : > { %1674 = vmatpush2.bf16.msra.mxu1 %v1224_v15  ;;  %1717 = vmatpush2.bf16.msra.mxu0 %v1352_v23 }
 0x24c   : > { %1729 = vmatprep.subr.bf16.mxu0 %v963_v7  ;;  %1772 = vmatprep.subr.bf16.mxu1 %v1091_v29  ;;  %v914_v7 = vunpack.c.h.s8.bf16 %v666_v22  ;;  %v1042_v29 = vunpack.c.h.s8.bf16 %v730_v51 }
 0x24e   : > { %1676 = vmatmul.mubr.bf16.vlgmr.msra.gmra.mxu1 %v10837_v37  ;;  %1719 = vmatmul.mubr.bf16.vlgmr.msra.gmra.mxu0 %v10870_v47 }
 0x24f   : > { %1730 = vmatpush1.bf16.msra.mxu0 %v962_v28  ;;  %1761 = vmatprep.mubr.bf16.mxu0 %v10811_v52  ;;  %v723_v28 = vld [vmem:[%s10349_s24 + $0x568] sm:$0xff] }
 0x250   : > { %1773 = vmatpush1.bf16.msra.mxu1 %v1090_v11  ;;  %1804 = vmatprep.mubr.bf16.mxu1 %v10813_v53  ;;  %v787_v11 = vld [vmem:[%s10349_s24 + $0xb68] sm:$0xff]  ;;  %v1027_v63 = vunpack.c.h.s8.bf16 %v723_v28 }
 0x251   : > { %1731 = vmatprep.subr.bf16.mxu0 %v955_v20  ;;  %1774 = vmatprep.subr.bf16.mxu1 %v1083_v59  ;;  %v906_v20 = vunpack.c.l.s8.bf16 %v666_v22  ;;  %v1034_v59 = vunpack.c.l.s8.bf16 %v730_v51  ;;  %v1147_v5 = vunpack.c.l.s8.bf16 %v787_v11  ;;  %v763_v51 = vld [vmem:[%s10349_s24 + $0x928] sm:$0xff] }
 0x253   : > { %1732 = vmatpush1.bf16.msra.mxu0 %v954_v12  ;;  %v1155_v12 = vunpack.c.h.s8.bf16 %v787_v11 }
 0x254   : > { %1775 = vmatpush1.bf16.msra.mxu1 %v1082_v19  ;;  %1733 = vmatprep.subr.bf16.mxu0 %v947_v1  ;;  %v786_v19 = vld [vmem:[%s10349_s24 + $0xb60] sm:$0xff]  ;;  %v1026_v1 = vunpack.c.h.s8.bf16 %v722_v34 }
 0x255   : > { %1776 = vmatprep.subr.bf16.mxu1 %v1075_v25  ;;  %v1154_v2 = vunpack.c.h.s8.bf16 %v786_v19  ;;  %v1019_v25 = vunpack.c.l.s8.bf16 %v723_v28 }
 0x257   : > { %1734 = vmatpush1.bf16.msra.mxu0 %v946_v10  ;;  %v715_v10 = vld [vmem:[%s10349_s24 + $0x4a8] sm:$0xff] }
 0x258   : > { %1777 = vmatpush1.bf16.msra.mxu1 %v1074_v9  ;;  %1735 = vmatprep.subr.bf16.mxu0 %v939_v13  ;;  %v779_v9 = vld [vmem:[%s10349_s24 + $0xaa8] sm:$0xff]  ;;  %v1018_v13 = vunpack.c.l.s8.bf16 %v722_v34  ;;  %v1011_v33 = vunpack.c.h.s8.bf16 %v715_v10 }
 0x259   : > { %1778 = vmatprep.subr.bf16.mxu1 %v1067_v58  ;;  %v1146_v58 = vunpack.c.l.s8.bf16 %v786_v19  ;;  %v1131_v31 = vunpack.c.l.s8.bf16 %v779_v9  ;;  %v883_v34 = vld [vmem:[%s10349_s24 + $0x1468] sm:$0xff] }
 0x25b   : > { %1736 = vmatpush1.bf16.msra.mxu0 %v938_v16  ;;  %v1139_v16 = vunpack.c.h.s8.bf16 %v779_v9 }
 0x25c   : > { %1779 = vmatpush1.bf16.msra.mxu1 %v1066_v36  ;;  %1737 = vmatprep.subr.bf16.mxu0 %v931_v4  ;;  %v778_v36 = vld [vmem:[%s10349_s24 + $0xaa0] sm:$0xff]  ;;  %v1010_v4 = vunpack.c.h.s8.bf16 %v714_v35 }
 0x25d   : > { %1780 = vmatprep.subr.bf16.mxu1 %v1059_v14  ;;  %v1138_v26 = vunpack.c.h.s8.bf16 %v778_v36  ;;  %v1003_v14 = vunpack.c.l.s8.bf16 %v715_v10 }
 0x25e   : > { %v1419_v42 = vpop.f32.mrf.mxu0  ;;  %v1462_v49 = vpop.f32.mrf.mxu1 }
 0x25f   : > { %v10959_v41 = vadd.f32 %v1462_v49, %v1419_v42  ;;  %1738 = vmatpush1.bf16.msra.mxu0 %v930_v6  ;;  %v707_v6 = vld [vmem:[%s10349_s24 + $0x3e8] sm:$0xff]  ;;  %v706_v42 = vld [vmem:[%s10349_s24 + $0x3e0] sm:$0xff] }
 0x260   : > { %1781 = vmatpush1.bf16.msra.mxu1 %v1058_v30  ;;  %v10961_v44 = vpop.f32.mrf.mxu0  ;;  %v10963_v45 = vpop.f32.mrf.mxu1  ;;  %1739 = vmatprep.subr.bf16.mxu0 %v923_v32  ;;  %v771_v30 = vld [vmem:[%s10349_s24 + $0x9e8] sm:$0xff]  ;;  %v1002_v32 = vunpack.c.l.s8.bf16 %v714_v35  ;;  %v995_v39 = vunpack.c.h.s8.bf16 %v707_v6 }
 0x261   : > { %1782 = vmatprep.subr.bf16.mxu1 %v1051_v38  ;;  %v1130_v38 = vunpack.c.l.s8.bf16 %v778_v36  ;;  %v1123_v49 = vunpack.c.h.s8.bf16 %v771_v30  ;;  %v1115_v22 = vunpack.c.l.s8.bf16 %v771_v30  ;;  %v875_v35 = vld [vmem:[%s10349_s24 + $0x13a8] sm:$0xff] }
 0x262   : > { %v1423_v17 = vpop.f32.mrf.mxu0  ;;  %v1466_v15 = vpop.f32.mrf.mxu1 }
 0x263   : > { %v10967_v23 = vadd.f32 %v1466_v15, %v1423_v17  ;;  %1740 = vmatpush1.bf16.msra.mxu0 %v922_v43  ;;  %v994_v43 = vunpack.c.h.s8.bf16 %v706_v42  ;;  %v986_v17 = vunpack.c.l.s8.bf16 %v706_v42  ;;  %v1114_v15 = vunpack.c.l.s8.bf16 %v770_v40  ;;  %v867_v42 = vld [vmem:[%s10349_s24 + $0x12e8] sm:$0xff] }
 0x264   : > { %1783 = vmatpush1.bf16.msra.mxu1 %v1050_v3  ;;  %1741 = vmatprep.subr.bf16.mxu0 %v915_v48  ;;  %v1122_v3 = vunpack.c.h.s8.bf16 %v770_v40  ;;  %v987_v48 = vunpack.c.l.s8.bf16 %v707_v6 }
 0x265   : > { %1784 = vmatprep.subr.bf16.mxu1 %v1043_v24  ;;  %v699_v24 = vld [vmem:[%s10349_s24 + $0x328] sm:$0xff] }
 0x267   : > { %1742 = vmatpush1.bf16.msra.mxu0 %v914_v7  ;;  %v979_v7 = vunpack.c.h.s8.bf16 %v699_v24 }
 0x268   : > { %1785 = vmatpush1.bf16.msra.mxu1 %v1042_v29  ;;  %1743 = vmatprep.subr.bf16.mxu0 %v907_v8  ;;  %v698_v29 = vld [vmem:[%s10349_s24 + $0x320] sm:$0xff]  ;;  %v1107_v8 = vunpack.c.h.s8.bf16 %v763_v51 }
 0x269   : > { %1786 = vmatprep.subr.bf16.mxu1 %v1035_v18  ;;  %v762_v18 = vld [vmem:[%s10349_s24 + $0x920] sm:$0xff]  ;;  %v978_v28 = vunpack.c.h.s8.bf16 %v698_v29 }
 0x26a   : > { %v1106_v11 = vunpack.c.h.s8.bf16 %v762_v18  ;;  %v1098_v19 = vunpack.c.l.s8.bf16 %v762_v18  ;;  %v795_v18 = vld [vmem:[%s10349_s24 + $0xc28] sm:$0xff] }
 0x26b   : > { %1744 = vmatpush1.bf16.msra.mxu0 %v906_v20  ;;  %v971_v20 = vunpack.c.l.s8.bf16 %v699_v24  ;;  %v11002_v24 = vpop.f32.mrf.mxu1 }
 0x26c   : > { %1787 = vmatpush1.bf16.msra.mxu1 %v1034_v59  ;;  %1745 = vmatprep.subr.bf16.mxu0 %v1027_v63  ;;  %v1099_v59 = vunpack.c.l.s8.bf16 %v763_v51  ;;  %v819_v63 = vld [vmem:[%s10349_s24 + $0xe68] sm:$0xff]  ;;  %13044 = vst [vmem:[#allocation11_spill] sm:$0xff] %v11002_v24 }
 0x26d   : > { %1788 = vmatprep.subr.bf16.mxu1 %v1155_v12  ;;  %v970_v12 = vunpack.c.l.s8.bf16 %v698_v29 }
 0x26f   : > { %1746 = vmatpush2.bf16.msra.mxu0 %v1026_v1  ;;  %v1219_v1 = vunpack.c.h.s8.bf16 %v819_v63 }
 0x270   : > { %1789 = vmatpush2.bf16.msra.mxu1 %v1154_v2  ;;  %1747 = vmatprep.subr.bf16.mxu0 %v1019_v25  ;;  %v818_v2 = vld [vmem:[%s10349_s24 + $0xe60] sm:$0xff]  ;;  %v1347_v25 = vunpack.c.h.s8.bf16 %v883_v34 }
 0x271   : > { %1790 = vmatprep.subr.bf16.mxu1 %v1147_v5  ;;  %v882_v5 = vld [vmem:[%s10349_s24 + $0x1460] sm:$0xff]  ;;  %v1218_v10 = vunpack.c.h.s8.bf16 %v818_v2 }
 0x272   : > { %v1346_v9 = vunpack.c.h.s8.bf16 %v882_v5  ;;  %v1338_v36 = vunpack.c.l.s8.bf16 %v882_v5  ;;  %v858_v5 = vld [vmem:[%s10349_s24 + $0x1220] sm:$0xff] }
 0x273   : > { %1748 = vmatpush2.bf16.msra.mxu0 %v1018_v13  ;;  %v1211_v13 = vunpack.c.l.s8.bf16 %v819_v63 }
 0x274   : > { %1791 = vmatpush2.bf16.msra.mxu1 %v1146_v58  ;;  %1749 = vmatprep.subr.bf16.mxu0 %v1011_v33  ;;  %v811_v58 = vld [vmem:[%s10349_s24 + $0xda8] sm:$0xff]  ;;  %v1339_v33 = vunpack.c.l.s8.bf16 %v883_v34 }
 0x275   : > { %1792 = vmatprep.subr.bf16.mxu1 %v1139_v16  ;;  %v1210_v16 = vunpack.c.l.s8.bf16 %v818_v2 }
 0x277   : > { %1750 = vmatpush2.bf16.msra.mxu0 %v1010_v4  ;;  %v1203_v4 = vunpack.c.h.s8.bf16 %v811_v58 }
 0x278   : > { %1793 = vmatpush2.bf16.msra.mxu1 %v1138_v26  ;;  %1751 = vmatprep.subr.bf16.mxu0 %v1003_v14  ;;  %v810_v26 = vld [vmem:[%s10349_s24 + $0xda0] sm:$0xff]  ;;  %v1331_v14 = vunpack.c.h.s8.bf16 %v875_v35 }
 0x279   : > { %1794 = vmatprep.subr.bf16.mxu1 %v1131_v31  ;;  %v874_v31 = vld [vmem:[%s10349_s24 + $0x13a0] sm:$0xff]  ;;  %v1202_v6 = vunpack.c.h.s8.bf16 %v810_v26 }
 0x27a   : > { %v1330_v30 = vunpack.c.h.s8.bf16 %v874_v31  ;;  %v1322_v40 = vunpack.c.l.s8.bf16 %v874_v31  ;;  %v850_v31 = vld [vmem:[%s10349_s24 + $0x1160] sm:$0xff] }
 0x27b   : > { %1752 = vmatpush2.bf16.msra.mxu0 %v1002_v32  ;;  %v1195_v32 = vunpack.c.l.s8.bf16 %v811_v58  ;;  %v1298_v58 = vunpack.c.h.s8.bf16 %v858_v5 }
 0x27c   : > { %1795 = vmatpush2.bf16.msra.mxu1 %v1130_v38  ;;  %1753 = vmatprep.subr.bf16.mxu0 %v995_v39  ;;  %v1323_v38 = vunpack.c.l.s8.bf16 %v875_v35  ;;  %v803_v39 = vld [vmem:[%s10349_s24 + $0xce8] sm:$0xff] }
 0x27d   : > { %1796 = vmatprep.subr.bf16.mxu1 %v1123_v49  ;;  %v1194_v49 = vunpack.c.l.s8.bf16 %v810_v26  ;;  %v1179_v29 = vunpack.c.l.s8.bf16 %v803_v39 }
 0x27f   : > { %1754 = vmatpush2.bf16.msra.mxu0 %v994_v43  ;;  %v1187_v43 = vunpack.c.h.s8.bf16 %v803_v39 }
 0x280   : > { %1797 = vmatpush2.bf16.msra.mxu1 %v1122_v3  ;;  %1755 = vmatprep.subr.bf16.mxu0 %v987_v48  ;;  %v802_v3 = vld [vmem:[%s10349_s24 + $0xce0] sm:$0xff]  ;;  %v1315_v48 = vunpack.c.h.s8.bf16 %v867_v42 }
 0x281   : > { %1798 = vmatprep.subr.bf16.mxu1 %v1115_v22  ;;  %v866_v22 = vld [vmem:[%s10349_s24 + $0x12e0] sm:$0xff]  ;;  %v1186_v51 = vunpack.c.h.s8.bf16 %v802_v3 }
 0x283   : > { %1756 = vmatpush2.bf16.msra.mxu0 %v986_v17  ;;  %v11004_v17 = vpop.f32.mrf.mxu0 }
 0x284   : > { %1799 = vmatpush2.bf16.msra.mxu1 %v1114_v15  ;;  %1757 = vmatprep.subr.bf16.mxu0 %v979_v7  ;;  %13045 = vst [vmem:[#allocation12_spill] sm:$0xff] %v11004_v17  ;;  %v1314_v7 = vunpack.c.h.s8.bf16 %v866_v22 }
 0x285   : > { %1800 = vmatprep.subr.bf16.mxu1 %v1107_v8  ;;  %v1307_v8 = vunpack.c.l.s8.bf16 %v867_v42 }
 0x287   : > { %1758 = vmatpush2.bf16.msra.mxu0 %v978_v28 }
 0x288   : > { %1801 = vmatpush2.bf16.msra.mxu1 %v1106_v11  ;;  %1759 = vmatprep.subr.bf16.mxu0 %v971_v20  ;;  %v859_v11 = vld [vmem:[%s10349_s24 + $0x1228] sm:$0xff] }
 0x289   : > { %1802 = vmatprep.subr.bf16.mxu1 %v1099_v59  ;;  %v1178_v59 = vunpack.c.l.s8.bf16 %v802_v3 }
 0x28b   : > { %1760 = vmatpush2.bf16.msra.mxu0 %v970_v12  ;;  %v1306_v12 = vunpack.c.l.s8.bf16 %v866_v22  ;;  %v842_v22 = vld [vmem:[%s10349_s24 + $0x10a0] sm:$0xff] }
 0x28c   : > { %1803 = vmatpush2.bf16.msra.mxu1 %v1098_v19  ;;  %1815 = vmatprep.subr.bf16.mxu0 %v1219_v1  ;;  %v1171_v19 = vunpack.c.h.s8.bf16 %v795_v18  ;;  %v794_v1 = vld [vmem:[%s10349_s24 + $0xc20] sm:$0xff] }
 0x28d   : > { %1858 = vmatprep.subr.bf16.mxu1 %v1347_v25  ;;  %v1299_v25 = vunpack.c.h.s8.bf16 %v859_v11  ;;  %v1162_v26 = vunpack.c.l.s8.bf16 %v794_v1 }
 0x28e   : > { %1762 = vmatmul.mubr.bf16.vlgmr.msra.gmra.mxu0 %v10815_v62  ;;  %v1548_v15 = vpop.f32.mrf.mxu1 }
 0x28f   : > { %1805 = vmatmul.mubr.bf16.vlgmr.msra.gmra.mxu1 %v10817_v0  ;;  %1816 = vmatpush1.bf16.msra.mxu0 %v1218_v10 }
 0x290   : > { %1847 = vmatprep.mubr.bf16.mxu0 %v10827_v60  ;;  %1859 = vmatpush1.bf16.msra.mxu1 %v1346_v9  ;;  %v11009_v63 = vpop.f32.mrf.mxu1  ;;  %v1170_v9 = vunpack.c.h.s8.bf16 %v794_v1 }
 0x291   : > { %9729 = vmatprep.mubr.msk.bf16.mxu1 %vm448_vm1, %v10829_v21  ;;  %1817 = vmatprep.subr.bf16.mxu0 %v1211_v13 }
 0x292   : > { %1860 = vmatprep.subr.bf16.mxu1 %v1339_v33  ;;  %v1552_v13 = vpop.f32.mrf.mxu1  ;;  %v1163_v33 = vunpack.c.l.s8.bf16 %v795_v18 }
 0x293   : > { %1818 = vmatpush1.bf16.msra.mxu0 %v1210_v16  ;;  %v1291_v16 = vunpack.c.l.s8.bf16 %v859_v11  ;;  %v693_v11 = vld [vmem:[%s10349_s24 + $0x278] sm:$0xff] }
 0x294   : > { %1861 = vmatpush1.bf16.msra.mxu1 %v1338_v36  ;;  %1819 = vmatprep.subr.bf16.mxu0 %v1203_v4  ;;  %v851_v36 = vld [vmem:[%s10349_s24 + $0x1168] sm:$0xff]  ;;  %v965_v1 = vunpack.c.h.s8.bf16 %v693_v11 }
 0x295   : > { %1862 = vmatprep.subr.bf16.mxu1 %v1331_v14  ;;  %v899_v4 = vld [vmem:[%s10349_s24 + $0x15e8] sm:$0xff]  ;;  %v1283_v14 = vunpack.c.h.s8.bf16 %v851_v36  ;;  %v1275_v39 = vunpack.c.l.s8.bf16 %v851_v36 }
 0x296   : > { %v1371_v42 = vunpack.c.l.s8.bf16 %v899_v4 }
 0x297   : > { %1820 = vmatpush1.bf16.msra.mxu0 %v1202_v6  ;;  %v1379_v6 = vunpack.c.h.s8.bf16 %v899_v4  ;;  %v826_v4 = vld [vmem:[%s10349_s24 + $0xf20] sm:$0xff] }
 0x298   : > { %1863 = vmatpush1.bf16.msra.mxu1 %v1330_v30  ;;  %1821 = vmatprep.subr.bf16.mxu0 %v1195_v32  ;;  %v898_v30 = vld [vmem:[%s10349_s24 + $0x15e0] sm:$0xff]  ;;  %v1282_v32 = vunpack.c.h.s8.bf16 %v850_v31 }
 0x299   : > { %1864 = vmatprep.subr.bf16.mxu1 %v1323_v38  ;;  %v1378_v38 = vunpack.c.h.s8.bf16 %v898_v30  ;;  %v1370_v3 = vunpack.c.l.s8.bf16 %v898_v30 }
 0x29b   : > { %1822 = vmatpush1.bf16.msra.mxu0 %v1194_v49  ;;  %v843_v49 = vld [vmem:[%s10349_s24 + $0x10a8] sm:$0xff] }
 0x29c   : > { %1865 = vmatpush1.bf16.msra.mxu1 %v1322_v40  ;;  %1823 = vmatprep.subr.bf16.mxu0 %v1187_v43  ;;  %v891_v40 = vld [vmem:[%s10349_s24 + $0x1528] sm:$0xff]  ;;  %v1274_v43 = vunpack.c.l.s8.bf16 %v850_v31 }
 0x29d   : > { %1866 = vmatprep.subr.bf16.mxu1 %v1315_v48  ;;  %v1267_v48 = vunpack.c.h.s8.bf16 %v843_v49  ;;  %v1355_v18 = vunpack.c.l.s8.bf16 %v891_v40 }
 0x29e   : > { %v1505_v28 = vpop.f32.mrf.mxu0 }
 0x29f   : > { %v1506_v20 = vadd.f32 %v1505_v28, %v10959_v41  ;;  %1824 = vmatpush1.bf16.msra.mxu0 %v1186_v51  ;;  %v1363_v51 = vunpack.c.h.s8.bf16 %v891_v40  ;;  %v835_v28 = vld [vmem:[%s10349_s24 + $0xfe8] sm:$0xff]  ;;  %v756_v40 = vld [vmem:[%s10349_s24 + $0x870] sm:$0xff] }
 0x2a0   : > { %1867 = vmatpush1.bf16.msra.mxu1 %v1314_v7  ;;  %v11011_v34 = vpop.f32.mrf.mxu0  ;;  %1825 = vmatprep.subr.bf16.mxu0 %v1179_v29  ;;  %v1266_v7 = vunpack.c.h.s8.bf16 %v842_v22 }
 0x2a1   : > { %v11014_v2 = vadd.f32 %v1548_v15, %v1506_v20  ;;  %1868 = vmatprep.subr.bf16.mxu1 %v1307_v8  ;;  %v890_v15 = vld [vmem:[%s10349_s24 + $0x1520] sm:$0xff]  ;;  %v1259_v8 = vunpack.c.l.s8.bf16 %v843_v49  ;;  %v1258_v20 = vunpack.c.l.s8.bf16 %v842_v22 }
 0x2a2   : > { %v1509_v10 = vpop.f32.mrf.mxu0  ;;  %v1362_v29 = vunpack.c.h.s8.bf16 %v890_v15 }
 0x2a3   : > { %v1510_v41 = vadd.f32 %v1509_v10, %v10967_v23  ;;  %1826 = vmatpush1.bf16.msra.mxu0 %v1178_v59  ;;  %v1290_v23 = vunpack.c.l.s8.bf16 %v858_v5  ;;  %v1354_v59 = vunpack.c.l.s8.bf16 %v890_v15 }
 0x2a4   : > { %1869 = vmatpush1.bf16.msra.mxu1 %v1306_v12  ;;  %1827 = vmatprep.subr.bf16.mxu0 %v1171_v19  ;;  %v1251_v12 = vunpack.c.h.s8.bf16 %v835_v28  ;;  %v834_v19 = vld [vmem:[%s10349_s24 + $0xfe0] sm:$0xff] }
 0x2a5   : > { %v11018_v35 = vadd.f32 %v1552_v13, %v1510_v41  ;;  %1870 = vmatprep.subr.bf16.mxu1 %v1299_v25  ;;  %v692_v25 = vld [vmem:[%s10349_s24 + $0x270] sm:$0xff]  ;;  %v1250_v5 = vunpack.c.h.s8.bf16 %v834_v19  ;;  %v1243_v41 = vunpack.c.l.s8.bf16 %v835_v28  ;;  %v827_v13 = vld [vmem:[%s10349_s24 + $0xf28] sm:$0xff] }
 0x2a6   : > { %v964_v10 = vunpack.c.h.s8.bf16 %v692_v25  ;;  %v1235_v36 = vunpack.c.h.s8.bf16 %v827_v13 }
 0x2a7   : > { %13046 = vst [vmem:[#allocation13_spill] sm:$0xff] %v11018_v35  ;;  %1828 = vmatpush1.bf16.msra.mxu0 %v1170_v9  ;;  %v957_v9 = vunpack.c.l.s8.bf16 %v693_v11  ;;  %v748_v11 = vld [vmem:[%s10349_s24 + $0x7b0] sm:$0xff] }
 0x2a8   : > { %1871 = vmatpush1.bf16.msra.mxu1 %v1298_v58  ;;  %1829 = vmatprep.subr.bf16.mxu0 %v1163_v33  ;;  %v685_v58 = vld [vmem:[%s10349_s24 + $0x1b8] sm:$0xff]  ;;  %v1242_v33 = vunpack.c.l.s8.bf16 %v834_v19 }
 0x2a9   : > { %1872 = vmatprep.subr.bf16.mxu1 %v1291_v16  ;;  %v956_v16 = vunpack.c.l.s8.bf16 %v692_v25  ;;  %v941_v30 = vunpack.c.l.s8.bf16 %v685_v58 }
 0x2ab   : > { %1830 = vmatpush1.bf16.msra.mxu0 %v1162_v26  ;;  %v949_v26 = vunpack.c.h.s8.bf16 %v685_v58 }
 0x2ac   : > { %1873 = vmatpush1.bf16.msra.mxu1 %v1290_v23  ;;  %1831 = vmatprep.subr.bf16.mxu0 %v1283_v14  ;;  %v684_v23 = vld [vmem:[%s10349_s24 + $0x1b0] sm:$0xff]  ;;  %v1234_v14 = vunpack.c.h.s8.bf16 %v826_v4 }
 0x2ad   : > { %1882 = vmatprep.subr.bf16.mxu1 %v1379_v6  ;;  %v948_v31 = vunpack.c.h.s8.bf16 %v684_v23  ;;  %v1227_v6 = vunpack.c.l.s8.bf16 %v827_v13 }
 0x2af   : > { %1832 = vmatpush2.bf16.msra.mxu0 %v1282_v32  ;;  %v757_v32 = vld [vmem:[%s10349_s24 + $0x878] sm:$0xff] }
 0x2b0   : > { %1883 = vmatpush2.bf16.msra.mxu1 %v1378_v38  ;;  %1833 = vmatprep.subr.bf16.mxu0 %v1275_v39  ;;  %v677_v38 = vld [vmem:[%s10349_s24 + $0xf8] sm:$0xff]  ;;  %v1226_v39 = vunpack.c.l.s8.bf16 %v826_v4  ;;  %v1093_v49 = vunpack.c.h.s8.bf16 %v757_v32 }
 0x2b1   : > { %1884 = vmatprep.subr.bf16.mxu1 %v1371_v42  ;;  %v940_v42 = vunpack.c.l.s8.bf16 %v684_v23  ;;  %v925_v15 = vunpack.c.l.s8.bf16 %v677_v38  ;;  %v11054_v23 = vpop.f32.mrf.mxu0 }
 0x2b2   : > { %13048 = vst [vmem:[#allocation15_spill] sm:$0xff] %v11054_v23 }
 0x2b3   : > { %1834 = vmatpush2.bf16.msra.mxu0 %v1274_v43  ;;  %v933_v43 = vunpack.c.h.s8.bf16 %v677_v38 }
 0x2b4   : > { %1885 = vmatpush2.bf16.msra.mxu1 %v1370_v3  ;;  %1835 = vmatprep.subr.bf16.mxu0 %v1267_v48  ;;  %v676_v3 = vld [vmem:[%s10349_s24 + $0xf0] sm:$0xff]  ;;  %v1092_v48 = vunpack.c.h.s8.bf16 %v756_v40 }
 0x2b5   : > { %1886 = vmatprep.subr.bf16.mxu1 %v1363_v51  ;;  %v932_v22 = vunpack.c.h.s8.bf16 %v676_v3  ;;  %v1085_v51 = vunpack.c.l.s8.bf16 %v757_v32 }
 0x2b7   : > { %1836 = vmatpush2.bf16.msra.mxu0 %v1266_v7  ;;  %v749_v7 = vld [vmem:[%s10349_s24 + $0x7b8] sm:$0xff] }
 0x2b8   : > { %1887 = vmatpush2.bf16.msra.mxu1 %v1362_v29  ;;  %1837 = vmatprep.subr.bf16.mxu0 %v1259_v8  ;;  %v669_v29 = vld [vmem:[%s10349_s24 + $0x38] sm:$0xff]  ;;  %v1084_v8 = vunpack.c.l.s8.bf16 %v756_v40  ;;  %v1077_v28 = vunpack.c.h.s8.bf16 %v749_v7 }
 0x2b9   : > { %1888 = vmatprep.subr.bf16.mxu1 %v1355_v18  ;;  %v924_v18 = vunpack.c.l.s8.bf16 %v676_v3  ;;  %v909_v25 = vunpack.c.l.s8.bf16 %v669_v29 }
 0x2bb   : > { %1838 = vmatpush2.bf16.msra.mxu0 %v1258_v20  ;;  %v917_v20 = vunpack.c.h.s8.bf16 %v669_v29 }
 0x2bc   : > { %1889 = vmatpush2.bf16.msra.mxu1 %v1354_v59  ;;  %1839 = vmatprep.subr.bf16.mxu0 %v1251_v12  ;;  %v668_v59 = vld [vmem:[%s10349_s24 + $0x30] sm:$0xff]  ;;  %v1076_v12 = vunpack.c.h.s8.bf16 %v748_v11 }
 0x2bd   : > { %1901 = vmatprep.subr.bf16.mxu1 %v965_v1  ;;  %v916_v19 = vunpack.c.h.s8.bf16 %v668_v59  ;;  %v1069_v1 = vunpack.c.l.s8.bf16 %v749_v7  ;;  %v908_v13 = vunpack.c.l.s8.bf16 %v668_v59  ;;  %v709_v59 = vld [vmem:[%s10349_s24 + $0x3f8] sm:$0xff] }
 0x2bf   : > { %1891 = vmatmul.mubr.bf16.vlgmr.msra.gmra.mxu1 %v10870_v47  ;;  %1840 = vmatpush2.bf16.msra.mxu0 %v1250_v5  ;;  %v741_v5 = vld [vmem:[%s10349_s24 + $0x6f8] sm:$0xff] }
 0x2c0   : > { %1902 = vmatpush1.bf16.msra.mxu1 %v964_v10  ;;  %1933 = vmatprep.mubr.bf16.mxu1 %v10811_v52  ;;  %v725_v10 = vld [vmem:[%s10349_s24 + $0x578] sm:$0xff]  ;;  %v1061_v58 = vunpack.c.h.s8.bf16 %v741_v5 }
 0x2c1   : > { %1841 = vmatprep.subr.bf16.mxu0 %v1243_v41  ;;  %1903 = vmatprep.subr.bf16.mxu1 %v957_v9  ;;  %v1068_v41 = vunpack.c.l.s8.bf16 %v748_v11  ;;  %v11050_v9 = vpop.f32.mrf.mxu1 }
 0x2c2   : > { %13047 = vst [vmem:[#allocation14_spill] sm:$0xff] %v11050_v9 }
 0x2c3   : > { %1842 = vmatpush2.bf16.msra.mxu0 %v1242_v33  ;;  %v740_v33 = vld [vmem:[%s10349_s24 + $0x6f0] sm:$0xff] }
 0x2c4   : > { %1904 = vmatpush1.bf16.msra.mxu1 %v956_v16  ;;  %1843 = vmatprep.subr.bf16.mxu0 %v1235_v36  ;;  %v1029_v16 = vunpack.c.h.s8.bf16 %v725_v10  ;;  %v724_v36 = vld [vmem:[%s10349_s24 + $0x570] sm:$0xff] }
 0x2c5   : > { %1905 = vmatprep.subr.bf16.mxu1 %v949_v26  ;;  %v1060_v26 = vunpack.c.h.s8.bf16 %v740_v33 }
 0x2c7   : > { %1844 = vmatpush2.bf16.msra.mxu0 %v1234_v14  ;;  %v1028_v14 = vunpack.c.h.s8.bf16 %v724_v36 }
 0x2c8   : > { %1906 = vmatpush1.bf16.msra.mxu1 %v948_v31  ;;  %1845 = vmatprep.subr.bf16.mxu0 %v1227_v6  ;;  %v1053_v31 = vunpack.c.l.s8.bf16 %v741_v5  ;;  %v1021_v6 = vunpack.c.l.s8.bf16 %v725_v10  ;;  %v997_v5 = vunpack.c.h.s8.bf16 %v709_v59  ;;  %v708_v10 = vld [vmem:[%s10349_s24 + $0x3f0] sm:$0xff] }
 0x2c9   : > { %1907 = vmatprep.subr.bf16.mxu1 %v941_v30  ;;  %v733_v30 = vld [vmem:[%s10349_s24 + $0x638] sm:$0xff] }
 0x2ca   : > { %v1045_v3 = vunpack.c.h.s8.bf16 %v733_v30 }
 0x2cb   : > { %1846 = vmatpush2.bf16.msra.mxu0 %v1226_v39  ;;  %v717_v39 = vld [vmem:[%s10349_s24 + $0x4b8] sm:$0xff] }
 0x2cc   : > { %1908 = vmatpush1.bf16.msra.mxu1 %v940_v42  ;;  %1944 = vmatprep.subr.bf16.mxu0 %v1093_v49  ;;  %v1052_v49 = vunpack.c.l.s8.bf16 %v740_v33  ;;  %v1005_v11 = vunpack.c.l.s8.bf16 %v717_v39  ;;  %v989_v33 = vunpack.c.l.s8.bf16 %v709_v59 }
 0x2cd   : > { %1909 = vmatprep.subr.bf16.mxu1 %v933_v43  ;;  %v1020_v43 = vunpack.c.l.s8.bf16 %v724_v36  ;;  %v701_v36 = vld [vmem:[%s10349_s24 + $0x338] sm:$0xff] }
 0x2ce   : > { %1848 = vmatmul.mubr.bf16.vlgmr.msra.gmra.mxu0 %v10837_v37  ;;  %v1591_v4 = vpop.f32.mrf.mxu1 }
 0x2cf   : > { %1945 = vmatpush1.bf16.msra.mxu0 %v1092_v48  ;;  %1976 = vmatprep.mubr.bf16.mxu0 %v10813_v53  ;;  %v732_v48 = vld [vmem:[%s10349_s24 + $0x630] sm:$0xff] }
 0x2d0   : > { %1910 = vmatpush1.bf16.msra.mxu1 %v932_v22  ;;  %1946 = vmatprep.subr.bf16.mxu0 %v1085_v51  ;;  %v11057_v32 = vpop.f32.mrf.mxu1  ;;  %v1013_v22 = vunpack.c.h.s8.bf16 %v717_v39  ;;  %v716_v51 = vld [vmem:[%s10349_s24 + $0x4b0] sm:$0xff] }
 0x2d1   : > { %1911 = vmatprep.subr.bf16.mxu1 %v925_v15 }
 0x2d2   : > { %v1595_v15 = vpop.f32.mrf.mxu1 }
 0x2d3   : > { %1947 = vmatpush1.bf16.msra.mxu0 %v1084_v8  ;;  %v1044_v8 = vunpack.c.h.s8.bf16 %v732_v48 }
 0x2d4   : > { %1912 = vmatpush1.bf16.msra.mxu1 %v924_v18  ;;  %1948 = vmatprep.subr.bf16.mxu0 %v1077_v28  ;;  %v1012_v18 = vunpack.c.h.s8.bf16 %v716_v51  ;;  %v1037_v28 = vunpack.c.l.s8.bf16 %v733_v30  ;;  %v700_v30 = vld [vmem:[%s10349_s24 + $0x330] sm:$0xff] }
 0x2d5   : > { %1913 = vmatprep.subr.bf16.mxu1 %v917_v20  ;;  %v789_v20 = vld [vmem:[%s10349_s24 + $0xb78] sm:$0xff]  ;;  %v980_v39 = vunpack.c.h.s8.bf16 %v700_v30 }
 0x2d7   : > { %1949 = vmatpush1.bf16.msra.mxu0 %v1076_v12  ;;  %v1036_v12 = vunpack.c.l.s8.bf16 %v732_v48  ;;  %v821_v48 = vld [vmem:[%s10349_s24 + $0xe78] sm:$0xff] }
 0x2d8   : > { %1914 = vmatpush1.bf16.msra.mxu1 %v916_v19  ;;  %1950 = vmatprep.subr.bf16.mxu0 %v1069_v1  ;;  %v1004_v19 = vunpack.c.l.s8.bf16 %v716_v51  ;;  %v1157_v1 = vunpack.c.h.s8.bf16 %v789_v20  ;;  %v972_v51 = vunpack.c.l.s8.bf16 %v700_v30  ;;  %v1213_v59 = vunpack.c.l.s8.bf16 %v821_v48  ;;  %v884_v30 = vld [vmem:[%s10349_s24 + $0x1470] sm:$0xff] }
 0x2d9   : > { %1915 = vmatprep.subr.bf16.mxu1 %v909_v25  ;;  %v788_v25 = vld [vmem:[%s10349_s24 + $0xb70] sm:$0xff] }
 0x2db   : > { %1951 = vmatpush1.bf16.msra.mxu0 %v1068_v41  ;;  %v1156_v41 = vunpack.c.h.s8.bf16 %v788_v25 }
 0x2dc   : > { %1916 = vmatpush1.bf16.msra.mxu1 %v908_v13  ;;  %1952 = vmatprep.subr.bf16.mxu0 %v1061_v58  ;;  %v996_v13 = vunpack.c.h.s8.bf16 %v708_v10  ;;  %v1149_v58 = vunpack.c.l.s8.bf16 %v789_v20 }
 0x2dd   : > { %1917 = vmatprep.subr.bf16.mxu1 %v1029_v16  ;;  %v781_v16 = vld [vmem:[%s10349_s24 + $0xab8] sm:$0xff] }
 0x2de   : > { %v1634_v38 = vpop.f32.mrf.mxu0 }
 0x2df   : > { %v11060_v42 = vadd.f32 %v1634_v38, %v1591_v4  ;;  %1953 = vmatpush1.bf16.msra.mxu0 %v1060_v26  ;;  %v1148_v4 = vunpack.c.l.s8.bf16 %v788_v25  ;;  %v988_v26 = vunpack.c.l.s8.bf16 %v708_v10  ;;  %v764_v10 = vld [vmem:[%s10349_s24 + $0x930] sm:$0xff] }
 0x2e0   : > { %1918 = vmatpush2.bf16.msra.mxu1 %v1028_v14  ;;  %v11062_v40 = vpop.f32.mrf.mxu0  ;;  %1954 = vmatprep.subr.bf16.mxu0 %v1053_v31  ;;  %v1141_v14 = vunpack.c.h.s8.bf16 %v781_v16  ;;  %v780_v31 = vld [vmem:[%s10349_s24 + $0xab0] sm:$0xff] }
 0x2e1   : > { %1919 = vmatprep.subr.bf16.mxu1 %v1021_v6  ;;  %v981_v6 = vunpack.c.h.s8.bf16 %v701_v36  ;;  %v1140_v38 = vunpack.c.h.s8.bf16 %v780_v31 }
 0x2e2   : > { %v1638_v7 = vpop.f32.mrf.mxu0 }
 0x2e3   : > { %v11066_v29 = vadd.f32 %v1638_v7, %v1595_v15  ;;  %1955 = vmatpush1.bf16.msra.mxu0 %v1052_v49  ;;  %v1133_v49 = vunpack.c.l.s8.bf16 %v781_v16  ;;  %v772_v7 = vld [vmem:[%s10349_s24 + $0x9f0] sm:$0xff] }
 0x2e4   : > { %1920 = vmatpush2.bf16.msra.mxu1 %v1020_v43  ;;  %1956 = vmatprep.subr.bf16.mxu0 %v1045_v3  ;;  %v973_v43 = vunpack.c.l.s8.bf16 %v701_v36  ;;  %v773_v3 = vld [vmem:[%s10349_s24 + $0x9f8] sm:$0xff] }
 0x2e5   : > { %1921 = vmatprep.subr.bf16.mxu1 %v1013_v22  ;;  %v1132_v22 = vunpack.c.l.s8.bf16 %v780_v31  ;;  %v1125_v15 = vunpack.c.h.s8.bf16 %v773_v3  ;;  %v1117_v20 = vunpack.c.l.s8.bf16 %v773_v3  ;;  %v11092_v3 = vpop.f32.mrf.mxu0 }
 0x2e6   : > { %13050 = vst [vmem:[#allocation17_spill] sm:$0xff] %v11092_v3 }
 0x2e7   : > { %1957 = vmatpush1.bf16.msra.mxu0 %v1044_v8  ;;  %v1221_v8 = vunpack.c.h.s8.bf16 %v821_v48 }
 0x2e8   : > { %1922 = vmatpush2.bf16.msra.mxu1 %v1012_v18  ;;  %1958 = vmatprep.subr.bf16.mxu0 %v1037_v28  ;;  %v820_v18 = vld [vmem:[%s10349_s24 + $0xe70] sm:$0xff]  ;;  %v1124_v28 = vunpack.c.h.s8.bf16 %v772_v7 }
 0x2e9   : > { %1923 = vmatprep.subr.bf16.mxu1 %v1005_v11  ;;  %v1220_v11 = vunpack.c.h.s8.bf16 %v820_v18  ;;  %v1212_v25 = vunpack.c.l.s8.bf16 %v820_v18  ;;  %v797_v18 = vld [vmem:[%s10349_s24 + $0xc38] sm:$0xff] }
 0x2eb   : > { %1959 = vmatpush1.bf16.msra.mxu0 %v1036_v12  ;;  %v765_v12 = vld [vmem:[%s10349_s24 + $0x938] sm:$0xff] }
 0x2ec   : > { %1924 = vmatpush2.bf16.msra.mxu1 %v1004_v19  ;;  %1960 = vmatprep.subr.bf16.mxu0 %v1157_v1  ;;  %v813_v19 = vld [vmem:[%s10349_s24 + $0xdb8] sm:$0xff]  ;;  %v1116_v1 = vunpack.c.l.s8.bf16 %v772_v7  ;;  %v1101_v16 = vunpack.c.l.s8.bf16 %v765_v12 }
 0x2ed   : > { %1925 = vmatprep.subr.bf16.mxu1 %v997_v5  ;;  %v1109_v5 = vunpack.c.h.s8.bf16 %v765_v12  ;;  %v1197_v36 = vunpack.c.l.s8.bf16 %v813_v19 }
 0x2ef   : > { %1961 = vmatpush2.bf16.msra.mxu0 %v1156_v41  ;;  %v1205_v41 = vunpack.c.h.s8.bf16 %v813_v19 }
 0x2f0   : > { %1926 = vmatpush2.bf16.msra.mxu1 %v996_v13  ;;  %1962 = vmatprep.subr.bf16.mxu0 %v1149_v58  ;;  %v812_v13 = vld [vmem:[%s10349_s24 + $0xdb0] sm:$0xff]  ;;  %v1108_v58 = vunpack.c.h.s8.bf16 %v764_v10 }
 0x2f1   : > { %1927 = vmatprep.subr.bf16.mxu1 %v989_v33  ;;  %v1204_v33 = vunpack.c.h.s8.bf16 %v812_v13  ;;  %v1196_v31 = vunpack.c.l.s8.bf16 %v812_v13 }
 0x2f3   : > { %1963 = vmatpush2.bf16.msra.mxu0 %v1148_v4  ;;  %v885_v4 = vld [vmem:[%s10349_s24 + $0x1478] sm:$0xff] }
 0x2f4   : > { %1928 = vmatpush2.bf16.msra.mxu1 %v988_v26  ;;  %1964 = vmatprep.subr.bf16.mxu0 %v1141_v14  ;;  %v805_v26 = vld [vmem:[%s10349_s24 + $0xcf8] sm:$0xff]  ;;  %v1100_v14 = vunpack.c.l.s8.bf16 %v764_v10 }
 0x2f5   : > { %1929 = vmatprep.subr.bf16.mxu1 %v981_v6  ;;  %v1349_v6 = vunpack.c.h.s8.bf16 %v885_v4 }
 0x2f7   : > { %1965 = vmatpush2.bf16.msra.mxu0 %v1140_v38  ;;  %v1189_v38 = vunpack.c.h.s8.bf16 %v805_v26 }
 0x2f8   : > { %1930 = vmatpush2.bf16.msra.mxu1 %v980_v39  ;;  %1966 = vmatprep.subr.bf16.mxu0 %v1133_v49  ;;  %v804_v39 = vld [vmem:[%s10349_s24 + $0xcf0] sm:$0xff]  ;;  %v1348_v49 = vunpack.c.h.s8.bf16 %v884_v30 }
 0x2f9   : > { %1931 = vmatprep.subr.bf16.mxu1 %v973_v43  ;;  %v11090_v43 = vpop.f32.mrf.mxu1  ;;  %v1188_v48 = vunpack.c.h.s8.bf16 %v804_v39  ;;  %v1180_v12 = vunpack.c.l.s8.bf16 %v804_v39  ;;  %v852_v39 = vld [vmem:[%s10349_s24 + $0x1170] sm:$0xff] }
 0x2fa   : > { %13049 = vst [vmem:[#allocation16_spill] sm:$0xff] %v11090_v43 }
 0x2fb   : > { %1967 = vmatpush2.bf16.msra.mxu0 %v1132_v22  ;;  %v1341_v22 = vunpack.c.l.s8.bf16 %v885_v4  ;;  %v1165_v4 = vunpack.c.l.s8.bf16 %v797_v18 }
 0x2fc   : > { %1932 = vmatpush2.bf16.msra.mxu1 %v972_v51  ;;  %1968 = vmatprep.subr.bf16.mxu0 %v1125_v15  ;;  %v1181_v51 = vunpack.c.l.s8.bf16 %v805_v26  ;;  %v877_v15 = vld [vmem:[%s10349_s24 + $0x13b8] sm:$0xff] }
 0x2fd   : > { %1987 = vmatprep.subr.bf16.mxu1 %v1221_v8  ;;  %v1333_v19 = vunpack.c.h.s8.bf16 %v877_v15  ;;  %v869_v26 = vld [vmem:[%s10349_s24 + $0x12f8] sm:$0xff] }
 0x2ff   : > { %1934 = vmatmul.mubr.bf16.vlgmr.msra.gmra.mxu1 %v10815_v62  ;;  %1969 = vmatpush2.bf16.msra.mxu0 %v1124_v28 }
 0x300   : > { %1988 = vmatpush1.bf16.msra.mxu1 %v1220_v11  ;;  %2019 = vmatprep.mubr.bf16.mxu1 %v10827_v60  ;;  %v1340_v11 = vunpack.c.l.s8.bf16 %v884_v30  ;;  %v868_v30 = vld [vmem:[%s10349_s24 + $0x12f0] sm:$0xff] }
 0x301   : > { %1970 = vmatprep.subr.bf16.mxu0 %v1117_v20  ;;  %1989 = vmatprep.subr.bf16.mxu1 %v1213_v59 }
 0x303   : > { %1971 = vmatpush2.bf16.msra.mxu0 %v1116_v1  ;;  %v876_v1 = vld [vmem:[%s10349_s24 + $0x13b0] sm:$0xff] }
 0x304   : > { %1990 = vmatpush1.bf16.msra.mxu1 %v1212_v25  ;;  %1972 = vmatprep.subr.bf16.mxu0 %v1109_v5  ;;  %v796_v5 = vld [vmem:[%s10349_s24 + $0xc30] sm:$0xff]  ;;  %v1332_v13 = vunpack.c.h.s8.bf16 %v876_v1 }
 0x305   : > { %1991 = vmatprep.subr.bf16.mxu1 %v1205_v41 }
 0x307   : > { %1973 = vmatpush2.bf16.msra.mxu0 %v1108_v58 }
 0x308   : > { %1992 = vmatpush1.bf16.msra.mxu1 %v1204_v33  ;;  %1974 = vmatprep.subr.bf16.mxu0 %v1101_v16  ;;  %v1172_v33 = vunpack.c.h.s8.bf16 %v796_v5  ;;  %v1325_v16 = vunpack.c.l.s8.bf16 %v877_v15  ;;  %v861_v15 = vld [vmem:[%s10349_s24 + $0x1238] sm:$0xff] }
 0x309   : > { %1993 = vmatprep.subr.bf16.mxu1 %v1197_v36 }
 0x30b   : > { %1975 = vmatpush2.bf16.msra.mxu0 %v1100_v14  ;;  %v853_v14 = vld [vmem:[%s10349_s24 + $0x1178] sm:$0xff] }
 0x30c   : > { %1994 = vmatpush1.bf16.msra.mxu1 %v1196_v31  ;;  %2030 = vmatprep.subr.bf16.mxu0 %v1349_v6  ;;  %v1324_v31 = vunpack.c.l.s8.bf16 %v876_v1  ;;  %v1317_v6 = vunpack.c.h.s8.bf16 %v869_v26 }
 0x30d   : > { %1995 = vmatprep.subr.bf16.mxu1 %v1189_v38  ;;  %v1285_v38 = vunpack.c.h.s8.bf16 %v853_v14 }
 0x30e   : > { %v1677_v7 = vpop.f32.mrf.mxu1  ;;  %v1720_v8 = vpop.f32.mrf.mxu0  ;;  %1977 = vmatmul.mubr.bf16.vlgmr.msra.gmra.mxu0 %v10817_v0 }
 0x30f   : > { %v1678_v28 = vadd.f32 %v1677_v7, %v11060_v42  ;;  %2031 = vmatpush1.bf16.msra.mxu0 %v1348_v49  ;;  %9730 = vmatprep.mubr.msk.bf16.mxu0 %vm448_vm1, %v10829_v21  ;;  %v1173_v42 = vunpack.c.h.s8.bf16 %v797_v18  ;;  %v1316_v49 = vunpack.c.h.s8.bf16 %v868_v30  ;;  %v845_v7 = vld [vmem:[%s10349_s24 + $0x10b8] sm:$0xff]  ;;  %v1276_v18 = vunpack.c.l.s8.bf16 %v852_v39 }
 0x310   : > { %1996 = vmatpush1.bf16.msra.mxu1 %v1188_v48  ;;  %v11100_v20 = vpop.f32.mrf.mxu1  ;;  %v11102_v59 = vpop.f32.mrf.mxu0  ;;  %2032 = vmatprep.subr.bf16.mxu0 %v1341_v22  ;;  %v1284_v48 = vunpack.c.h.s8.bf16 %v852_v39  ;;  %v1309_v22 = vunpack.c.l.s8.bf16 %v869_v26  ;;  %v829_v39 = vld [vmem:[%s10349_s24 + $0xf38] sm:$0xff] }
 0x311   : > { %13051 = vst [vmem:[#allocation18_spill] sm:$0xff] %v11102_v59  ;;  %v11105_v25 = vadd.f32 %v1720_v8, %v1678_v28  ;;  %1997 = vmatprep.subr.bf16.mxu1 %v1181_v51  ;;  %v1277_v51 = vunpack.c.l.s8.bf16 %v853_v14  ;;  %v1308_v8 = vunpack.c.l.s8.bf16 %v868_v30  ;;  %v1301_v28 = vunpack.c.h.s8.bf16 %v861_v15  ;;  %v836_v14 = vld [vmem:[%s10349_s24 + $0xff0] sm:$0xff] }
 0x312   : > { %v1681_v10 = vpop.f32.mrf.mxu1  ;;  %v1724_v58 = vpop.f32.mrf.mxu0  ;;  %v3763_v59 = vld [vmem:[%s10349_s24 + $0xcb0] sm:$0xff] }
 0x313   : > { %13052 = vst [vmem:[#allocation19_spill] sm:$0xff] %v11105_v25  ;;  %v1682_v41 = vadd.f32 %v1681_v10, %v11066_v29  ;;  %2033 = vmatpush1.bf16.msra.mxu0 %v1340_v11  ;;  %v1164_v29 = vunpack.c.l.s8.bf16 %v796_v5  ;;  %v860_v11 = vld [vmem:[%s10349_s24 + $0x1230] sm:$0xff]  ;;  %v1293_v5 = vunpack.c.l.s8.bf16 %v861_v15  ;;  %v1261_v10 = vunpack.c.l.s8.bf16 %v845_v7 }
 0x314   : > { %1998 = vmatpush1.bf16.msra.mxu1 %v1180_v12  ;;  %2034 = vmatprep.subr.bf16.mxu0 %v1333_v19  ;;  %v1269_v12 = vunpack.c.h.s8.bf16 %v845_v7  ;;  %v844_v19 = vld [vmem:[%s10349_s24 + $0x10b0] sm:$0xff]  ;;  %v1300_v1 = vunpack.c.h.s8.bf16 %v860_v11  ;;  %v1237_v15 = vunpack.c.h.s8.bf16 %v829_v39 }
 0x315   : > { %v11109_v36 = vadd.f32 %v1724_v58, %v1682_v41  ;;  %1999 = vmatprep.subr.bf16.mxu1 %v1173_v42  ;;  %v1268_v42 = vunpack.c.h.s8.bf16 %v844_v19  ;;  %v901_v41 = vld [vmem:[%s10349_s24 + $0x15f8] sm:$0xff]  ;;  %v1292_v58 = vunpack.c.l.s8.bf16 %v860_v11  ;;  %v828_v7 = vld [vmem:[%s10349_s24 + $0xf30] sm:$0xff]  ;;  %v1229_v11 = vunpack.c.l.s8.bf16 %v829_v39  ;;  %v2227_v39 = vld [vmem:[%s10349_s24 + $0x7c0] sm:$0xff] }
 0x317   : > { %13053 = vst [vmem:[#allocation20_spill] sm:$0xff] %v11109_v36  ;;  %2035 = vmatpush1.bf16.msra.mxu0 %v1332_v13  ;;  %v837_v13 = vld [vmem:[%s10349_s24 + $0xff8] sm:$0xff] }
 0x318   : > { %2000 = vmatpush1.bf16.msra.mxu1 %v1172_v33  ;;  %2036 = vmatprep.subr.bf16.mxu0 %v1325_v16  ;;  %v1260_v33 = vunpack.c.l.s8.bf16 %v844_v19  ;;  %v1381_v16 = vunpack.c.h.s8.bf16 %v901_v41  ;;  %v1253_v26 = vunpack.c.h.s8.bf16 %v837_v13  ;;  %v1245_v30 = vunpack.c.l.s8.bf16 %v837_v13  ;;  %v2236_v19 = vld [vmem:[%s10349_s24 + $0x888] sm:$0xff]  ;;  %v2235_v13 = vld [vmem:[%s10349_s24 + $0x880] sm:$0xff] }
 0x319   : > { %2001 = vmatprep.subr.bf16.mxu1 %v1165_v4  ;;  %v900_v4 = vld [vmem:[%s10349_s24 + $0x15f0] sm:$0xff] }
 0x31b   : > { %2037 = vmatpush1.bf16.msra.mxu0 %v1324_v31  ;;  %v1380_v31 = vunpack.c.h.s8.bf16 %v900_v4 }
 0x31c   : > { %2002 = vmatpush1.bf16.msra.mxu1 %v1164_v29  ;;  %2038 = vmatprep.subr.bf16.mxu0 %v1317_v6  ;;  %v1252_v29 = vunpack.c.h.s8.bf16 %v836_v14  ;;  %v1373_v6 = vunpack.c.l.s8.bf16 %v901_v41  ;;  %v2572_v41 = vunpack.c.h.s8.bf16 %v2236_v19 }
 0x31d   : > { %2003 = vmatprep.subr.bf16.mxu1 %v1285_v38  ;;  %v893_v38 = vld [vmem:[%s10349_s24 + $0x1538] sm:$0xff] }
 0x31f   : > { %2039 = vmatpush1.bf16.msra.mxu0 %v1316_v49  ;;  %v1372_v49 = vunpack.c.l.s8.bf16 %v900_v4  ;;  %v2164_v4 = vld [vmem:[%s10349_s24 + $0x1c8] sm:$0xff] }
 0x320   : > { %2004 = vmatpush2.bf16.msra.mxu1 %v1284_v48  ;;  %2040 = vmatprep.subr.bf16.mxu0 %v1309_v22  ;;  %v1244_v48 = vunpack.c.l.s8.bf16 %v836_v14  ;;  %v1365_v22 = vunpack.c.h.s8.bf16 %v893_v38  ;;  %v2228_v14 = vld [vmem:[%s10349_s24 + $0x7c8] sm:$0xff] }
 0x321   : > { %2005 = vmatprep.subr.bf16.mxu1 %v1277_v51  ;;  %v892_v51 = vld [vmem:[%s10349_s24 + $0x1530] sm:$0xff] }
 0x323   : > { %2041 = vmatpush1.bf16.msra.mxu0 %v1308_v8  ;;  %v1364_v8 = vunpack.c.h.s8.bf16 %v892_v51 }
 0x324   : > { %2006 = vmatpush2.bf16.msra.mxu1 %v1276_v18  ;;  %2042 = vmatprep.subr.bf16.mxu0 %v1301_v28  ;;  %v1236_v18 = vunpack.c.h.s8.bf16 %v828_v7  ;;  %v1357_v28 = vunpack.c.l.s8.bf16 %v893_v38  ;;  %v2556_v38 = vunpack.c.h.s8.bf16 %v2228_v14 }
 0x325   : > { %2007 = vmatprep.subr.bf16.mxu1 %v1269_v12  ;;  %v2172_v12 = vld [vmem:[%s10349_s24 + $0x288] sm:$0xff] }
 0x327   : > { %2043 = vmatpush1.bf16.msra.mxu0 %v1300_v1  ;;  %v1356_v1 = vunpack.c.l.s8.bf16 %v892_v51  ;;  %v2548_v51 = vunpack.c.l.s8.bf16 %v2228_v14 }
 0x328   : > { %2008 = vmatpush2.bf16.msra.mxu1 %v1268_v42  ;;  %2044 = vmatprep.subr.bf16.mxu0 %v1293_v5  ;;  %v1228_v42 = vunpack.c.l.s8.bf16 %v828_v7  ;;  %v2444_v5 = vunpack.c.h.s8.bf16 %v2172_v12  ;;  %v2220_v7 = vld [vmem:[%s10349_s24 + $0x708] sm:$0xff] }
 0x329   : > { %2009 = vmatprep.subr.bf16.mxu1 %v1261_v10  ;;  %v2171_v10 = vld [vmem:[%s10349_s24 + $0x280] sm:$0xff] }
 0x32b   : > { %2045 = vmatpush1.bf16.msra.mxu0 %v1292_v58  ;;  %v2443_v58 = vunpack.c.h.s8.bf16 %v2171_v10 }
 0x32c   : > { %2010 = vmatpush2.bf16.msra.mxu1 %v1260_v33  ;;  %2054 = vmatprep.subr.bf16.mxu0 %v1381_v16  ;;  %v2571_v33 = vunpack.c.h.s8.bf16 %v2235_v13  ;;  %v2436_v16 = vunpack.c.l.s8.bf16 %v2172_v12  ;;  %v2540_v12 = vunpack.c.h.s8.bf16 %v2220_v7 }
 0x32d   : > { %2011 = vmatprep.subr.bf16.mxu1 %v1253_v26  ;;  %v2564_v26 = vunpack.c.l.s8.bf16 %v2236_v19  ;;  %v2219_v19 = vld [vmem:[%s10349_s24 + $0x700] sm:$0xff] }
 0x32f   : > { %2055 = vmatpush2.bf16.msra.mxu0 %v1380_v31  ;;  %v2435_v31 = vunpack.c.l.s8.bf16 %v2171_v10 }
 0x330   : > { %2012 = vmatpush2.bf16.msra.mxu1 %v1252_v29  ;;  %2056 = vmatprep.subr.bf16.mxu0 %v1373_v6  ;;  %v2563_v29 = vunpack.c.l.s8.bf16 %v2235_v13  ;;  %v2428_v6 = vunpack.c.h.s8.bf16 %v2164_v4  ;;  %v2532_v13 = vunpack.c.l.s8.bf16 %v2220_v7 }
 0x331   : > { %2013 = vmatprep.subr.bf16.mxu1 %v1245_v30  ;;  %v2163_v30 = vld [vmem:[%s10349_s24 + $0x1c0] sm:$0xff] }
 0x333   : > { %2057 = vmatpush2.bf16.msra.mxu0 %v1372_v49  ;;  %v2427_v49 = vunpack.c.h.s8.bf16 %v2163_v30 }
 0x334   : > { %2014 = vmatpush2.bf16.msra.mxu1 %v1244_v48  ;;  %2058 = vmatprep.subr.bf16.mxu0 %v1365_v22  ;;  %v2555_v48 = vunpack.c.h.s8.bf16 %v2227_v39  ;;  %v2420_v22 = vunpack.c.l.s8.bf16 %v2164_v4 }
 0x335   : > { %2015 = vmatprep.subr.bf16.mxu1 %v1237_v15  ;;  %v2156_v15 = vld [vmem:[%s10349_s24 + $0x108] sm:$0xff] }
 0x336   : > { %v2404_v10 = vunpack.c.l.s8.bf16 %v2156_v15 }
 0x337   : > { %2059 = vmatpush2.bf16.msra.mxu0 %v1364_v8  ;;  %v2419_v8 = vunpack.c.l.s8.bf16 %v2163_v30  ;;  %v2147_v30 = vld [vmem:[%s10349_s24 + $0x40] sm:$0xff] }
 0x338   : > { %2016 = vmatpush2.bf16.msra.mxu1 %v1236_v18  ;;  %2060 = vmatprep.subr.bf16.mxu0 %v1357_v28  ;;  %v2547_v18 = vunpack.c.l.s8.bf16 %v2227_v39  ;;  %v2412_v28 = vunpack.c.h.s8.bf16 %v2156_v15  ;;  %v2395_v15 = vunpack.c.h.s8.bf16 %v2147_v30 }
 0x339   : > { %2017 = vmatprep.subr.bf16.mxu1 %v1229_v11  ;;  %v2155_v11 = vld [vmem:[%s10349_s24 + $0x100] sm:$0xff] }
 0x33b   : > { %2061 = vmatpush2.bf16.msra.mxu0 %v1356_v1  ;;  %v2411_v1 = vunpack.c.h.s8.bf16 %v2155_v11 }
 0x33c   : > { %2018 = vmatpush2.bf16.msra.mxu1 %v1228_v42  ;;  %2867 = vmatprep.subr.bf16.mxu0 %v2444_v5  ;;  %v11143_v42 = vpop.f32.mrf.mxu0  ;;  %v2539_v5 = vunpack.c.h.s8.bf16 %v2219_v19 }
 0x33d   : > { %2910 = vmatprep.subr.bf16.mxu1 %v2572_v41  ;;  %13054 = vst [vmem:[#allocation21_spill] sm:$0xff] %v11143_v42  ;;  %v11145_v41 = vpop.f32.mrf.mxu1 }
 0x33e   : > { %2063 = vmatmul.mubr.bf16.vlgmr.msra.gmra.mxu0 %v10870_v47  ;;  %13055 = vst [vmem:[#allocation22_spill] sm:$0xff] %v11145_v41  ;;  %v2384_v41 = vld [vmem:[%s10349_s24 + $0x1628] sm:$0xff] }
 0x33f   : > { %2020 = vmatmul.mubr.bf16.vlgmr.msra.gmra.mxu1 %v10837_v37  ;;  %2868 = vmatpush1.bf16.msra.mxu0 %v2443_v58  ;;  %v2148_v58 = vld [vmem:[%s10349_s24 + $0x48] sm:$0xff] }
 0x340   : > { %2899 = vmatprep.mubr.bf16.mxu0 %v10811_v52  ;;  %2911 = vmatpush1.bf16.msra.mxu1 %v2571_v33 }
 0x341   : > { %2942 = vmatprep.mubr.bf16.mxu1 %v10813_v53  ;;  %2869 = vmatprep.subr.bf16.mxu0 %v2436_v16  ;;  %v2212_v16 = vld [vmem:[%s10349_s24 + $0x648] sm:$0xff] }
 0x342   : > { %2912 = vmatprep.subr.bf16.mxu1 %v2564_v26  ;;  %v2403_v26 = vunpack.c.l.s8.bf16 %v2155_v11  ;;  %v2524_v39 = vunpack.c.h.s8.bf16 %v2212_v16  ;;  %v2204_v11 = vld [vmem:[%s10349_s24 + $0x588] sm:$0xff] }
 0x343   : > { %2870 = vmatpush1.bf16.msra.mxu0 %v2435_v31 }
 0x344   : > { %2913 = vmatpush1.bf16.msra.mxu1 %v2563_v29  ;;  %2871 = vmatprep.subr.bf16.mxu0 %v2428_v6  ;;  %v2531_v29 = vunpack.c.l.s8.bf16 %v2219_v19  ;;  %v2396_v6 = vunpack.c.h.s8.bf16 %v2148_v58  ;;  %v2387_v19 = vunpack.c.l.s8.bf16 %v2147_v30 }
 0x345   : > { %2914 = vmatprep.subr.bf16.mxu1 %v2556_v38 }
 0x347   : > { %2872 = vmatpush1.bf16.msra.mxu0 %v2427_v49  ;;  %v2211_v49 = vld [vmem:[%s10349_s24 + $0x640] sm:$0xff] }
 0x348   : > { %2915 = vmatpush1.bf16.msra.mxu1 %v2555_v48  ;;  %2873 = vmatprep.subr.bf16.mxu0 %v2420_v22 }
 0x349   : > { %2916 = vmatprep.subr.bf16.mxu1 %v2548_v51 }
 0x34b   : > { %2874 = vmatpush1.bf16.msra.mxu0 %v2419_v8  ;;  %v2523_v8 = vunpack.c.h.s8.bf16 %v2211_v49 }
 0x34c   : > { %2917 = vmatpush1.bf16.msra.mxu1 %v2547_v18  ;;  %2875 = vmatprep.subr.bf16.mxu0 %v2412_v28  ;;  %v2388_v18 = vunpack.c.l.s8.bf16 %v2148_v58  ;;  %v2516_v28 = vunpack.c.l.s8.bf16 %v2212_v16  ;;  %v2500_v16 = vunpack.c.l.s8.bf16 %v2204_v11 }
 0x34d   : > { %2918 = vmatprep.subr.bf16.mxu1 %v2540_v12  ;;  %v2268_v12 = vld [vmem:[%s10349_s24 + $0xb88] sm:$0xff] }
 0x34e   : > { %v1763_v33 = vpop.f32.mrf.mxu0 }
 0x34f   : > { %v1806_v4 = vpop.f32.mrf.mxu1  ;;  %2876 = vmatpush1.bf16.msra.mxu0 %v2411_v1  ;;  %v2515_v1 = vunpack.c.l.s8.bf16 %v2211_v49 }
 0x350   : > { %v11149_v14 = vadd.f32 %v1806_v4, %v1763_v33  ;;  %2919 = vmatpush1.bf16.msra.mxu1 %v2539_v5  ;;  %v1765_v31 = vpop.f32.mrf.mxu0  ;;  %2877 = vmatprep.subr.bf16.mxu0 %v2404_v10  ;;  %v2508_v5 = vunpack.c.h.s8.bf16 %v2204_v11  ;;  %v2203_v10 = vld [vmem:[%s10349_s24 + $0x580] sm:$0xff]  ;;  %v2252_v11 = vld [vmem:[%s10349_s24 + $0xa08] sm:$0xff] }
 0x351   : > { %v1808_v38 = vpop.f32.mrf.mxu1  ;;  %2920 = vmatprep.subr.bf16.mxu1 %v2532_v13  ;;  %v2636_v13 = vunpack.c.h.s8.bf16 %v2268_v12  ;;  %v2267_v33 = vld [vmem:[%s10349_s24 + $0xb80] sm:$0xff]  ;;  %v2507_v4 = vunpack.c.h.s8.bf16 %v2203_v10 }
 0x352   : > { %v11153_v48 = vadd.f32 %v1808_v38, %v1765_v31  ;;  %v1767_v22 = vpop.f32.mrf.mxu0  ;;  %v2635_v58 = vunpack.c.h.s8.bf16 %v2267_v33  ;;  %v2196_v31 = vld [vmem:[%s10349_s24 + $0x4c8] sm:$0xff]  ;;  %v2627_v30 = vunpack.c.l.s8.bf16 %v2267_v33 }
 0x353   : > { %v1810_v51 = vpop.f32.mrf.mxu1  ;;  %2878 = vmatpush1.bf16.msra.mxu0 %v2403_v26  ;;  %v2628_v26 = vunpack.c.l.s8.bf16 %v2268_v12  ;;  %v2492_v38 = vunpack.c.h.s8.bf16 %v2196_v31 }
 0x354   : > { %v11155_v7 = vadd.f32 %v1810_v51, %v1767_v22  ;;  %2921 = vmatpush1.bf16.msra.mxu1 %v2531_v29  ;;  %2879 = vmatprep.subr.bf16.mxu0 %v2396_v6  ;;  %v2260_v29 = vld [vmem:[%s10349_s24 + $0xac8] sm:$0xff]  ;;  %v2499_v6 = vunpack.c.l.s8.bf16 %v2203_v10  ;;  %v2259_v22 = vld [vmem:[%s10349_s24 + $0xac0] sm:$0xff]  ;;  %v2604_v10 = vunpack.c.h.s8.bf16 %v2252_v11 }
 0x355   : > { %2922 = vmatprep.subr.bf16.mxu1 %v2524_v39  ;;  %v2195_v39 = vld [vmem:[%s10349_s24 + $0x4c0] sm:$0xff]  ;;  %v2620_v49 = vunpack.c.h.s8.bf16 %v2260_v29 }
 0x356   : > { %v2491_v51 = vunpack.c.h.s8.bf16 %v2195_v39  ;;  %v2483_v12 = vunpack.c.l.s8.bf16 %v2195_v39 }
 0x357   : > { %2880 = vmatpush1.bf16.msra.mxu0 %v2395_v15  ;;  %v2619_v15 = vunpack.c.h.s8.bf16 %v2259_v22 }
 0x358   : > { %2923 = vmatpush1.bf16.msra.mxu1 %v2523_v8  ;;  %2881 = vmatprep.subr.bf16.mxu0 %v2388_v18  ;;  %v2484_v8 = vunpack.c.l.s8.bf16 %v2196_v31  ;;  %v2612_v18 = vunpack.c.l.s8.bf16 %v2260_v29  ;;  %v2244_v31 = vld [vmem:[%s10349_s24 + $0x948] sm:$0xff] }
 0x359   : > { %2924 = vmatprep.subr.bf16.mxu1 %v2516_v28  ;;  %v2188_v28 = vld [vmem:[%s10349_s24 + $0x408] sm:$0xff]  ;;  %v2588_v39 = vunpack.c.h.s8.bf16 %v2244_v31 }
 0x35b   : > { %2882 = vmatpush1.bf16.msra.mxu0 %v2387_v19  ;;  %v2611_v19 = vunpack.c.l.s8.bf16 %v2259_v22 }
 0x35c   : > { %2925 = vmatpush1.bf16.msra.mxu1 %v2515_v1  ;;  %2883 = vmatprep.subr.bf16.mxu0 %v2508_v5  ;;  %v2476_v1 = vunpack.c.h.s8.bf16 %v2188_v28  ;;  %v2187_v5 = vld [vmem:[%s10349_s24 + $0x400] sm:$0xff] }
 0x35d   : > { %2926 = vmatprep.subr.bf16.mxu1 %v2636_v13  ;;  %v2251_v13 = vld [vmem:[%s10349_s24 + $0xa00] sm:$0xff]  ;;  %v2475_v33 = vunpack.c.h.s8.bf16 %v2187_v5  ;;  %v2467_v29 = vunpack.c.l.s8.bf16 %v2187_v5 }
 0x35f   : > { %2884 = vmatpush2.bf16.msra.mxu0 %v2507_v4  ;;  %v2603_v4 = vunpack.c.h.s8.bf16 %v2251_v13 }
 0x360   : > { %2927 = vmatpush2.bf16.msra.mxu1 %v2635_v58  ;;  %2885 = vmatprep.subr.bf16.mxu0 %v2500_v16  ;;  %v2468_v58 = vunpack.c.l.s8.bf16 %v2188_v28  ;;  %v2596_v16 = vunpack.c.l.s8.bf16 %v2252_v11  ;;  %v2364_v28 = vld [vmem:[%s10349_s24 + $0x1488] sm:$0xff] }
 0x361   : > { %2928 = vmatprep.subr.bf16.mxu1 %v2628_v26  ;;  %v2180_v26 = vld [vmem:[%s10349_s24 + $0x348] sm:$0xff]  ;;  %v2828_v5 = vunpack.c.h.s8.bf16 %v2364_v28 }
 0x363   : > { %2886 = vmatpush2.bf16.msra.mxu0 %v2499_v6  ;;  %v2595_v6 = vunpack.c.l.s8.bf16 %v2251_v13 }
 0x364   : > { %2929 = vmatpush2.bf16.msra.mxu1 %v2627_v30  ;;  %2887 = vmatprep.subr.bf16.mxu0 %v2492_v38  ;;  %v2460_v30 = vunpack.c.h.s8.bf16 %v2180_v26  ;;  %v2179_v38 = vld [vmem:[%s10349_s24 + $0x340] sm:$0xff] }
 0x365   : > { %2930 = vmatprep.subr.bf16.mxu1 %v2620_v49  ;;  %v2243_v49 = vld [vmem:[%s10349_s24 + $0x940] sm:$0xff]  ;;  %v2459_v22 = vunpack.c.h.s8.bf16 %v2179_v38  ;;  %v2451_v11 = vunpack.c.l.s8.bf16 %v2179_v38 }
 0x367   : > { %2888 = vmatpush2.bf16.msra.mxu0 %v2491_v51  ;;  %v2587_v51 = vunpack.c.h.s8.bf16 %v2243_v49 }
 0x368   : > { %2931 = vmatpush2.bf16.msra.mxu1 %v2619_v15  ;;  %2889 = vmatprep.subr.bf16.mxu0 %v2484_v8  ;;  %v2452_v15 = vunpack.c.l.s8.bf16 %v2180_v26  ;;  %v2580_v8 = vunpack.c.l.s8.bf16 %v2244_v31  ;;  %v2356_v26 = vld [vmem:[%s10349_s24 + $0x13c8] sm:$0xff] }
 0x369   : > { %2932 = vmatprep.subr.bf16.mxu1 %v2612_v18  ;;  %v2300_v18 = vld [vmem:[%s10349_s24 + $0xe88] sm:$0xff]  ;;  %v2812_v38 = vunpack.c.h.s8.bf16 %v2356_v26 }
 0x36b   : > { %2890 = vmatpush2.bf16.msra.mxu0 %v2483_v12  ;;  %v2579_v12 = vunpack.c.l.s8.bf16 %v2243_v49 }
 0x36c   : > { %2933 = vmatpush2.bf16.msra.mxu1 %v2611_v19  ;;  %2891 = vmatprep.subr.bf16.mxu0 %v2476_v1  ;;  %v2700_v19 = vunpack.c.h.s8.bf16 %v2300_v18  ;;  %v2299_v1 = vld [vmem:[%s10349_s24 + $0xe80] sm:$0xff] }
 0x36d   : > { %2934 = vmatprep.subr.bf16.mxu1 %v2604_v10  ;;  %v2363_v10 = vld [vmem:[%s10349_s24 + $0x1480] sm:$0xff]  ;;  %v2699_v13 = vunpack.c.h.s8.bf16 %v2299_v1  ;;  %v2691_v31 = vunpack.c.l.s8.bf16 %v2299_v1 }
 0x36f   : > { %2892 = vmatpush2.bf16.msra.mxu0 %v2475_v33  ;;  %v2827_v33 = vunpack.c.h.s8.bf16 %v2363_v10 }
 0x370   : > { %2935 = vmatpush2.bf16.msra.mxu1 %v2603_v4  ;;  %2893 = vmatprep.subr.bf16.mxu0 %v2468_v58  ;;  %v2692_v4 = vunpack.c.l.s8.bf16 %v2300_v18  ;;  %v2292_v58 = vld [vmem:[%s10349_s24 + $0xdc8] sm:$0xff] }
 0x371   : > { %2936 = vmatprep.subr.bf16.mxu1 %v2596_v16  ;;  %v2820_v16 = vunpack.c.l.s8.bf16 %v2364_v28  ;;  %v2348_v18 = vld [vmem:[%s10349_s24 + $0x1308] sm:$0xff] }
 0x372   : > { %v2796_v1 = vunpack.c.h.s8.bf16 %v2348_v18 }
 0x373   : > { %2894 = vmatpush2.bf16.msra.mxu0 %v2467_v29  ;;  %v2819_v29 = vunpack.c.l.s8.bf16 %v2363_v10  ;;  %v11190_v10 = vpop.f32.mrf.mxu1 }
 0x374   : > { %2937 = vmatpush2.bf16.msra.mxu1 %v2595_v6  ;;  %2895 = vmatprep.subr.bf16.mxu0 %v2460_v30  ;;  %v2684_v6 = vunpack.c.h.s8.bf16 %v2292_v58  ;;  %v2291_v30 = vld [vmem:[%s10349_s24 + $0xdc0] sm:$0xff]  ;;  %13056 = vst [vmem:[#allocation23_spill] sm:$0xff] %v11190_v10 }
 0x375   : > { %2938 = vmatprep.subr.bf16.mxu1 %v2588_v39  ;;  %v2355_v39 = vld [vmem:[%s10349_s24 + $0x13c0] sm:$0xff]  ;;  %v2683_v49 = vunpack.c.h.s8.bf16 %v2291_v30  ;;  %v2675_v28 = vunpack.c.l.s8.bf16 %v2291_v30 }
 0x377   : > { %2896 = vmatpush2.bf16.msra.mxu0 %v2459_v22  ;;  %v2811_v22 = vunpack.c.h.s8.bf16 %v2355_v39 }
 0x378   : > { %2939 = vmatpush2.bf16.msra.mxu1 %v2587_v51  ;;  %2897 = vmatprep.subr.bf16.mxu0 %v2452_v15  ;;  %v2676_v51 = vunpack.c.l.s8.bf16 %v2292_v58  ;;  %v2804_v15 = vunpack.c.l.s8.bf16 %v2356_v26  ;;  %v2788_v26 = vunpack.c.l.s8.bf16 %v2348_v18 }
 0x379   : > { %2940 = vmatprep.subr.bf16.mxu1 %v2580_v8  ;;  %v2284_v8 = vld [vmem:[%s10349_s24 + $0xd08] sm:$0xff] }
 0x37b   : > { %2898 = vmatpush2.bf16.msra.mxu0 %v2451_v11  ;;  %v2803_v11 = vunpack.c.l.s8.bf16 %v2355_v39 }
 0x37c   : > { %2941 = vmatpush2.bf16.msra.mxu1 %v2579_v12  ;;  %2953 = vmatprep.subr.bf16.mxu0 %v2700_v19  ;;  %v2668_v12 = vunpack.c.h.s8.bf16 %v2284_v8  ;;  %v2283_v19 = vld [vmem:[%s10349_s24 + $0xd00] sm:$0xff] }
 0x37d   : > { %2996 = vmatprep.subr.bf16.mxu1 %v2828_v5  ;;  %v2347_v5 = vld [vmem:[%s10349_s24 + $0x1300] sm:$0xff] }
 0x37e   : > { %2900 = vmatmul.mubr.bf16.vlgmr.msra.gmra.mxu0 %v10815_v62  ;;  %v2795_v58 = vunpack.c.h.s8.bf16 %v2347_v5 }
 0x37f   : > { %2943 = vmatmul.mubr.bf16.vlgmr.msra.gmra.mxu1 %v10817_v0  ;;  %2954 = vmatpush1.bf16.msra.mxu0 %v2699_v13  ;;  %v2667_v13 = vunpack.c.h.s8.bf16 %v2283_v19 }
 0x380   : > { %2985 = vmatprep.mubr.bf16.mxu0 %v10827_v60  ;;  %2997 = vmatpush1.bf16.msra.mxu1 %v2827_v33  ;;  %v11192_v33 = vpop.f32.mrf.mxu0 }
 0x381   : > { %9731 = vmatprep.mubr.msk.bf16.mxu1 %vm448_vm1, %v10829_v21  ;;  %2955 = vmatprep.subr.bf16.mxu0 %v2692_v4  ;;  %13057 = vst [vmem:[#allocation24_spill] sm:$0xff] %v11192_v33  ;;  %v1892_v4 = vpop.f32.mrf.mxu1 }
 0x382   : > { %2998 = vmatprep.subr.bf16.mxu1 %v2820_v16  ;;  %v2660_v16 = vunpack.c.l.s8.bf16 %v2284_v8 }
 0x383   : > { %2956 = vmatpush1.bf16.msra.mxu0 %v2691_v31  ;;  %v2276_v31 = vld [vmem:[%s10349_s24 + $0xc48] sm:$0xff]  ;;  %v1894_v39 = vpop.f32.mrf.mxu1 }
 0x384   : > { %2999 = vmatpush1.bf16.msra.mxu1 %v2819_v29  ;;  %2957 = vmatprep.subr.bf16.mxu0 %v2684_v6  ;;  %v2340_v6 = vld [vmem:[%s10349_s24 + $0x1248] sm:$0xff] }
 0x385   : > { %3000 = vmatprep.subr.bf16.mxu1 %v2812_v38  ;;  %v2659_v38 = vunpack.c.l.s8.bf16 %v2283_v19  ;;  %v2780_v18 = vunpack.c.h.s8.bf16 %v2340_v6 }
 0x387   : > { %2958 = vmatpush1.bf16.msra.mxu0 %v2683_v49 }
 0x388   : > { %3001 = vmatpush1.bf16.msra.mxu1 %v2811_v22  ;;  %2959 = vmatprep.subr.bf16.mxu0 %v2676_v51  ;;  %v2787_v22 = vunpack.c.l.s8.bf16 %v2347_v5  ;;  %v2652_v51 = vunpack.c.h.s8.bf16 %v2276_v31 }
 0x389   : > { %3002 = vmatprep.subr.bf16.mxu1 %v2804_v15  ;;  %v2275_v15 = vld [vmem:[%s10349_s24 + $0xc40] sm:$0xff] }
 0x38b   : > { %2960 = vmatpush1.bf16.msra.mxu0 %v2675_v28 }
 0x38c   : > { %3003 = vmatpush1.bf16.msra.mxu1 %v2803_v11  ;;  %2961 = vmatprep.subr.bf16.mxu0 %v2668_v12  ;;  %v2339_v11 = vld [vmem:[%s10349_s24 + $0x1240] sm:$0xff] }
 0x38d   : > { %3004 = vmatprep.subr.bf16.mxu1 %v2796_v1  ;;  %v2651_v1 = vunpack.c.h.s8.bf16 %v2275_v15  ;;  %v2779_v5 = vunpack.c.h.s8.bf16 %v2339_v11 }
 0x38e   : > { %v1849_v29 = vpop.f32.mrf.mxu0 }
 0x38f   : > { %v1850_v30 = vadd.f32 %v1849_v29, %v11149_v14  ;;  %2962 = vmatpush1.bf16.msra.mxu0 %v2667_v13  ;;  %v1896_v13 = vpop.f32.mrf.mxu1  ;;  %v2643_v29 = vunpack.c.l.s8.bf16 %v2275_v15  ;;  %v2324_v15 = vld [vmem:[%s10349_s24 + $0x10c8] sm:$0xff] }
 0x390   : > { %3005 = vmatpush1.bf16.msra.mxu1 %v2795_v58  ;;  %v1851_v49 = vpop.f32.mrf.mxu0  ;;  %2963 = vmatprep.subr.bf16.mxu0 %v2660_v16  ;;  %v2772_v58 = vunpack.c.l.s8.bf16 %v2340_v6  ;;  %v2332_v16 = vld [vmem:[%s10349_s24 + $0x1188] sm:$0xff] }
 0x391   : > { %v11198_v28 = vadd.f32 %v1892_v4, %v1850_v30  ;;  %v1852_v8 = vadd.f32 %v1851_v49, %v11153_v48  ;;  %3006 = vmatprep.subr.bf16.mxu1 %v2788_v26  ;;  %v2644_v4 = vunpack.c.l.s8.bf16 %v2276_v31  ;;  %v2380_v26 = vld [vmem:[%s10349_s24 + $0x1608] sm:$0xff]  ;;  %v2764_v30 = vunpack.c.h.s8.bf16 %v2332_v16  ;;  %v2379_v49 = vld [vmem:[%s10349_s24 + $0x1600] sm:$0xff] }
 0x392   : > { %v1853_v12 = vpop.f32.mrf.mxu0  ;;  %v2859_v6 = vunpack.c.h.s8.bf16 %v2379_v49 }
 0x393   : > { %13058 = vst [vmem:[#allocation25_spill] sm:$0xff] %v11198_v28  ;;  %v11202_v14 = vadd.f32 %v1894_v39, %v1852_v8  ;;  %v1854_v19 = vadd.f32 %v1853_v12, %v11155_v7  ;;  %2964 = vmatpush1.bf16.msra.mxu0 %v2659_v38  ;;  %v2771_v7 = vunpack.c.l.s8.bf16 %v2339_v11  ;;  %v2331_v38 = vld [vmem:[%s10349_s24 + $0x1180] sm:$0xff]  ;;  %v2860_v39 = vunpack.c.h.s8.bf16 %v2380_v26  ;;  %v2372_v8 = vld [vmem:[%s10349_s24 + $0x1548] sm:$0xff] }
 0x394   : > { %3007 = vmatpush1.bf16.msra.mxu1 %v2787_v22  ;;  %2965 = vmatprep.subr.bf16.mxu0 %v2652_v51  ;;  %v2763_v31 = vunpack.c.h.s8.bf16 %v2331_v38  ;;  %v2756_v22 = vunpack.c.l.s8.bf16 %v2332_v16  ;;  %v2852_v51 = vunpack.c.l.s8.bf16 %v2380_v26  ;;  %v2851_v11 = vunpack.c.l.s8.bf16 %v2379_v49  ;;  %v2316_v26 = vld [vmem:[%s10349_s24 + $0x1008] sm:$0xff] }
 0x395   : > { %13059 = vst [vmem:[#allocation26_spill] sm:$0xff] %v11202_v14  ;;  %v11205_v48 = vadd.f32 %v1896_v13, %v1854_v19  ;;  %3008 = vmatprep.subr.bf16.mxu1 %v2780_v18  ;;  %v2755_v18 = vunpack.c.l.s8.bf16 %v2331_v38  ;;  %v2748_v12 = vunpack.c.h.s8.bf16 %v2324_v15  ;;  %v2323_v19 = vld [vmem:[%s10349_s24 + $0x10c0] sm:$0xff]  ;;  %v2836_v16 = vunpack.c.l.s8.bf16 %v2372_v8  ;;  %v3862_v14 = vld [vmem:[%s10349_s24 + $0x1648] sm:$0xff] }
 0x396   : > { %v2371_v13 = vld [vmem:[%s10349_s24 + $0x1540] sm:$0xff]  ;;  %v2732_v38 = vunpack.c.h.s8.bf16 %v2316_v26 }
 0x397   : > { %13060 = vst [vmem:[#allocation27_spill] sm:$0xff] %v11205_v48  ;;  %2966 = vmatpush1.bf16.msra.mxu0 %v2651_v1  ;;  %v2844_v1 = vunpack.c.h.s8.bf16 %v2372_v8  ;;  %v2308_v8 = vld [vmem:[%s10349_s24 + $0xf48] sm:$0xff] }
 0x398   : > { %3009 = vmatpush1.bf16.msra.mxu1 %v2779_v5  ;;  %2967 = vmatprep.subr.bf16.mxu0 %v2644_v4  ;;  %v2747_v5 = vunpack.c.h.s8.bf16 %v2323_v19  ;;  %v2843_v4 = vunpack.c.h.s8.bf16 %v2371_v13 }
 0x399   : > { %3010 = vmatprep.subr.bf16.mxu1 %v2772_v58  ;;  %v2740_v58 = vunpack.c.l.s8.bf16 %v2324_v15 }
 0x39b   : > { %2968 = vmatpush1.bf16.msra.mxu0 %v2643_v29  ;;  %v2174_v29 = vld [vmem:[%s10349_s24 + $0x298] sm:$0xff] }
 0x39c   : > { %3011 = vmatpush1.bf16.msra.mxu1 %v2771_v7  ;;  %2969 = vmatprep.subr.bf16.mxu0 %v2764_v30  ;;  %v2739_v7 = vunpack.c.l.s8.bf16 %v2323_v19  ;;  %v2835_v30 = vunpack.c.l.s8.bf16 %v2371_v13  ;;  %v2446_v49 = vunpack.c.h.s8.bf16 %v2174_v29  ;;  %v2438_v15 = vunpack.c.l.s8.bf16 %v2174_v29  ;;  %v2238_v29 = vld [vmem:[%s10349_s24 + $0x898] sm:$0xff] }
 0x39d   : > { %3020 = vmatprep.subr.bf16.mxu1 %v2860_v39  ;;  %v2315_v39 = vld [vmem:[%s10349_s24 + $0x1000] sm:$0xff]  ;;  %v2716_v19 = vunpack.c.h.s8.bf16 %v2308_v8 }
 0x39f   : > { %2970 = vmatpush2.bf16.msra.mxu0 %v2763_v31  ;;  %v2173_v31 = vld [vmem:[%s10349_s24 + $0x290] sm:$0xff] }
 0x3a0   : > { %3021 = vmatpush2.bf16.msra.mxu1 %v2859_v6  ;;  %2971 = vmatprep.subr.bf16.mxu0 %v2756_v22  ;;  %v2731_v6 = vunpack.c.h.s8.bf16 %v2315_v39  ;;  %v2445_v22 = vunpack.c.h.s8.bf16 %v2173_v31 }
 0x3a1   : > { %3022 = vmatprep.subr.bf16.mxu1 %v2852_v51  ;;  %v2724_v51 = vunpack.c.l.s8.bf16 %v2316_v26 }
 0x3a3   : > { %2972 = vmatpush2.bf16.msra.mxu0 %v2755_v18  ;;  %v2166_v18 = vld [vmem:[%s10349_s24 + $0x1d8] sm:$0xff] }
 0x3a4   : > { %3023 = vmatpush2.bf16.msra.mxu1 %v2851_v11  ;;  %2973 = vmatprep.subr.bf16.mxu0 %v2748_v12  ;;  %v2723_v11 = vunpack.c.l.s8.bf16 %v2315_v39  ;;  %v2437_v12 = vunpack.c.l.s8.bf16 %v2173_v31  ;;  %v2430_v13 = vunpack.c.h.s8.bf16 %v2166_v18  ;;  %v2422_v26 = vunpack.c.l.s8.bf16 %v2166_v18  ;;  %v2230_v18 = vld [vmem:[%s10349_s24 + $0x7d8] sm:$0xff] }
 0x3a5   : > { %3024 = vmatprep.subr.bf16.mxu1 %v2844_v1  ;;  %v2307_v1 = vld [vmem:[%s10349_s24 + $0xf40] sm:$0xff]  ;;  %v2574_v39 = vunpack.c.h.s8.bf16 %v2238_v29 }
 0x3a7   : > { %2974 = vmatpush2.bf16.msra.mxu0 %v2747_v5  ;;  %v2165_v5 = vld [vmem:[%s10349_s24 + $0x1d0] sm:$0xff] }
 0x3a8   : > { %3025 = vmatpush2.bf16.msra.mxu1 %v2843_v4  ;;  %2975 = vmatprep.subr.bf16.mxu0 %v2740_v58  ;;  %v2715_v4 = vunpack.c.h.s8.bf16 %v2307_v1  ;;  %v2429_v58 = vunpack.c.h.s8.bf16 %v2165_v5 }
 0x3a9   : > { %3026 = vmatprep.subr.bf16.mxu1 %v2836_v16  ;;  %v2708_v16 = vunpack.c.l.s8.bf16 %v2308_v8 }
 0x3ab   : > { %2976 = vmatpush2.bf16.msra.mxu0 %v2739_v7  ;;  %v2158_v7 = vld [vmem:[%s10349_s24 + $0x118] sm:$0xff] }
 0x3ac   : > { %3027 = vmatpush2.bf16.msra.mxu1 %v2835_v30  ;;  %2977 = vmatprep.subr.bf16.mxu0 %v2732_v38  ;;  %v2707_v30 = vunpack.c.l.s8.bf16 %v2307_v1  ;;  %v2421_v38 = vunpack.c.l.s8.bf16 %v2165_v5  ;;  %v2414_v31 = vunpack.c.h.s8.bf16 %v2158_v7  ;;  %v2406_v8 = vunpack.c.l.s8.bf16 %v2158_v7  ;;  %v2222_v7 = vld [vmem:[%s10349_s24 + $0x718] sm:$0xff] }
 0x3ad   : > { %3039 = vmatprep.subr.bf16.mxu1 %v2446_v49  ;;  %v2237_v49 = vld [vmem:[%s10349_s24 + $0x890] sm:$0xff]  ;;  %v2558_v1 = vunpack.c.h.s8.bf16 %v2230_v18 }
 0x3af   : > { %3029 = vmatmul.mubr.bf16.vlgmr.msra.gmra.mxu1 %v10870_v47  ;;  %2978 = vmatpush2.bf16.msra.mxu0 %v2731_v6  ;;  %v2157_v6 = vld [vmem:[%s10349_s24 + $0x110] sm:$0xff] }
 0x3b0   : > { %3040 = vmatpush1.bf16.msra.mxu1 %v2445_v22  ;;  %3071 = vmatprep.mubr.bf16.mxu1 %v10811_v52  ;;  %v2573_v22 = vunpack.c.h.s8.bf16 %v2237_v49 }
 0x3b1   : > { %2979 = vmatprep.subr.bf16.mxu0 %v2724_v51  ;;  %3041 = vmatprep.subr.bf16.mxu1 %v2438_v15  ;;  %v2413_v51 = vunpack.c.h.s8.bf16 %v2157_v6  ;;  %v2566_v15 = vunpack.c.l.s8.bf16 %v2238_v29 }
 0x3b3   : > { %2980 = vmatpush2.bf16.msra.mxu0 %v2723_v11  ;;  %v2150_v11 = vld [vmem:[%s10349_s24 + $0x58] sm:$0xff] }
 0x3b4   : > { %3042 = vmatpush1.bf16.msra.mxu1 %v2437_v12  ;;  %2981 = vmatprep.subr.bf16.mxu0 %v2716_v19  ;;  %v2565_v12 = vunpack.c.l.s8.bf16 %v2237_v49  ;;  %v2405_v19 = vunpack.c.l.s8.bf16 %v2157_v6  ;;  %v2398_v5 = vunpack.c.h.s8.bf16 %v2150_v11  ;;  %v2390_v29 = vunpack.c.l.s8.bf16 %v2150_v11  ;;  %v2221_v6 = vld [vmem:[%s10349_s24 + $0x710] sm:$0xff] }
 0x3b5   : > { %3043 = vmatprep.subr.bf16.mxu1 %v2430_v13  ;;  %v2229_v13 = vld [vmem:[%s10349_s24 + $0x7d0] sm:$0xff] }
 0x3b7   : > { %2982 = vmatpush2.bf16.msra.mxu0 %v2715_v4  ;;  %v2149_v4 = vld [vmem:[%s10349_s24 + $0x50] sm:$0xff] }
 0x3b8   : > { %3044 = vmatpush1.bf16.msra.mxu1 %v2429_v58  ;;  %2983 = vmatprep.subr.bf16.mxu0 %v2708_v16  ;;  %v2557_v58 = vunpack.c.h.s8.bf16 %v2229_v13  ;;  %v2397_v16 = vunpack.c.h.s8.bf16 %v2149_v4  ;;  %v2389_v49 = vunpack.c.l.s8.bf16 %v2149_v4  ;;  %v2198_v4 = vld [vmem:[%s10349_s24 + $0x4d8] sm:$0xff] }
 0x3b9   : > { %3045 = vmatprep.subr.bf16.mxu1 %v2422_v26  ;;  %v2550_v26 = vunpack.c.l.s8.bf16 %v2230_v18  ;;  %v11241_v18 = vpop.f32.mrf.mxu0 }
 0x3ba   : > { %13062 = vst [vmem:[#allocation29_spill] sm:$0xff] %v11241_v18 }
 0x3bb   : > { %2984 = vmatpush2.bf16.msra.mxu0 %v2707_v30  ;;  %v2206_v30 = vld [vmem:[%s10349_s24 + $0x598] sm:$0xff] }
 0x3bc   : > { %3046 = vmatpush1.bf16.msra.mxu1 %v2421_v38  ;;  %3082 = vmatprep.subr.bf16.mxu0 %v2574_v39  ;;  %v2549_v38 = vunpack.c.l.s8.bf16 %v2229_v13  ;;  %v11237_v39 = vpop.f32.mrf.mxu1 }
 0x3bd   : > { %3047 = vmatprep.subr.bf16.mxu1 %v2414_v31  ;;  %13061 = vst [vmem:[#allocation28_spill] sm:$0xff] %v11237_v39  ;;  %v2542_v31 = vunpack.c.h.s8.bf16 %v2222_v7 }
 0x3be   : > { %2986 = vmatmul.mubr.bf16.vlgmr.msra.gmra.mxu0 %v10837_v37 }
 0x3bf   : > { %3083 = vmatpush1.bf16.msra.mxu0 %v2573_v22  ;;  %3114 = vmatprep.mubr.bf16.mxu0 %v10813_v53  ;;  %v2510_v22 = vunpack.c.h.s8.bf16 %v2206_v30 }
 0x3c0   : > { %3048 = vmatpush1.bf16.msra.mxu1 %v2413_v51  ;;  %3084 = vmatprep.subr.bf16.mxu0 %v2566_v15  ;;  %v2205_v51 = vld [vmem:[%s10349_s24 + $0x590] sm:$0xff]  ;;  %v1935_v15 = vpop.f32.mrf.mxu1 }
 0x3c1   : > { %3049 = vmatprep.subr.bf16.mxu1 %v2406_v8  ;;  %v2541_v8 = vunpack.c.h.s8.bf16 %v2221_v6  ;;  %v2509_v11 = vunpack.c.h.s8.bf16 %v2205_v51 }
 0x3c2   : > { %v1937_v13 = vpop.f32.mrf.mxu1 }
 0x3c3   : > { %3085 = vmatpush1.bf16.msra.mxu0 %v2565_v12  ;;  %v2534_v12 = vunpack.c.l.s8.bf16 %v2222_v7  ;;  %v2494_v7 = vunpack.c.h.s8.bf16 %v2198_v4 }
 0x3c4   : > { %3050 = vmatpush1.bf16.msra.mxu1 %v2405_v19  ;;  %3086 = vmatprep.subr.bf16.mxu0 %v2558_v1  ;;  %v2502_v19 = vunpack.c.l.s8.bf16 %v2206_v30  ;;  %v2214_v1 = vld [vmem:[%s10349_s24 + $0x658] sm:$0xff]  ;;  %v2197_v30 = vld [vmem:[%s10349_s24 + $0x4d0] sm:$0xff] }
 0x3c5   : > { %3051 = vmatprep.subr.bf16.mxu1 %v2398_v5 }
 0x3c7   : > { %3087 = vmatpush1.bf16.msra.mxu0 %v2557_v58 }
 0x3c8   : > { %3052 = vmatpush1.bf16.msra.mxu1 %v2397_v16  ;;  %3088 = vmatprep.subr.bf16.mxu0 %v2550_v26  ;;  %v2533_v16 = vunpack.c.l.s8.bf16 %v2221_v6 }
 0x3c9   : > { %3053 = vmatprep.subr.bf16.mxu1 %v2390_v29  ;;  %v2501_v29 = vunpack.c.l.s8.bf16 %v2205_v51  ;;  %v2493_v51 = vunpack.c.h.s8.bf16 %v2197_v30 }
 0x3cb   : > { %3089 = vmatpush1.bf16.msra.mxu0 %v2549_v38  ;;  %v2526_v38 = vunpack.c.h.s8.bf16 %v2214_v1 }
 0x3cc   : > { %3054 = vmatpush1.bf16.msra.mxu1 %v2389_v49  ;;  %3090 = vmatprep.subr.bf16.mxu0 %v2542_v31  ;;  %v2213_v49 = vld [vmem:[%s10349_s24 + $0x650] sm:$0xff] }
 0x3cd   : > { %3055 = vmatprep.subr.bf16.mxu1 %v2510_v22  ;;  %v1939_v22 = vpop.f32.mrf.mxu1  ;;  %v2525_v6 = vunpack.c.h.s8.bf16 %v2213_v49 }
 0x3ce   : > { %v1978_v5 = vpop.f32.mrf.mxu0 }
 0x3cf   : > { %v11245_v58 = vadd.f32 %v1978_v5, %v1935_v15  ;;  %3091 = vmatpush1.bf16.msra.mxu0 %v2541_v8  ;;  %v2518_v15 = vunpack.c.l.s8.bf16 %v2214_v1  ;;  %v2486_v8 = vunpack.c.l.s8.bf16 %v2198_v4  ;;  %v2269_v5 = vld [vmem:[%s10349_s24 + $0xb90] sm:$0xff] }
 0x3d0   : > { %3056 = vmatpush2.bf16.msra.mxu1 %v2509_v11  ;;  %v1980_v26 = vpop.f32.mrf.mxu0  ;;  %3092 = vmatprep.subr.bf16.mxu0 %v2534_v12  ;;  %v2270_v11 = vld [vmem:[%s10349_s24 + $0xb98] sm:$0xff] }
 0x3d1   : > { %v11248_v31 = vadd.f32 %v1980_v26, %v1937_v13  ;;  %3057 = vmatprep.subr.bf16.mxu1 %v2502_v19  ;;  %v2190_v12 = vld [vmem:[%s10349_s24 + $0x418] sm:$0xff]  ;;  %v2517_v19 = vunpack.c.l.s8.bf16 %v2213_v49  ;;  %v2638_v13 = vunpack.c.h.s8.bf16 %v2270_v11  ;;  %v2189_v26 = vld [vmem:[%s10349_s24 + $0x410] sm:$0xff]  ;;  %v2630_v4 = vunpack.c.l.s8.bf16 %v2270_v11 }
 0x3d2   : > { %v1982_v39 = vpop.f32.mrf.mxu0  ;;  %v2477_v1 = vunpack.c.h.s8.bf16 %v2189_v26  ;;  %v2262_v49 = vld [vmem:[%s10349_s24 + $0xad8] sm:$0xff] }
 0x3d3   : > { %v11251_v48 = vadd.f32 %v1982_v39, %v1939_v22  ;;  %3093 = vmatpush1.bf16.msra.mxu0 %v2533_v16  ;;  %v2485_v39 = vunpack.c.l.s8.bf16 %v2197_v30  ;;  %v2478_v16 = vunpack.c.h.s8.bf16 %v2190_v12  ;;  %v2629_v22 = vunpack.c.l.s8.bf16 %v2269_v5 }
 0x3d4   : > { %3058 = vmatpush2.bf16.msra.mxu1 %v2501_v29  ;;  %3094 = vmatprep.subr.bf16.mxu0 %v2526_v38  ;;  %v2637_v29 = vunpack.c.h.s8.bf16 %v2269_v5  ;;  %v2470_v38 = vunpack.c.l.s8.bf16 %v2190_v12  ;;  %v2469_v30 = vunpack.c.l.s8.bf16 %v2189_v26  ;;  %v2614_v12 = vunpack.c.l.s8.bf16 %v2262_v49  ;;  %v2302_v5 = vld [vmem:[%s10349_s24 + $0xe98] sm:$0xff] }
 0x3d5   : > { %3059 = vmatprep.subr.bf16.mxu1 %v2494_v7  ;;  %v2182_v7 = vld [vmem:[%s10349_s24 + $0x358] sm:$0xff] }
 0x3d7   : > { %3095 = vmatpush1.bf16.msra.mxu0 %v2525_v6  ;;  %v2622_v6 = vunpack.c.h.s8.bf16 %v2262_v49 }
 0x3d8   : > { %3060 = vmatpush2.bf16.msra.mxu1 %v2493_v51  ;;  %3096 = vmatprep.subr.bf16.mxu0 %v2518_v15  ;;  %v2261_v51 = vld [vmem:[%s10349_s24 + $0xad0] sm:$0xff]  ;;  %v2462_v15 = vunpack.c.h.s8.bf16 %v2182_v7 }
 0x3d9   : > { %3061 = vmatprep.subr.bf16.mxu1 %v2486_v8  ;;  %v2181_v8 = vld [vmem:[%s10349_s24 + $0x350] sm:$0xff] }
 0x3da   : > { %v2461_v11 = vunpack.c.h.s8.bf16 %v2181_v8  ;;  %v2453_v26 = vunpack.c.l.s8.bf16 %v2181_v8 }
 0x3db   : > { %3097 = vmatpush1.bf16.msra.mxu0 %v2517_v19  ;;  %v2621_v19 = vunpack.c.h.s8.bf16 %v2261_v51 }
 0x3dc   : > { %3062 = vmatpush2.bf16.msra.mxu1 %v2485_v39  ;;  %3098 = vmatprep.subr.bf16.mxu0 %v2638_v13  ;;  %v2454_v39 = vunpack.c.l.s8.bf16 %v2182_v7  ;;  %v2254_v13 = vld [vmem:[%s10349_s24 + $0xa18] sm:$0xff] }
 0x3dd   : > { %3063 = vmatprep.subr.bf16.mxu1 %v2478_v16  ;;  %v2613_v16 = vunpack.c.l.s8.bf16 %v2261_v51  ;;  %v2598_v7 = vunpack.c.l.s8.bf16 %v2254_v13  ;;  %v2294_v51 = vld [vmem:[%s10349_s24 + $0xdd8] sm:$0xff] }
 0x3df   : > { %3099 = vmatpush2.bf16.msra.mxu0 %v2637_v29  ;;  %v2606_v29 = vunpack.c.h.s8.bf16 %v2254_v13 }
 0x3e0   : > { %3064 = vmatpush2.bf16.msra.mxu1 %v2477_v1  ;;  %3100 = vmatprep.subr.bf16.mxu0 %v2630_v4  ;;  %v2253_v1 = vld [vmem:[%s10349_s24 + $0xa10] sm:$0xff]  ;;  %v2702_v4 = vunpack.c.h.s8.bf16 %v2302_v5 }
 0x3e1   : > { %3065 = vmatprep.subr.bf16.mxu1 %v2470_v38  ;;  %v2301_v38 = vld [vmem:[%s10349_s24 + $0xe90] sm:$0xff] }
 0x3e2   : > { %v2701_v49 = vunpack.c.h.s8.bf16 %v2301_v38  ;;  %v2693_v8 = vunpack.c.l.s8.bf16 %v2301_v38 }
 0x3e3   : > { %3101 = vmatpush2.bf16.msra.mxu0 %v2629_v22  ;;  %v2605_v22 = vunpack.c.h.s8.bf16 %v2253_v1 }
 0x3e4   : > { %3066 = vmatpush2.bf16.msra.mxu1 %v2469_v30  ;;  %3102 = vmatprep.subr.bf16.mxu0 %v2622_v6  ;;  %v2694_v30 = vunpack.c.l.s8.bf16 %v2302_v5  ;;  %v2246_v6 = vld [vmem:[%s10349_s24 + $0x958] sm:$0xff] }
 0x3e5   : > { %3067 = vmatprep.subr.bf16.mxu1 %v2462_v15  ;;  %v2597_v15 = vunpack.c.l.s8.bf16 %v2253_v1  ;;  %v2286_v1 = vld [vmem:[%s10349_s24 + $0xd18] sm:$0xff] }
 0x3e7   : > { %3103 = vmatpush2.bf16.msra.mxu0 %v2621_v19  ;;  %v2590_v19 = vunpack.c.h.s8.bf16 %v2246_v6 }
 0x3e8   : > { %3068 = vmatpush2.bf16.msra.mxu1 %v2461_v11  ;;  %3104 = vmatprep.subr.bf16.mxu0 %v2614_v12  ;;  %v2245_v11 = vld [vmem:[%s10349_s24 + $0x950] sm:$0xff]  ;;  %v2686_v12 = vunpack.c.h.s8.bf16 %v2294_v51 }
 0x3e9   : > { %3069 = vmatprep.subr.bf16.mxu1 %v2454_v39  ;;  %v2293_v39 = vld [vmem:[%s10349_s24 + $0xdd0] sm:$0xff]  ;;  %v2589_v13 = vunpack.c.h.s8.bf16 %v2245_v11 }
 0x3ea   : > { %v2685_v5 = vunpack.c.h.s8.bf16 %v2293_v39  ;;  %v2677_v38 = vunpack.c.l.s8.bf16 %v2293_v39 }
 0x3eb   : > { %3105 = vmatpush2.bf16.msra.mxu0 %v2613_v16  ;;  %v2582_v16 = vunpack.c.l.s8.bf16 %v2246_v6 }
 0x3ec   : > { %3070 = vmatpush2.bf16.msra.mxu1 %v2453_v26  ;;  %3106 = vmatprep.subr.bf16.mxu0 %v2606_v29  ;;  %v2678_v26 = vunpack.c.l.s8.bf16 %v2294_v51  ;;  %v2366_v29 = vld [vmem:[%s10349_s24 + $0x1498] sm:$0xff] }
 0x3ed   : > { %3125 = vmatprep.subr.bf16.mxu1 %v2702_v4  ;;  %v2581_v4 = vunpack.c.l.s8.bf16 %v2245_v11  ;;  %v2822_v51 = vunpack.c.l.s8.bf16 %v2366_v29  ;;  %v2662_v11 = vunpack.c.l.s8.bf16 %v2286_v1 }
 0x3ef   : > { %3072 = vmatmul.mubr.bf16.vlgmr.msra.gmra.mxu1 %v10815_v62  ;;  %3107 = vmatpush2.bf16.msra.mxu0 %v2605_v22  ;;  %v2830_v22 = vunpack.c.h.s8.bf16 %v2366_v29 }
 0x3f0   : > { %3126 = vmatpush1.bf16.msra.mxu1 %v2701_v49  ;;  %3157 = vmatprep.mubr.bf16.mxu1 %v10827_v60  ;;  %v2365_v49 = vld [vmem:[%s10349_s24 + $0x1490] sm:$0xff] }
 0x3f1   : > { %3108 = vmatprep.subr.bf16.mxu0 %v2598_v7  ;;  %3127 = vmatprep.subr.bf16.mxu1 %v2694_v30  ;;  %v2670_v7 = vunpack.c.h.s8.bf16 %v2286_v1  ;;  %v2285_v30 = vld [vmem:[%s10349_s24 + $0xd10] sm:$0xff] }
 0x3f2   : > { %v2669_v6 = vunpack.c.h.s8.bf16 %v2285_v30  ;;  %v2661_v29 = vunpack.c.l.s8.bf16 %v2285_v30 }
 0x3f3   : > { %3109 = vmatpush2.bf16.msra.mxu0 %v2597_v15  ;;  %v2829_v15 = vunpack.c.h.s8.bf16 %v2365_v49 }
 0x3f4   : > { %3128 = vmatpush1.bf16.msra.mxu1 %v2693_v8  ;;  %3110 = vmatprep.subr.bf16.mxu0 %v2590_v19  ;;  %v11275_v8 = vpop.f32.mrf.mxu0  ;;  %v11277_v19 = vpop.f32.mrf.mxu1 }
 0x3f5   : > { %3129 = vmatprep.subr.bf16.mxu1 %v2686_v12  ;;  %13063 = vst [vmem:[#allocation30_spill] sm:$0xff] %v11275_v8  ;;  %13064 = vst [vmem:[#allocation31_spill] sm:$0xff] %v11277_v19  ;;  %v2358_v12 = vld [vmem:[%s10349_s24 + $0x13d8] sm:$0xff]  ;;  %v2277_v8 = vld [vmem:[%s10349_s24 + $0xc50] sm:$0xff] }
 0x3f7   : > { %3111 = vmatpush2.bf16.msra.mxu0 %v2589_v13  ;;  %v2278_v13 = vld [vmem:[%s10349_s24 + $0xc58] sm:$0xff] }
 0x3f8   : > { %3130 = vmatpush1.bf16.msra.mxu1 %v2685_v5  ;;  %3112 = vmatprep.subr.bf16.mxu0 %v2582_v16  ;;  %v2821_v16 = vunpack.c.l.s8.bf16 %v2365_v49 }
 0x3f9   : > { %3131 = vmatprep.subr.bf16.mxu1 %v2678_v26 }
 0x3fb   : > { %3113 = vmatpush2.bf16.msra.mxu0 %v2581_v4  ;;  %v2814_v4 = vunpack.c.h.s8.bf16 %v2358_v12 }
 0x3fc   : > { %3132 = vmatpush1.bf16.msra.mxu1 %v2677_v38  ;;  %3168 = vmatprep.subr.bf16.mxu0 %v2830_v22  ;;  %v2357_v38 = vld [vmem:[%s10349_s24 + $0x13d0] sm:$0xff] }
 0x3fd   : > { %3133 = vmatprep.subr.bf16.mxu1 %v2670_v7  ;;  %v2654_v7 = vunpack.c.h.s8.bf16 %v2278_v13  ;;  %v2813_v49 = vunpack.c.h.s8.bf16 %v2357_v38 }
 0x3fe   : > { %v2064_v39 = vpop.f32.mrf.mxu0  ;;  %3115 = vmatmul.mubr.bf16.vlgmr.msra.gmra.mxu0 %v10817_v0 }
 0x3ff   : > { %v2021_v5 = vpop.f32.mrf.mxu1  ;;  %3169 = vmatpush1.bf16.msra.mxu0 %v2829_v15  ;;  %9732 = vmatprep.mubr.msk.bf16.mxu0 %vm448_vm1, %v10829_v21 }
 0x400   : > { %v2022_v26 = vadd.f32 %v2021_v5, %v11245_v58  ;;  %3134 = vmatpush1.bf16.msra.mxu1 %v2669_v6  ;;  %3170 = vmatprep.subr.bf16.mxu0 %v2822_v51  ;;  %v2066_v22 = vpop.f32.mrf.mxu0  ;;  %v2653_v6 = vunpack.c.h.s8.bf16 %v2277_v8  ;;  %v2806_v51 = vunpack.c.l.s8.bf16 %v2358_v12  ;;  %v2350_v5 = vld [vmem:[%s10349_s24 + $0x1318] sm:$0xff]  ;;  %v2333_v12 = vld [vmem:[%s10349_s24 + $0x1190] sm:$0xff] }
 0x401   : > { %v2023_v1 = vpop.f32.mrf.mxu1  ;;  %3135 = vmatprep.subr.bf16.mxu1 %v2662_v11 }
 0x402   : > { %v11287_v19 = vadd.f32 %v2064_v39, %v2022_v26  ;;  %v2024_v15 = vadd.f32 %v2023_v1, %v11248_v31  ;;  %v2068_v11 = vpop.f32.mrf.mxu0  ;;  %v2646_v39 = vunpack.c.l.s8.bf16 %v2278_v13  ;;  %v2334_v31 = vld [vmem:[%s10349_s24 + $0x1198] sm:$0xff]  ;;  %v2765_v13 = vunpack.c.h.s8.bf16 %v2333_v12 }
 0x403   : > { %v2025_v18 = vpop.f32.mrf.mxu1  ;;  %3171 = vmatpush1.bf16.msra.mxu0 %v2821_v16  ;;  %v2805_v16 = vunpack.c.l.s8.bf16 %v2357_v38  ;;  %v2758_v38 = vunpack.c.l.s8.bf16 %v2334_v31 }
 0x404   : > { %13065 = vst [vmem:[#allocation32_spill] sm:$0xff] %v11287_v19  ;;  %v11290_v58 = vadd.f32 %v2066_v22, %v2024_v15  ;;  %v2026_v30 = vadd.f32 %v2025_v18, %v11251_v48  ;;  %3136 = vmatpush1.bf16.msra.mxu1 %v2661_v29  ;;  %3172 = vmatprep.subr.bf16.mxu0 %v2814_v4  ;;  %v2645_v48 = vunpack.c.l.s8.bf16 %v2277_v8  ;;  %v2798_v18 = vunpack.c.h.s8.bf16 %v2350_v5  ;;  %v2349_v29 = vld [vmem:[%s10349_s24 + $0x1310] sm:$0xff]  ;;  %v2326_v15 = vld [vmem:[%s10349_s24 + $0x10d8] sm:$0xff] }
 0x405   : > { %3137 = vmatprep.subr.bf16.mxu1 %v2654_v7  ;;  %v2766_v4 = vunpack.c.h.s8.bf16 %v2334_v31  ;;  %v2797_v1 = vunpack.c.h.s8.bf16 %v2349_v29  ;;  %v2790_v22 = vunpack.c.l.s8.bf16 %v2350_v5  ;;  %v2342_v7 = vld [vmem:[%s10349_s24 + $0x1258] sm:$0xff]  ;;  %v2757_v8 = vunpack.c.l.s8.bf16 %v2333_v12 }
 0x406   : > { %13066 = vst [vmem:[#allocation33_spill] sm:$0xff] %v11290_v58  ;;  %v11294_v26 = vadd.f32 %v2068_v11, %v2026_v30  ;;  %v2782_v30 = vunpack.c.h.s8.bf16 %v2342_v7  ;;  %v2325_v11 = vld [vmem:[%s10349_s24 + $0x10d0] sm:$0xff]  ;;  %v2774_v31 = vunpack.c.l.s8.bf16 %v2342_v7  ;;  %v2354_v58 = vld [vmem:[%s10349_s24 + $0x1338] sm:$0xff] }
 0x407   : > { %3173 = vmatpush1.bf16.msra.mxu0 %v2813_v49  ;;  %v2789_v49 = vunpack.c.l.s8.bf16 %v2349_v29  ;;  %v2749_v5 = vunpack.c.h.s8.bf16 %v2325_v11 }
 0x408   : > { %13067 = vst [vmem:[#allocation34_spill] sm:$0xff] %v11294_v26  ;;  %3138 = vmatpush1.bf16.msra.mxu1 %v2653_v6  ;;  %3174 = vmatprep.subr.bf16.mxu0 %v2806_v51  ;;  %v2341_v6 = vld [vmem:[%s10349_s24 + $0x1250] sm:$0xff]  ;;  %v2750_v51 = vunpack.c.h.s8.bf16 %v2326_v15 }
 0x409   : > { %3139 = vmatprep.subr.bf16.mxu1 %v2646_v39  ;;  %v2781_v39 = vunpack.c.h.s8.bf16 %v2341_v6  ;;  %v2773_v29 = vunpack.c.l.s8.bf16 %v2341_v6 }
 0x40b   : > { %3175 = vmatpush1.bf16.msra.mxu0 %v2805_v16  ;;  %v2742_v16 = vunpack.c.l.s8.bf16 %v2326_v15 }
 0x40c   : > { %3140 = vmatpush1.bf16.msra.mxu1 %v2645_v48  ;;  %3176 = vmatprep.subr.bf16.mxu0 %v2798_v18  ;;  %v2382_v48 = vld [vmem:[%s10349_s24 + $0x1618] sm:$0xff] }
 0x40d   : > { %3141 = vmatprep.subr.bf16.mxu1 %v2766_v4  ;;  %v2318_v18 = vld [vmem:[%s10349_s24 + $0x1018] sm:$0xff]  ;;  %v2741_v4 = vunpack.c.l.s8.bf16 %v2325_v11  ;;  %v2862_v12 = vunpack.c.h.s8.bf16 %v2382_v48  ;;  %v2854_v15 = vunpack.c.l.s8.bf16 %v2382_v48 }
 0x40f   : > { %3177 = vmatpush1.bf16.msra.mxu0 %v2797_v1  ;;  %v2381_v1 = vld [vmem:[%s10349_s24 + $0x1610] sm:$0xff] }
 0x410   : > { %3142 = vmatpush2.bf16.msra.mxu1 %v2765_v13  ;;  %3178 = vmatprep.subr.bf16.mxu0 %v2790_v22  ;;  %v2734_v13 = vunpack.c.h.s8.bf16 %v2318_v18  ;;  %v2317_v22 = vld [vmem:[%s10349_s24 + $0x1010] sm:$0xff]  ;;  %v2853_v6 = vunpack.c.l.s8.bf16 %v2381_v1 }
 0x411   : > { %3143 = vmatprep.subr.bf16.mxu1 %v2758_v38  ;;  %v2861_v38 = vunpack.c.h.s8.bf16 %v2381_v1  ;;  %v2733_v7 = vunpack.c.h.s8.bf16 %v2317_v22 }
 0x413   : > { %3179 = vmatpush1.bf16.msra.mxu0 %v2789_v49  ;;  %v2726_v49 = vunpack.c.l.s8.bf16 %v2318_v18 }
 0x414   : > { %3144 = vmatpush2.bf16.msra.mxu1 %v2757_v8  ;;  %3180 = vmatprep.subr.bf16.mxu0 %v2782_v30  ;;  %v2374_v8 = vld [vmem:[%s10349_s24 + $0x1558] sm:$0xff] }
 0x415   : > { %3145 = vmatprep.subr.bf16.mxu1 %v2750_v51  ;;  %v2310_v30 = vld [vmem:[%s10349_s24 + $0xf58] sm:$0xff]  ;;  %v2725_v51 = vunpack.c.l.s8.bf16 %v2317_v22  ;;  %v2846_v11 = vunpack.c.h.s8.bf16 %v2374_v8  ;;  %v2838_v18 = vunpack.c.l.s8.bf16 %v2374_v8 }
 0x417   : > { %3181 = vmatpush1.bf16.msra.mxu0 %v2781_v39  ;;  %v2373_v39 = vld [vmem:[%s10349_s24 + $0x1550] sm:$0xff] }
 0x418   : > { %3146 = vmatpush2.bf16.msra.mxu1 %v2749_v5  ;;  %3182 = vmatprep.subr.bf16.mxu0 %v2774_v31  ;;  %v2718_v5 = vunpack.c.h.s8.bf16 %v2310_v30  ;;  %v2309_v31 = vld [vmem:[%s10349_s24 + $0xf50] sm:$0xff]  ;;  %v2837_v1 = vunpack.c.l.s8.bf16 %v2373_v39 }
 0x419   : > { %3147 = vmatprep.subr.bf16.mxu1 %v2742_v16  ;;  %v2845_v16 = vunpack.c.h.s8.bf16 %v2373_v39  ;;  %v2717_v48 = vunpack.c.h.s8.bf16 %v2309_v31 }
 0x41b   : > { %3183 = vmatpush1.bf16.msra.mxu0 %v2773_v29  ;;  %v2710_v29 = vunpack.c.l.s8.bf16 %v2310_v30 }
 0x41c   : > { %3148 = vmatpush2.bf16.msra.mxu1 %v2741_v4  ;;  %3192 = vmatprep.subr.bf16.mxu0 %v2862_v12  ;;  %v2176_v4 = vld [vmem:[%s10349_s24 + $0x2a8] sm:$0xff] }
 0x41d   : > { %3149 = vmatprep.subr.bf16.mxu1 %v2734_v13  ;;  %v2240_v12 = vld [vmem:[%s10349_s24 + $0x8a8] sm:$0xff]  ;;  %v2709_v13 = vunpack.c.l.s8.bf16 %v2309_v31  ;;  %v2448_v22 = vunpack.c.h.s8.bf16 %v2176_v4  ;;  %v2440_v30 = vunpack.c.l.s8.bf16 %v2176_v4 }
 0x41f   : > { %3193 = vmatpush2.bf16.msra.mxu0 %v2861_v38  ;;  %v2175_v38 = vld [vmem:[%s10349_s24 + $0x2a0] sm:$0xff] }
 0x420   : > { %3150 = vmatpush2.bf16.msra.mxu1 %v2733_v7  ;;  %3194 = vmatprep.subr.bf16.mxu0 %v2854_v15  ;;  %v2576_v7 = vunpack.c.h.s8.bf16 %v2240_v12  ;;  %v2239_v15 = vld [vmem:[%s10349_s24 + $0x8a0] sm:$0xff]  ;;  %v2439_v39 = vunpack.c.l.s8.bf16 %v2175_v38 }
 0x421   : > { %3151 = vmatprep.subr.bf16.mxu1 %v2726_v49  ;;  %v2447_v49 = vunpack.c.h.s8.bf16 %v2175_v38  ;;  %v2575_v8 = vunpack.c.h.s8.bf16 %v2239_v15 }
 0x423   : > { %3195 = vmatpush2.bf16.msra.mxu0 %v2853_v6  ;;  %v2168_v6 = vld [vmem:[%s10349_s24 + $0x1e8] sm:$0xff] }
 0x424   : > { %3152 = vmatpush2.bf16.msra.mxu1 %v2725_v51  ;;  %3196 = vmatprep.subr.bf16.mxu0 %v2846_v11  ;;  %v2568_v51 = vunpack.c.l.s8.bf16 %v2240_v12  ;;  %v2232_v11 = vld [vmem:[%s10349_s24 + $0x7e8] sm:$0xff]  ;;  %v2432_v31 = vunpack.c.h.s8.bf16 %v2168_v6  ;;  %v2424_v12 = vunpack.c.l.s8.bf16 %v2168_v6 }
 0x425   : > { %3153 = vmatprep.subr.bf16.mxu1 %v2718_v5  ;;  %v2567_v5 = vunpack.c.l.s8.bf16 %v2239_v15 }
 0x427   : > { %3197 = vmatpush2.bf16.msra.mxu0 %v2845_v16  ;;  %v2167_v16 = vld [vmem:[%s10349_s24 + $0x1e0] sm:$0xff] }
 0x428   : > { %3154 = vmatpush2.bf16.msra.mxu1 %v2717_v48  ;;  %3198 = vmatprep.subr.bf16.mxu0 %v2838_v18  ;;  %v2560_v48 = vunpack.c.h.s8.bf16 %v2232_v11  ;;  %v2231_v18 = vld [vmem:[%s10349_s24 + $0x7e0] sm:$0xff]  ;;  %v2423_v38 = vunpack.c.l.s8.bf16 %v2167_v16 }
 0x429   : > { %3155 = vmatprep.subr.bf16.mxu1 %v2710_v29  ;;  %v2431_v29 = vunpack.c.h.s8.bf16 %v2167_v16  ;;  %v2559_v4 = vunpack.c.h.s8.bf16 %v2231_v18  ;;  %v2152_v16 = vld [vmem:[%s10349_s24 + $0x68] sm:$0xff] }
 0x42b   : > { %3199 = vmatpush2.bf16.msra.mxu0 %v2837_v1  ;;  %v2552_v1 = vunpack.c.l.s8.bf16 %v2232_v11 }
 0x42c   : > { %3156 = vmatpush2.bf16.msra.mxu1 %v2709_v13  ;;  %3211 = vmatprep.subr.bf16.mxu0 %v2448_v22  ;;  %v2160_v13 = vld [vmem:[%s10349_s24 + $0x128] sm:$0xff] }
 0x42d   : > { %3254 = vmatprep.subr.bf16.mxu1 %v2576_v7  ;;  %v2224_v22 = vld [vmem:[%s10349_s24 + $0x728] sm:$0xff]  ;;  %v2551_v7 = vunpack.c.l.s8.bf16 %v2231_v18  ;;  %v2416_v15 = vunpack.c.h.s8.bf16 %v2160_v13  ;;  %v2408_v11 = vunpack.c.l.s8.bf16 %v2160_v13  ;;  %v2151_v13 = vld [vmem:[%s10349_s24 + $0x60] sm:$0xff] }
 0x42e   : > { %3201 = vmatmul.mubr.bf16.vlgmr.msra.gmra.mxu0 %v10870_v47  ;;  %v2216_v18 = vld [vmem:[%s10349_s24 + $0x668] sm:$0xff] }
 0x42f   : > { %3158 = vmatmul.mubr.bf16.vlgmr.msra.gmra.mxu1 %v10837_v37  ;;  %3212 = vmatpush1.bf16.msra.mxu0 %v2447_v49  ;;  %v2159_v49 = vld [vmem:[%s10349_s24 + $0x120] sm:$0xff] }
 0x430   : > { %3243 = vmatprep.mubr.bf16.mxu0 %v10811_v52  ;;  %3255 = vmatpush1.bf16.msra.mxu1 %v2575_v8  ;;  %v2544_v8 = vunpack.c.h.s8.bf16 %v2224_v22 }
 0x431   : > { %3286 = vmatprep.mubr.bf16.mxu1 %v10813_v53  ;;  %3213 = vmatprep.subr.bf16.mxu0 %v2440_v30  ;;  %v2223_v30 = vld [vmem:[%s10349_s24 + $0x720] sm:$0xff] }
 0x432   : > { %3256 = vmatprep.subr.bf16.mxu1 %v2568_v51  ;;  %v2415_v51 = vunpack.c.h.s8.bf16 %v2159_v49  ;;  %v2543_v6 = vunpack.c.h.s8.bf16 %v2223_v30 }
 0x433   : > { %3214 = vmatpush1.bf16.msra.mxu0 %v2439_v39  ;;  %v11327_v39 = vpop.f32.mrf.mxu0 }
 0x434   : > { %3257 = vmatpush1.bf16.msra.mxu1 %v2567_v5  ;;  %3215 = vmatprep.subr.bf16.mxu0 %v2432_v31  ;;  %13068 = vst [vmem:[#allocation35_spill] sm:$0xff] %v11327_v39  ;;  %v11329_v5 = vpop.f32.mrf.mxu1  ;;  %v2536_v31 = vunpack.c.l.s8.bf16 %v2224_v22  ;;  %v2528_v22 = vunpack.c.h.s8.bf16 %v2216_v18 }
 0x435   : > { %3258 = vmatprep.subr.bf16.mxu1 %v2560_v48  ;;  %13069 = vst [vmem:[#allocation36_spill] sm:$0xff] %v11329_v5 }
 0x437   : > { %3216 = vmatpush1.bf16.msra.mxu0 %v2431_v29 }
 0x438   : > { %3259 = vmatpush1.bf16.msra.mxu1 %v2559_v4  ;;  %3217 = vmatprep.subr.bf16.mxu0 %v2424_v12  ;;  %v2407_v4 = vunpack.c.l.s8.bf16 %v2159_v49  ;;  %v2399_v49 = vunpack.c.h.s8.bf16 %v2151_v13 }
 0x439   : > { %3260 = vmatprep.subr.bf16.mxu1 %v2552_v1 }
 0x43b   : > { %3218 = vmatpush1.bf16.msra.mxu0 %v2423_v38  ;;  %v2535_v38 = vunpack.c.l.s8.bf16 %v2223_v30 }
 0x43c   : > { %3261 = vmatpush1.bf16.msra.mxu1 %v2551_v7  ;;  %3219 = vmatprep.subr.bf16.mxu0 %v2416_v15  ;;  %v2400_v7 = vunpack.c.h.s8.bf16 %v2152_v16 }
 0x43d   : > { %3262 = vmatprep.subr.bf16.mxu1 %v2544_v8  ;;  %v2215_v8 = vld [vmem:[%s10349_s24 + $0x660] sm:$0xff] }
 0x43e   : > { %v2901_v48 = vpop.f32.mrf.mxu0  ;;  %v2527_v30 = vunpack.c.h.s8.bf16 %v2215_v8 }
 0x43f   : > { %v2944_v29 = vpop.f32.mrf.mxu1  ;;  %3220 = vmatpush1.bf16.msra.mxu0 %v2415_v51 }
 0x440   : > { %v11333_v12 = vadd.f32 %v2944_v29, %v2901_v48  ;;  %3263 = vmatpush1.bf16.msra.mxu1 %v2543_v6  ;;  %v2903_v1 = vpop.f32.mrf.mxu0  ;;  %3221 = vmatprep.subr.bf16.mxu0 %v2408_v11  ;;  %v2392_v6 = vunpack.c.l.s8.bf16 %v2152_v16  ;;  %v2520_v11 = vunpack.c.l.s8.bf16 %v2216_v18  ;;  %v2272_v48 = vld [vmem:[%s10349_s24 + $0xba8] sm:$0xff]  ;;  %v2391_v29 = vunpack.c.l.s8.bf16 %v2151_v13 }
 0x441   : > { %v2946_v15 = vpop.f32.mrf.mxu1  ;;  %3264 = vmatprep.subr.bf16.mxu1 %v2536_v31  ;;  %v2208_v31 = vld [vmem:[%s10349_s24 + $0x5a8] sm:$0xff] }
 0x442   : > { %v11337_v39 = vadd.f32 %v2946_v15, %v2903_v1  ;;  %v2905_v26 = vpop.f32.mrf.mxu0  ;;  %v2512_v1 = vunpack.c.h.s8.bf16 %v2208_v31  ;;  %v2207_v15 = vld [vmem:[%s10349_s24 + $0x5a0] sm:$0xff]  ;;  %v2504_v18 = vunpack.c.l.s8.bf16 %v2208_v31  ;;  %v2200_v13 = vld [vmem:[%s10349_s24 + $0x4e8] sm:$0xff] }
 0x443   : > { %v2948_v5 = vpop.f32.mrf.mxu1  ;;  %3222 = vmatpush1.bf16.msra.mxu0 %v2407_v4  ;;  %v2519_v4 = vunpack.c.l.s8.bf16 %v2215_v8 }
 0x444   : > { %v11339_v51 = vadd.f32 %v2948_v5, %v2905_v26  ;;  %3265 = vmatpush1.bf16.msra.mxu1 %v2535_v38  ;;  %3223 = vmatprep.subr.bf16.mxu0 %v2400_v7  ;;  %v2640_v26 = vunpack.c.h.s8.bf16 %v2272_v48  ;;  %v2271_v5 = vld [vmem:[%s10349_s24 + $0xba0] sm:$0xff]  ;;  %v2511_v38 = vunpack.c.h.s8.bf16 %v2207_v15  ;;  %v2632_v7 = vunpack.c.l.s8.bf16 %v2272_v48 }
 0x445   : > { %3266 = vmatprep.subr.bf16.mxu1 %v2528_v22  ;;  %v2639_v16 = vunpack.c.h.s8.bf16 %v2271_v5  ;;  %v2264_v22 = vld [vmem:[%s10349_s24 + $0xae8] sm:$0xff]  ;;  %v2631_v8 = vunpack.c.l.s8.bf16 %v2271_v5  ;;  %v2488_v48 = vunpack.c.l.s8.bf16 %v2200_v13 }
 0x447   : > { %3224 = vmatpush1.bf16.msra.mxu0 %v2399_v49  ;;  %v2503_v49 = vunpack.c.l.s8.bf16 %v2207_v15  ;;  %v2192_v15 = vld [vmem:[%s10349_s24 + $0x428] sm:$0xff] }
 0x448   : > { %3267 = vmatpush1.bf16.msra.mxu1 %v2527_v30  ;;  %3225 = vmatprep.subr.bf16.mxu0 %v2392_v6  ;;  %v2496_v30 = vunpack.c.h.s8.bf16 %v2200_v13  ;;  %v2199_v6 = vld [vmem:[%s10349_s24 + $0x4e0] sm:$0xff] }
 0x449   : > { %3268 = vmatprep.subr.bf16.mxu1 %v2520_v11  ;;  %v2624_v11 = vunpack.c.h.s8.bf16 %v2264_v22 }
 0x44b   : > { %3226 = vmatpush1.bf16.msra.mxu0 %v2391_v29  ;;  %v2263_v29 = vld [vmem:[%s10349_s24 + $0xae0] sm:$0xff] }
 0x44c   : > { %3269 = vmatpush1.bf16.msra.mxu1 %v2519_v4  ;;  %3227 = vmatprep.subr.bf16.mxu0 %v2512_v1  ;;  %v2495_v4 = vunpack.c.h.s8.bf16 %v2199_v6  ;;  %v2623_v31 = vunpack.c.h.s8.bf16 %v2263_v29  ;;  %v2616_v1 = vunpack.c.l.s8.bf16 %v2264_v22  ;;  %v2615_v5 = vunpack.c.l.s8.bf16 %v2263_v29 }
 0x44d   : > { %3270 = vmatprep.subr.bf16.mxu1 %v2640_v26  ;;  %v2256_v26 = vld [vmem:[%s10349_s24 + $0xa28] sm:$0xff]  ;;  %v2472_v22 = vunpack.c.l.s8.bf16 %v2192_v15 }
 0x44f   : > { %3228 = vmatpush2.bf16.msra.mxu0 %v2511_v38  ;;  %v2487_v38 = vunpack.c.l.s8.bf16 %v2199_v6  ;;  %v2184_v6 = vld [vmem:[%s10349_s24 + $0x368] sm:$0xff] }
 0x450   : > { %3271 = vmatpush2.bf16.msra.mxu1 %v2639_v16  ;;  %3229 = vmatprep.subr.bf16.mxu0 %v2504_v18  ;;  %v2480_v16 = vunpack.c.h.s8.bf16 %v2192_v15  ;;  %v2191_v18 = vld [vmem:[%s10349_s24 + $0x420] sm:$0xff] }
 0x451   : > { %3272 = vmatprep.subr.bf16.mxu1 %v2632_v7  ;;  %v2608_v7 = vunpack.c.h.s8.bf16 %v2256_v26 }
 0x453   : > { %3230 = vmatpush2.bf16.msra.mxu0 %v2503_v49  ;;  %v2255_v49 = vld [vmem:[%s10349_s24 + $0xa20] sm:$0xff] }
 0x454   : > { %3273 = vmatpush2.bf16.msra.mxu1 %v2631_v8  ;;  %3231 = vmatprep.subr.bf16.mxu0 %v2496_v30  ;;  %v2479_v8 = vunpack.c.h.s8.bf16 %v2191_v18  ;;  %v2607_v13 = vunpack.c.h.s8.bf16 %v2255_v49  ;;  %v2600_v30 = vunpack.c.l.s8.bf16 %v2256_v26  ;;  %v2599_v29 = vunpack.c.l.s8.bf16 %v2255_v49 }
 0x455   : > { %3274 = vmatprep.subr.bf16.mxu1 %v2624_v11  ;;  %v2248_v11 = vld [vmem:[%s10349_s24 + $0x968] sm:$0xff]  ;;  %v2456_v26 = vunpack.c.l.s8.bf16 %v2184_v6 }
 0x457   : > { %3232 = vmatpush2.bf16.msra.mxu0 %v2495_v4  ;;  %v2471_v4 = vunpack.c.l.s8.bf16 %v2191_v18  ;;  %v2304_v18 = vld [vmem:[%s10349_s24 + $0xea8] sm:$0xff] }
 0x458   : > { %3275 = vmatpush2.bf16.msra.mxu1 %v2623_v31  ;;  %3233 = vmatprep.subr.bf16.mxu0 %v2488_v48  ;;  %v2464_v31 = vunpack.c.h.s8.bf16 %v2184_v6  ;;  %v2183_v48 = vld [vmem:[%s10349_s24 + $0x360] sm:$0xff] }
 0x459   : > { %3276 = vmatprep.subr.bf16.mxu1 %v2616_v1  ;;  %v2592_v1 = vunpack.c.h.s8.bf16 %v2248_v11 }
 0x45b   : > { %3234 = vmatpush2.bf16.msra.mxu0 %v2487_v38  ;;  %v2247_v38 = vld [vmem:[%s10349_s24 + $0x960] sm:$0xff] }
 0x45c   : > { %3277 = vmatpush2.bf16.msra.mxu1 %v2615_v5  ;;  %3235 = vmatprep.subr.bf16.mxu0 %v2480_v16  ;;  %v2463_v5 = vunpack.c.h.s8.bf16 %v2183_v48  ;;  %v2591_v15 = vunpack.c.h.s8.bf16 %v2247_v38  ;;  %v2584_v16 = vunpack.c.l.s8.bf16 %v2248_v11  ;;  %v2583_v49 = vunpack.c.l.s8.bf16 %v2247_v38 }
 0x45d   : > { %3278 = vmatprep.subr.bf16.mxu1 %v2608_v7  ;;  %v2368_v7 = vld [vmem:[%s10349_s24 + $0x14a8] sm:$0xff]  ;;  %v2696_v11 = vunpack.c.l.s8.bf16 %v2304_v18 }
 0x45f   : > { %3236 = vmatpush2.bf16.msra.mxu0 %v2479_v8  ;;  %v2455_v8 = vunpack.c.l.s8.bf16 %v2183_v48  ;;  %v2824_v48 = vunpack.c.l.s8.bf16 %v2368_v7 }
 0x460   : > { %3279 = vmatpush2.bf16.msra.mxu1 %v2607_v13  ;;  %3237 = vmatprep.subr.bf16.mxu0 %v2472_v22  ;;  %v2704_v13 = vunpack.c.h.s8.bf16 %v2304_v18  ;;  %v2303_v22 = vld [vmem:[%s10349_s24 + $0xea0] sm:$0xff] }
 0x461   : > { %3280 = vmatprep.subr.bf16.mxu1 %v2600_v30  ;;  %v2832_v30 = vunpack.c.h.s8.bf16 %v2368_v7  ;;  %v2695_v38 = vunpack.c.l.s8.bf16 %v2303_v22  ;;  %v2359_v18 = vld [vmem:[%s10349_s24 + $0x13e0] sm:$0xff] }
 0x463   : > { %3238 = vmatpush2.bf16.msra.mxu0 %v2471_v4  ;;  %v2367_v4 = vld [vmem:[%s10349_s24 + $0x14a0] sm:$0xff] }
 0x464   : > { %3281 = vmatpush2.bf16.msra.mxu1 %v2599_v29  ;;  %3239 = vmatprep.subr.bf16.mxu0 %v2464_v31  ;;  %v2703_v29 = vunpack.c.h.s8.bf16 %v2303_v22  ;;  %v2831_v6 = vunpack.c.h.s8.bf16 %v2367_v4  ;;  %v2296_v31 = vld [vmem:[%s10349_s24 + $0xde8] sm:$0xff] }
 0x465   : > { %3282 = vmatprep.subr.bf16.mxu1 %v2592_v1  ;;  %v2360_v1 = vld [vmem:[%s10349_s24 + $0x13e8] sm:$0xff] }
 0x466   : > { %v2288_v22 = vld [vmem:[%s10349_s24 + $0xd28] sm:$0xff] }
 0x467   : > { %3240 = vmatpush2.bf16.msra.mxu0 %v2463_v5  ;;  %v2823_v5 = vunpack.c.l.s8.bf16 %v2367_v4 }
 0x468   : > { %3283 = vmatpush2.bf16.msra.mxu1 %v2591_v15  ;;  %3241 = vmatprep.subr.bf16.mxu0 %v2456_v26  ;;  %v2688_v15 = vunpack.c.h.s8.bf16 %v2296_v31  ;;  %v2295_v26 = vld [vmem:[%s10349_s24 + $0xde0] sm:$0xff] }
 0x469   : > { %3284 = vmatprep.subr.bf16.mxu1 %v2584_v16  ;;  %v2816_v16 = vunpack.c.h.s8.bf16 %v2360_v1  ;;  %v2687_v7 = vunpack.c.h.s8.bf16 %v2295_v26  ;;  %v2679_v4 = vunpack.c.l.s8.bf16 %v2295_v26 }
 0x46b   : > { %3242 = vmatpush2.bf16.msra.mxu0 %v2455_v8  ;;  %v2815_v8 = vunpack.c.h.s8.bf16 %v2359_v18 }
 0x46c   : > { %3285 = vmatpush2.bf16.msra.mxu1 %v2583_v49  ;;  %3297 = vmatprep.subr.bf16.mxu0 %v2704_v13  ;;  %v2680_v49 = vunpack.c.l.s8.bf16 %v2296_v31  ;;  %v2808_v13 = vunpack.c.l.s8.bf16 %v2360_v1 }
 0x46d   : > { %3340 = vmatprep.subr.bf16.mxu1 %v2832_v30  ;;  %v2352_v30 = vld [vmem:[%s10349_s24 + $0x1328] sm:$0xff] }
 0x46e   : > { %3244 = vmatmul.mubr.bf16.vlgmr.msra.gmra.mxu0 %v10815_v62 }
 0x46f   : > { %3287 = vmatmul.mubr.bf16.vlgmr.msra.gmra.mxu1 %v10817_v0  ;;  %3298 = vmatpush1.bf16.msra.mxu0 %v2703_v29  ;;  %v2807_v29 = vunpack.c.l.s8.bf16 %v2359_v18  ;;  %v2792_v18 = vunpack.c.l.s8.bf16 %v2352_v30 }
 0x470   : > { %3329 = vmatprep.mubr.bf16.mxu0 %v10827_v60  ;;  %3341 = vmatpush1.bf16.msra.mxu1 %v2831_v6  ;;  %v2672_v6 = vunpack.c.h.s8.bf16 %v2288_v22 }
 0x471   : > { %9733 = vmatprep.mubr.msk.bf16.mxu1 %vm448_vm1, %v10829_v21  ;;  %3299 = vmatprep.subr.bf16.mxu0 %v2696_v11  ;;  %v2287_v11 = vld [vmem:[%s10349_s24 + $0xd20] sm:$0xff] }
 0x472   : > { %3342 = vmatprep.subr.bf16.mxu1 %v2824_v48  ;;  %v2800_v48 = vunpack.c.h.s8.bf16 %v2352_v30  ;;  %v2671_v31 = vunpack.c.h.s8.bf16 %v2287_v11  ;;  %v2343_v30 = vld [vmem:[%s10349_s24 + $0x1260] sm:$0xff] }
 0x473   : > { %3300 = vmatpush1.bf16.msra.mxu0 %v2695_v38  ;;  %v2351_v38 = vld [vmem:[%s10349_s24 + $0x1320] sm:$0xff] }
 0x474   : > { %3343 = vmatpush1.bf16.msra.mxu1 %v2823_v5  ;;  %3301 = vmatprep.subr.bf16.mxu0 %v2688_v15  ;;  %v11374_v5 = vpop.f32.mrf.mxu1  ;;  %v11376_v15 = vpop.f32.mrf.mxu0  ;;  %v2799_v26 = vunpack.c.h.s8.bf16 %v2351_v38  ;;  %v2791_v33 = vunpack.c.l.s8.bf16 %v2351_v38  ;;  %v2783_v38 = vunpack.c.h.s8.bf16 %v2343_v30 }
 0x475   : > { %3344 = vmatprep.subr.bf16.mxu1 %v2816_v16  ;;  %13070 = vst [vmem:[#allocation37_spill] sm:$0xff] %v11374_v5  ;;  %13071 = vst [vmem:[#allocation38_spill] sm:$0xff] %v11376_v15  ;;  %v2664_v16 = vunpack.c.l.s8.bf16 %v2288_v22  ;;  %v3685_v5 = vld [vmem:[%s10349_s24 + $0x5c0] sm:$0xff] }
 0x476   : > { %v11378_v1 = vpop.f32.mrf.mxu1 }
 0x477   : > { %3302 = vmatpush1.bf16.msra.mxu0 %v2687_v7  ;;  %v2280_v7 = vld [vmem:[%s10349_s24 + $0xc68] sm:$0xff] }
 0x478   : > { %3345 = vmatpush1.bf16.msra.mxu1 %v2815_v8  ;;  %3303 = vmatprep.subr.bf16.mxu0 %v2680_v49  ;;  %v2344_v49 = vld [vmem:[%s10349_s24 + $0x1268] sm:$0xff]  ;;  %v2656_v42 = vunpack.c.h.s8.bf16 %v2280_v7 }
 0x479   : > { %3346 = vmatprep.subr.bf16.mxu1 %v2808_v13  ;;  %v2663_v13 = vunpack.c.l.s8.bf16 %v2287_v11  ;;  %v2784_v22 = vunpack.c.h.s8.bf16 %v2344_v49 }
 0x47b   : > { %3304 = vmatpush1.bf16.msra.mxu0 %v2679_v4  ;;  %v3032_v4 = vpop.f32.mrf.mxu1 }
 0x47c   : > { %3347 = vmatpush1.bf16.msra.mxu1 %v2807_v29  ;;  %3305 = vmatprep.subr.bf16.mxu0 %v2672_v6  ;;  %v2279_v29 = vld [vmem:[%s10349_s24 + $0xc60] sm:$0xff] }
 0x47d   : > { %3348 = vmatprep.subr.bf16.mxu1 %v2800_v48  ;;  %v2655_v11 = vunpack.c.h.s8.bf16 %v2279_v29 }
 0x47e   : > { %v11381_v8 = vpop.f32.mrf.mxu0 }
 0x47f   : > { %3306 = vmatpush1.bf16.msra.mxu0 %v2671_v31 }
 0x480   : > { %3349 = vmatpush1.bf16.msra.mxu1 %v2799_v26  ;;  %v2989_v10 = vpop.f32.mrf.mxu0  ;;  %3307 = vmatprep.subr.bf16.mxu0 %v2664_v16  ;;  %v3034_v26 = vpop.f32.mrf.mxu1  ;;  %v2648_v16 = vunpack.c.l.s8.bf16 %v2280_v7 }
 0x481   : > { %v2990_v6 = vadd.f32 %v2989_v10, %v11337_v39  ;;  %3350 = vmatprep.subr.bf16.mxu1 %v2792_v18  ;;  %v2776_v39 = vunpack.c.l.s8.bf16 %v2344_v49  ;;  %v2336_v18 = vld [vmem:[%s10349_s24 + $0x11a8] sm:$0xff] }
 0x482   : > { %v2991_v48 = vpop.f32.mrf.mxu0 }
 0x483   : > { %v11387_v36 = vadd.f32 %v3032_v4, %v2990_v6  ;;  %v2992_v31 = vadd.f32 %v2991_v48, %v11339_v51  ;;  %3308 = vmatpush1.bf16.msra.mxu0 %v2663_v13  ;;  %v2647_v4 = vunpack.c.l.s8.bf16 %v2279_v29  ;;  %v2775_v51 = vunpack.c.l.s8.bf16 %v2343_v30  ;;  %v2335_v6 = vld [vmem:[%s10349_s24 + $0x11a0] sm:$0xff]  ;;  %v2328_v48 = vld [vmem:[%s10349_s24 + $0x10e8] sm:$0xff] }
 0x484   : > { %3351 = vmatpush1.bf16.msra.mxu1 %v2791_v33  ;;  %3309 = vmatprep.subr.bf16.mxu0 %v2656_v42  ;;  %v2768_v13 = vunpack.c.h.s8.bf16 %v2336_v18  ;;  %v2864_v42 = vunpack.c.h.s8.bf16 %v2384_v41  ;;  %v2383_v33 = vld [vmem:[%s10349_s24 + $0x1620] sm:$0xff]  ;;  %v2767_v7 = vunpack.c.h.s8.bf16 %v2335_v6  ;;  %v2856_v29 = vunpack.c.l.s8.bf16 %v2384_v41 }
 0x485   : > { %v11390_v10 = vadd.f32 %v3034_v26, %v2992_v31  ;;  %3352 = vmatprep.subr.bf16.mxu1 %v2784_v22  ;;  %v2863_v49 = vunpack.c.h.s8.bf16 %v2383_v33  ;;  %v2760_v22 = vunpack.c.l.s8.bf16 %v2336_v18  ;;  %v2376_v31 = vld [vmem:[%s10349_s24 + $0x1568] sm:$0xff]  ;;  %v2855_v30 = vunpack.c.l.s8.bf16 %v2383_v33 }
 0x486   : > { %v2752_v26 = vunpack.c.h.s8.bf16 %v2328_v48  ;;  %v2744_v18 = vunpack.c.l.s8.bf16 %v2328_v48 }
 0x487   : > { %13072 = vst [vmem:[#allocation39_spill] sm:$0xff] %v11390_v10  ;;  %3310 = vmatpush1.bf16.msra.mxu0 %v2655_v11  ;;  %v2759_v11 = vunpack.c.l.s8.bf16 %v2335_v6  ;;  %v2178_v6 = vld [vmem:[%s10349_s24 + $0x2b8] sm:$0xff] }
 0x488   : > { %3353 = vmatpush1.bf16.msra.mxu1 %v2783_v38  ;;  %3311 = vmatprep.subr.bf16.mxu0 %v2648_v16  ;;  %v2327_v38 = vld [vmem:[%s10349_s24 + $0x10e0] sm:$0xff]  ;;  %v2848_v16 = vunpack.c.h.s8.bf16 %v2376_v31 }
 0x489   : > { %3354 = vmatprep.subr.bf16.mxu1 %v2776_v39  ;;  %v2375_v39 = vld [vmem:[%s10349_s24 + $0x1560] sm:$0xff] }
 0x48a   : > { %v2847_v41 = vunpack.c.h.s8.bf16 %v2375_v39  ;;  %v2839_v33 = vunpack.c.l.s8.bf16 %v2375_v39 }
 0x48b   : > { %3312 = vmatpush1.bf16.msra.mxu0 %v2647_v4  ;;  %v2751_v4 = vunpack.c.h.s8.bf16 %v2327_v38 }
 0x48c   : > { %3355 = vmatpush1.bf16.msra.mxu1 %v2775_v51  ;;  %3313 = vmatprep.subr.bf16.mxu0 %v2768_v13  ;;  %v2840_v51 = vunpack.c.l.s8.bf16 %v2376_v31  ;;  %v2320_v13 = vld [vmem:[%s10349_s24 + $0x1028] sm:$0xff] }
 0x48d   : > { %3364 = vmatprep.subr.bf16.mxu1 %v2864_v42  ;;  %v2743_v42 = vunpack.c.l.s8.bf16 %v2327_v38  ;;  %v2728_v31 = vunpack.c.l.s8.bf16 %v2320_v13  ;;  %v2170_v38 = vld [vmem:[%s10349_s24 + $0x1f8] sm:$0xff] }
 0x48f   : > { %3314 = vmatpush2.bf16.msra.mxu0 %v2767_v7  ;;  %v2736_v7 = vunpack.c.h.s8.bf16 %v2320_v13 }
 0x490   : > { %3365 = vmatpush2.bf16.msra.mxu1 %v2863_v49  ;;  %3315 = vmatprep.subr.bf16.mxu0 %v2760_v22  ;;  %v2319_v49 = vld [vmem:[%s10349_s24 + $0x1020] sm:$0xff]  ;;  %v2450_v22 = vunpack.c.h.s8.bf16 %v2178_v6 }
 0x491   : > { %3366 = vmatprep.subr.bf16.mxu1 %v2856_v29  ;;  %v2177_v29 = vld [vmem:[%s10349_s24 + $0x2b0] sm:$0xff] }
 0x492   : > { %v2449_v48 = vunpack.c.h.s8.bf16 %v2177_v29  ;;  %v2441_v39 = vunpack.c.l.s8.bf16 %v2177_v29 }
 0x493   : > { %3316 = vmatpush2.bf16.msra.mxu0 %v2759_v11  ;;  %v2735_v11 = vunpack.c.h.s8.bf16 %v2319_v49 }
 0x494   : > { %3367 = vmatpush2.bf16.msra.mxu1 %v2855_v30  ;;  %3317 = vmatprep.subr.bf16.mxu0 %v2752_v26  ;;  %v2442_v30 = vunpack.c.l.s8.bf16 %v2178_v6  ;;  %v2312_v26 = vld [vmem:[%s10349_s24 + $0xf68] sm:$0xff] }
 0x495   : > { %3368 = vmatprep.subr.bf16.mxu1 %v2848_v16  ;;  %v2727_v16 = vunpack.c.l.s8.bf16 %v2319_v49  ;;  %v2162_v49 = vld [vmem:[%s10349_s24 + $0x138] sm:$0xff] }
 0x497   : > { %3318 = vmatpush2.bf16.msra.mxu0 %v2751_v4  ;;  %v2720_v4 = vunpack.c.h.s8.bf16 %v2312_v26 }
 0x498   : > { %3369 = vmatpush2.bf16.msra.mxu1 %v2847_v41  ;;  %3319 = vmatprep.subr.bf16.mxu0 %v2744_v18  ;;  %v2311_v41 = vld [vmem:[%s10349_s24 + $0xf60] sm:$0xff]  ;;  %v2434_v18 = vunpack.c.h.s8.bf16 %v2170_v38 }
 0x499   : > { %3370 = vmatprep.subr.bf16.mxu1 %v2840_v51  ;;  %v2169_v51 = vld [vmem:[%s10349_s24 + $0x1f0] sm:$0xff]  ;;  %v2719_v13 = vunpack.c.h.s8.bf16 %v2311_v41 }
 0x49a   : > { %v2433_v6 = vunpack.c.h.s8.bf16 %v2169_v51  ;;  %v2425_v29 = vunpack.c.l.s8.bf16 %v2169_v51 }
 0x49b   : > { %3320 = vmatpush2.bf16.msra.mxu0 %v2743_v42  ;;  %v2712_v42 = vunpack.c.l.s8.bf16 %v2312_v26 }
 0x49c   : > { %3371 = vmatpush2.bf16.msra.mxu1 %v2839_v33  ;;  %3321 = vmatprep.subr.bf16.mxu0 %v2736_v7  ;;  %v2426_v33 = vunpack.c.l.s8.bf16 %v2170_v38  ;;  %v2242_v7 = vld [vmem:[%s10349_s24 + $0x8b8] sm:$0xff] }
 0x49d   : > { %3383 = vmatprep.subr.bf16.mxu1 %v2450_v22  ;;  %v2711_v22 = vunpack.c.l.s8.bf16 %v2311_v41  ;;  %v2570_v38 = vunpack.c.l.s8.bf16 %v2242_v7  ;;  %v2154_v41 = vld [vmem:[%s10349_s24 + $0x78] sm:$0xff] }
 0x49f   : > { %3373 = vmatmul.mubr.bf16.vlgmr.msra.gmra.mxu1 %v10870_v47  ;;  %3322 = vmatpush2.bf16.msra.mxu0 %v2735_v11  ;;  %v2578_v11 = vunpack.c.h.s8.bf16 %v2242_v7 }
 0x4a0   : > { %3384 = vmatpush1.bf16.msra.mxu1 %v2449_v48  ;;  %3415 = vmatprep.mubr.bf16.mxu1 %v10811_v52  ;;  %v2241_v48 = vld [vmem:[%s10349_s24 + $0x8b0] sm:$0xff] }
 0x4a1   : > { %3323 = vmatprep.subr.bf16.mxu0 %v2728_v31  ;;  %3385 = vmatprep.subr.bf16.mxu1 %v2442_v30  ;;  %v2418_v31 = vunpack.c.h.s8.bf16 %v2162_v49  ;;  %v2161_v30 = vld [vmem:[%s10349_s24 + $0x130] sm:$0xff] }
 0x4a2   : > { %v2417_v26 = vunpack.c.h.s8.bf16 %v2161_v30  ;;  %v2409_v51 = vunpack.c.l.s8.bf16 %v2161_v30  ;;  %v11422_v30 = vpop.f32.mrf.mxu1 }
 0x4a3   : > { %3324 = vmatpush2.bf16.msra.mxu0 %v2727_v16  ;;  %v2577_v16 = vunpack.c.h.s8.bf16 %v2241_v48  ;;  %13073 = vst [vmem:[#allocation40_spill] sm:$0xff] %v11422_v30 }
 0x4a4   : > { %3386 = vmatpush1.bf16.msra.mxu1 %v2441_v39  ;;  %3325 = vmatprep.subr.bf16.mxu0 %v2720_v4  ;;  %v2410_v39 = vunpack.c.l.s8.bf16 %v2162_v49  ;;  %v2234_v4 = vld [vmem:[%s10349_s24 + $0x7f8] sm:$0xff] }
 0x4a5   : > { %3387 = vmatprep.subr.bf16.mxu1 %v2434_v18  ;;  %v2569_v18 = vunpack.c.l.s8.bf16 %v2241_v48  ;;  %v2210_v48 = vld [vmem:[%s10349_s24 + $0x5b8] sm:$0xff] }
 0x4a7   : > { %3326 = vmatpush2.bf16.msra.mxu0 %v2719_v13  ;;  %v2562_v13 = vunpack.c.h.s8.bf16 %v2234_v4 }
 0x4a8   : > { %3388 = vmatpush1.bf16.msra.mxu1 %v2433_v6  ;;  %3327 = vmatprep.subr.bf16.mxu0 %v2712_v42  ;;  %v2233_v6 = vld [vmem:[%s10349_s24 + $0x7f0] sm:$0xff]  ;;  %v2402_v42 = vunpack.c.h.s8.bf16 %v2154_v41 }
 0x4a9   : > { %3389 = vmatprep.subr.bf16.mxu1 %v2426_v33  ;;  %v2153_v33 = vld [vmem:[%s10349_s24 + $0x70] sm:$0xff]  ;;  %v2561_v7 = vunpack.c.h.s8.bf16 %v2233_v6 }
 0x4aa   : > { %v2401_v49 = vunpack.c.h.s8.bf16 %v2153_v33 }
 0x4ab   : > { %3328 = vmatpush2.bf16.msra.mxu0 %v2711_v22  ;;  %v2554_v22 = vunpack.c.l.s8.bf16 %v2234_v4 }
 0x4ac   : > { %3390 = vmatpush1.bf16.msra.mxu1 %v2425_v29  ;;  %3426 = vmatprep.subr.bf16.mxu0 %v2578_v11  ;;  %v2394_v29 = vunpack.c.l.s8.bf16 %v2154_v41  ;;  %v2226_v11 = vld [vmem:[%s10349_s24 + $0x738] sm:$0xff]  ;;  %v11428_v41 = vpop.f32.mrf.mxu0 }
 0x4ad   : > { %3391 = vmatprep.subr.bf16.mxu1 %v2418_v31  ;;  %v2553_v31 = vunpack.c.l.s8.bf16 %v2233_v6  ;;  %13074 = vst [vmem:[#allocation41_spill] sm:$0xff] %v11428_v41  ;;  %v2538_v6 = vunpack.c.l.s8.bf16 %v2226_v11  ;;  %v3750_v41 = vld [vmem:[%s10349_s24 + $0xbc8] sm:$0xff] }
 0x4ae   : > { %3330 = vmatmul.mubr.bf16.vlgmr.msra.gmra.mxu0 %v10837_v37 }
 0x4af   : > { %3427 = vmatpush1.bf16.msra.mxu0 %v2577_v16  ;;  %3458 = vmatprep.mubr.bf16.mxu0 %v10813_v53  ;;  %v2393_v16 = vunpack.c.l.s8.bf16 %v2153_v33  ;;  %v2218_v33 = vld [vmem:[%s10349_s24 + $0x678] sm:$0xff] }
 0x4b0   : > { %3392 = vmatpush1.bf16.msra.mxu1 %v2417_v26  ;;  %3428 = vmatprep.subr.bf16.mxu0 %v2570_v38  ;;  %v2546_v26 = vunpack.c.h.s8.bf16 %v2226_v11  ;;  %v2225_v38 = vld [vmem:[%s10349_s24 + $0x730] sm:$0xff]  ;;  %v2530_v43 = vunpack.c.h.s8.bf16 %v2218_v33 }
 0x4b1   : > { %3393 = vmatprep.subr.bf16.mxu1 %v2410_v39  ;;  %v2514_v39 = vunpack.c.h.s8.bf16 %v2210_v48  ;;  %v2545_v4 = vunpack.c.h.s8.bf16 %v2225_v38 }
 0x4b3   : > { %3429 = vmatpush1.bf16.msra.mxu0 %v2569_v18  ;;  %v2209_v18 = vld [vmem:[%s10349_s24 + $0x5b0] sm:$0xff] }
 0x4b4   : > { %3394 = vmatpush1.bf16.msra.mxu1 %v2409_v51  ;;  %3430 = vmatprep.subr.bf16.mxu0 %v2562_v13  ;;  %v11426_v51 = vpop.f32.mrf.mxu1  ;;  %v2513_v13 = vunpack.c.h.s8.bf16 %v2209_v18  ;;  %v2505_v3 = vunpack.c.l.s8.bf16 %v2209_v18 }
 0x4b5   : > { %3395 = vmatprep.subr.bf16.mxu1 %v2402_v42  ;;  %v2506_v42 = vunpack.c.l.s8.bf16 %v2210_v48  ;;  %v2201_v48 = vld [vmem:[%s10349_s24 + $0x4f0] sm:$0xff] }
 0x4b6   : > { %v2497_v18 = vunpack.c.h.s8.bf16 %v2201_v48 }
 0x4b7   : > { %3431 = vmatpush1.bf16.msra.mxu0 %v2561_v7  ;;  %v3075_v7 = vpop.f32.mrf.mxu1 }
 0x4b8   : > { %3396 = vmatpush1.bf16.msra.mxu1 %v2401_v49  ;;  %3432 = vmatprep.subr.bf16.mxu0 %v2554_v22  ;;  %v2202_v22 = vld [vmem:[%s10349_s24 + $0x4f8] sm:$0xff] }
 0x4b9   : > { %3397 = vmatprep.subr.bf16.mxu1 %v2394_v29  ;;  %v2537_v29 = vunpack.c.l.s8.bf16 %v2225_v38  ;;  %v2498_v11 = vunpack.c.h.s8.bf16 %v2202_v22 }
 0x4bb   : > { %3433 = vmatpush1.bf16.msra.mxu0 %v2553_v31 }
 0x4bc   : > { %3398 = vmatpush1.bf16.msra.mxu1 %v2393_v16  ;;  %3434 = vmatprep.subr.bf16.mxu0 %v2546_v26  ;;  %v2217_v16 = vld [vmem:[%s10349_s24 + $0x670] sm:$0xff] }
 0x4bd   : > { %3399 = vmatprep.subr.bf16.mxu1 %v2514_v39  ;;  %v3077_v39 = vpop.f32.mrf.mxu1  ;;  %v2529_v38 = vunpack.c.h.s8.bf16 %v2217_v16 }
 0x4be   : > { %v11431_v49 = vpop.f32.mrf.mxu0 }
 0x4bf   : > { %3435 = vmatpush1.bf16.msra.mxu0 %v2545_v4  ;;  %v2522_v4 = vunpack.c.l.s8.bf16 %v2218_v33 }
 0x4c0   : > { %3400 = vmatpush2.bf16.msra.mxu1 %v2513_v13  ;;  %v3118_v31 = vpop.f32.mrf.mxu0  ;;  %3436 = vmatprep.subr.bf16.mxu0 %v2538_v6  ;;  %v2490_v13 = vunpack.c.l.s8.bf16 %v2202_v22  ;;  %v2274_v6 = vld [vmem:[%s10349_s24 + $0xbb8] sm:$0xff] }
 0x4c1   : > { %v11435_v26 = vadd.f32 %v3118_v31, %v3075_v7  ;;  %3401 = vmatprep.subr.bf16.mxu1 %v2506_v42  ;;  %v2194_v7 = vld [vmem:[%s10349_s24 + $0x438] sm:$0xff]  ;;  %v2521_v42 = vunpack.c.l.s8.bf16 %v2217_v16  ;;  %v2642_v31 = vunpack.c.h.s8.bf16 %v2274_v6  ;;  %v2634_v22 = vunpack.c.l.s8.bf16 %v2274_v6 }
 0x4c2   : > { %v3120_v9 = vpop.f32.mrf.mxu0  ;;  %v2474_v16 = vunpack.c.l.s8.bf16 %v2194_v7 }
 0x4c3   : > { %v11438_v35 = vadd.f32 %v3120_v9, %v3077_v39  ;;  %3437 = vmatpush1.bf16.msra.mxu0 %v2537_v29  ;;  %v2489_v9 = vunpack.c.l.s8.bf16 %v2201_v48  ;;  %v2273_v29 = vld [vmem:[%s10349_s24 + $0xbb0] sm:$0xff]  ;;  %v2482_v39 = vunpack.c.h.s8.bf16 %v2194_v7 }
 0x4c4   : > { %3402 = vmatpush2.bf16.msra.mxu1 %v2505_v3  ;;  %3438 = vmatprep.subr.bf16.mxu0 %v2530_v43  ;;  %v2193_v3 = vld [vmem:[%s10349_s24 + $0x430] sm:$0xff]  ;;  %v2641_v43 = vunpack.c.h.s8.bf16 %v2273_v29  ;;  %v11462_v30 = vpop.f32.mrf.mxu0 }
 0x4c5   : > { %3403 = vmatprep.subr.bf16.mxu1 %v2498_v11  ;;  %v2481_v33 = vunpack.c.h.s8.bf16 %v2193_v3  ;;  %v2266_v11 = vld [vmem:[%s10349_s24 + $0xaf8] sm:$0xff]  ;;  %v2473_v48 = vunpack.c.l.s8.bf16 %v2193_v3  ;;  %13075 = vst [vmem:[#allocation42_spill] sm:$0xff] %v11462_v30  ;;  %v2281_v30 = vld [vmem:[%s10349_s24 + $0xc70] sm:$0xff] }
 0x4c6   : > { %v2618_v7 = vunpack.c.l.s8.bf16 %v2266_v11 }
 0x4c7   : > { %3439 = vmatpush1.bf16.msra.mxu0 %v2529_v38  ;;  %v2186_v38 = vld [vmem:[%s10349_s24 + $0x378] sm:$0xff] }
 0x4c8   : > { %3404 = vmatpush2.bf16.msra.mxu1 %v2497_v18  ;;  %3440 = vmatprep.subr.bf16.mxu0 %v2522_v4  ;;  %v2633_v18 = vunpack.c.l.s8.bf16 %v2273_v29  ;;  %v2626_v4 = vunpack.c.h.s8.bf16 %v2266_v11  ;;  %v2458_v29 = vunpack.c.l.s8.bf16 %v2186_v38 }
 0x4c9   : > { %3405 = vmatprep.subr.bf16.mxu1 %v2490_v13  ;;  %v2265_v13 = vld [vmem:[%s10349_s24 + $0xaf0] sm:$0xff] }
 0x4cb   : > { %3441 = vmatpush1.bf16.msra.mxu0 %v2521_v42  ;;  %v2466_v42 = vunpack.c.h.s8.bf16 %v2186_v38 }
 0x4cc   : > { %3406 = vmatpush2.bf16.msra.mxu1 %v2489_v9  ;;  %3442 = vmatprep.subr.bf16.mxu0 %v2642_v31  ;;  %v2185_v9 = vld [vmem:[%s10349_s24 + $0x370] sm:$0xff]  ;;  %v2625_v31 = vunpack.c.h.s8.bf16 %v2265_v13 }
 0x4cd   : > { %3407 = vmatprep.subr.bf16.mxu1 %v2482_v39  ;;  %v2465_v6 = vunpack.c.h.s8.bf16 %v2185_v9  ;;  %v2258_v39 = vld [vmem:[%s10349_s24 + $0xa38] sm:$0xff]  ;;  %v2457_v3 = vunpack.c.l.s8.bf16 %v2185_v9 }
 0x4ce   : > { %v2602_v38 = vunpack.c.l.s8.bf16 %v2258_v39 }
 0x4cf   : > { %3443 = vmatpush2.bf16.msra.mxu0 %v2641_v43  ;;  %v2306_v43 = vld [vmem:[%s10349_s24 + $0xeb8] sm:$0xff] }
 0x4d0   : > { %3408 = vmatpush2.bf16.msra.mxu1 %v2481_v33  ;;  %3444 = vmatprep.subr.bf16.mxu0 %v2634_v22  ;;  %v2617_v33 = vunpack.c.l.s8.bf16 %v2265_v13  ;;  %v2610_v22 = vunpack.c.h.s8.bf16 %v2258_v39  ;;  %v2698_v13 = vunpack.c.l.s8.bf16 %v2306_v43 }
 0x4d1   : > { %3409 = vmatprep.subr.bf16.mxu1 %v2474_v16  ;;  %v2257_v16 = vld [vmem:[%s10349_s24 + $0xa30] sm:$0xff] }
 0x4d2   : > { %v2601_v9 = vunpack.c.l.s8.bf16 %v2257_v16 }
 0x4d3   : > { %3445 = vmatpush2.bf16.msra.mxu0 %v2633_v18  ;;  %v2706_v18 = vunpack.c.h.s8.bf16 %v2306_v43 }
 0x4d4   : > { %3410 = vmatpush2.bf16.msra.mxu1 %v2473_v48  ;;  %3446 = vmatprep.subr.bf16.mxu0 %v2626_v4  ;;  %v2305_v48 = vld [vmem:[%s10349_s24 + $0xeb0] sm:$0xff]  ;;  %v2609_v4 = vunpack.c.h.s8.bf16 %v2257_v16 }
 0x4d5   : > { %3411 = vmatprep.subr.bf16.mxu1 %v2466_v42  ;;  %v2705_v11 = vunpack.c.h.s8.bf16 %v2305_v48  ;;  %v2250_v42 = vld [vmem:[%s10349_s24 + $0x978] sm:$0xff] }
 0x4d7   : > { %3447 = vmatpush2.bf16.msra.mxu0 %v2625_v31  ;;  %v2298_v31 = vld [vmem:[%s10349_s24 + $0xdf8] sm:$0xff] }
 0x4d8   : > { %3412 = vmatpush2.bf16.msra.mxu1 %v2465_v6  ;;  %3448 = vmatprep.subr.bf16.mxu0 %v2618_v7  ;;  %v2697_v6 = vunpack.c.l.s8.bf16 %v2305_v48  ;;  %v2594_v7 = vunpack.c.h.s8.bf16 %v2250_v42  ;;  %v2682_v16 = vunpack.c.l.s8.bf16 %v2298_v31 }
 0x4d9   : > { %3413 = vmatprep.subr.bf16.mxu1 %v2458_v29  ;;  %v2249_v29 = vld [vmem:[%s10349_s24 + $0x970] sm:$0xff] }
 0x4da   : > { %v2593_v39 = vunpack.c.h.s8.bf16 %v2249_v29  ;;  %v2585_v48 = vunpack.c.l.s8.bf16 %v2249_v29  ;;  %v11464_v29 = vpop.f32.mrf.mxu1 }
 0x4db   : > { %3449 = vmatpush2.bf16.msra.mxu0 %v2617_v33  ;;  %v2690_v33 = vunpack.c.h.s8.bf16 %v2298_v31  ;;  %13076 = vst [vmem:[#allocation43_spill] sm:$0xff] %v11464_v29 }
 0x4dc   : > { %3414 = vmatpush2.bf16.msra.mxu1 %v2457_v3  ;;  %3450 = vmatprep.subr.bf16.mxu0 %v2610_v22  ;;  %v2297_v3 = vld [vmem:[%s10349_s24 + $0xdf0] sm:$0xff]  ;;  %v2586_v22 = vunpack.c.l.s8.bf16 %v2250_v42 }
 0x4dd   : > { %3469 = vmatprep.subr.bf16.mxu1 %v2706_v18  ;;  %v2689_v43 = vunpack.c.h.s8.bf16 %v2297_v3  ;;  %v2370_v18 = vld [vmem:[%s10349_s24 + $0x14b8] sm:$0xff] }
 0x4de   : > { %v2826_v31 = vunpack.c.l.s8.bf16 %v2370_v18 }
 0x4df   : > { %3416 = vmatmul.mubr.bf16.vlgmr.msra.gmra.mxu1 %v10815_v62  ;;  %3451 = vmatpush2.bf16.msra.mxu0 %v2609_v4  ;;  %v2290_v4 = vld [vmem:[%s10349_s24 + $0xd38] sm:$0xff] }
 0x4e0   : > { %3470 = vmatpush1.bf16.msra.mxu1 %v2705_v11  ;;  %3501 = vmatprep.mubr.bf16.mxu1 %v10827_v60  ;;  %v2681_v11 = vunpack.c.l.s8.bf16 %v2297_v3  ;;  %v2362_v3 = vld [vmem:[%s10349_s24 + $0x13f8] sm:$0xff] }
 0x4e1   : > { %3452 = vmatprep.subr.bf16.mxu0 %v2602_v38  ;;  %3471 = vmatprep.subr.bf16.mxu1 %v2698_v13  ;;  %v2834_v38 = vunpack.c.h.s8.bf16 %v2370_v18  ;;  %v2369_v13 = vld [vmem:[%s10349_s24 + $0x14b0] sm:$0xff] }
 0x4e3   : > { %3453 = vmatpush2.bf16.msra.mxu0 %v2601_v9  ;;  %v2674_v9 = vunpack.c.h.s8.bf16 %v2290_v4 }
 0x4e4   : > { %3472 = vmatpush1.bf16.msra.mxu1 %v2697_v6  ;;  %3454 = vmatprep.subr.bf16.mxu0 %v2594_v7  ;;  %v2289_v6 = vld [vmem:[%s10349_s24 + $0xd30] sm:$0xff]  ;;  %v2833_v7 = vunpack.c.h.s8.bf16 %v2369_v13 }
 0x4e5   : > { %3473 = vmatprep.subr.bf16.mxu1 %v2690_v33  ;;  %v2673_v42 = vunpack.c.h.s8.bf16 %v2289_v6  ;;  %v2666_v33 = vunpack.c.l.s8.bf16 %v2290_v4  ;;  %v2665_v18 = vunpack.c.l.s8.bf16 %v2289_v6  ;;  %v2810_v6 = vunpack.c.l.s8.bf16 %v2362_v3 }
 0x4e7   : > { %3455 = vmatpush2.bf16.msra.mxu0 %v2593_v39 }
 0x4e8   : > { %3474 = vmatpush1.bf16.msra.mxu1 %v2689_v43  ;;  %3456 = vmatprep.subr.bf16.mxu0 %v2586_v22  ;;  %v2282_v43 = vld [vmem:[%s10349_s24 + $0xc78] sm:$0xff] }
 0x4e9   : > { %3475 = vmatprep.subr.bf16.mxu1 %v2682_v16  ;;  %v2825_v16 = vunpack.c.l.s8.bf16 %v2369_v13  ;;  %v2657_v13 = vunpack.c.h.s8.bf16 %v2281_v30 }
 0x4eb   : > { %3457 = vmatpush2.bf16.msra.mxu0 %v2585_v48  ;;  %v2818_v48 = vunpack.c.h.s8.bf16 %v2362_v3  ;;  %v2337_v3 = vld [vmem:[%s10349_s24 + $0x11b0] sm:$0xff] }
 0x4ec   : > { %3476 = vmatpush1.bf16.msra.mxu1 %v2681_v11  ;;  %3512 = vmatprep.subr.bf16.mxu0 %v2834_v38  ;;  %v2361_v11 = vld [vmem:[%s10349_s24 + $0x13f0] sm:$0xff] }
 0x4ed   : > { %3477 = vmatprep.subr.bf16.mxu1 %v2674_v9  ;;  %v2658_v9 = vunpack.c.h.s8.bf16 %v2282_v43  ;;  %v2809_v24 = vunpack.c.l.s8.bf16 %v2361_v11 }
 0x4ee   : > { %v11467_v39 = vpop.f32.mrf.mxu0  ;;  %3459 = vmatmul.mubr.bf16.vlgmr.msra.gmra.mxu0 %v10817_v0 }
 0x4ef   : > { %v11471_v22 = vpop.f32.mrf.mxu1  ;;  %3513 = vmatpush1.bf16.msra.mxu0 %v2833_v7  ;;  %9734 = vmatprep.mubr.msk.bf16.mxu0 %vm448_vm1, %v10829_v21  ;;  %v2817_v7 = vunpack.c.h.s8.bf16 %v2361_v11 }
 0x4f0   : > { %3478 = vmatpush1.bf16.msra.mxu1 %v2673_v42  ;;  %3514 = vmatprep.subr.bf16.mxu0 %v2826_v31  ;;  %v11478_v38 = vpop.f32.mrf.mxu0  ;;  %v2650_v31 = vunpack.c.l.s8.bf16 %v2282_v43  ;;  %v2794_v43 = vunpack.c.l.s8.bf16 %v2354_v58 }
 0x4f1   : > { %v11476_v4 = vpop.f32.mrf.mxu1  ;;  %3479 = vmatprep.subr.bf16.mxu1 %v2666_v33  ;;  %v2338_v33 = vld [vmem:[%s10349_s24 + $0x11b8] sm:$0xff] }
 0x4f2   : > { %v3206_v42 = vpop.f32.mrf.mxu0  ;;  %v2762_v11 = vunpack.c.l.s8.bf16 %v2338_v33 }
 0x4f3   : > { %v3163_v29 = vpop.f32.mrf.mxu1  ;;  %3515 = vmatpush1.bf16.msra.mxu0 %v2825_v16  ;;  %v2353_v16 = vld [vmem:[%s10349_s24 + $0x1330] sm:$0xff] }
 0x4f4   : > { %v3164_v10 = vadd.f32 %v3163_v29, %v11438_v35  ;;  %3480 = vmatpush1.bf16.msra.mxu1 %v2665_v18  ;;  %3516 = vmatprep.subr.bf16.mxu0 %v2818_v48  ;;  %v2649_v35 = vunpack.c.l.s8.bf16 %v2281_v30  ;;  %v2802_v29 = vunpack.c.h.s8.bf16 %v2354_v58  ;;  %v2770_v18 = vunpack.c.h.s8.bf16 %v2338_v33 }
 0x4f5   : > { %3481 = vmatprep.subr.bf16.mxu1 %v2658_v9  ;;  %v2801_v48 = vunpack.c.h.s8.bf16 %v2353_v16  ;;  %v2346_v9 = vld [vmem:[%s10349_s24 + $0x1278] sm:$0xff]  ;;  %v2761_v30 = vunpack.c.l.s8.bf16 %v2337_v3 }
 0x4f6   : > { %v11483_v23 = vadd.f32 %v3206_v42, %v3164_v10  ;;  %v2769_v10 = vunpack.c.h.s8.bf16 %v2337_v3  ;;  %v2778_v33 = vunpack.c.l.s8.bf16 %v2346_v9 }
 0x4f7   : > { %3517 = vmatpush1.bf16.msra.mxu0 %v2817_v7  ;;  %v2330_v7 = vld [vmem:[%s10349_s24 + $0x10f8] sm:$0xff] }
 0x4f8   : > { %13077 = vst [vmem:[#allocation44_spill] sm:$0xff] %v11483_v23  ;;  %3482 = vmatpush1.bf16.msra.mxu1 %v2657_v13  ;;  %3518 = vmatprep.subr.bf16.mxu0 %v2810_v6  ;;  %v2793_v13 = vunpack.c.l.s8.bf16 %v2353_v16  ;;  %v2786_v6 = vunpack.c.h.s8.bf16 %v2346_v9  ;;  %v2754_v42 = vunpack.c.h.s8.bf16 %v2330_v7  ;;  %v2386_v16 = vld [vmem:[%s10349_s24 + $0x1638] sm:$0xff] }
 0x4f9   : > { %3483 = vmatprep.subr.bf16.mxu1 %v2650_v31  ;;  %v2329_v31 = vld [vmem:[%s10349_s24 + $0x10f0] sm:$0xff] }
 0x4fa   : > { %v2753_v58 = vunpack.c.h.s8.bf16 %v2329_v31  ;;  %v2745_v3 = vunpack.c.l.s8.bf16 %v2329_v31 }
 0x4fb   : > { %3519 = vmatpush1.bf16.msra.mxu0 %v2809_v24  ;;  %v2345_v24 = vld [vmem:[%s10349_s24 + $0x1270] sm:$0xff] }
 0x4fc   : > { %3484 = vmatpush1.bf16.msra.mxu1 %v2649_v35  ;;  %3520 = vmatprep.subr.bf16.mxu0 %v2802_v29  ;;  %v2785_v35 = vunpack.c.h.s8.bf16 %v2345_v24  ;;  %v2746_v29 = vunpack.c.l.s8.bf16 %v2330_v7  ;;  %v2858_v7 = vunpack.c.l.s8.bf16 %v2386_v16 }
 0x4fd   : > { %3485 = vmatprep.subr.bf16.mxu1 %v2770_v18  ;;  %v2322_v18 = vld [vmem:[%s10349_s24 + $0x1038] sm:$0xff] }
 0x4ff   : > { %3521 = vmatpush1.bf16.msra.mxu0 %v2801_v48  ;;  %v2777_v48 = vunpack.c.l.s8.bf16 %v2345_v24  ;;  %v2378_v24 = vld [vmem:[%s10349_s24 + $0x1578] sm:$0xff] }
 0x500   : > { %3486 = vmatpush2.bf16.msra.mxu1 %v2769_v10  ;;  %3522 = vmatprep.subr.bf16.mxu0 %v2794_v43  ;;  %v2866_v10 = vunpack.c.h.s8.bf16 %v2386_v16  ;;  %v2385_v43 = vld [vmem:[%s10349_s24 + $0x1630] sm:$0xff] }
 0x501   : > { %3487 = vmatprep.subr.bf16.mxu1 %v2762_v11  ;;  %v2738_v11 = vunpack.c.h.s8.bf16 %v2322_v18 }
 0x503   : > { %3523 = vmatpush1.bf16.msra.mxu0 %v2793_v13  ;;  %v2321_v13 = vld [vmem:[%s10349_s24 + $0x1030] sm:$0xff] }
 0x504   : > { %3488 = vmatpush2.bf16.msra.mxu1 %v2761_v30  ;;  %3524 = vmatprep.subr.bf16.mxu0 %v2786_v6  ;;  %v2865_v30 = vunpack.c.h.s8.bf16 %v2385_v43  ;;  %v2737_v9 = vunpack.c.h.s8.bf16 %v2321_v13  ;;  %v2730_v6 = vunpack.c.l.s8.bf16 %v2322_v18  ;;  %v2729_v31 = vunpack.c.l.s8.bf16 %v2321_v13 }
 0x505   : > { %3489 = vmatprep.subr.bf16.mxu1 %v2754_v42  ;;  %v2314_v42 = vld [vmem:[%s10349_s24 + $0xf78] sm:$0xff]  ;;  %v2842_v18 = vunpack.c.l.s8.bf16 %v2378_v24 }
 0x507   : > { %3525 = vmatpush1.bf16.msra.mxu0 %v2785_v35  ;;  %v2857_v35 = vunpack.c.l.s8.bf16 %v2385_v43  ;;  %v3654_v43 = vld [vmem:[%s10349_s24 + $0x2c8] sm:$0xff] }
 0x508   : > { %3490 = vmatpush2.bf16.msra.mxu1 %v2753_v58  ;;  %3526 = vmatprep.subr.bf16.mxu0 %v2778_v33  ;;  %v2850_v58 = vunpack.c.h.s8.bf16 %v2378_v24  ;;  %v2377_v33 = vld [vmem:[%s10349_s24 + $0x1570] sm:$0xff] }
 0x509   : > { %3491 = vmatprep.subr.bf16.mxu1 %v2746_v29  ;;  %v2722_v29 = vunpack.c.h.s8.bf16 %v2314_v42 }
 0x50b   : > { %3527 = vmatpush1.bf16.msra.mxu0 %v2777_v48  ;;  %v2313_v48 = vld [vmem:[%s10349_s24 + $0xf70] sm:$0xff] }
 0x50c   : > { %3492 = vmatpush2.bf16.msra.mxu1 %v2745_v3  ;;  %3536 = vmatprep.subr.bf16.mxu0 %v2866_v10  ;;  %v2849_v3 = vunpack.c.h.s8.bf16 %v2377_v33  ;;  %v2721_v16 = vunpack.c.h.s8.bf16 %v2313_v48  ;;  %v2714_v10 = vunpack.c.l.s8.bf16 %v2314_v42  ;;  %v2713_v13 = vunpack.c.l.s8.bf16 %v2313_v48 }
 0x50d   : > { %3493 = vmatprep.subr.bf16.mxu1 %v2738_v11  ;;  %v3718_v11 = vld [vmem:[%s10349_s24 + $0x8c8] sm:$0xff]  ;;  %v3918_v42 = vunpack.c.l.s8.bf16 %v3654_v43 }
 0x50f   : > { %3537 = vmatpush2.bf16.msra.mxu0 %v2865_v30  ;;  %v2841_v30 = vunpack.c.l.s8.bf16 %v2377_v33  ;;  %v4046_v33 = vunpack.c.l.s8.bf16 %v3718_v11 }
 0x510   : > { %3494 = vmatpush2.bf16.msra.mxu1 %v2737_v9  ;;  %3538 = vmatprep.subr.bf16.mxu0 %v2858_v7  ;;  %v3926_v9 = vunpack.c.h.s8.bf16 %v3654_v43  ;;  %v3653_v7 = vld [vmem:[%s10349_s24 + $0x2c0] sm:$0xff] }
 0x511   : > { %3495 = vmatprep.subr.bf16.mxu1 %v2730_v6  ;;  %v4054_v6 = vunpack.c.h.s8.bf16 %v3718_v11  ;;  %v3917_v48 = vunpack.c.l.s8.bf16 %v3653_v7  ;;  %v3709_v43 = vld [vmem:[%s10349_s24 + $0x800] sm:$0xff] }
 0x513   : > { %3539 = vmatpush2.bf16.msra.mxu0 %v2857_v35  ;;  %v3717_v35 = vld [vmem:[%s10349_s24 + $0x8c0] sm:$0xff] }
 0x514   : > { %3496 = vmatpush2.bf16.msra.mxu1 %v2729_v31  ;;  %3540 = vmatprep.subr.bf16.mxu0 %v2850_v58  ;;  %v3925_v31 = vunpack.c.h.s8.bf16 %v3653_v7  ;;  %v4053_v24 = vunpack.c.h.s8.bf16 %v3717_v35  ;;  %v3646_v58 = vld [vmem:[%s10349_s24 + $0x208] sm:$0xff] }
 0x515   : > { %3497 = vmatprep.subr.bf16.mxu1 %v2722_v29  ;;  %v3710_v29 = vld [vmem:[%s10349_s24 + $0x808] sm:$0xff] }
 0x516   : > { %v3638_v7 = vld [vmem:[%s10349_s24 + $0x148] sm:$0xff] }
 0x517   : > { %3541 = vmatpush2.bf16.msra.mxu0 %v2849_v3  ;;  %v4045_v3 = vunpack.c.l.s8.bf16 %v3717_v35 }
 0x518   : > { %3498 = vmatpush2.bf16.msra.mxu1 %v2721_v16  ;;  %3542 = vmatprep.subr.bf16.mxu0 %v2842_v18  ;;  %v3910_v16 = vunpack.c.h.s8.bf16 %v3646_v58  ;;  %v3645_v18 = vld [vmem:[%s10349_s24 + $0x200] sm:$0xff] }
 0x519   : > { %3499 = vmatprep.subr.bf16.mxu1 %v2714_v10  ;;  %v4038_v10 = vunpack.c.h.s8.bf16 %v3710_v29  ;;  %v3909_v11 = vunpack.c.h.s8.bf16 %v3645_v18  ;;  %v3901_v35 = vunpack.c.l.s8.bf16 %v3645_v18  ;;  %v11518_v18 = vpop.f32.mrf.mxu1 }
 0x51a   : > { %13079 = vst [vmem:[#allocation46_spill] sm:$0xff] %v11518_v18 }
 0x51b   : > { %3543 = vmatpush2.bf16.msra.mxu0 %v2841_v30  ;;  %v4037_v30 = vunpack.c.h.s8.bf16 %v3709_v43 }
 0x51c   : > { %3500 = vmatpush2.bf16.msra.mxu1 %v2713_v13  ;;  %4349 = vmatprep.subr.bf16.mxu0 %v3926_v9  ;;  %v3902_v13 = vunpack.c.l.s8.bf16 %v3646_v58  ;;  %v4030_v9 = vunpack.c.l.s8.bf16 %v3710_v29  ;;  %v3886_v29 = vunpack.c.l.s8.bf16 %v3638_v7 }
 0x51d   : > { %4392 = vmatprep.subr.bf16.mxu1 %v4054_v6  ;;  %v3702_v6 = vld [vmem:[%s10349_s24 + $0x748] sm:$0xff] }
 0x51e   : > { %3545 = vmatmul.mubr.bf16.vlgmr.msra.gmra.mxu0 %v10870_v47 }
 0x51f   : > { %3502 = vmatmul.mubr.bf16.vlgmr.msra.gmra.mxu1 %v10837_v37  ;;  %4350 = vmatpush1.bf16.msra.mxu0 %v3925_v31  ;;  %v4029_v31 = vunpack.c.l.s8.bf16 %v3709_v43  ;;  %v3630_v43 = vld [vmem:[%s10349_s24 + $0x88] sm:$0xff] }
 0x520   : > { %4381 = vmatprep.mubr.bf16.mxu0 %v10811_v52  ;;  %4393 = vmatpush1.bf16.msra.mxu1 %v4053_v24  ;;  %v3894_v24 = vunpack.c.h.s8.bf16 %v3638_v7  ;;  %v3629_v7 = vld [vmem:[%s10349_s24 + $0x80] sm:$0xff] }
 0x521   : > { %4424 = vmatprep.mubr.bf16.mxu1 %v10813_v53  ;;  %4351 = vmatprep.subr.bf16.mxu0 %v3918_v42  ;;  %v3637_v42 = vld [vmem:[%s10349_s24 + $0x140] sm:$0xff]  ;;  %v3877_v17 = vunpack.c.h.s8.bf16 %v3629_v7 }
 0x522   : > { %4394 = vmatprep.subr.bf16.mxu1 %v4046_v33  ;;  %v4022_v33 = vunpack.c.h.s8.bf16 %v3702_v6 }
 0x523   : > { %4352 = vmatpush1.bf16.msra.mxu0 %v3917_v48  ;;  %v3701_v48 = vld [vmem:[%s10349_s24 + $0x740] sm:$0xff] }
 0x524   : > { %4395 = vmatpush1.bf16.msra.mxu1 %v4045_v3  ;;  %4353 = vmatprep.subr.bf16.mxu0 %v3910_v16  ;;  %v3893_v3 = vunpack.c.h.s8.bf16 %v3637_v42  ;;  %v11516_v16 = vpop.f32.mrf.mxu0  ;;  %v4021_v58 = vunpack.c.h.s8.bf16 %v3701_v48 }
 0x525   : > { %4396 = vmatprep.subr.bf16.mxu1 %v4038_v10  ;;  %13078 = vst [vmem:[#allocation45_spill] sm:$0xff] %v11516_v16  ;;  %v4014_v10 = vunpack.c.l.s8.bf16 %v3702_v6 }
 0x527   : > { %4354 = vmatpush1.bf16.msra.mxu0 %v3909_v11 }
 0x528   : > { %4397 = vmatpush1.bf16.msra.mxu1 %v4037_v30  ;;  %4355 = vmatprep.subr.bf16.mxu0 %v3902_v13  ;;  %v3694_v30 = vld [vmem:[%s10349_s24 + $0x688] sm:$0xff] }
 0x529   : > { %4398 = vmatprep.subr.bf16.mxu1 %v4030_v9  ;;  %v3885_v9 = vunpack.c.l.s8.bf16 %v3637_v42  ;;  %v4006_v6 = vunpack.c.h.s8.bf16 %v3694_v30 }
 0x52b   : > { %4356 = vmatpush1.bf16.msra.mxu0 %v3901_v35 }
 0x52c   : > { %4399 = vmatpush1.bf16.msra.mxu1 %v4029_v31  ;;  %4357 = vmatprep.subr.bf16.mxu0 %v3894_v24  ;;  %v4013_v31 = vunpack.c.l.s8.bf16 %v3701_v48  ;;  %v3878_v24 = vunpack.c.h.s8.bf16 %v3630_v43 }
 0x52d   : > { %4400 = vmatprep.subr.bf16.mxu1 %v4022_v33  ;;  %v3693_v33 = vld [vmem:[%s10349_s24 + $0x680] sm:$0xff] }
 0x52e   : > { %v11521_v11 = vpop.f32.mrf.mxu0  ;;  %v4005_v48 = vunpack.c.h.s8.bf16 %v3693_v33 }
 0x52f   : > { %v11524_v13 = vpop.f32.mrf.mxu1  ;;  %4358 = vmatpush1.bf16.msra.mxu0 %v3893_v3  ;;  %v3870_v3 = vunpack.c.l.s8.bf16 %v3630_v43 }
 0x530   : > { %4401 = vmatpush1.bf16.msra.mxu1 %v4021_v58  ;;  %v11526_v35 = vpop.f32.mrf.mxu0  ;;  %4359 = vmatprep.subr.bf16.mxu0 %v3886_v29  ;;  %v3998_v58 = vunpack.c.l.s8.bf16 %v3694_v30  ;;  %v3686_v29 = vld [vmem:[%s10349_s24 + $0x5c8] sm:$0xff] }
 0x531   : > { %13080 = vst [vmem:[#allocation47_spill] sm:$0xff] %v11526_v35  ;;  %v11529_v16 = vpop.f32.mrf.mxu1  ;;  %4402 = vmatprep.subr.bf16.mxu1 %v4014_v10  ;;  %v3869_v10 = vunpack.c.l.s8.bf16 %v3629_v7  ;;  %v3990_v19 = vunpack.c.h.s8.bf16 %v3686_v29  ;;  %v3982_v30 = vunpack.c.l.s8.bf16 %v3686_v29  ;;  %v3742_v7 = vld [vmem:[%s10349_s24 + $0xb08] sm:$0xff] }
 0x532   : > { %13081 = vst [vmem:[#allocation48_spill] sm:$0xff] %v11529_v16  ;;  %v3249_v23 = vpop.f32.mrf.mxu0 }
 0x533   : > { %v3292_v18 = vpop.f32.mrf.mxu1  ;;  %4360 = vmatpush1.bf16.msra.mxu0 %v3885_v9  ;;  %v3997_v9 = vunpack.c.l.s8.bf16 %v3693_v33 }
 0x534   : > { %v11532_v42 = vadd.f32 %v3292_v18, %v3249_v23  ;;  %4403 = vmatpush1.bf16.msra.mxu1 %v4013_v31  ;;  %4361 = vmatprep.subr.bf16.mxu0 %v3878_v24  ;;  %v4118_v23 = vunpack.c.h.s8.bf16 %v3750_v41  ;;  %v3749_v18 = vld [vmem:[%s10349_s24 + $0xbc0] sm:$0xff]  ;;  %v3989_v31 = vunpack.c.h.s8.bf16 %v3685_v5  ;;  %v3678_v24 = vld [vmem:[%s10349_s24 + $0x508] sm:$0xff] }
 0x535   : > { %4404 = vmatprep.subr.bf16.mxu1 %v4006_v6  ;;  %v4117_v43 = vunpack.c.h.s8.bf16 %v3749_v18  ;;  %v3981_v6 = vunpack.c.l.s8.bf16 %v3685_v5  ;;  %v4109_v33 = vunpack.c.l.s8.bf16 %v3749_v18  ;;  %v3966_v29 = vunpack.c.l.s8.bf16 %v3678_v24 }
 0x536   : > { %v4094_v5 = vunpack.c.l.s8.bf16 %v3742_v7 }
 0x537   : > { %4362 = vmatpush1.bf16.msra.mxu0 %v3877_v17  ;;  %v4110_v17 = vunpack.c.l.s8.bf16 %v3750_v41 }
 0x538   : > { %4405 = vmatpush1.bf16.msra.mxu1 %v4005_v48  ;;  %4363 = vmatprep.subr.bf16.mxu0 %v3870_v3  ;;  %v3974_v48 = vunpack.c.h.s8.bf16 %v3678_v24  ;;  %v3677_v3 = vld [vmem:[%s10349_s24 + $0x500] sm:$0xff] }
 0x539   : > { %4406 = vmatprep.subr.bf16.mxu1 %v3998_v58  ;;  %v4102_v58 = vunpack.c.h.s8.bf16 %v3742_v7 }
 0x53b   : > { %4364 = vmatpush1.bf16.msra.mxu0 %v3869_v10  ;;  %v3741_v10 = vld [vmem:[%s10349_s24 + $0xb00] sm:$0xff] }
 0x53c   : > { %4407 = vmatpush1.bf16.msra.mxu1 %v3997_v9  ;;  %4365 = vmatprep.subr.bf16.mxu0 %v3990_v19  ;;  %v3973_v19 = vunpack.c.h.s8.bf16 %v3677_v3  ;;  %v4101_v41 = vunpack.c.h.s8.bf16 %v3741_v10  ;;  %v3670_v9 = vld [vmem:[%s10349_s24 + $0x448] sm:$0xff]  ;;  %v4093_v18 = vunpack.c.l.s8.bf16 %v3741_v10 }
 0x53d   : > { %4408 = vmatprep.subr.bf16.mxu1 %v4118_v23  ;;  %v3734_v23 = vld [vmem:[%s10349_s24 + $0xa48] sm:$0xff]  ;;  %v3950_v7 = vunpack.c.l.s8.bf16 %v3670_v9 }
 0x53f   : > { %4366 = vmatpush2.bf16.msra.mxu0 %v3989_v31  ;;  %v3965_v31 = vunpack.c.l.s8.bf16 %v3677_v3  ;;  %v3662_v3 = vld [vmem:[%s10349_s24 + $0x388] sm:$0xff] }
 0x540   : > { %4409 = vmatpush2.bf16.msra.mxu1 %v4117_v43  ;;  %4367 = vmatprep.subr.bf16.mxu0 %v3982_v30  ;;  %v3958_v43 = vunpack.c.h.s8.bf16 %v3670_v9  ;;  %v3669_v30 = vld [vmem:[%s10349_s24 + $0x440] sm:$0xff] }
 0x541   : > { %4410 = vmatprep.subr.bf16.mxu1 %v4110_v17  ;;  %v4086_v17 = vunpack.c.h.s8.bf16 %v3734_v23 }
 0x543   : > { %4368 = vmatpush2.bf16.msra.mxu0 %v3981_v6  ;;  %v3733_v6 = vld [vmem:[%s10349_s24 + $0xa40] sm:$0xff] }
 0x544   : > { %4411 = vmatpush2.bf16.msra.mxu1 %v4109_v33  ;;  %4369 = vmatprep.subr.bf16.mxu0 %v3974_v48  ;;  %v3957_v33 = vunpack.c.h.s8.bf16 %v3669_v30  ;;  %v4085_v24 = vunpack.c.h.s8.bf16 %v3733_v6  ;;  %v4078_v48 = vunpack.c.l.s8.bf16 %v3734_v23  ;;  %v4077_v10 = vunpack.c.l.s8.bf16 %v3733_v6 }
 0x545   : > { %4412 = vmatprep.subr.bf16.mxu1 %v4102_v58  ;;  %v3726_v58 = vld [vmem:[%s10349_s24 + $0x988] sm:$0xff]  ;;  %v3934_v23 = vunpack.c.l.s8.bf16 %v3662_v3 }
 0x547   : > { %4370 = vmatpush2.bf16.msra.mxu0 %v3973_v19  ;;  %v3949_v19 = vunpack.c.l.s8.bf16 %v3669_v30  ;;  %v3782_v30 = vld [vmem:[%s10349_s24 + $0xec8] sm:$0xff] }
 0x548   : > { %4413 = vmatpush2.bf16.msra.mxu1 %v4101_v41  ;;  %4371 = vmatprep.subr.bf16.mxu0 %v3966_v29  ;;  %v3942_v41 = vunpack.c.h.s8.bf16 %v3662_v3  ;;  %v3661_v29 = vld [vmem:[%s10349_s24 + $0x380] sm:$0xff] }
 0x549   : > { %4414 = vmatprep.subr.bf16.mxu1 %v4094_v5  ;;  %v4070_v5 = vunpack.c.h.s8.bf16 %v3726_v58 }
 0x54b   : > { %4372 = vmatpush2.bf16.msra.mxu0 %v3965_v31  ;;  %v3725_v31 = vld [vmem:[%s10349_s24 + $0x980] sm:$0xff] }
 0x54c   : > { %4415 = vmatpush2.bf16.msra.mxu1 %v4093_v18  ;;  %4373 = vmatprep.subr.bf16.mxu0 %v3958_v43  ;;  %v3941_v18 = vunpack.c.h.s8.bf16 %v3661_v29  ;;  %v4069_v9 = vunpack.c.h.s8.bf16 %v3725_v31  ;;  %v4062_v43 = vunpack.c.l.s8.bf16 %v3726_v58  ;;  %v4061_v6 = vunpack.c.l.s8.bf16 %v3725_v31 }
 0x54d   : > { %4416 = vmatprep.subr.bf16.mxu1 %v4086_v17  ;;  %v3846_v17 = vld [vmem:[%s10349_s24 + $0x14c8] sm:$0xff]  ;;  %v4174_v58 = vunpack.c.l.s8.bf16 %v3782_v30 }
 0x54f   : > { %4374 = vmatpush2.bf16.msra.mxu0 %v3957_v33  ;;  %v3933_v33 = vunpack.c.l.s8.bf16 %v3661_v29  ;;  %v4302_v29 = vunpack.c.l.s8.bf16 %v3846_v17 }
 0x550   : > { %4417 = vmatpush2.bf16.msra.mxu1 %v4085_v24  ;;  %4375 = vmatprep.subr.bf16.mxu0 %v3950_v7  ;;  %v4182_v24 = vunpack.c.h.s8.bf16 %v3782_v30  ;;  %v3781_v7 = vld [vmem:[%s10349_s24 + $0xec0] sm:$0xff] }
 0x551   : > { %4418 = vmatprep.subr.bf16.mxu1 %v4078_v48  ;;  %v4310_v48 = vunpack.c.h.s8.bf16 %v3846_v17  ;;  %v4173_v31 = vunpack.c.l.s8.bf16 %v3781_v7  ;;  %v3837_v30 = vld [vmem:[%s10349_s24 + $0x1400] sm:$0xff] }
 0x553   : > { %4376 = vmatpush2.bf16.msra.mxu0 %v3949_v19  ;;  %v3845_v19 = vld [vmem:[%s10349_s24 + $0x14c0] sm:$0xff] }
 0x554   : > { %4419 = vmatpush2.bf16.msra.mxu1 %v4077_v10  ;;  %4377 = vmatprep.subr.bf16.mxu0 %v3942_v41  ;;  %v4181_v10 = vunpack.c.h.s8.bf16 %v3781_v7  ;;  %v4309_v3 = vunpack.c.h.s8.bf16 %v3845_v19  ;;  %v3774_v41 = vld [vmem:[%s10349_s24 + $0xe08] sm:$0xff] }
 0x555   : > { %4420 = vmatprep.subr.bf16.mxu1 %v4070_v5  ;;  %v3838_v5 = vld [vmem:[%s10349_s24 + $0x1408] sm:$0xff] }
 0x556   : > { %v3766_v7 = vld [vmem:[%s10349_s24 + $0xd48] sm:$0xff] }
 0x557   : > { %4378 = vmatpush2.bf16.msra.mxu0 %v3941_v18  ;;  %v4301_v18 = vunpack.c.l.s8.bf16 %v3845_v19 }
 0x558   : > { %4421 = vmatpush2.bf16.msra.mxu1 %v4069_v9  ;;  %4379 = vmatprep.subr.bf16.mxu0 %v3934_v23  ;;  %v4166_v9 = vunpack.c.h.s8.bf16 %v3774_v41  ;;  %v3773_v23 = vld [vmem:[%s10349_s24 + $0xe00] sm:$0xff] }
 0x559   : > { %4422 = vmatprep.subr.bf16.mxu1 %v4062_v43  ;;  %v4294_v43 = vunpack.c.h.s8.bf16 %v3838_v5  ;;  %v4165_v17 = vunpack.c.h.s8.bf16 %v3773_v23  ;;  %v4157_v19 = vunpack.c.l.s8.bf16 %v3773_v23 }
 0x55b   : > { %4380 = vmatpush2.bf16.msra.mxu0 %v3933_v33  ;;  %v4293_v33 = vunpack.c.h.s8.bf16 %v3837_v30 }
 0x55c   : > { %4423 = vmatpush2.bf16.msra.mxu1 %v4061_v6  ;;  %4435 = vmatprep.subr.bf16.mxu0 %v4182_v24  ;;  %v4158_v6 = vunpack.c.l.s8.bf16 %v3774_v41  ;;  %v4286_v24 = vunpack.c.l.s8.bf16 %v3838_v5 }
 0x55d   : > { %4478 = vmatprep.subr.bf16.mxu1 %v4310_v48  ;;  %v3830_v48 = vld [vmem:[%s10349_s24 + $0x1348] sm:$0xff] }
 0x55e   : > { %4382 = vmatmul.mubr.bf16.vlgmr.msra.gmra.mxu0 %v10815_v62 }
 0x55f   : > { %4425 = vmatmul.mubr.bf16.vlgmr.msra.gmra.mxu1 %v10817_v0  ;;  %4436 = vmatpush1.bf16.msra.mxu0 %v4181_v10  ;;  %v4285_v10 = vunpack.c.l.s8.bf16 %v3837_v30  ;;  %v4270_v30 = vunpack.c.l.s8.bf16 %v3830_v48 }
 0x560   : > { %4467 = vmatprep.mubr.bf16.mxu0 %v10827_v60  ;;  %4479 = vmatpush1.bf16.msra.mxu1 %v4309_v3  ;;  %v4150_v3 = vunpack.c.h.s8.bf16 %v3766_v7 }
 0x561   : > { %9735 = vmatprep.mubr.msk.bf16.mxu1 %vm448_vm1, %v10829_v21  ;;  %4437 = vmatprep.subr.bf16.mxu0 %v4174_v58  ;;  %v3765_v58 = vld [vmem:[%s10349_s24 + $0xd40] sm:$0xff] }
 0x562   : > { %4480 = vmatprep.subr.bf16.mxu1 %v4302_v29  ;;  %v4278_v29 = vunpack.c.h.s8.bf16 %v3830_v48  ;;  %v4149_v41 = vunpack.c.h.s8.bf16 %v3765_v58  ;;  %v3821_v48 = vld [vmem:[%s10349_s24 + $0x1280] sm:$0xff] }
 0x563   : > { %4438 = vmatpush1.bf16.msra.mxu0 %v4173_v31  ;;  %v3829_v31 = vld [vmem:[%s10349_s24 + $0x1340] sm:$0xff] }
 0x564   : > { %4481 = vmatpush1.bf16.msra.mxu1 %v4301_v18  ;;  %4439 = vmatprep.subr.bf16.mxu0 %v4166_v9  ;;  %v11567_v18 = vpop.f32.mrf.mxu1  ;;  %v11569_v9 = vpop.f32.mrf.mxu0  ;;  %v4277_v23 = vunpack.c.h.s8.bf16 %v3829_v31 }
 0x565   : > { %4482 = vmatprep.subr.bf16.mxu1 %v4294_v43  ;;  %13082 = vst [vmem:[#allocation49_spill] sm:$0xff] %v11567_v18  ;;  %13083 = vst [vmem:[#allocation50_spill] sm:$0xff] %v11569_v9  ;;  %v4142_v43 = vunpack.c.l.s8.bf16 %v3766_v7  ;;  %v3757_v9 = vld [vmem:[%s10349_s24 + $0xc80] sm:$0xff] }
 0x566   : > { %v11571_v5 = vpop.f32.mrf.mxu1  ;;  %v4125_v27 = vunpack.c.l.s8.bf16 %v3757_v9 }
 0x567   : > { %4440 = vmatpush1.bf16.msra.mxu0 %v4165_v17  ;;  %13084 = vst [vmem:[#allocation51_spill] sm:$0xff] %v11571_v5  ;;  %v3758_v17 = vld [vmem:[%s10349_s24 + $0xc88] sm:$0xff] }
 0x568   : > { %4483 = vmatpush1.bf16.msra.mxu1 %v4293_v33  ;;  %4441 = vmatprep.subr.bf16.mxu0 %v4158_v6  ;;  %v3822_v6 = vld [vmem:[%s10349_s24 + $0x1288] sm:$0xff] }
 0x569   : > { %4484 = vmatprep.subr.bf16.mxu1 %v4286_v24  ;;  %v4141_v24 = vunpack.c.l.s8.bf16 %v3765_v58  ;;  %v4262_v7 = vunpack.c.h.s8.bf16 %v3822_v6  ;;  %v4254_v61 = vunpack.c.l.s8.bf16 %v3822_v6 }
 0x56b   : > { %4442 = vmatpush1.bf16.msra.mxu0 %v4157_v19  ;;  %v11577_v19 = vpop.f32.mrf.mxu1 }
 0x56c   : > { %4485 = vmatpush1.bf16.msra.mxu1 %v4285_v10  ;;  %4443 = vmatprep.subr.bf16.mxu0 %v4150_v3  ;;  %13085 = vst [vmem:[#allocation52_spill] sm:$0xff] %v11577_v19  ;;  %v4269_v10 = vunpack.c.l.s8.bf16 %v3829_v31  ;;  %v4134_v3 = vunpack.c.h.s8.bf16 %v3758_v17 }
 0x56d   : > { %4486 = vmatprep.subr.bf16.mxu1 %v4278_v29  ;;  %v3378_v58 = vpop.f32.mrf.mxu1 }
 0x56e   : > { %v11574_v33 = vpop.f32.mrf.mxu0 }
 0x56f   : > { %4444 = vmatpush1.bf16.msra.mxu0 %v4149_v41  ;;  %v4133_v41 = vunpack.c.h.s8.bf16 %v3757_v9  ;;  %v4334_v9 = vunpack.c.l.s8.bf16 %v3862_v14 }
 0x570   : > { %4487 = vmatpush1.bf16.msra.mxu1 %v4277_v23  ;;  %v11579_v18 = vpop.f32.mrf.mxu0  ;;  %4445 = vmatprep.subr.bf16.mxu0 %v4142_v43  ;;  %v4261_v23 = vunpack.c.h.s8.bf16 %v3821_v48  ;;  %v4126_v43 = vunpack.c.l.s8.bf16 %v3758_v17 }
 0x571   : > { %13086 = vst [vmem:[#allocation53_spill] sm:$0xff] %v11579_v18  ;;  %4488 = vmatprep.subr.bf16.mxu1 %v4270_v30  ;;  %v3814_v30 = vld [vmem:[%s10349_s24 + $0x11c8] sm:$0xff] }
 0x572   : > { %v3335_v29 = vpop.f32.mrf.mxu0  ;;  %v4238_v6 = vunpack.c.l.s8.bf16 %v3814_v30 }
 0x573   : > { %v3336_v15 = vadd.f32 %v3335_v29, %v11532_v42  ;;  %4446 = vmatpush1.bf16.msra.mxu0 %v4141_v24  ;;  %v4253_v42 = vunpack.c.l.s8.bf16 %v3821_v48  ;;  %v4246_v24 = vunpack.c.h.s8.bf16 %v3814_v30  ;;  %v3813_v29 = vld [vmem:[%s10349_s24 + $0x11c0] sm:$0xff] }
 0x574   : > { %4489 = vmatpush1.bf16.msra.mxu1 %v4269_v10  ;;  %4447 = vmatprep.subr.bf16.mxu0 %v4134_v3  ;;  %v4342_v10 = vunpack.c.h.s8.bf16 %v3862_v14  ;;  %v3861_v3 = vld [vmem:[%s10349_s24 + $0x1640] sm:$0xff] }
 0x575   : > { %v11584_v31 = vadd.f32 %v3378_v58, %v3336_v15  ;;  %4490 = vmatprep.subr.bf16.mxu1 %v4262_v7  ;;  %v4245_v15 = vunpack.c.h.s8.bf16 %v3813_v29  ;;  %v4341_v17 = vunpack.c.h.s8.bf16 %v3861_v3  ;;  %v3806_v7 = vld [vmem:[%s10349_s24 + $0x1108] sm:$0xff]  ;;  %v4237_v58 = vunpack.c.l.s8.bf16 %v3813_v29 }
 0x576   : > { %v4230_v48 = vunpack.c.h.s8.bf16 %v3806_v7  ;;  %v4222_v30 = vunpack.c.l.s8.bf16 %v3806_v7  ;;  %v3798_v29 = vld [vmem:[%s10349_s24 + $0x1048] sm:$0xff] }
 0x577   : > { %13087 = vst [vmem:[#allocation54_spill] sm:$0xff] %v11584_v31  ;;  %4448 = vmatpush1.bf16.msra.mxu0 %v4133_v41  ;;  %v3854_v41 = vld [vmem:[%s10349_s24 + $0x1588] sm:$0xff] }
 0x578   : > { %4491 = vmatpush1.bf16.msra.mxu1 %v4261_v23  ;;  %4449 = vmatprep.subr.bf16.mxu0 %v4126_v43  ;;  %v4326_v23 = vunpack.c.h.s8.bf16 %v3854_v41  ;;  %v3853_v43 = vld [vmem:[%s10349_s24 + $0x1580] sm:$0xff] }
 0x579   : > { %4492 = vmatprep.subr.bf16.mxu1 %v4254_v61  ;;  %v4333_v61 = vunpack.c.l.s8.bf16 %v3861_v3  ;;  %v4325_v14 = vunpack.c.h.s8.bf16 %v3853_v43  ;;  %v4317_v3 = vunpack.c.l.s8.bf16 %v3853_v43 }
 0x57b   : > { %4450 = vmatpush1.bf16.msra.mxu0 %v4125_v27  ;;  %v3805_v27 = vld [vmem:[%s10349_s24 + $0x1100] sm:$0xff] }
 0x57c   : > { %4493 = vmatpush1.bf16.msra.mxu1 %v4253_v42  ;;  %4451 = vmatprep.subr.bf16.mxu0 %v4246_v24  ;;  %v4229_v42 = vunpack.c.h.s8.bf16 %v3805_v27  ;;  %v4318_v24 = vunpack.c.l.s8.bf16 %v3854_v41  ;;  %v4206_v41 = vunpack.c.l.s8.bf16 %v3798_v29 }
 0x57d   : > { %4502 = vmatprep.subr.bf16.mxu1 %v4342_v10  ;;  %v3656_v10 = vld [vmem:[%s10349_s24 + $0x2d8] sm:$0xff] }
 0x57f   : > { %4452 = vmatpush2.bf16.msra.mxu0 %v4245_v15  ;;  %v4221_v15 = vunpack.c.l.s8.bf16 %v3805_v27  ;;  %v3790_v27 = vld [vmem:[%s10349_s24 + $0xf88] sm:$0xff] }
 0x580   : > { %4503 = vmatpush2.bf16.msra.mxu1 %v4341_v17  ;;  %4453 = vmatprep.subr.bf16.mxu0 %v4238_v6  ;;  %v4214_v17 = vunpack.c.h.s8.bf16 %v3798_v29  ;;  %v3797_v6 = vld [vmem:[%s10349_s24 + $0x1040] sm:$0xff] }
 0x581   : > { %4504 = vmatprep.subr.bf16.mxu1 %v4334_v9  ;;  %v3928_v9 = vunpack.c.h.s8.bf16 %v3656_v10  ;;  %v4205_v43 = vunpack.c.l.s8.bf16 %v3797_v6 }
 0x583   : > { %4454 = vmatpush2.bf16.msra.mxu0 %v4237_v58  ;;  %v3655_v58 = vld [vmem:[%s10349_s24 + $0x2d0] sm:$0xff] }
 0x584   : > { %4505 = vmatpush2.bf16.msra.mxu1 %v4333_v61  ;;  %4455 = vmatprep.subr.bf16.mxu0 %v4230_v48  ;;  %v4213_v61 = vunpack.c.h.s8.bf16 %v3797_v6  ;;  %v3927_v7 = vunpack.c.h.s8.bf16 %v3655_v58  ;;  %v3920_v48 = vunpack.c.l.s8.bf16 %v3656_v10  ;;  %v3720_v6 = vld [vmem:[%s10349_s24 + $0x8d8] sm:$0xff] }
 0x585   : > { %4506 = vmatprep.subr.bf16.mxu1 %v4326_v23  ;;  %v3648_v23 = vld [vmem:[%s10349_s24 + $0x218] sm:$0xff] }
 0x587   : > { %4456 = vmatpush2.bf16.msra.mxu0 %v4229_v42  ;;  %v3919_v42 = vunpack.c.l.s8.bf16 %v3655_v58 }
 0x588   : > { %4507 = vmatpush2.bf16.msra.mxu1 %v4325_v14  ;;  %4457 = vmatprep.subr.bf16.mxu0 %v4222_v30  ;;  %v4198_v14 = vunpack.c.h.s8.bf16 %v3790_v27  ;;  %v3789_v30 = vld [vmem:[%s10349_s24 + $0xf80] sm:$0xff] }
 0x589   : > { %4508 = vmatprep.subr.bf16.mxu1 %v4318_v24  ;;  %v3912_v24 = vunpack.c.h.s8.bf16 %v3648_v23  ;;  %v4197_v29 = vunpack.c.h.s8.bf16 %v3789_v30  ;;  %v4189_v58 = vunpack.c.l.s8.bf16 %v3789_v30  ;;  %v3712_v30 = vld [vmem:[%s10349_s24 + $0x818] sm:$0xff] }
 0x58b   : > { %4458 = vmatpush2.bf16.msra.mxu0 %v4221_v15  ;;  %v3647_v15 = vld [vmem:[%s10349_s24 + $0x210] sm:$0xff] }
 0x58c   : > { %4509 = vmatpush2.bf16.msra.mxu1 %v4317_v3  ;;  %4459 = vmatprep.subr.bf16.mxu0 %v4214_v17  ;;  %v3911_v10 = vunpack.c.h.s8.bf16 %v3647_v15  ;;  %v4190_v3 = vunpack.c.l.s8.bf16 %v3790_v27  ;;  %v3904_v17 = vunpack.c.l.s8.bf16 %v3648_v23  ;;  %v4048_v23 = vunpack.c.l.s8.bf16 %v3720_v6 }
 0x58d   : > { %4521 = vmatprep.subr.bf16.mxu1 %v3928_v9  ;;  %v3640_v9 = vld [vmem:[%s10349_s24 + $0x158] sm:$0xff] }
 0x58f   : > { %4511 = vmatmul.mubr.bf16.vlgmr.msra.gmra.mxu1 %v10870_v47  ;;  %4460 = vmatpush2.bf16.msra.mxu0 %v4213_v61  ;;  %v3903_v61 = vunpack.c.l.s8.bf16 %v3647_v15 }
 0x590   : > { %4522 = vmatpush1.bf16.msra.mxu1 %v3927_v7  ;;  %4553 = vmatprep.mubr.bf16.mxu1 %v10811_v52  ;;  %v4056_v7 = vunpack.c.h.s8.bf16 %v3720_v6  ;;  %v3631_v6 = vld [vmem:[%s10349_s24 + $0x90] sm:$0xff] }
 0x591   : > { %4461 = vmatprep.subr.bf16.mxu0 %v4206_v41  ;;  %4523 = vmatprep.subr.bf16.mxu1 %v3920_v48  ;;  %v3719_v41 = vld [vmem:[%s10349_s24 + $0x8d0] sm:$0xff]  ;;  %v3896_v48 = vunpack.c.h.s8.bf16 %v3640_v9 }
 0x592   : > { %v4047_v15 = vunpack.c.l.s8.bf16 %v3719_v41 }
 0x593   : > { %4462 = vmatpush2.bf16.msra.mxu0 %v4205_v43  ;;  %v3639_v43 = vld [vmem:[%s10349_s24 + $0x150] sm:$0xff] }
 0x594   : > { %4524 = vmatpush1.bf16.msra.mxu1 %v3919_v42  ;;  %4463 = vmatprep.subr.bf16.mxu0 %v4198_v14  ;;  %v4055_v42 = vunpack.c.h.s8.bf16 %v3719_v41  ;;  %v3895_v27 = vunpack.c.h.s8.bf16 %v3639_v43  ;;  %v3888_v14 = vunpack.c.l.s8.bf16 %v3640_v9  ;;  %v3704_v41 = vld [vmem:[%s10349_s24 + $0x758] sm:$0xff] }
 0x595   : > { %4525 = vmatprep.subr.bf16.mxu1 %v3912_v24  ;;  %v3632_v24 = vld [vmem:[%s10349_s24 + $0x98] sm:$0xff] }
 0x597   : > { %4464 = vmatpush2.bf16.msra.mxu0 %v4197_v29  ;;  %v3887_v29 = vunpack.c.l.s8.bf16 %v3639_v43  ;;  %v3688_v43 = vld [vmem:[%s10349_s24 + $0x5d8] sm:$0xff] }
 0x598   : > { %4526 = vmatpush1.bf16.msra.mxu1 %v3911_v10  ;;  %4465 = vmatprep.subr.bf16.mxu0 %v4190_v3  ;;  %v4040_v10 = vunpack.c.h.s8.bf16 %v3712_v30  ;;  %v3711_v3 = vld [vmem:[%s10349_s24 + $0x810] sm:$0xff] }
 0x599   : > { %4527 = vmatprep.subr.bf16.mxu1 %v3904_v17  ;;  %v3880_v17 = vunpack.c.h.s8.bf16 %v3632_v24  ;;  %v4039_v9 = vunpack.c.h.s8.bf16 %v3711_v3 }
 0x59b   : > { %4466 = vmatpush2.bf16.msra.mxu0 %v4189_v58  ;;  %v3879_v58 = vunpack.c.h.s8.bf16 %v3631_v6 }
 0x59c   : > { %4528 = vmatpush1.bf16.msra.mxu1 %v3903_v61  ;;  %4564 = vmatprep.subr.bf16.mxu0 %v4056_v7  ;;  %v4032_v61 = vunpack.c.l.s8.bf16 %v3712_v30  ;;  %v3872_v7 = vunpack.c.l.s8.bf16 %v3632_v24  ;;  %v3992_v30 = vunpack.c.h.s8.bf16 %v3688_v43 }
 0x59d   : > { %4529 = vmatprep.subr.bf16.mxu1 %v3896_v48  ;;  %v11615_v48 = vpop.f32.mrf.mxu1 }
 0x59e   : > { %4468 = vmatmul.mubr.bf16.vlgmr.msra.gmra.mxu0 %v10837_v37  ;;  %13088 = vst [vmem:[#allocation55_spill] sm:$0xff] %v11615_v48 }
 0x59f   : > { %4565 = vmatpush1.bf16.msra.mxu0 %v4055_v42  ;;  %4596 = vmatprep.mubr.bf16.mxu0 %v10813_v53  ;;  %v4031_v42 = vunpack.c.l.s8.bf16 %v3711_v3 }
 0x5a0   : > { %4530 = vmatpush1.bf16.msra.mxu1 %v3895_v27  ;;  %4566 = vmatprep.subr.bf16.mxu0 %v4048_v23  ;;  %v11618_v27 = vpop.f32.mrf.mxu1  ;;  %v3871_v23 = vunpack.c.l.s8.bf16 %v3631_v6  ;;  %v3984_v6 = vunpack.c.l.s8.bf16 %v3688_v43 }
 0x5a1   : > { %4531 = vmatprep.subr.bf16.mxu1 %v3888_v14  ;;  %13089 = vst [vmem:[#allocation56_spill] sm:$0xff] %v11618_v27  ;;  %v4024_v14 = vunpack.c.h.s8.bf16 %v3704_v41 }
 0x5a3   : > { %4567 = vmatpush1.bf16.msra.mxu0 %v4047_v15  ;;  %v3703_v15 = vld [vmem:[%s10349_s24 + $0x750] sm:$0xff] }
 0x5a4   : > { %4532 = vmatpush1.bf16.msra.mxu1 %v3887_v29  ;;  %4568 = vmatprep.subr.bf16.mxu0 %v4040_v10  ;;  %v3687_v29 = vld [vmem:[%s10349_s24 + $0x5d0] sm:$0xff]  ;;  %v4023_v24 = vunpack.c.h.s8.bf16 %v3703_v15  ;;  %v11622_v10 = vpop.f32.mrf.mxu0  ;;  %v4015_v48 = vunpack.c.l.s8.bf16 %v3703_v15 }
 0x5a5   : > { %4533 = vmatprep.subr.bf16.mxu1 %v3880_v17  ;;  %13090 = vst [vmem:[#allocation57_spill] sm:$0xff] %v11622_v10  ;;  %v11624_v17 = vpop.f32.mrf.mxu1  ;;  %v3991_v3 = vunpack.c.h.s8.bf16 %v3687_v29  ;;  %v3983_v10 = vunpack.c.l.s8.bf16 %v3687_v29 }
 0x5a6   : > { %13091 = vst [vmem:[#allocation58_spill] sm:$0xff] %v11624_v17 }
 0x5a7   : > { %4569 = vmatpush1.bf16.msra.mxu0 %v4039_v9  ;;  %v4016_v9 = vunpack.c.l.s8.bf16 %v3704_v41 }
 0x5a8   : > { %4534 = vmatpush1.bf16.msra.mxu1 %v3879_v58  ;;  %4570 = vmatprep.subr.bf16.mxu0 %v4032_v61  ;;  %v3696_v58 = vld [vmem:[%s10349_s24 + $0x698] sm:$0xff] }
 0x5a9   : > { %4535 = vmatprep.subr.bf16.mxu1 %v3872_v7  ;;  %v3680_v7 = vld [vmem:[%s10349_s24 + $0x518] sm:$0xff]  ;;  %v4000_v29 = vunpack.c.l.s8.bf16 %v3696_v58 }
 0x5aa   : > { %v3976_v41 = vunpack.c.h.s8.bf16 %v3680_v7 }
 0x5ab   : > { %4571 = vmatpush1.bf16.msra.mxu0 %v4031_v42  ;;  %v3421_v42 = vpop.f32.mrf.mxu1 }
 0x5ac   : > { %4536 = vmatpush1.bf16.msra.mxu1 %v3871_v23  ;;  %4572 = vmatprep.subr.bf16.mxu0 %v4024_v14  ;;  %v4008_v23 = vunpack.c.h.s8.bf16 %v3696_v58  ;;  %v3695_v14 = vld [vmem:[%s10349_s24 + $0x690] sm:$0xff] }
 0x5ad   : > { %4537 = vmatprep.subr.bf16.mxu1 %v3992_v30  ;;  %v3679_v30 = vld [vmem:[%s10349_s24 + $0x510] sm:$0xff]  ;;  %v4007_v17 = vunpack.c.h.s8.bf16 %v3695_v14  ;;  %v3999_v19 = vunpack.c.l.s8.bf16 %v3695_v14  ;;  %v3744_v14 = vld [vmem:[%s10349_s24 + $0xb18] sm:$0xff] }
 0x5ae   : > { %v11627_v61 = vpop.f32.mrf.mxu0 }
 0x5af   : > { %13092 = vst [vmem:[#allocation59_spill] sm:$0xff] %v11627_v61  ;;  %4573 = vmatpush1.bf16.msra.mxu0 %v4023_v24  ;;  %v3423_v24 = vpop.f32.mrf.mxu1  ;;  %v3816_v61 = vld [vmem:[%s10349_s24 + $0x11d8] sm:$0xff] }
 0x5b0   : > { %4538 = vmatpush2.bf16.msra.mxu1 %v3991_v3  ;;  %v11630_v31 = vpop.f32.mrf.mxu0  ;;  %4574 = vmatprep.subr.bf16.mxu0 %v4016_v9  ;;  %v3975_v3 = vunpack.c.h.s8.bf16 %v3679_v30 }
 0x5b1   : > { %13093 = vst [vmem:[#allocation60_spill] sm:$0xff] %v11630_v31  ;;  %4539 = vmatprep.subr.bf16.mxu1 %v3984_v6  ;;  %v3968_v6 = vunpack.c.l.s8.bf16 %v3680_v7  ;;  %v3752_v31 = vld [vmem:[%s10349_s24 + $0xbd8] sm:$0xff] }
 0x5b2   : > { %v3464_v43 = vpop.f32.mrf.mxu0 }
 0x5b3   : > { %v11634_v28 = vadd.f32 %v3464_v43, %v3421_v42  ;;  %4575 = vmatpush1.bf16.msra.mxu0 %v4015_v48  ;;  %v3967_v48 = vunpack.c.l.s8.bf16 %v3679_v30  ;;  %v3751_v42 = vld [vmem:[%s10349_s24 + $0xbd0] sm:$0xff] }
 0x5b4   : > { %4540 = vmatpush2.bf16.msra.mxu1 %v3983_v10  ;;  %v3466_v15 = vpop.f32.mrf.mxu0  ;;  %4576 = vmatprep.subr.bf16.mxu0 %v4008_v23  ;;  %v4120_v10 = vunpack.c.h.s8.bf16 %v3752_v31  ;;  %v3960_v23 = vunpack.c.h.s8.bf16 %v3672_v57  ;;  %v3671_v43 = vld [vmem:[%s10349_s24 + $0x450] sm:$0xff]  ;;  %v4119_v58 = vunpack.c.h.s8.bf16 %v3751_v42 }
 0x5b5   : > { %v11636_v9 = vadd.f32 %v3466_v15, %v3423_v24  ;;  %4541 = vmatprep.subr.bf16.mxu1 %v3976_v41  ;;  %v3959_v7 = vunpack.c.h.s8.bf16 %v3671_v43  ;;  %v4112_v41 = vunpack.c.l.s8.bf16 %v3752_v31  ;;  %v3664_v24 = vld [vmem:[%s10349_s24 + $0x398] sm:$0xff]  ;;  %v4111_v15 = vunpack.c.l.s8.bf16 %v3751_v42 }
 0x5b6   : > { %v3951_v30 = vunpack.c.l.s8.bf16 %v3671_v43  ;;  %v4096_v31 = vunpack.c.l.s8.bf16 %v3744_v14  ;;  %v3736_v42 = vld [vmem:[%s10349_s24 + $0xa58] sm:$0xff] }
 0x5b7   : > { %4577 = vmatpush1.bf16.msra.mxu0 %v4007_v17  ;;  %v3952_v17 = vunpack.c.l.s8.bf16 %v3672_v57 }
 0x5b8   : > { %4542 = vmatpush2.bf16.msra.mxu1 %v3975_v3  ;;  %4578 = vmatprep.subr.bf16.mxu0 %v4000_v29  ;;  %v4104_v3 = vunpack.c.h.s8.bf16 %v3744_v14  ;;  %v3944_v29 = vunpack.c.h.s8.bf16 %v3664_v24 }
 0x5b9   : > { %4543 = vmatprep.subr.bf16.mxu1 %v3968_v6  ;;  %v3663_v6 = vld [vmem:[%s10349_s24 + $0x390] sm:$0xff] }
 0x5ba   : > { %v3943_v57 = vunpack.c.h.s8.bf16 %v3663_v6  ;;  %v3935_v43 = vunpack.c.l.s8.bf16 %v3663_v6 }
 0x5bb   : > { %4579 = vmatpush1.bf16.msra.mxu0 %v3999_v19  ;;  %v3743_v19 = vld [vmem:[%s10349_s24 + $0xb10] sm:$0xff] }
 0x5bc   : > { %4544 = vmatpush2.bf16.msra.mxu1 %v3967_v48  ;;  %4580 = vmatprep.subr.bf16.mxu0 %v4120_v10  ;;  %v4103_v48 = vunpack.c.h.s8.bf16 %v3743_v19  ;;  %v3936_v10 = vunpack.c.l.s8.bf16 %v3664_v24  ;;  %v4080_v24 = vunpack.c.l.s8.bf16 %v3736_v42 }
 0x5bd   : > { %4545 = vmatprep.subr.bf16.mxu1 %v3960_v23  ;;  %v3784_v23 = vld [vmem:[%s10349_s24 + $0xed8] sm:$0xff] }
 0x5bf   : > { %4581 = vmatpush2.bf16.msra.mxu0 %v4119_v58  ;;  %v4095_v58 = vunpack.c.l.s8.bf16 %v3743_v19  ;;  %v3728_v19 = vld [vmem:[%s10349_s24 + $0x998] sm:$0xff] }
 0x5c0   : > { %4546 = vmatpush2.bf16.msra.mxu1 %v3959_v7  ;;  %4582 = vmatprep.subr.bf16.mxu0 %v4112_v41  ;;  %v4088_v7 = vunpack.c.h.s8.bf16 %v3736_v42  ;;  %v3735_v41 = vld [vmem:[%s10349_s24 + $0xa50] sm:$0xff] }
 0x5c1   : > { %4547 = vmatprep.subr.bf16.mxu1 %v3952_v17  ;;  %v4184_v17 = vunpack.c.h.s8.bf16 %v3784_v23  ;;  %v4079_v6 = vunpack.c.l.s8.bf16 %v3735_v41 }
 0x5c3   : > { %4583 = vmatpush2.bf16.msra.mxu0 %v4111_v15  ;;  %v3783_v15 = vld [vmem:[%s10349_s24 + $0xed0] sm:$0xff] }
 0x5c4   : > { %4548 = vmatpush2.bf16.msra.mxu1 %v3951_v30  ;;  %4584 = vmatprep.subr.bf16.mxu0 %v4104_v3  ;;  %v4087_v30 = vunpack.c.h.s8.bf16 %v3735_v41  ;;  %v4183_v14 = vunpack.c.h.s8.bf16 %v3783_v15  ;;  %v4176_v3 = vunpack.c.l.s8.bf16 %v3784_v23  ;;  %v3848_v41 = vld [vmem:[%s10349_s24 + $0x14d8] sm:$0xff] }
 0x5c5   : > { %4549 = vmatprep.subr.bf16.mxu1 %v3944_v29  ;;  %v3776_v29 = vld [vmem:[%s10349_s24 + $0xe18] sm:$0xff] }
 0x5c7   : > { %4585 = vmatpush2.bf16.msra.mxu0 %v4103_v48  ;;  %v4175_v48 = vunpack.c.l.s8.bf16 %v3783_v15 }
 0x5c8   : > { %4550 = vmatpush2.bf16.msra.mxu1 %v3943_v57  ;;  %4586 = vmatprep.subr.bf16.mxu0 %v4096_v31  ;;  %v4072_v57 = vunpack.c.h.s8.bf16 %v3728_v19  ;;  %v3727_v31 = vld [vmem:[%s10349_s24 + $0x990] sm:$0xff] }
 0x5c9   : > { %4551 = vmatprep.subr.bf16.mxu1 %v3936_v10  ;;  %v4168_v10 = vunpack.c.h.s8.bf16 %v3776_v29  ;;  %v4071_v42 = vunpack.c.h.s8.bf16 %v3727_v31  ;;  %v4063_v15 = vunpack.c.l.s8.bf16 %v3727_v31  ;;  %v3840_v31 = vld [vmem:[%s10349_s24 + $0x1418] sm:$0xff] }
 0x5cb   : > { %4587 = vmatpush2.bf16.msra.mxu0 %v4095_v58  ;;  %v3775_v58 = vld [vmem:[%s10349_s24 + $0xe10] sm:$0xff] }
 0x5cc   : > { %4552 = vmatpush2.bf16.msra.mxu1 %v3935_v43  ;;  %4588 = vmatprep.subr.bf16.mxu0 %v4088_v7  ;;  %v4167_v23 = vunpack.c.h.s8.bf16 %v3775_v58  ;;  %v4064_v43 = vunpack.c.l.s8.bf16 %v3728_v19  ;;  %v4160_v7 = vunpack.c.l.s8.bf16 %v3776_v29  ;;  %v4304_v29 = vunpack.c.l.s8.bf16 %v3848_v41 }
 0x5cd   : > { %4607 = vmatprep.subr.bf16.mxu1 %v4184_v17  ;;  %v3768_v17 = vld [vmem:[%s10349_s24 + $0xd58] sm:$0xff] }
 0x5cf   : > { %4554 = vmatmul.mubr.bf16.vlgmr.msra.gmra.mxu1 %v10815_v62  ;;  %4589 = vmatpush2.bf16.msra.mxu0 %v4087_v30  ;;  %v4159_v30 = vunpack.c.l.s8.bf16 %v3775_v58  ;;  %v3760_v58 = vld [vmem:[%s10349_s24 + $0xc98] sm:$0xff] }
 0x5d0   : > { %4608 = vmatpush1.bf16.msra.mxu1 %v4183_v14  ;;  %4639 = vmatprep.mubr.bf16.mxu1 %v10827_v60  ;;  %v4312_v14 = vunpack.c.h.s8.bf16 %v3848_v41  ;;  %v4296_v41 = vunpack.c.h.s8.bf16 %v3840_v31 }
 0x5d1   : > { %4590 = vmatprep.subr.bf16.mxu0 %v4080_v24  ;;  %4609 = vmatprep.subr.bf16.mxu1 %v4176_v3  ;;  %v3847_v24 = vld [vmem:[%s10349_s24 + $0x14d0] sm:$0xff]  ;;  %v4152_v3 = vunpack.c.h.s8.bf16 %v3768_v17 }
 0x5d3   : > { %4591 = vmatpush2.bf16.msra.mxu0 %v4079_v6  ;;  %v3767_v6 = vld [vmem:[%s10349_s24 + $0xd50] sm:$0xff] }
 0x5d4   : > { %4610 = vmatpush1.bf16.msra.mxu1 %v4175_v48  ;;  %4592 = vmatprep.subr.bf16.mxu0 %v4072_v57  ;;  %v4311_v48 = vunpack.c.h.s8.bf16 %v3847_v24  ;;  %v4151_v19 = vunpack.c.h.s8.bf16 %v3767_v6  ;;  %v4144_v57 = vunpack.c.l.s8.bf16 %v3768_v17  ;;  %v3839_v17 = vld [vmem:[%s10349_s24 + $0x1410] sm:$0xff] }
 0x5d5   : > { %4611 = vmatprep.subr.bf16.mxu1 %v4168_v10 }
 0x5d7   : > { %4593 = vmatpush2.bf16.msra.mxu0 %v4071_v42 }
 0x5d8   : > { %4612 = vmatpush1.bf16.msra.mxu1 %v4167_v23  ;;  %4594 = vmatprep.subr.bf16.mxu0 %v4064_v43  ;;  %v4303_v23 = vunpack.c.l.s8.bf16 %v3847_v24 }
 0x5d9   : > { %4613 = vmatprep.subr.bf16.mxu1 %v4160_v7  ;;  %v4143_v7 = vunpack.c.l.s8.bf16 %v3767_v6 }
 0x5db   : > { %4595 = vmatpush2.bf16.msra.mxu0 %v4063_v15 }
 0x5dc   : > { %4614 = vmatpush1.bf16.msra.mxu1 %v4159_v30  ;;  %4650 = vmatprep.subr.bf16.mxu0 %v4312_v14  ;;  %v4136_v30 = vunpack.c.h.s8.bf16 %v3760_v58  ;;  %v3759_v14 = vld [vmem:[%s10349_s24 + $0xc90] sm:$0xff] }
 0x5dd   : > { %4615 = vmatprep.subr.bf16.mxu1 %v4152_v3 }
 0x5de   : > { %v11661_v10 = vpop.f32.mrf.mxu0  ;;  %4597 = vmatmul.mubr.bf16.vlgmr.msra.gmra.mxu0 %v10817_v0 }
 0x5df   : > { %13094 = vst [vmem:[#allocation61_spill] sm:$0xff] %v11661_v10  ;;  %v11665_v42 = vpop.f32.mrf.mxu1  ;;  %4651 = vmatpush1.bf16.msra.mxu0 %v4311_v48  ;;  %9736 = vmatprep.mubr.msk.bf16.mxu0 %vm448_vm1, %v10829_v21  ;;  %v4295_v10 = vunpack.c.h.s8.bf16 %v3839_v17 }
 0x5e0   : > { %13095 = vst [vmem:[#allocation62_spill] sm:$0xff] %v11665_v42  ;;  %4616 = vmatpush1.bf16.msra.mxu1 %v4151_v19  ;;  %v11669_v43 = vpop.f32.mrf.mxu0  ;;  %4652 = vmatprep.subr.bf16.mxu0 %v4304_v29  ;;  %v4135_v19 = vunpack.c.h.s8.bf16 %v3759_v14  ;;  %v4288_v29 = vunpack.c.l.s8.bf16 %v3840_v31 }
 0x5e1   : > { %13096 = vst [vmem:[#allocation63_spill] sm:$0xff] %v11669_v43  ;;  %v11672_v15 = vpop.f32.mrf.mxu1  ;;  %4617 = vmatprep.subr.bf16.mxu1 %v4144_v57  ;;  %v4128_v43 = vunpack.c.l.s8.bf16 %v3760_v58  ;;  %v4248_v58 = vunpack.c.h.s8.bf16 %v3816_v61 }
 0x5e2   : > { %13097 = vst [vmem:[#allocation64_spill] sm:$0xff] %v11672_v15  ;;  %v3550_v48 = vpop.f32.mrf.mxu0  ;;  %v3832_v15 = vld [vmem:[%s10349_s24 + $0x1358] sm:$0xff] }
 0x5e3   : > { %v3507_v3 = vpop.f32.mrf.mxu1  ;;  %4653 = vmatpush1.bf16.msra.mxu0 %v4303_v23  ;;  %v4287_v23 = vunpack.c.l.s8.bf16 %v3839_v17  ;;  %v4280_v31 = vunpack.c.h.s8.bf16 %v3832_v15  ;;  %v3808_v17 = vld [vmem:[%s10349_s24 + $0x1118] sm:$0xff] }
 0x5e4   : > { %v3508_v24 = vadd.f32 %v3507_v3, %v11634_v28  ;;  %4618 = vmatpush1.bf16.msra.mxu1 %v4143_v7  ;;  %4654 = vmatprep.subr.bf16.mxu0 %v4296_v41  ;;  %v3552_v27 = vpop.f32.mrf.mxu0  ;;  %v4127_v28 = vunpack.c.l.s8.bf16 %v3759_v14  ;;  %v3831_v7 = vld [vmem:[%s10349_s24 + $0x1350] sm:$0xff] }
 0x5e5   : > { %v3509_v6 = vpop.f32.mrf.mxu1  ;;  %4619 = vmatprep.subr.bf16.mxu1 %v4136_v30  ;;  %v3815_v41 = vld [vmem:[%s10349_s24 + $0x11d0] sm:$0xff]  ;;  %v4279_v30 = vunpack.c.h.s8.bf16 %v3831_v7  ;;  %v4271_v3 = vunpack.c.l.s8.bf16 %v3831_v7 }
 0x5e6   : > { %v11677_v57 = vadd.f32 %v3550_v48, %v3508_v24  ;;  %v3510_v42 = vadd.f32 %v3509_v6, %v11636_v9  ;;  %v4247_v9 = vunpack.c.h.s8.bf16 %v3815_v41  ;;  %v3823_v48 = vld [vmem:[%s10349_s24 + $0x1290] sm:$0xff]  ;;  %v4232_v24 = vunpack.c.h.s8.bf16 %v3808_v17 }
 0x5e7   : > { %4655 = vmatpush1.bf16.msra.mxu0 %v4295_v10  ;;  %v4272_v10 = vunpack.c.l.s8.bf16 %v3832_v15  ;;  %v4224_v6 = vunpack.c.l.s8.bf16 %v3808_v17 }
 0x5e8   : > { %13098 = vst [vmem:[#allocation65_spill] sm:$0xff] %v11677_v57  ;;  %v11681_v18 = vadd.f32 %v3552_v27, %v3510_v42  ;;  %4620 = vmatpush1.bf16.msra.mxu1 %v4135_v19  ;;  %4656 = vmatprep.subr.bf16.mxu0 %v4288_v29  ;;  %v4240_v27 = vunpack.c.l.s8.bf16 %v3816_v61  ;;  %v3824_v42 = vld [vmem:[%s10349_s24 + $0x1298] sm:$0xff]  ;;  %v3807_v19 = vld [vmem:[%s10349_s24 + $0x1110] sm:$0xff]  ;;  %v4263_v29 = vunpack.c.h.s8.bf16 %v3823_v48 }
 0x5e9   : > { %4621 = vmatprep.subr.bf16.mxu1 %v4128_v43  ;;  %v4239_v43 = vunpack.c.l.s8.bf16 %v3815_v41  ;;  %v4264_v14 = vunpack.c.h.s8.bf16 %v3824_v42  ;;  %v4231_v61 = vunpack.c.h.s8.bf16 %v3807_v19  ;;  %v4256_v15 = vunpack.c.l.s8.bf16 %v3824_v42  ;;  %v3863_v41 = vld [vmem:[%s10349_s24 + $0x1650] sm:$0xff] }
 0x5ea   : > { %13099 = vst [vmem:[#allocation66_spill] sm:$0xff] %v11681_v18  ;;  %v4223_v7 = vunpack.c.l.s8.bf16 %v3807_v19  ;;  %v3855_v19 = vld [vmem:[%s10349_s24 + $0x1590] sm:$0xff]  ;;  %v3690_v18 = vld [vmem:[%s10349_s24 + $0x5e8] sm:$0xff] }
 0x5eb   : > { %4657 = vmatpush1.bf16.msra.mxu0 %v4287_v23  ;;  %v3864_v23 = vld [vmem:[%s10349_s24 + $0x1658] sm:$0xff] }
 0x5ec   : > { %4622 = vmatpush1.bf16.msra.mxu1 %v4127_v28  ;;  %4658 = vmatprep.subr.bf16.mxu0 %v4280_v31  ;;  %v3800_v28 = vld [vmem:[%s10349_s24 + $0x1058] sm:$0xff]  ;;  %v4255_v31 = vunpack.c.l.s8.bf16 %v3823_v48  ;;  %v4336_v42 = vunpack.c.l.s8.bf16 %v3864_v23 }
 0x5ed   : > { %4623 = vmatprep.subr.bf16.mxu1 %v4248_v58  ;;  %v4344_v58 = vunpack.c.h.s8.bf16 %v3864_v23  ;;  %v4208_v17 = vunpack.c.l.s8.bf16 %v3800_v28 }
 0x5ef   : > { %4659 = vmatpush1.bf16.msra.mxu0 %v4279_v30  ;;  %v4216_v30 = vunpack.c.h.s8.bf16 %v3800_v28 }
 0x5f0   : > { %4624 = vmatpush2.bf16.msra.mxu1 %v4247_v9  ;;  %4660 = vmatprep.subr.bf16.mxu0 %v4272_v10  ;;  %v3799_v9 = vld [vmem:[%s10349_s24 + $0x1050] sm:$0xff]  ;;  %v4343_v10 = vunpack.c.h.s8.bf16 %v3863_v41 }
 0x5f1   : > { %4625 = vmatprep.subr.bf16.mxu1 %v4240_v27  ;;  %v4215_v27 = vunpack.c.h.s8.bf16 %v3799_v9  ;;  %v4207_v48 = vunpack.c.l.s8.bf16 %v3799_v9  ;;  %v3657_v9 = vld [vmem:[%s10349_s24 + $0x2e0] sm:$0xff] }
 0x5f3   : > { %4661 = vmatpush1.bf16.msra.mxu0 %v4271_v3  ;;  %v3856_v3 = vld [vmem:[%s10349_s24 + $0x1598] sm:$0xff] }
 0x5f4   : > { %4626 = vmatpush2.bf16.msra.mxu1 %v4239_v43  ;;  %4662 = vmatprep.subr.bf16.mxu0 %v4264_v14  ;;  %v3792_v43 = vld [vmem:[%s10349_s24 + $0xf98] sm:$0xff]  ;;  %v4335_v14 = vunpack.c.l.s8.bf16 %v3863_v41  ;;  %v4320_v23 = vunpack.c.l.s8.bf16 %v3856_v3 }
 0x5f5   : > { %4627 = vmatprep.subr.bf16.mxu1 %v4232_v24  ;;  %v4328_v24 = vunpack.c.h.s8.bf16 %v3856_v3  ;;  %v4192_v28 = vunpack.c.l.s8.bf16 %v3792_v43 }
 0x5f7   : > { %4663 = vmatpush1.bf16.msra.mxu0 %v4263_v29  ;;  %v4200_v29 = vunpack.c.h.s8.bf16 %v3792_v43  ;;  %v3650_v43 = vld [vmem:[%s10349_s24 + $0x228] sm:$0xff] }
 0x5f8   : > { %4628 = vmatpush2.bf16.msra.mxu1 %v4231_v61  ;;  %4664 = vmatprep.subr.bf16.mxu0 %v4256_v15  ;;  %v3791_v61 = vld [vmem:[%s10349_s24 + $0xf90] sm:$0xff]  ;;  %v4327_v15 = vunpack.c.h.s8.bf16 %v3855_v19 }
 0x5f9   : > { %4629 = vmatprep.subr.bf16.mxu1 %v4224_v6  ;;  %v4199_v6 = vunpack.c.h.s8.bf16 %v3791_v61  ;;  %v4191_v41 = vunpack.c.l.s8.bf16 %v3791_v61  ;;  %v3649_v61 = vld [vmem:[%s10349_s24 + $0x220] sm:$0xff] }
 0x5fb   : > { %4665 = vmatpush1.bf16.msra.mxu0 %v4255_v31  ;;  %v3658_v31 = vld [vmem:[%s10349_s24 + $0x2e8] sm:$0xff] }
 0x5fc   : > { %4630 = vmatpush2.bf16.msra.mxu1 %v4223_v7  ;;  %4674 = vmatprep.subr.bf16.mxu0 %v4344_v58  ;;  %v3722_v7 = vld [vmem:[%s10349_s24 + $0x8e8] sm:$0xff]  ;;  %v4319_v58 = vunpack.c.l.s8.bf16 %v3855_v19  ;;  %v3922_v3 = vunpack.c.l.s8.bf16 %v3658_v31 }
 0x5fd   : > { %4631 = vmatprep.subr.bf16.mxu1 %v4216_v30  ;;  %v3930_v30 = vunpack.c.h.s8.bf16 %v3658_v31  ;;  %v3906_v31 = vunpack.c.l.s8.bf16 %v3650_v43 }
 0x5ff   : > { %4675 = vmatpush2.bf16.msra.mxu0 %v4343_v10  ;;  %v4058_v10 = vunpack.c.h.s8.bf16 %v3722_v7 }
 0x600   : > { %4632 = vmatpush2.bf16.msra.mxu1 %v4215_v27  ;;  %4676 = vmatprep.subr.bf16.mxu0 %v4336_v42  ;;  %v3721_v27 = vld [vmem:[%s10349_s24 + $0x8e0] sm:$0xff]  ;;  %v3929_v42 = vunpack.c.h.s8.bf16 %v3657_v9 }
 0x601   : > { %4633 = vmatprep.subr.bf16.mxu1 %v4208_v17  ;;  %v4057_v17 = vunpack.c.h.s8.bf16 %v3721_v27  ;;  %v4049_v19 = vunpack.c.l.s8.bf16 %v3721_v27  ;;  %v3641_v27 = vld [vmem:[%s10349_s24 + $0x160] sm:$0xff] }
 0x603   : > { %4677 = vmatpush2.bf16.msra.mxu0 %v4335_v14  ;;  %v4050_v14 = vunpack.c.l.s8.bf16 %v3722_v7 }
 0x604   : > { %4634 = vmatpush2.bf16.msra.mxu1 %v4207_v48  ;;  %4678 = vmatprep.subr.bf16.mxu0 %v4328_v24  ;;  %v3714_v48 = vld [vmem:[%s10349_s24 + $0x828] sm:$0xff]  ;;  %v3921_v24 = vunpack.c.l.s8.bf16 %v3657_v9 }
 0x605   : > { %4635 = vmatprep.subr.bf16.mxu1 %v4200_v29  ;;  %v3914_v29 = vunpack.c.h.s8.bf16 %v3650_v43  ;;  %v4034_v7 = vunpack.c.l.s8.bf16 %v3714_v48 }
 0x607   : > { %4679 = vmatpush2.bf16.msra.mxu0 %v4327_v15  ;;  %v4042_v15 = vunpack.c.h.s8.bf16 %v3714_v48 }
 0x608   : > { %4636 = vmatpush2.bf16.msra.mxu1 %v4199_v6  ;;  %4680 = vmatprep.subr.bf16.mxu0 %v4320_v23  ;;  %v3713_v6 = vld [vmem:[%s10349_s24 + $0x820] sm:$0xff]  ;;  %v3913_v23 = vunpack.c.h.s8.bf16 %v3649_v61 }
 0x609   : > { %4637 = vmatprep.subr.bf16.mxu1 %v4192_v28  ;;  %v4041_v28 = vunpack.c.h.s8.bf16 %v3713_v6  ;;  %v4033_v9 = vunpack.c.l.s8.bf16 %v3713_v6 }
 0x60b   : > { %4681 = vmatpush2.bf16.msra.mxu0 %v4319_v58  ;;  %v3642_v58 = vld [vmem:[%s10349_s24 + $0x168] sm:$0xff] }
 0x60c   : > { %4638 = vmatpush2.bf16.msra.mxu1 %v4191_v41  ;;  %4693 = vmatprep.subr.bf16.mxu0 %v3930_v30  ;;  %v3706_v41 = vld [vmem:[%s10349_s24 + $0x768] sm:$0xff]  ;;  %v3905_v30 = vunpack.c.l.s8.bf16 %v3649_v61 }
 0x60d   : > { %4736 = vmatprep.subr.bf16.mxu1 %v4058_v10  ;;  %v3898_v10 = vunpack.c.h.s8.bf16 %v3642_v58  ;;  %v4018_v48 = vunpack.c.l.s8.bf16 %v3706_v41 }
 0x60e   : > { %4683 = vmatmul.mubr.bf16.vlgmr.msra.gmra.mxu0 %v10870_v47 }
 0x60f   : > { %4640 = vmatmul.mubr.bf16.vlgmr.msra.gmra.mxu1 %v10837_v37  ;;  %4694 = vmatpush1.bf16.msra.mxu0 %v3929_v42  ;;  %v4026_v42 = vunpack.c.h.s8.bf16 %v3706_v41  ;;  %v3697_v41 = vld [vmem:[%s10349_s24 + $0x6a0] sm:$0xff] }
 0x610   : > { %4725 = vmatprep.mubr.bf16.mxu0 %v10811_v52  ;;  %4737 = vmatpush1.bf16.msra.mxu1 %v4057_v17  ;;  %v3705_v17 = vld [vmem:[%s10349_s24 + $0x760] sm:$0xff] }
 0x611   : > { %4768 = vmatprep.mubr.bf16.mxu1 %v10813_v53  ;;  %4695 = vmatprep.subr.bf16.mxu0 %v3922_v3  ;;  %v3897_v3 = vunpack.c.h.s8.bf16 %v3641_v27  ;;  %v4025_v43 = vunpack.c.h.s8.bf16 %v3705_v17 }
 0x612   : > { %4738 = vmatprep.subr.bf16.mxu1 %v4050_v14  ;;  %v3890_v14 = vunpack.c.l.s8.bf16 %v3642_v58 }
 0x613   : > { %4696 = vmatpush1.bf16.msra.mxu0 %v3921_v24  ;;  %v3634_v24 = vld [vmem:[%s10349_s24 + $0xa8] sm:$0xff] }
 0x614   : > { %4739 = vmatpush1.bf16.msra.mxu1 %v4049_v19  ;;  %4697 = vmatprep.subr.bf16.mxu0 %v3914_v29  ;;  %v3698_v29 = vld [vmem:[%s10349_s24 + $0x6a8] sm:$0xff] }
 0x615   : > { %4740 = vmatprep.subr.bf16.mxu1 %v4042_v15  ;;  %v3889_v15 = vunpack.c.l.s8.bf16 %v3641_v27  ;;  %v4010_v58 = vunpack.c.h.s8.bf16 %v3698_v29 }
 0x617   : > { %4698 = vmatpush1.bf16.msra.mxu0 %v3913_v23  ;;  %v4017_v23 = vunpack.c.l.s8.bf16 %v3705_v17  ;;  %v4009_v17 = vunpack.c.h.s8.bf16 %v3697_v41 }
 0x618   : > { %4741 = vmatpush1.bf16.msra.mxu1 %v4041_v28  ;;  %4699 = vmatprep.subr.bf16.mxu0 %v3906_v31  ;;  %v3882_v28 = vunpack.c.h.s8.bf16 %v3634_v24  ;;  %v3633_v31 = vld [vmem:[%s10349_s24 + $0xa0] sm:$0xff] }
 0x619   : > { %4742 = vmatprep.subr.bf16.mxu1 %v4034_v7  ;;  %v3873_v57 = vunpack.c.l.s8.bf16 %v3633_v31 }
 0x61b   : > { %4700 = vmatpush1.bf16.msra.mxu0 %v3905_v30 }
 0x61c   : > { %4743 = vmatpush1.bf16.msra.mxu1 %v4033_v9  ;;  %4701 = vmatprep.subr.bf16.mxu0 %v3898_v10 }
 0x61d   : > { %4744 = vmatprep.subr.bf16.mxu1 %v4026_v42  ;;  %v3881_v42 = vunpack.c.h.s8.bf16 %v3633_v31 }
 0x61e   : > { %v11714_v19 = vpop.f32.mrf.mxu0 }
 0x61f   : > { %v11717_v61 = vpop.f32.mrf.mxu1  ;;  %4702 = vmatpush1.bf16.msra.mxu0 %v3897_v3 }
 0x620   : > { %4745 = vmatpush1.bf16.msra.mxu1 %v4025_v43  ;;  %v4385_v6 = vpop.f32.mrf.mxu0  ;;  %4703 = vmatprep.subr.bf16.mxu0 %v3890_v14  ;;  %v3874_v43 = vunpack.c.l.s8.bf16 %v3634_v24  ;;  %v3753_v24 = vld [vmem:[%s10349_s24 + $0xbe0] sm:$0xff] }
 0x621   : > { %v4428_v7 = vpop.f32.mrf.mxu1  ;;  %4746 = vmatprep.subr.bf16.mxu1 %v4018_v48  ;;  %v4002_v48 = vunpack.c.l.s8.bf16 %v3698_v29  ;;  %v4121_v29 = vunpack.c.h.s8.bf16 %v3753_v24 }
 0x622   : > { %v11721_v30 = vadd.f32 %v4428_v7, %v4385_v6  ;;  %v4387_v9 = vpop.f32.mrf.mxu0  ;;  %v3754_v7 = vld [vmem:[%s10349_s24 + $0xbe8] sm:$0xff] }
 0x623   : > { %v4430_v10 = vpop.f32.mrf.mxu1  ;;  %4704 = vmatpush1.bf16.msra.mxu0 %v3889_v15  ;;  %v4001_v15 = vunpack.c.l.s8.bf16 %v3697_v41  ;;  %v4114_v31 = vunpack.c.l.s8.bf16 %v3754_v7  ;;  %v4113_v41 = vunpack.c.l.s8.bf16 %v3753_v24 }
 0x624   : > { %v11723_v3 = vadd.f32 %v4430_v10, %v4387_v9  ;;  %4747 = vmatpush1.bf16.msra.mxu1 %v4017_v23  ;;  %v4389_v27 = vpop.f32.mrf.mxu0  ;;  %4705 = vmatprep.subr.bf16.mxu0 %v3882_v28  ;;  %v3994_v23 = vunpack.c.h.s8.bf16 %v3690_v18  ;;  %v3689_v9 = vld [vmem:[%s10349_s24 + $0x5e0] sm:$0xff]  ;;  %v4122_v28 = vunpack.c.h.s8.bf16 %v3754_v7  ;;  %v3986_v10 = vunpack.c.l.s8.bf16 %v3690_v18 }
 0x625   : > { %v4432_v14 = vpop.f32.mrf.mxu1  ;;  %4748 = vmatprep.subr.bf16.mxu1 %v4010_v58  ;;  %v3993_v58 = vunpack.c.h.s8.bf16 %v3689_v9 }
 0x626   : > { %v11726_v6 = vadd.f32 %v4432_v14, %v4389_v27  ;;  %v3746_v27 = vld [vmem:[%s10349_s24 + $0xb28] sm:$0xff] }
 0x627   : > { %4706 = vmatpush1.bf16.msra.mxu0 %v3881_v42  ;;  %v3682_v42 = vld [vmem:[%s10349_s24 + $0x528] sm:$0xff]  ;;  %v4106_v14 = vunpack.c.h.s8.bf16 %v3746_v27 }
 0x628   : > { %4749 = vmatpush1.bf16.msra.mxu1 %v4009_v17  ;;  %4707 = vmatprep.subr.bf16.mxu0 %v3874_v43  ;;  %v3985_v17 = vunpack.c.l.s8.bf16 %v3689_v9  ;;  %v3978_v43 = vunpack.c.h.s8.bf16 %v3682_v42  ;;  %v3970_v7 = vunpack.c.l.s8.bf16 %v3682_v42  ;;  %v3674_v9 = vld [vmem:[%s10349_s24 + $0x468] sm:$0xff] }
 0x629   : > { %4750 = vmatprep.subr.bf16.mxu1 %v4002_v48  ;;  %v3745_v48 = vld [vmem:[%s10349_s24 + $0xb20] sm:$0xff] }
 0x62a   : > { %v4105_v18 = vunpack.c.h.s8.bf16 %v3745_v48  ;;  %v4097_v24 = vunpack.c.l.s8.bf16 %v3745_v48 }
 0x62b   : > { %4708 = vmatpush1.bf16.msra.mxu0 %v3873_v57  ;;  %v3681_v57 = vld [vmem:[%s10349_s24 + $0x520] sm:$0xff] }
 0x62c   : > { %4751 = vmatpush1.bf16.msra.mxu1 %v4001_v15  ;;  %4709 = vmatprep.subr.bf16.mxu0 %v3994_v23  ;;  %v3977_v15 = vunpack.c.h.s8.bf16 %v3681_v57  ;;  %v4098_v23 = vunpack.c.l.s8.bf16 %v3746_v27  ;;  %v3954_v27 = vunpack.c.l.s8.bf16 %v3674_v9 }
 0x62d   : > { %4752 = vmatprep.subr.bf16.mxu1 %v4122_v28  ;;  %v3738_v28 = vld [vmem:[%s10349_s24 + $0xa68] sm:$0xff] }
 0x62f   : > { %4710 = vmatpush2.bf16.msra.mxu0 %v3993_v58  ;;  %v3969_v58 = vunpack.c.l.s8.bf16 %v3681_v57  ;;  %v3666_v57 = vld [vmem:[%s10349_s24 + $0x3a8] sm:$0xff] }
 0x630   : > { %4753 = vmatpush2.bf16.msra.mxu1 %v4121_v29  ;;  %4711 = vmatprep.subr.bf16.mxu0 %v3986_v10  ;;  %v3962_v29 = vunpack.c.h.s8.bf16 %v3674_v9  ;;  %v3673_v10 = vld [vmem:[%s10349_s24 + $0x460] sm:$0xff] }
 0x631   : > { %4754 = vmatprep.subr.bf16.mxu1 %v4114_v31  ;;  %v4090_v31 = vunpack.c.h.s8.bf16 %v3738_v28 }
 0x633   : > { %4712 = vmatpush2.bf16.msra.mxu0 %v3985_v17  ;;  %v3737_v17 = vld [vmem:[%s10349_s24 + $0xa60] sm:$0xff] }
 0x634   : > { %4755 = vmatpush2.bf16.msra.mxu1 %v4113_v41  ;;  %4713 = vmatprep.subr.bf16.mxu0 %v3978_v43  ;;  %v3961_v41 = vunpack.c.h.s8.bf16 %v3673_v10  ;;  %v4089_v42 = vunpack.c.h.s8.bf16 %v3737_v17  ;;  %v4082_v43 = vunpack.c.l.s8.bf16 %v3738_v28  ;;  %v4081_v48 = vunpack.c.l.s8.bf16 %v3737_v17 }
 0x635   : > { %4756 = vmatprep.subr.bf16.mxu1 %v4106_v14  ;;  %v3730_v14 = vld [vmem:[%s10349_s24 + $0x9a8] sm:$0xff]  ;;  %v3938_v28 = vunpack.c.l.s8.bf16 %v3666_v57 }
 0x637   : > { %4714 = vmatpush2.bf16.msra.mxu0 %v3977_v15  ;;  %v3953_v15 = vunpack.c.l.s8.bf16 %v3673_v10  ;;  %v3786_v10 = vld [vmem:[%s10349_s24 + $0xee8] sm:$0xff] }
 0x638   : > { %4757 = vmatpush2.bf16.msra.mxu1 %v4105_v18  ;;  %4715 = vmatprep.subr.bf16.mxu0 %v3970_v7  ;;  %v3946_v18 = vunpack.c.h.s8.bf16 %v3666_v57  ;;  %v3665_v7 = vld [vmem:[%s10349_s24 + $0x3a0] sm:$0xff] }
 0x639   : > { %4758 = vmatprep.subr.bf16.mxu1 %v4098_v23  ;;  %v4074_v23 = vunpack.c.h.s8.bf16 %v3730_v14 }
 0x63b   : > { %4716 = vmatpush2.bf16.msra.mxu0 %v3969_v58  ;;  %v3729_v58 = vld [vmem:[%s10349_s24 + $0x9a0] sm:$0xff] }
 0x63c   : > { %4759 = vmatpush2.bf16.msra.mxu1 %v4097_v24  ;;  %4717 = vmatprep.subr.bf16.mxu0 %v3962_v29  ;;  %v3945_v24 = vunpack.c.h.s8.bf16 %v3665_v7  ;;  %v4073_v9 = vunpack.c.h.s8.bf16 %v3729_v58  ;;  %v4066_v29 = vunpack.c.l.s8.bf16 %v3730_v14  ;;  %v4065_v17 = vunpack.c.l.s8.bf16 %v3729_v58 }
 0x63d   : > { %4760 = vmatprep.subr.bf16.mxu1 %v4090_v31  ;;  %v3850_v31 = vld [vmem:[%s10349_s24 + $0x14e8] sm:$0xff]  ;;  %v4178_v14 = vunpack.c.l.s8.bf16 %v3786_v10 }
 0x63f   : > { %4718 = vmatpush2.bf16.msra.mxu0 %v3961_v41  ;;  %v3937_v41 = vunpack.c.l.s8.bf16 %v3665_v7  ;;  %v4306_v7 = vunpack.c.l.s8.bf16 %v3850_v31 }
 0x640   : > { %4761 = vmatpush2.bf16.msra.mxu1 %v4089_v42  ;;  %4719 = vmatprep.subr.bf16.mxu0 %v3954_v27  ;;  %v4186_v42 = vunpack.c.h.s8.bf16 %v3786_v10  ;;  %v3785_v27 = vld [vmem:[%s10349_s24 + $0xee0] sm:$0xff] }
 0x641   : > { %4762 = vmatprep.subr.bf16.mxu1 %v4082_v43  ;;  %v4314_v43 = vunpack.c.h.s8.bf16 %v3850_v31  ;;  %v4177_v58 = vunpack.c.l.s8.bf16 %v3785_v27  ;;  %v3841_v10 = vld [vmem:[%s10349_s24 + $0x1420] sm:$0xff] }
 0x643   : > { %4720 = vmatpush2.bf16.msra.mxu0 %v3953_v15  ;;  %v3849_v15 = vld [vmem:[%s10349_s24 + $0x14e0] sm:$0xff] }
 0x644   : > { %4763 = vmatpush2.bf16.msra.mxu1 %v4081_v48  ;;  %4721 = vmatprep.subr.bf16.mxu0 %v3946_v18  ;;  %v4185_v48 = vunpack.c.h.s8.bf16 %v3785_v27  ;;  %v4313_v57 = vunpack.c.h.s8.bf16 %v3849_v15  ;;  %v3778_v18 = vld [vmem:[%s10349_s24 + $0xe28] sm:$0xff] }
 0x645   : > { %4764 = vmatprep.subr.bf16.mxu1 %v4074_v23  ;;  %v3842_v23 = vld [vmem:[%s10349_s24 + $0x1428] sm:$0xff] }
 0x646   : > { %v3770_v27 = vld [vmem:[%s10349_s24 + $0xd68] sm:$0xff] }
 0x647   : > { %4722 = vmatpush2.bf16.msra.mxu0 %v3945_v24  ;;  %v4305_v24 = vunpack.c.l.s8.bf16 %v3849_v15 }
 0x648   : > { %4765 = vmatpush2.bf16.msra.mxu1 %v4073_v9  ;;  %4723 = vmatprep.subr.bf16.mxu0 %v3938_v28  ;;  %v4170_v9 = vunpack.c.h.s8.bf16 %v3778_v18  ;;  %v3777_v28 = vld [vmem:[%s10349_s24 + $0xe20] sm:$0xff] }
 0x649   : > { %4766 = vmatprep.subr.bf16.mxu1 %v4066_v29  ;;  %v4298_v29 = vunpack.c.h.s8.bf16 %v3842_v23  ;;  %v4169_v31 = vunpack.c.h.s8.bf16 %v3777_v28  ;;  %v4161_v15 = vunpack.c.l.s8.bf16 %v3777_v28 }
 0x64b   : > { %4724 = vmatpush2.bf16.msra.mxu0 %v3937_v41  ;;  %v4297_v41 = vunpack.c.h.s8.bf16 %v3841_v10 }
 0x64c   : > { %4767 = vmatpush2.bf16.msra.mxu1 %v4065_v17  ;;  %4779 = vmatprep.subr.bf16.mxu0 %v4186_v42  ;;  %v4162_v17 = vunpack.c.l.s8.bf16 %v3778_v18  ;;  %v4290_v42 = vunpack.c.l.s8.bf16 %v3842_v23  ;;  %v4146_v23 = vunpack.c.l.s8.bf16 %v3770_v27 }
 0x64d   : > { %4822 = vmatprep.subr.bf16.mxu1 %v4314_v43  ;;  %v3834_v43 = vld [vmem:[%s10349_s24 + $0x1368] sm:$0xff] }
 0x64e   : > { %4726 = vmatmul.mubr.bf16.vlgmr.msra.gmra.mxu0 %v10815_v62  ;;  %v4274_v28 = vunpack.c.l.s8.bf16 %v3834_v43 }
 0x64f   : > { %4769 = vmatmul.mubr.bf16.vlgmr.msra.gmra.mxu1 %v10817_v0  ;;  %4780 = vmatpush1.bf16.msra.mxu0 %v4185_v48  ;;  %v4289_v48 = vunpack.c.l.s8.bf16 %v3841_v10 }
 0x650   : > { %4811 = vmatprep.mubr.bf16.mxu0 %v10827_v60  ;;  %4823 = vmatpush1.bf16.msra.mxu1 %v4313_v57  ;;  %v4154_v57 = vunpack.c.h.s8.bf16 %v3770_v27 }
 0x651   : > { %9737 = vmatprep.mubr.msk.bf16.mxu1 %vm448_vm1, %v10829_v21  ;;  %4781 = vmatprep.subr.bf16.mxu0 %v4178_v14  ;;  %v3769_v14 = vld [vmem:[%s10349_s24 + $0xd60] sm:$0xff] }
 0x652   : > { %4824 = vmatprep.subr.bf16.mxu1 %v4306_v7  ;;  %v4282_v7 = vunpack.c.h.s8.bf16 %v3834_v43 }
 0x653   : > { %4782 = vmatpush1.bf16.msra.mxu0 %v4177_v58  ;;  %v3833_v58 = vld [vmem:[%s10349_s24 + $0x1360] sm:$0xff] }
 0x654   : > { %4825 = vmatpush1.bf16.msra.mxu1 %v4305_v24  ;;  %4783 = vmatprep.subr.bf16.mxu0 %v4170_v9  ;;  %v4153_v24 = vunpack.c.h.s8.bf16 %v3769_v14  ;;  %v11760_v9 = vpop.f32.mrf.mxu1  ;;  %v4281_v18 = vunpack.c.h.s8.bf16 %v3833_v58 }
 0x655   : > { %4826 = vmatprep.subr.bf16.mxu1 %v4298_v29  ;;  %v3762_v29 = vld [vmem:[%s10349_s24 + $0xca8] sm:$0xff] }
 0x657   : > { %4784 = vmatpush1.bf16.msra.mxu0 %v4169_v31  ;;  %v3826_v31 = vld [vmem:[%s10349_s24 + $0x12a8] sm:$0xff] }
 0x658   : > { %4827 = vmatpush1.bf16.msra.mxu1 %v4297_v41  ;;  %4785 = vmatprep.subr.bf16.mxu0 %v4162_v17  ;;  %v4145_v41 = vunpack.c.l.s8.bf16 %v3769_v14  ;;  %v11766_v17 = vpop.f32.mrf.mxu1  ;;  %v4266_v43 = vunpack.c.h.s8.bf16 %v3826_v31 }
 0x659   : > { %4828 = vmatprep.subr.bf16.mxu1 %v4290_v42  ;;  %13100 = vst [vmem:[#allocation67_spill] sm:$0xff] %v11766_v17  ;;  %v4130_v17 = vunpack.c.l.s8.bf16 %v3762_v29 }
 0x65b   : > { %4786 = vmatpush1.bf16.msra.mxu0 %v4161_v15  ;;  %v4273_v15 = vunpack.c.l.s8.bf16 %v3833_v58 }
 0x65c   : > { %4829 = vmatpush1.bf16.msra.mxu1 %v4289_v48  ;;  %4787 = vmatprep.subr.bf16.mxu0 %v4154_v57  ;;  %v4138_v48 = vunpack.c.h.s8.bf16 %v3762_v29  ;;  %v3761_v57 = vld [vmem:[%s10349_s24 + $0xca0] sm:$0xff] }
 0x65d   : > { %4830 = vmatprep.subr.bf16.mxu1 %v4282_v7  ;;  %v3825_v7 = vld [vmem:[%s10349_s24 + $0x12a0] sm:$0xff] }
 0x65e   : > { %v11763_v10 = vpop.f32.mrf.mxu0  ;;  %v4265_v58 = vunpack.c.h.s8.bf16 %v3825_v7 }
 0x65f   : > { %4788 = vmatpush1.bf16.msra.mxu0 %v4153_v24  ;;  %v4137_v24 = vunpack.c.h.s8.bf16 %v3761_v57 }
 0x660   : > { %4831 = vmatpush1.bf16.msra.mxu1 %v4281_v18  ;;  %v4471_v42 = vpop.f32.mrf.mxu0  ;;  %4789 = vmatprep.subr.bf16.mxu0 %v4146_v23  ;;  %v4516_v18 = vpop.f32.mrf.mxu1 }
 0x661   : > { %v11770_v27 = vadd.f32 %v4471_v42, %v11721_v30  ;;  %4832 = vmatprep.subr.bf16.mxu1 %v4274_v28  ;;  %v11776_v30 = vrot.slane %v5037_v46, %v10729_v55  ;;  %v4257_v46 = vunpack.c.l.s8.bf16 %v3825_v7 }
 0x662   : > { %v4473_v5 = vpop.f32.mrf.mxu0 }
 0x663   : > { %13101 = vst [vmem:[#allocation68_spill] sm:$0xff] %v11770_v27  ;;  %v4474_v14 = vadd.f32 %v4473_v5, %v11723_v3  ;;  %4790 = vmatpush1.bf16.msra.mxu0 %v4145_v41  ;;  %v4258_v27 = vunpack.c.l.s8.bf16 %v3826_v31  ;;  %v3818_v5 = vld [vmem:[%s10349_s24 + $0x11e8] sm:$0xff] }
 0x664   : > { %4833 = vmatpush1.bf16.msra.mxu1 %v4273_v15  ;;  %v4475_v23 = vpop.f32.mrf.mxu0  ;;  %4791 = vmatprep.subr.bf16.mxu0 %v4138_v48  ;;  %v3866_v3 = vld [vmem:[%s10349_s24 + $0x1668] sm:$0xff]  ;;  %v4129_v15 = vunpack.c.l.s8.bf16 %v3761_v57  ;;  %v4250_v29 = vunpack.c.h.s8.bf16 %v3818_v5  ;;  %v3817_v48 = vld [vmem:[%s10349_s24 + $0x11e0] sm:$0xff] }
 0x665   : > { %v4517_v28 = vadd.f32 %v4516_v18, %v4474_v14  ;;  %v11779_v42 = vadd.f32 %v4475_v23, %v11726_v6  ;;  %4834 = vmatprep.subr.bf16.mxu1 %v4266_v43  ;;  %v4346_v14 = vunpack.c.h.s8.bf16 %v3866_v3  ;;  %v3865_v6 = vld [vmem:[%s10349_s24 + $0x1660] sm:$0xff]  ;;  %v4249_v31 = vunpack.c.h.s8.bf16 %v3817_v48  ;;  %v3858_v23 = vld [vmem:[%s10349_s24 + $0x15a8] sm:$0xff] }
 0x666   : > { %v4345_v43 = vunpack.c.h.s8.bf16 %v3865_v6  ;;  %v4242_v18 = vunpack.c.l.s8.bf16 %v3818_v5  ;;  %v4338_v57 = vunpack.c.l.s8.bf16 %v3866_v3 }
 0x667   : > { %13102 = vst [vmem:[#allocation69_spill] sm:$0xff] %v11779_v42  ;;  %v11784_v41 = vmul.f32 %v11776_v30, %v4517_v28  ;;  %4792 = vmatpush1.bf16.msra.mxu0 %v4137_v24  ;;  %v3810_v24 = vld [vmem:[%s10349_s24 + $0x1128] sm:$0xff]  ;;  %v4330_v28 = vunpack.c.h.s8.bf16 %v3858_v23 }
 0x668   : > { %4835 = vmatpush1.bf16.msra.mxu1 %v4265_v58  ;;  %4793 = vmatprep.subr.bf16.mxu0 %v4130_v17  ;;  %v4241_v17 = vunpack.c.l.s8.bf16 %v3817_v48  ;;  %v4234_v7 = vunpack.c.h.s8.bf16 %v3810_v24  ;;  %v3809_v58 = vld [vmem:[%s10349_s24 + $0x1120] sm:$0xff]  ;;  %v4226_v3 = vunpack.c.l.s8.bf16 %v3810_v24  ;;  %v3802_v48 = vld [vmem:[%s10349_s24 + $0x1068] sm:$0xff] }
 0x669   : > { %13103 = vst [vmem:[#allocation70_spill] sm:$0xff] %v11784_v41  ;;  %4836 = vmatprep.subr.bf16.mxu1 %v4258_v27  ;;  %v4337_v27 = vunpack.c.l.s8.bf16 %v3865_v6 }
 0x66b   : > { %4794 = vmatpush1.bf16.msra.mxu0 %v4129_v15  ;;  %v3857_v15 = vld [vmem:[%s10349_s24 + $0x15a0] sm:$0xff] }
 0x66c   : > { %4837 = vmatpush1.bf16.msra.mxu1 %v4257_v46  ;;  %4795 = vmatprep.subr.bf16.mxu0 %v4250_v29  ;;  %v4233_v46 = vunpack.c.h.s8.bf16 %v3809_v58  ;;  %v4329_v5 = vunpack.c.h.s8.bf16 %v3857_v15  ;;  %v4322_v29 = vunpack.c.l.s8.bf16 %v3858_v23  ;;  %v4321_v6 = vunpack.c.l.s8.bf16 %v3857_v15 }
 0x66d   : > { %4846 = vmatprep.subr.bf16.mxu1 %v4346_v14  ;;  %v3660_v14 = vld [vmem:[%s10349_s24 + $0x2f8] sm:$0xff]  ;;  %v4210_v23 = vunpack.c.l.s8.bf16 %v3802_v48 }
 0x66f   : > { %4796 = vmatpush2.bf16.msra.mxu0 %v4249_v31  ;;  %v4225_v31 = vunpack.c.l.s8.bf16 %v3809_v58  ;;  %v3794_v58 = vld [vmem:[%s10349_s24 + $0xfa8] sm:$0xff] }
 0x670   : > { %4847 = vmatpush2.bf16.msra.mxu1 %v4345_v43  ;;  %4797 = vmatprep.subr.bf16.mxu0 %v4242_v18  ;;  %v4218_v43 = vunpack.c.h.s8.bf16 %v3802_v48  ;;  %v3801_v18 = vld [vmem:[%s10349_s24 + $0x1060] sm:$0xff] }
 0x671   : > { %4848 = vmatprep.subr.bf16.mxu1 %v4338_v57  ;;  %v3932_v57 = vunpack.c.h.s8.bf16 %v3660_v14  ;;  %v4209_v15 = vunpack.c.l.s8.bf16 %v3801_v18 }
 0x673   : > { %4798 = vmatpush2.bf16.msra.mxu0 %v4241_v17  ;;  %v3659_v17 = vld [vmem:[%s10349_s24 + $0x2f0] sm:$0xff] }
 0x674   : > { %4849 = vmatpush2.bf16.msra.mxu1 %v4337_v27  ;;  %4799 = vmatprep.subr.bf16.mxu0 %v4234_v7  ;;  %v4217_v27 = vunpack.c.h.s8.bf16 %v3801_v18  ;;  %v3931_v24 = vunpack.c.h.s8.bf16 %v3659_v17  ;;  %v3924_v7 = vunpack.c.l.s8.bf16 %v3660_v14  ;;  %v3644_v18 = vld [vmem:[%s10349_s24 + $0x178] sm:$0xff] }
 0x675   : > { %4850 = vmatprep.subr.bf16.mxu1 %v4330_v28  ;;  %v3652_v28 = vld [vmem:[%s10349_s24 + $0x238] sm:$0xff] }
 0x677   : > { %4800 = vmatpush2.bf16.msra.mxu0 %v4233_v46  ;;  %v3923_v46 = vunpack.c.l.s8.bf16 %v3659_v17 }
 0x678   : > { %4851 = vmatpush2.bf16.msra.mxu1 %v4329_v5  ;;  %4801 = vmatprep.subr.bf16.mxu0 %v4226_v3  ;;  %v4202_v5 = vunpack.c.h.s8.bf16 %v3794_v58  ;;  %v3793_v3 = vld [vmem:[%s10349_s24 + $0xfa0] sm:$0xff] }
 0x679   : > { %4852 = vmatprep.subr.bf16.mxu1 %v4322_v29  ;;  %v3916_v29 = vunpack.c.h.s8.bf16 %v3652_v28  ;;  %v4201_v48 = vunpack.c.h.s8.bf16 %v3793_v3 }
 0x67b   : > { %4802 = vmatpush2.bf16.msra.mxu0 %v4225_v31  ;;  %v3651_v31 = vld [vmem:[%s10349_s24 + $0x230] sm:$0xff] }
 0x67c   : > { %4853 = vmatpush2.bf16.msra.mxu1 %v4321_v6  ;;  %4803 = vmatprep.subr.bf16.mxu0 %v4218_v43  ;;  %v3915_v14 = vunpack.c.h.s8.bf16 %v3651_v31  ;;  %v4194_v6 = vunpack.c.l.s8.bf16 %v3794_v58  ;;  %v3908_v43 = vunpack.c.l.s8.bf16 %v3652_v28  ;;  %v3907_v17 = vunpack.c.l.s8.bf16 %v3651_v31 }
 0x67d   : > { %4865 = vmatprep.subr.bf16.mxu1 %v3932_v57  ;;  %v4193_v57 = vunpack.c.l.s8.bf16 %v3793_v3  ;;  %v3636_v3 = vld [vmem:[%s10349_s24 + $0xb8] sm:$0xff] }
 0x67f   : > { %4855 = vmatmul.mubr.bf16.vlgmr.msra.gmra.mxu1 %v10870_v47  ;;  %4804 = vmatpush2.bf16.msra.mxu0 %v4217_v27 }
 0x680   : > { %4866 = vmatpush1.bf16.msra.mxu1 %v3931_v24  ;;  %4897 = vmatprep.mubr.bf16.mxu1 %v10811_v52  ;;  %v3724_v52 = vld [vmem:[%s10349_s24 + $0x8f8] sm:$0xff]  ;;  %v3723_v24 = vld [vmem:[%s10349_s24 + $0x8f0] sm:$0xff] }
 0x681   : > { %4805 = vmatprep.subr.bf16.mxu0 %v4210_v23  ;;  %4867 = vmatprep.subr.bf16.mxu1 %v3924_v7  ;;  %v4060_v27 = vunpack.c.h.s8.bf16 %v3724_v52  ;;  %v3900_v23 = vunpack.c.h.s8.bf16 %v3644_v18  ;;  %v3643_v7 = vld [vmem:[%s10349_s24 + $0x170] sm:$0xff]  ;;  %v4052_v28 = vunpack.c.l.s8.bf16 %v3724_v52 }
 0x682   : > { %v3899_v58 = vunpack.c.h.s8.bf16 %v3643_v7  ;;  %v3891_v31 = vunpack.c.l.s8.bf16 %v3643_v7 }
 0x683   : > { %4806 = vmatpush2.bf16.msra.mxu0 %v4209_v15  ;;  %v4059_v15 = vunpack.c.h.s8.bf16 %v3723_v24 }
 0x684   : > { %4868 = vmatpush1.bf16.msra.mxu1 %v3923_v46  ;;  %4807 = vmatprep.subr.bf16.mxu0 %v4202_v5  ;;  %v3892_v46 = vunpack.c.l.s8.bf16 %v3644_v18  ;;  %v3716_v5 = vld [vmem:[%s10349_s24 + $0x838] sm:$0xff] }
 0x685   : > { %4869 = vmatprep.subr.bf16.mxu1 %v3916_v29  ;;  %v4051_v29 = vunpack.c.l.s8.bf16 %v3723_v24 }
 0x687   : > { %4808 = vmatpush2.bf16.msra.mxu0 %v4201_v48  ;;  %v4044_v48 = vunpack.c.h.s8.bf16 %v3716_v5 }
 0x688   : > { %4870 = vmatpush1.bf16.msra.mxu1 %v3915_v14  ;;  %4809 = vmatprep.subr.bf16.mxu0 %v4194_v6  ;;  %v3715_v14 = vld [vmem:[%s10349_s24 + $0x830] sm:$0xff]  ;;  %v3884_v6 = vunpack.c.h.s8.bf16 %v3636_v3 }
 0x689   : > { %4871 = vmatprep.subr.bf16.mxu1 %v3908_v43  ;;  %v3635_v43 = vld [vmem:[%s10349_s24 + $0xb0] sm:$0xff]  ;;  %v4043_v52 = vunpack.c.h.s8.bf16 %v3715_v14  ;;  %v4035_v24 = vunpack.c.l.s8.bf16 %v3715_v14 }
 0x68a   : > { %v3883_v18 = vunpack.c.h.s8.bf16 %v3635_v43 }
 0x68b   : > { %4810 = vmatpush2.bf16.msra.mxu0 %v4193_v57  ;;  %v4036_v57 = vunpack.c.l.s8.bf16 %v3716_v5 }
 0x68c   : > { %4872 = vmatpush1.bf16.msra.mxu1 %v3907_v17  ;;  %4908 = vmatprep.subr.bf16.mxu0 %v4060_v27  ;;  %v3708_v17 = vld [vmem:[%s10349_s24 + $0x778] sm:$0xff] }
 0x68d   : > { %4873 = vmatprep.subr.bf16.mxu1 %v3900_v23  ;;  %v3692_v27 = vld [vmem:[%s10349_s24 + $0x5f8] sm:$0xff]  ;;  %v3875_v23 = vunpack.c.l.s8.bf16 %v3635_v43  ;;  %v4028_v7 = vunpack.c.h.s8.bf16 %v3708_v17 }
 0x68e   : > { %4812 = vmatmul.mubr.bf16.vlgmr.msra.gmra.mxu0 %v10837_v37 }
 0x68f   : > { %4909 = vmatpush1.bf16.msra.mxu0 %v4059_v15  ;;  %4940 = vmatprep.mubr.bf16.mxu0 %v10813_v53  ;;  %v3876_v53 = vunpack.c.l.s8.bf16 %v3636_v3  ;;  %v3707_v15 = vld [vmem:[%s10349_s24 + $0x770] sm:$0xff]  ;;  %v4020_v3 = vunpack.c.l.s8.bf16 %v3708_v17 }
 0x690   : > { %4874 = vmatpush1.bf16.msra.mxu1 %v3899_v58  ;;  %4910 = vmatprep.subr.bf16.mxu0 %v4052_v28  ;;  %v3996_v58 = vunpack.c.h.s8.bf16 %v3692_v27  ;;  %v3691_v28 = vld [vmem:[%s10349_s24 + $0x5f0] sm:$0xff]  ;;  %v4019_v14 = vunpack.c.l.s8.bf16 %v3707_v15 }
 0x691   : > { %4875 = vmatprep.subr.bf16.mxu1 %v3892_v46  ;;  %v4027_v46 = vunpack.c.h.s8.bf16 %v3707_v15  ;;  %v3995_v5 = vunpack.c.h.s8.bf16 %v3691_v28 }
 0x693   : > { %4911 = vmatpush1.bf16.msra.mxu0 %v4051_v29  ;;  %v3988_v29 = vunpack.c.l.s8.bf16 %v3692_v27 }
 0x694   : > { %4876 = vmatpush1.bf16.msra.mxu1 %v3891_v31  ;;  %4912 = vmatprep.subr.bf16.mxu0 %v4044_v48  ;;  %v3700_v31 = vld [vmem:[%s10349_s24 + $0x6b8] sm:$0xff] }
 0x695   : > { %4877 = vmatprep.subr.bf16.mxu1 %v3884_v6  ;;  %v3684_v48 = vld [vmem:[%s10349_s24 + $0x538] sm:$0xff]  ;;  %v3987_v6 = vunpack.c.l.s8.bf16 %v3691_v28  ;;  %v4012_v43 = vunpack.c.h.s8.bf16 %v3700_v31  ;;  %v4004_v27 = vunpack.c.l.s8.bf16 %v3700_v31 }
 0x697   : > { %4913 = vmatpush1.bf16.msra.mxu0 %v4043_v52  ;;  %v3699_v52 = vld [vmem:[%s10349_s24 + $0x6b0] sm:$0xff] }
 0x698   : > { %4878 = vmatpush1.bf16.msra.mxu1 %v3883_v18  ;;  %4914 = vmatprep.subr.bf16.mxu0 %v4036_v57  ;;  %v3980_v18 = vunpack.c.h.s8.bf16 %v3684_v48  ;;  %v3683_v57 = vld [vmem:[%s10349_s24 + $0x530] sm:$0xff]  ;;  %v4003_v15 = vunpack.c.l.s8.bf16 %v3699_v52 }
 0x699   : > { %4879 = vmatprep.subr.bf16.mxu1 %v3876_v53  ;;  %v4011_v53 = vunpack.c.h.s8.bf16 %v3699_v52  ;;  %v3979_v17 = vunpack.c.h.s8.bf16 %v3683_v57 }
 0x69b   : > { %4915 = vmatpush1.bf16.msra.mxu0 %v4035_v24  ;;  %v3972_v24 = vunpack.c.l.s8.bf16 %v3684_v48 }
 0x69c   : > { %4880 = vmatpush1.bf16.msra.mxu1 %v3875_v23  ;;  %4916 = vmatprep.subr.bf16.mxu0 %v4028_v7  ;;  %v3756_v23 = vld [vmem:[%s10349_s24 + $0xbf8] sm:$0xff] }
 0x69d   : > { %4881 = vmatprep.subr.bf16.mxu1 %v3996_v58  ;;  %v3676_v7 = vld [vmem:[%s10349_s24 + $0x478] sm:$0xff]  ;;  %v3971_v58 = vunpack.c.l.s8.bf16 %v3683_v57  ;;  %v4124_v28 = vunpack.c.h.s8.bf16 %v3756_v23  ;;  %v4116_v48 = vunpack.c.l.s8.bf16 %v3756_v23 }
 0x69f   : > { %4917 = vmatpush1.bf16.msra.mxu0 %v4027_v46  ;;  %v3755_v46 = vld [vmem:[%s10349_s24 + $0xbf0] sm:$0xff] }
 0x6a0   : > { %4882 = vmatpush2.bf16.msra.mxu1 %v3995_v5  ;;  %4918 = vmatprep.subr.bf16.mxu0 %v4020_v3  ;;  %v3964_v5 = vunpack.c.h.s8.bf16 %v3676_v7  ;;  %v3675_v3 = vld [vmem:[%s10349_s24 + $0x470] sm:$0xff]  ;;  %v4115_v52 = vunpack.c.l.s8.bf16 %v3755_v46 }
 0x6a1   : > { %4883 = vmatprep.subr.bf16.mxu1 %v3988_v29  ;;  %v4123_v29 = vunpack.c.h.s8.bf16 %v3755_v46  ;;  %v3963_v31 = vunpack.c.h.s8.bf16 %v3675_v3 }
 0x6a3   : > { %4919 = vmatpush1.bf16.msra.mxu0 %v4019_v14  ;;  %v3956_v14 = vunpack.c.l.s8.bf16 %v3676_v7 }
 0x6a4   : > { %4884 = vmatpush2.bf16.msra.mxu1 %v3987_v6  ;;  %4920 = vmatprep.subr.bf16.mxu0 %v4012_v43  ;;  %v3748_v6 = vld [vmem:[%s10349_s24 + $0xb38] sm:$0xff] }
 0x6a5   : > { %4885 = vmatprep.subr.bf16.mxu1 %v3980_v18  ;;  %v3668_v43 = vld [vmem:[%s10349_s24 + $0x3b8] sm:$0xff]  ;;  %v3955_v18 = vunpack.c.l.s8.bf16 %v3675_v3  ;;  %v4108_v57 = vunpack.c.h.s8.bf16 %v3748_v6  ;;  %v4100_v7 = vunpack.c.l.s8.bf16 %v3748_v6 }
 0x6a7   : > { %4921 = vmatpush1.bf16.msra.mxu0 %v4011_v53  ;;  %v3747_v53 = vld [vmem:[%s10349_s24 + $0xb30] sm:$0xff] }
 0x6a8   : > { %4886 = vmatpush2.bf16.msra.mxu1 %v3979_v17  ;;  %4922 = vmatprep.subr.bf16.mxu0 %v4004_v27  ;;  %v3948_v17 = vunpack.c.h.s8.bf16 %v3668_v43  ;;  %v3667_v27 = vld [vmem:[%s10349_s24 + $0x3b0] sm:$0xff]  ;;  %v4099_v46 = vunpack.c.l.s8.bf16 %v3747_v53 }
 0x6a9   : > { %4887 = vmatprep.subr.bf16.mxu1 %v3972_v24  ;;  %v4107_v24 = vunpack.c.h.s8.bf16 %v3747_v53  ;;  %v3947_v23 = vunpack.c.h.s8.bf16 %v3667_v27  ;;  %v11834_v53 = vpop.f32.mrf.mxu1 }
 0x6aa   : > { %13104 = vst [vmem:[#allocation71_spill] sm:$0xff] %v11834_v53 }
 0x6ab   : > { %4923 = vmatpush1.bf16.msra.mxu0 %v4003_v15  ;;  %v3940_v15 = vunpack.c.l.s8.bf16 %v3668_v43 }
 0x6ac   : > { %4888 = vmatpush2.bf16.msra.mxu1 %v3971_v58  ;;  %4924 = vmatprep.subr.bf16.mxu0 %v4124_v28  ;;  %v3740_v58 = vld [vmem:[%s10349_s24 + $0xa78] sm:$0xff] }
 0x6ad   : > { %4889 = vmatprep.subr.bf16.mxu1 %v3964_v5  ;;  %v3788_v28 = vld [vmem:[%s10349_s24 + $0xef8] sm:$0xff]  ;;  %v3939_v5 = vunpack.c.l.s8.bf16 %v3667_v27  ;;  %v4092_v3 = vunpack.c.h.s8.bf16 %v3740_v58  ;;  %v4084_v43 = vunpack.c.l.s8.bf16 %v3740_v58  ;;  %v4598_v27 = vpop.f32.mrf.mxu0 }
 0x6af   : > { %4925 = vmatpush2.bf16.msra.mxu0 %v4123_v29  ;;  %v3739_v29 = vld [vmem:[%s10349_s24 + $0xa70] sm:$0xff] }
 0x6b0   : > { %4890 = vmatpush2.bf16.msra.mxu1 %v3963_v31  ;;  %4926 = vmatprep.subr.bf16.mxu0 %v4116_v48  ;;  %v4188_v31 = vunpack.c.h.s8.bf16 %v3788_v28  ;;  %v3787_v48 = vld [vmem:[%s10349_s24 + $0xef0] sm:$0xff] }
 0x6b1   : > { %4891 = vmatprep.subr.bf16.mxu1 %v3956_v14  ;;  %v4091_v14 = vunpack.c.h.s8.bf16 %v3739_v29  ;;  %v4187_v6 = vunpack.c.h.s8.bf16 %v3787_v48 }
 0x6b3   : > { %4927 = vmatpush2.bf16.msra.mxu0 %v4115_v52  ;;  %v4180_v52 = vunpack.c.l.s8.bf16 %v3788_v28  ;;  %v3779_v28 = vld [vmem:[%s10349_s24 + $0xe30] sm:$0xff] }
 0x6b4   : > { %4892 = vmatpush2.bf16.msra.mxu1 %v3955_v18  ;;  %4928 = vmatprep.subr.bf16.mxu0 %v4108_v57  ;;  %v3732_v18 = vld [vmem:[%s10349_s24 + $0x9b8] sm:$0xff] }
 0x6b5   : > { %4893 = vmatprep.subr.bf16.mxu1 %v3948_v17  ;;  %v3780_v57 = vld [vmem:[%s10349_s24 + $0xe38] sm:$0xff]  ;;  %v4083_v17 = vunpack.c.l.s8.bf16 %v3739_v29 }
 0x6b6   : > { %v4172_v58 = vunpack.c.h.s8.bf16 %v3780_v57 }
 0x6b7   : > { %4929 = vmatpush2.bf16.msra.mxu0 %v4107_v24  ;;  %v4179_v24 = vunpack.c.l.s8.bf16 %v3787_v48  ;;  %v3772_v48 = vld [vmem:[%s10349_s24 + $0xd78] sm:$0xff] }
 0x6b8   : > { %4894 = vmatpush2.bf16.msra.mxu1 %v3947_v23  ;;  %4930 = vmatprep.subr.bf16.mxu0 %v4100_v7  ;;  %v4076_v23 = vunpack.c.h.s8.bf16 %v3732_v18  ;;  %v3731_v7 = vld [vmem:[%s10349_s24 + $0x9b0] sm:$0xff] }
 0x6b9   : > { %4895 = vmatprep.subr.bf16.mxu1 %v3940_v15  ;;  %v4555_v15 = vpop.f32.mrf.mxu1 }
 0x6bb   : > { %4931 = vmatpush2.bf16.msra.mxu0 %v4099_v46  ;;  %v4075_v46 = vunpack.c.h.s8.bf16 %v3731_v7  ;;  %v4557_v29 = vpop.f32.mrf.mxu1 }
 0x6bc   : > { %4896 = vmatpush2.bf16.msra.mxu1 %v3939_v5  ;;  %4932 = vmatprep.subr.bf16.mxu0 %v4092_v3  ;;  %v4600_v5 = vpop.f32.mrf.mxu0  ;;  %v4068_v3 = vunpack.c.l.s8.bf16 %v3732_v18  ;;  %v3771_v18 = vld [vmem:[%s10349_s24 + $0xd70] sm:$0xff] }
 0x6bd   : > { %4951 = vmatprep.subr.bf16.mxu1 %v4188_v31  ;;  %v3852_v31 = vld [vmem:[%s10349_s24 + $0x14f8] sm:$0xff] }
 0x6bf   : > { %4898 = vmatmul.mubr.bf16.vlgmr.msra.gmra.mxu1 %v10815_v62  ;;  %4933 = vmatpush2.bf16.msra.mxu0 %v4091_v14  ;;  %v4171_v62 = vunpack.c.h.s8.bf16 %v3779_v28  ;;  %v4067_v14 = vunpack.c.l.s8.bf16 %v3731_v7 }
 0x6c0   : > { %4952 = vmatpush1.bf16.msra.mxu1 %v4187_v6  ;;  %4983 = vmatprep.mubr.bf16.mxu1 %v10827_v60  ;;  %v4164_v60 = vunpack.c.l.s8.bf16 %v3780_v57  ;;  %v4602_v6 = vpop.f32.mrf.mxu0  ;;  %v4155_v57 = vunpack.c.h.s8.bf16 %v3771_v18 }
 0x6c1   : > { %4934 = vmatprep.subr.bf16.mxu0 %v4084_v43  ;;  %4953 = vmatprep.subr.bf16.mxu1 %v4180_v52  ;;  %v4163_v43 = vunpack.c.l.s8.bf16 %v3779_v28  ;;  %v4316_v52 = vunpack.c.h.s8.bf16 %v3852_v31  ;;  %v4599_v28 = vadd.f32 %v4598_v27, %v4555_v15  ;;  %v3843_v27 = vld [vmem:[%s10349_s24 + $0x1430] sm:$0xff] }
 0x6c3   : > { %4935 = vmatpush2.bf16.msra.mxu0 %v4083_v17  ;;  %v3851_v17 = vld [vmem:[%s10349_s24 + $0x14f0] sm:$0xff] }
 0x6c4   : > { %4954 = vmatpush1.bf16.msra.mxu1 %v4179_v24  ;;  %4936 = vmatprep.subr.bf16.mxu0 %v4076_v23  ;;  %v4559_v24 = vpop.f32.mrf.mxu1  ;;  %v4156_v23 = vunpack.c.h.s8.bf16 %v3772_v48  ;;  %v4315_v41 = vunpack.c.h.s8.bf16 %v3851_v17 }
 0x6c5   : > { %4955 = vmatprep.subr.bf16.mxu1 %v4172_v58  ;;  %v4604_v58 = vpop.f32.mrf.mxu0 }
 0x6c6   : > { %v4561_v7 = vpop.f32.mrf.mxu1 }
 0x6c7   : > { %4937 = vmatpush2.bf16.msra.mxu0 %v4075_v46  ;;  %v4308_v46 = vunpack.c.l.s8.bf16 %v3852_v31 }
 0x6c8   : > { %4956 = vmatpush1.bf16.msra.mxu1 %v4171_v62  ;;  %4938 = vmatprep.subr.bf16.mxu0 %v4068_v3  ;;  %v4148_v62 = vunpack.c.l.s8.bf16 %v3772_v48  ;;  %v3844_v3 = vld [vmem:[%s10349_s24 + $0x1438] sm:$0xff]  ;;  %v4147_v48 = vunpack.c.l.s8.bf16 %v3771_v18 }
 0x6c9   : > { %4957 = vmatprep.subr.bf16.mxu1 %v4164_v60  ;;  %v3764_v60 = vld [vmem:[%s10349_s24 + $0xcb8] sm:$0xff] }
 0x6ca   : > { %v4140_v25 = vunpack.c.h.s8.bf16 %v3764_v60 }
 0x6cb   : > { %4939 = vmatpush2.bf16.msra.mxu0 %v4067_v14  ;;  %v4307_v14 = vunpack.c.l.s8.bf16 %v3851_v17 }
 0x6cc   : > { %4958 = vmatpush1.bf16.msra.mxu1 %v4163_v43  ;;  %4994 = vmatprep.subr.bf16.mxu0 %v4316_v52  ;;  %v4601_v43 = vadd.f32 %v4600_v5, %v4557_v29  ;;  %v4299_v5 = vunpack.c.h.s8.bf16 %v3843_v27  ;;  %v4605_v29 = vadd.f32 %v4604_v58, %v4561_v7 }
 0x6cd   : > { %4959 = vmatprep.subr.bf16.mxu1 %v4156_v23  ;;  %v4300_v23 = vunpack.c.h.s8.bf16 %v3844_v3 }
 0x6ce   : > { %v4684_v53 = vpop.f32.mrf.mxu0  ;;  %4941 = vmatmul.mubr.bf16.vlgmr.msra.gmra.mxu0 %v10817_v0  ;;  %v4603_v0 = vadd.f32 %v4602_v6, %v4559_v24  ;;  %v3836_v6 = vld [vmem:[%s10349_s24 + $0x1378] sm:$0xff] }
 0x6cf   : > { %v4641_v42 = vpop.f32.mrf.mxu1  ;;  %4995 = vmatpush1.bf16.msra.mxu0 %v4315_v41  ;;  %9738 = vmatprep.mubr.msk.bf16.mxu0 %vm448_vm1, %v10829_v21  ;;  %v4284_v7 = vunpack.c.h.s8.bf16 %v3836_v6 }
 0x6d0   : > { %v4642_v52 = vadd.f32 %v4641_v42, %v4599_v28  ;;  %4960 = vmatpush1.bf16.msra.mxu1 %v4155_v57  ;;  %v4686_v31 = vpop.f32.mrf.mxu0  ;;  %4996 = vmatprep.subr.bf16.mxu0 %v4308_v46  ;;  %v4139_v42 = vunpack.c.h.s8.bf16 %v3763_v59  ;;  %v4292_v57 = vunpack.c.l.s8.bf16 %v3844_v3  ;;  %v3820_v28 = vld [vmem:[%s10349_s24 + $0x11f8] sm:$0xff]  ;;  %v3835_v3 = vld [vmem:[%s10349_s24 + $0x1370] sm:$0xff] }
 0x6d1   : > { %v4643_v15 = vpop.f32.mrf.mxu1  ;;  %4961 = vmatprep.subr.bf16.mxu1 %v4148_v62 }
 0x6d2   : > { %v11851_v16 = vadd.f32 %v4684_v53, %v4642_v52  ;;  %v4644_v41 = vadd.f32 %v4643_v15, %v4601_v43  ;;  %v4688_v21 = vpop.f32.mrf.mxu0  ;;  %v4132_v53 = vunpack.c.l.s8.bf16 %v3764_v60  ;;  %v4291_v43 = vunpack.c.l.s8.bf16 %v3843_v27  ;;  %v3819_v60 = vld [vmem:[%s10349_s24 + $0x11f0] sm:$0xff]  ;;  %v3828_v27 = vld [vmem:[%s10349_s24 + $0x12b8] sm:$0xff] }
 0x6d3   : > { %v4645_v35 = vpop.f32.mrf.mxu1  ;;  %4997 = vmatpush1.bf16.msra.mxu0 %v4307_v14  ;;  %v4283_v52 = vunpack.c.h.s8.bf16 %v3835_v3  ;;  %v3812_v15 = vld [vmem:[%s10349_s24 + $0x1138] sm:$0xff] }
 0x6d4   : > { %v11853_v17 = vadd.f32 %v4686_v31, %v4644_v41  ;;  %v4646_v18 = vadd.f32 %v4645_v35, %v4603_v0  ;;  %4962 = vmatpush1.bf16.msra.mxu1 %v4147_v48  ;;  %4998 = vmatprep.subr.bf16.mxu0 %v4300_v23  ;;  %v4690_v14 = vpop.f32.mrf.mxu0  ;;  %v4131_v35 = vunpack.c.l.s8.bf16 %v3763_v59  ;;  %v4251_v31 = vunpack.c.h.s8.bf16 %v3819_v60 }
 0x6d5   : > { %v4647_v46 = vpop.f32.mrf.mxu1  ;;  %4963 = vmatprep.subr.bf16.mxu1 %v4140_v25  ;;  %v4252_v25 = vunpack.c.h.s8.bf16 %v3820_v28  ;;  %v4276_v48 = vunpack.c.l.s8.bf16 %v3836_v6  ;;  %v4244_v23 = vunpack.c.l.s8.bf16 %v3820_v28  ;;  %v4275_v0 = vunpack.c.l.s8.bf16 %v3835_v3  ;;  %v3804_v6 = vld [vmem:[%s10349_s24 + $0x1078] sm:$0xff] }
 0x6d6   : > { %v11856_v24 = vadd.f32 %v4688_v21, %v4646_v18  ;;  %v4648_v62 = vadd.f32 %v4647_v46, %v4605_v29  ;;  %v4243_v59 = vunpack.c.l.s8.bf16 %v3819_v60  ;;  %v4268_v41 = vunpack.c.h.s8.bf16 %v3828_v27  ;;  %v3827_v21 = vld [vmem:[%s10349_s24 + $0x12b0] sm:$0xff] }
 0x6d7   : > { %4999 = vmatpush1.bf16.msra.mxu0 %v4299_v5  ;;  %v3811_v5 = vld [vmem:[%s10349_s24 + $0x1130] sm:$0xff]  ;;  %v4267_v29 = vunpack.c.h.s8.bf16 %v3827_v21  ;;  %v4228_v46 = vunpack.c.l.s8.bf16 %v3812_v15 }
 0x6d8   : > { %v11859_v58 = vadd.f32 %v4690_v14, %v4648_v62  ;;  %4964 = vmatpush1.bf16.msra.mxu1 %v4139_v42  ;;  %5000 = vmatprep.subr.bf16.mxu0 %v4292_v57  ;;  %v4236_v42 = vunpack.c.h.s8.bf16 %v3812_v15  ;;  %v4235_v18 = vunpack.c.h.s8.bf16 %v3811_v5  ;;  %v4260_v57 = vunpack.c.l.s8.bf16 %v3828_v27 }
 0x6d9   : > { %4965 = vmatprep.subr.bf16.mxu1 %v4132_v53  ;;  %v3868_v53 = vld [vmem:[%s10349_s24 + $0x1678] sm:$0xff]  ;;  %v4259_v62 = vunpack.c.l.s8.bf16 %v3827_v21  ;;  %v4227_v28 = vunpack.c.l.s8.bf16 %v3811_v5 }
 0x6da   : > { %v4348_v14 = vunpack.c.h.s8.bf16 %v3868_v53  ;;  %v4340_v60 = vunpack.c.l.s8.bf16 %v3868_v53 }
 0x6db   : > { %5001 = vmatpush1.bf16.msra.mxu0 %v4291_v43  ;;  %v3867_v43 = vld [vmem:[%s10349_s24 + $0x1670] sm:$0xff] }
 0x6dc   : > { %4966 = vmatpush1.bf16.msra.mxu1 %v4131_v35  ;;  %5002 = vmatprep.subr.bf16.mxu0 %v4284_v7  ;;  %v4220_v35 = vunpack.c.h.s8.bf16 %v3804_v6  ;;  %v3803_v7 = vld [vmem:[%s10349_s24 + $0x1070] sm:$0xff]  ;;  %v4347_v3 = vunpack.c.h.s8.bf16 %v3867_v43 }
 0x6dd   : > { %4967 = vmatprep.subr.bf16.mxu1 %v4252_v25  ;;  %v4219_v25 = vunpack.c.h.s8.bf16 %v3803_v7  ;;  %v4211_v27 = vunpack.c.l.s8.bf16 %v3803_v7 }
 0x6df   : > { %5003 = vmatpush1.bf16.msra.mxu0 %v4283_v52  ;;  %v4212_v52 = vunpack.c.l.s8.bf16 %v3804_v6 }
 0x6e0   : > { %4968 = vmatpush2.bf16.msra.mxu1 %v4251_v31  ;;  %5004 = vmatprep.subr.bf16.mxu0 %v4276_v48  ;;  %v3860_v31 = vld [vmem:[%s10349_s24 + $0x15b8] sm:$0xff] }
 0x6e1   : > { %4969 = vmatprep.subr.bf16.mxu1 %v4244_v23  ;;  %v3796_v48 = vld [vmem:[%s10349_s24 + $0xfb8] sm:$0xff]  ;;  %v4339_v23 = vunpack.c.l.s8.bf16 %v3867_v43  ;;  %v4332_v15 = vunpack.c.h.s8.bf16 %v3860_v31 }
 0x6e3   : > { %5005 = vmatpush1.bf16.msra.mxu0 %v4275_v0  ;;  %v3859_v0 = vld [vmem:[%s10349_s24 + $0x15b0] sm:$0xff] }
 0x6e4   : > { %4970 = vmatpush2.bf16.msra.mxu1 %v4243_v59  ;;  %5006 = vmatprep.subr.bf16.mxu0 %v4268_v41  ;;  %v4204_v59 = vunpack.c.h.s8.bf16 %v3796_v48  ;;  %v3795_v41 = vld [vmem:[%s10349_s24 + $0xfb0] sm:$0xff]  ;;  %v4331_v21 = vunpack.c.h.s8.bf16 %v3859_v0  ;;  %v4323_v6 = vunpack.c.l.s8.bf16 %v3859_v0 }
 0x6e5   : > { %4971 = vmatprep.subr.bf16.mxu1 %v4236_v42  ;;  %v4427_v42 = vadd.f32 %v11717_v61, %v11714_v19  ;;  %v4203_v5 = vunpack.c.h.s8.bf16 %v3795_v41 }
 0x6e7   : > { %5007 = vmatpush1.bf16.msra.mxu0 %v4267_v29  ;;  %v4324_v29 = vunpack.c.l.s8.bf16 %v3860_v31  ;;  %v4470_v53 = vadd.f32 %v11763_v10, %v4427_v42  ;;  %v11891_v10 = vld [vmem:[%s10365_s13] sm:$0xff] }
 0x6e8   : > { %4972 = vmatpush2.bf16.msra.mxu1 %v4235_v18  ;;  %5008 = vmatprep.subr.bf16.mxu0 %v4260_v57  ;;  %v2988_v18 = vadd.f32 %v11381_v8, %v11333_v12  ;;  %v4196_v57 = vunpack.c.l.s8.bf16 %v3796_v48  ;;  %v10227_v8 = vmov 0.0   ;;  %v11904_v43 = vrot.slane %v11891_v10, %v10729_v55  ;;  %v13109_v31 = vld [vmem:[#allocation51_spill] sm:$0xff] }
 0x6e9   : > { %4973 = vmatprep.subr.bf16.mxu1 %v4228_v46  ;;  %v11880_v46 = vld [vmem:[%s10365_s13 + $0x8] sm:$0xff]  ;;  %v4513_v12 = vadd.f32 %v11760_v9, %v4470_v53  ;;  %v3117_v9 = vadd.f32 %v11431_v49, %v11426_v51 }
 0x6ea   : > { %v3031_v19 = vadd.f32 %v11378_v1, %v2988_v18  ;;  %v11886_v61 = vrot.slane %v11880_v46, %v10729_v55  ;;  %v1465_v1 = vadd.f32 %v10963_v45, %v10961_v44 }
 0x6eb   : > { %5009 = vmatpush1.bf16.msra.mxu0 %v4259_v62  ;;  %v4195_v62 = vunpack.c.l.s8.bf16 %v3795_v41  ;;  %v3160_v44 = vadd.f32 %v11471_v22, %v3117_v9  ;;  %v11930_v22 = vrot.slane %v11880_v46, %v10732_v56  ;;  %v13112_v41 = vld [vmem:[#allocation56_spill] sm:$0xff] }
 0x6ec   : > { %4974 = vmatpush2.bf16.msra.mxu1 %v4227_v28  ;;  %5018 = vmatprep.subr.bf16.mxu0 %v4348_v14  ;;  %v3597_v28 = vmul.f32 %v11886_v61, %v3031_v19  ;;  %v5079_v14 = vmul.f32 %v11776_v30, %v4513_v12  ;;  %v3162_v30 = vadd.f32 %v11476_v4, %v11435_v26  ;;  %v13115_v19 = vld [vmem:[#allocation7_spill] sm:$0xff] }
 0x6ed   : > { %4975 = vmatprep.subr.bf16.mxu1 %v4220_v35  ;;  %v1508_v35 = vadd.f32 %v11011_v34, %v1465_v1  ;;  %v11923_v34 = vrot.slane %v11891_v10, %v10720_v50  ;;  %v3203_v49 = vadd.f32 %v11467_v39, %v3160_v44  ;;  %v11943_v39 = vrot.slane %v11891_v10, %v10732_v56  ;;  %v13118_v44 = vld [vmem:[#allocation60_spill] sm:$0xff] }
 0x6ee   : > { %v11951_v26 = vrot.slane %v11880_v46, %v10726_v54  ;;  %v11993_v12 = vrot.slane %v11880_v46, %v13115_v19 }
 0x6ef   : > { %5019 = vmatpush2.bf16.msra.mxu0 %v4347_v3  ;;  %v1551_v45 = vadd.f32 %v11009_v63, %v1508_v35  ;;  %v3289_v63 = vadd.f32 %v11524_v13, %v11521_v11  ;;  %v13105_v11 = vld [vmem:[#allocation47_spill] sm:$0xff]  ;;  %v13106_v13 = vld [vmem:[#allocation48_spill] sm:$0xff]  ;;  %v13117_v35 = vld [vmem:[#allocation58_spill] sm:$0xff] }
 0x6f0   : > { %4976 = vmatpush2.bf16.msra.mxu1 %v4219_v25  ;;  %5020 = vmatprep.subr.bf16.mxu0 %v4340_v60  ;;  %v3291_v3 = vadd.f32 %v13106_v13, %v13105_v11  ;;  %v13108_v60 = vld [vmem:[#allocation18_spill] sm:$0xff] }
 0x6f1   : > { %4977 = vmatprep.subr.bf16.mxu1 %v4212_v52  ;;  %v3332_v4 = vadd.f32 %v11574_v33, %v3289_v63 }
 0x6f3   : > { %5021 = vmatpush2.bf16.msra.mxu0 %v4339_v23  ;;  %v3375_v48 = vadd.f32 %v13109_v31, %v3332_v4  ;;  %v13110_v23 = vld [vmem:[#allocation9_spill] sm:$0xff]  ;;  %v13122_v4 = vld [vmem:[#allocation64_spill] sm:$0xff] }
 0x6f4   : > { %4978 = vmatpush2.bf16.msra.mxu1 %v4211_v27  ;;  %5022 = vmatprep.subr.bf16.mxu0 %v4332_v15  ;;  %v11970_v27 = vrot.slane %v11880_v46, %v13110_v23  ;;  %v13111_v15 = vld [vmem:[#allocation53_spill] sm:$0xff]  ;;  %v11984_v18 = vrot.slane %v11891_v10, %v13110_v23 }
 0x6f5   : > { %4979 = vmatprep.subr.bf16.mxu1 %v4204_v59  ;;  %v3334_v0 = vadd.f32 %v13111_v15, %v3291_v3 }
 0x6f6   : > { %v3601_v53 = vmul.f32 %v11970_v27, %v3375_v48  ;;  %v13125_v48 = vld [vmem:[#allocation8_spill] sm:$0xff] }
 0x6f7   : > { %5023 = vmatpush2.bf16.msra.mxu0 %v4331_v21  ;;  %v13113_v21 = vld [vmem:[#allocation59_spill] sm:$0xff]  ;;  %v12035_v15 = vrot.slane %v11880_v46, %v13125_v48 }
 0x6f8   : > { %4980 = vmatpush2.bf16.msra.mxu1 %v4203_v5  ;;  %5024 = vmatprep.subr.bf16.mxu0 %v4324_v29  ;;  %v3461_v42 = vadd.f32 %v13113_v21, %v13112_v41  ;;  %v13127_v41 = vld [vmem:[#allocation37_spill] sm:$0xff] }
 0x6f9   : > { %4981 = vmatprep.subr.bf16.mxu1 %v4196_v57 }
 0x6fb   : > { %5025 = vmatpush2.bf16.msra.mxu0 %v4323_v6  ;;  %v13114_v6 = vld [vmem:[#allocation52_spill] sm:$0xff] }
 0x6fc   : > { %4982 = vmatpush2.bf16.msra.mxu1 %v4195_v62  ;;  %9833 = vmatprep.subr.mxu0 %v10227_v8  ;;  %v3377_v62 = vadd.f32 %v13114_v6, %v3334_v0  ;;  %v13126_v0 = vld [vmem:[#allocation38_spill] sm:$0xff]  ;;  %v13129_v6 = vld [vmem:[#allocation41_spill] sm:$0xff] }
 0x6fd   : > { %9838 = vmatprep.subr.mxu1 %v10227_v8  ;;  %v2951_v21 = vadd.f32 %v13127_v41, %v13126_v0  ;;  %v13141_v0 = vld [vmem:[#allocation16_spill] sm:$0xff]  ;;  %v13142_v41 = vld [vmem:[#allocation17_spill] sm:$0xff] }
 0x6fe   : > { %5027 = vmatmul.mubr.bf16.vlgmr.msra.gmra.mxu0 %v10870_v47  ;;  %v11911_v47 = vrot.slane %v11880_v46, %v10720_v50  ;;  %v3602_v63 = vmul.f32 %v11993_v12, %v3377_v62 }
 0x6ff   : > { %4984 = vmatmul.mubr.bf16.vlgmr.msra.gmra.mxu1 %v10837_v37  ;;  %9834 = vmatpush3.xpose.msra.mxu0 %v3597_v28  ;;  %v2115_v37 = vmul.f32 %v11904_v43, %v11014_v2  ;;  %v1637_v2 = vadd.f32 %v11062_v40, %v11057_v32  ;;  %v3599_v32 = vmul.f32 %v11930_v22, %v3203_v49  ;;  %v13116_v28 = vld [vmem:[#allocation62_spill] sm:$0xff] }
 0x700   : > { %9839 = vmatpush3.msra.mxu1 %v5079_v14  ;;  %9835 = vmatprep.mubr.msk.f32.mxu0 %vm10228_vm2, %v10227_v8  ;;  %v3598_v51 = vmul.f32 %v11911_v47, %v11387_v36  ;;  %v2116_v36 = vmul.f32 %v11923_v34, %v1551_v45  ;;  %v3205_v40 = vadd.f32 %v11478_v38, %v3162_v30 }
 0x701   : > { %9843 = vmatprep.subr.mxu0 %v10227_v8  ;;  %9840 = vmatprep.mubr.msk.f32.mxu1 %vm10228_vm2, %v10227_v8  ;;  %v1680_v7 = vadd.f32 %v11100_v20, %v1637_v2  ;;  %v13107_v20 = vld [vmem:[#allocation19_spill] sm:$0xff]  ;;  %v11963_v38 = vrot.slane %v11891_v10, %v10726_v54  ;;  %v3504_v1 = vadd.f32 %v13116_v28, %v3461_v42  ;;  %v13128_v42 = vld [vmem:[#allocation32_spill] sm:$0xff] }
 0x702   : > { %9848 = vmatprep.subr.mxu1 %v10227_v8  ;;  %v2117_v25 = vmul.f32 %v11943_v39, %v13107_v20  ;;  %v3600_v33 = vmul.f32 %v11951_v26, %v3205_v40  ;;  %v12010_v30 = vrot.slane %v11891_v10, %v13115_v19  ;;  %v13123_v20 = vld [vmem:[#allocation26_spill] sm:$0xff]  ;;  %v13130_v28 = vld [vmem:[#allocation12_spill] sm:$0xff] }
 0x703   : > { %v1723_v52 = vadd.f32 %v13108_v60, %v1680_v7 }
 0x705   : > { %v2118_v29 = vmul.f32 %v11963_v38, %v1723_v52 }
 0x706   : > { %9836 = vmatmul.mubr.f32.vlgmr.msra.gmra.mxu0 %v2115_v37  ;;  %v3463_v37 = vadd.f32 %v13118_v44, %v13117_v35  ;;  %v13132_v44 = vld [vmem:[#allocation15_spill] sm:$0xff] }
 0x707   : > { %9844 = vmatpush3.xpose.msra.mxu0 %v3598_v51  ;;  %9845 = vmatprep.mubr.msk.f32.mxu0 %vm10228_vm2, %v10227_v8  ;;  %v13119_v51 = vld [vmem:[#allocation25_spill] sm:$0xff] }
 0x708   : > { %9853 = vmatprep.subr.mxu0 %v10227_v8  ;;  %v2119_v49 = vmul.f32 %v11984_v18, %v13119_v51  ;;  %v3506_v11 = vadd.f32 %v13122_v4, %v3463_v37  ;;  %v13133_v51 = vld [vmem:[#allocation33_spill] sm:$0xff]  ;;  %v13137_v4 = vld [vmem:[#allocation42_spill] sm:$0xff] }
 0x70a   : > { %9846 = vmatmul.mubr.f32.vlgmr.msra.gmra.mxu0 %v2116_v36  ;;  %v13120_v36 = vld [vmem:[#allocation61_spill] sm:$0xff] }
 0x70b   : > { %9854 = vmatpush3.xpose.msra.mxu0 %v3599_v32  ;;  %9855 = vmatprep.mubr.msk.f32.mxu0 %vm10228_vm2, %v10227_v8  ;;  %v3547_v7 = vadd.f32 %v13120_v36, %v3504_v1  ;;  %v13121_v32 = vld [vmem:[#allocation10_spill] sm:$0xff]  ;;  %v13131_v1 = vld [vmem:[#allocation11_spill] sm:$0xff] }
 0x70c   : > { %9863 = vmatprep.subr.mxu0 %v10227_v8  ;;  %v12017_v40 = vrot.slane %v11880_v46, %v13121_v32  ;;  %v12028_v60 = vrot.slane %v11891_v10, %v13121_v32  ;;  %v2994_v46 = vadd.f32 %v13129_v6, %v2951_v21  ;;  %v1469_v35 = vadd.f32 %v13131_v1, %v13130_v28  ;;  %v13144_v6 = vld [vmem:[#allocation44_spill] sm:$0xff]  ;;  %v13146_v28 = vld [vmem:[#allocation50_spill] sm:$0xff]  ;;  %v13147_v1 = vld [vmem:[#allocation49_spill] sm:$0xff] }
 0x70d   : > { %v1641_v21 = vadd.f32 %v13142_v41, %v13141_v0  ;;  %v13159_v0 = vld [vmem:[#allocation30_spill] sm:$0xff] }
 0x70e   : > { %v11973_v59 = vpop.f32.mrf.mxu0  ;;  %9856 = vmatmul.mubr.f32.vlgmr.msra.gmra.mxu0 %v2117_v25  ;;  %v2120_v25 = vmul.f32 %v12010_v30, %v13123_v20  ;;  %v3603_v52 = vmul.f32 %v12017_v40, %v3547_v7  ;;  %v1512_v37 = vadd.f32 %v13132_v44, %v1469_v35  ;;  %v13136_v7 = vld [vmem:[#allocation43_spill] sm:$0xff]  ;;  %v3295_v35 = vadd.f32 %v13147_v1, %v13146_v28  ;;  %v13148_v44 = vld [vmem:[#allocation20_spill] sm:$0xff] }
 0x70f   : > { %v11977_v5 = vpop.f32.mrf.mxu1  ;;  %9864 = vmatpush3.xpose.msra.mxu0 %v3600_v33  ;;  %9865 = vmatprep.mubr.msk.f32.mxu0 %vm10228_vm2, %v10227_v8  ;;  %v13124_v33 = vld [vmem:[#allocation63_spill] sm:$0xff] }
 0x710   : > { %v11986_v57 = vpop.f32.mrf.mxu0  ;;  %9873 = vmatprep.subr.mxu0 %v10227_v8  ;;  %v3549_v31 = vadd.f32 %v13124_v33, %v3506_v11  ;;  %v3123_v11 = vadd.f32 %v13137_v4, %v13136_v7  ;;  %v13153_v4 = vld [vmem:[#allocation29_spill] sm:$0xff] }
 0x711   : > { %v11996_v14 = vpop.f32.mrf.mxu1 }
 0x712   : > { %v11998_v9 = vpop.f32.mrf.mxu0  ;;  %9866 = vmatmul.mubr.f32.vlgmr.msra.gmra.mxu0 %v2118_v29  ;;  %v2121_v29 = vmul.f32 %v12028_v60, %v13128_v42  ;;  %v3604_v62 = vmul.f32 %v12035_v15, %v3549_v31 }
 0x713   : > { %v12002_v45 = vpop.f32.mrf.mxu1  ;;  %9874 = vmatpush3.xpose.msra.mxu0 %v3601_v53  ;;  %9875 = vmatprep.mubr.msk.f32.mxu0 %vm10228_vm2, %v10227_v8  ;;  %v12045_v53 = vrot.slane %v11891_v10, %v13125_v48 }
 0x714   : > { %v4733_v2 = vpop.f32.mrf.mxu0  ;;  %9883 = vmatprep.subr.mxu0 %v10227_v8 }
 0x715   : > { %v4776_v13 = vpop.f32.mrf.mxu1  ;;  %v2122_v10 = vmul.f32 %v12045_v53, %v13133_v51 }
 0x716   : > { %v12020_v3 = vadd.f32 %v4776_v13, %v4733_v2  ;;  %9876 = vmatmul.mubr.f32.vlgmr.msra.gmra.mxu0 %v2119_v49  ;;  %v13134_v49 = vld [vmem:[#allocation39_spill] sm:$0xff]  ;;  %v13138_v13 = vld [vmem:[#allocation13_spill] sm:$0xff] }
 0x717   : > { %9884 = vmatpush3.xpose.msra.mxu0 %v3602_v63  ;;  %9885 = vmatprep.mubr.msk.f32.mxu0 %vm10228_vm2, %v10227_v8  ;;  %v3605_v2 = vmul.f32 %v11886_v61, %v13134_v49  ;;  %v13135_v63 = vld [vmem:[#allocation40_spill] sm:$0xff]  ;;  %v2123_v20 = vmul.f32 %v11904_v43, %v13138_v13  ;;  %v13140_v61 = vld [vmem:[#allocation46_spill] sm:$0xff] }
 0x718   : > { %9893 = vmatprep.subr.mxu0 %v10227_v8  ;;  %v3037_v36 = vadd.f32 %v13135_v63, %v2994_v46  ;;  %v3166_v31 = vadd.f32 %v13140_v61, %v3123_v11  ;;  %v3607_v46 = vmul.f32 %v11930_v22, %v13144_v6  ;;  %v13150_v22 = vld [vmem:[#allocation57_spill] sm:$0xff]  ;;  %v13152_v63 = vld [vmem:[#allocation23_spill] sm:$0xff]  ;;  %v13154_v11 = vld [vmem:[#allocation54_spill] sm:$0xff] }
 0x719   : > { %v3338_v49 = vadd.f32 %v13150_v22, %v3295_v35  ;;  %v3609_v13 = vmul.f32 %v11970_v27, %v13154_v11  ;;  %v13163_v6 = vld [vmem:[#allocation35_spill] sm:$0xff] }
 0x71a   : > { %9886 = vmatmul.mubr.f32.vlgmr.msra.gmra.mxu0 %v2120_v25  ;;  %v13139_v25 = vld [vmem:[#allocation14_spill] sm:$0xff]  ;;  %v3606_v33 = vmul.f32 %v11911_v47, %v3037_v36  ;;  %v13145_v47 = vld [vmem:[#allocation45_spill] sm:$0xff] }
 0x71b   : > { %9894 = vmatpush3.xpose.msra.mxu0 %v3603_v52  ;;  %9895 = vmatprep.mubr.msk.f32.mxu0 %vm10228_vm2, %v10227_v8  ;;  %v1555_v52 = vadd.f32 %v13139_v25, %v1512_v37  ;;  %v13149_v37 = vld [vmem:[#allocation21_spill] sm:$0xff]  ;;  %v13156_v25 = vld [vmem:[#allocation27_spill] sm:$0xff] }
 0x71c   : > { %9903 = vmatprep.subr.mxu0 %v10227_v8 }
 0x71d   : > { %v2124_v42 = vmul.f32 %v11923_v34, %v1555_v52  ;;  %v2125_v34 = vmul.f32 %v11943_v39, %v13148_v44  ;;  %v2127_v52 = vmul.f32 %v11984_v18, %v13156_v25  ;;  %v13161_v18 = vld [vmem:[#allocation65_spill] sm:$0xff] }
 0x71e   : > { %9896 = vmatmul.mubr.f32.vlgmr.msra.gmra.mxu0 %v2121_v29  ;;  %v13143_v29 = vld [vmem:[#allocation22_spill] sm:$0xff] }
 0x71f   : > { %9904 = vmatpush3.xpose.msra.mxu0 %v3604_v62  ;;  %9905 = vmatprep.mubr.msk.f32.mxu0 %vm10228_vm2, %v10227_v8  ;;  %v1684_v43 = vadd.f32 %v13143_v29, %v1641_v21  ;;  %v3209_v62 = vadd.f32 %v13145_v47, %v3166_v31  ;;  %v13158_v31 = vld [vmem:[#allocation31_spill] sm:$0xff]  ;;  %v13160_v21 = vld [vmem:[#allocation36_spill] sm:$0xff]  ;;  %v3611_v29 = vmul.f32 %v12017_v40, %v13161_v18 }
 0x720   : > { %9913 = vmatprep.subr.mxu0 %v10227_v8  ;;  %v1985_v41 = vadd.f32 %v13159_v0, %v13158_v31 }
 0x721   : > { %v1727_v51 = vadd.f32 %v13149_v37, %v1684_v43 }
 0x722   : > { %9906 = vmatmul.mubr.f32.vlgmr.msra.gmra.mxu0 %v2122_v10  ;;  %v3608_v10 = vmul.f32 %v11951_v26, %v3209_v62  ;;  %v13155_v26 = vld [vmem:[#allocation55_spill] sm:$0xff] }
 0x723   : > { %9914 = vmatpush3.xpose.msra.mxu0 %v3605_v2  ;;  %9915 = vmatprep.mubr.msk.f32.mxu0 %vm10228_vm2, %v10227_v8  ;;  %v13151_v2 = vld [vmem:[#allocation24_spill] sm:$0xff]  ;;  %v2126_v7 = vmul.f32 %v11963_v38, %v1727_v51 }
 0x724   : > { %9923 = vmatprep.subr.mxu0 %v10227_v8  ;;  %v1813_v36 = vadd.f32 %v13152_v63, %v13151_v2 }
 0x726   : > { %9916 = vmatmul.mubr.f32.vlgmr.msra.gmra.mxu0 %v2123_v20  ;;  %v1856_v39 = vadd.f32 %v13153_v4, %v1813_v36  ;;  %v3381_v20 = vadd.f32 %v13155_v26, %v3338_v49  ;;  %v12148_v49 = vld [vmem:[%s10365_s13 + $0x10] sm:$0xff] }
 0x727   : > { %9924 = vmatpush3.xpose.msra.mxu0 %v3606_v33  ;;  %9925 = vmatprep.mubr.msk.f32.mxu0 %vm10228_vm2, %v10227_v8  ;;  %v13157_v33 = vld [vmem:[#allocation28_spill] sm:$0xff] }
 0x728   : > { %9933 = vmatprep.subr.mxu0 %v10227_v8  ;;  %v1899_v61 = vadd.f32 %v13157_v33, %v1856_v39  ;;  %v3610_v38 = vmul.f32 %v11993_v12, %v3381_v20  ;;  %v13162_v12 = vld [vmem:[#allocation34_spill] sm:$0xff] }
 0x729   : > { %v2129_v43 = vmul.f32 %v12028_v60, %v13162_v12  ;;  %v4771_v60 = vadd.f32 %v11977_v5, %v11973_v59  ;;  %v12163_v12 = vrot.slane %v12148_v49, %v13121_v32 }
 0x72a   : > { %9926 = vmatmul.mubr.f32.vlgmr.msra.gmra.mxu0 %v2124_v42  ;;  %v2128_v27 = vmul.f32 %v12010_v30, %v1899_v61  ;;  %v2028_v42 = vadd.f32 %v13160_v21, %v1985_v41  ;;  %v13164_v30 = vld [vmem:[#allocation66_spill] sm:$0xff] }
 0x72b   : > { %9934 = vmatpush3.xpose.msra.mxu0 %v3607_v46  ;;  %9935 = vmatprep.mubr.msk.f32.mxu0 %vm10228_vm2, %v10227_v8  ;;  %v3612_v47 = vmul.f32 %v12035_v15, %v13164_v30  ;;  %v4773_v15 = vadd.f32 %v11996_v14, %v11986_v57  ;;  %v12152_v57 = vrot.slane %v12148_v49, %v13115_v19 }
 0x72c   : > { %9943 = vmatprep.subr.mxu0 %v10227_v8  ;;  %v2071_v46 = vadd.f32 %v13163_v6, %v2028_v42 }
 0x72e   : > { %9936 = vmatmul.mubr.f32.vlgmr.msra.gmra.mxu0 %v2125_v34  ;;  %v2130_v40 = vmul.f32 %v12045_v53, %v2071_v46  ;;  %v4775_v34 = vadd.f32 %v12002_v45, %v11998_v9 }
 0x72f   : > { %9944 = vmatpush3.xpose.msra.mxu0 %v3608_v10  ;;  %9945 = vmatprep.mubr.msk.f32.mxu0 %vm10228_vm2, %v10227_v8 }
 0x730   : > { %9953 = vmatprep.subr.mxu0 %v10227_v8 }
 0x732   : > { %9946 = vmatmul.mubr.f32.vlgmr.msra.gmra.mxu0 %v2126_v7 }
 0x733   : > { %9954 = vmatpush3.xpose.msra.mxu0 %v3609_v13  ;;  %9955 = vmatprep.mubr.msk.f32.mxu0 %vm10228_vm2, %v10227_v8 }
 0x734   : > { %9963 = vmatprep.subr.mxu0 %v10227_v8 }
 0x736   : > { %9956 = vmatmul.mubr.f32.vlgmr.msra.gmra.mxu0 %v2127_v52 }
 0x737   : > { %9964 = vmatpush3.xpose.msra.mxu0 %v3610_v38  ;;  %9965 = vmatprep.mubr.msk.f32.mxu0 %vm10228_vm2, %v10227_v8 }
 0x738   : > { %9973 = vmatprep.subr.mxu0 %v10227_v8 }
 0x73a   : > { %9966 = vmatmul.mubr.f32.vlgmr.msra.gmra.mxu0 %v2128_v27 }
 0x73b   : > { %9974 = vmatpush3.xpose.msra.mxu0 %v3611_v29  ;;  %9975 = vmatprep.mubr.msk.f32.mxu0 %vm10228_vm2, %v10227_v8 }
 0x73c   : > { %9983 = vmatprep.subr.mxu0 %v10227_v8 }
 0x73e   : > { %9976 = vmatmul.mubr.f32.vlgmr.msra.gmra.mxu0 %v2129_v43 }
 0x73f   : > { %9984 = vmatpush3.xpose.msra.mxu0 %v3612_v47  ;;  %9985 = vmatprep.mubr.msk.f32.mxu0 %vm10228_vm2, %v10227_v8  ;;  %v12128_v62 = vpop.f32.mrf.mxu1  ;;  %v12168_v47 = vrot.slane %v12148_v49, %v13125_v48 }
 0x741   : > { %v12132_v28 = vpop.f32.mrf.mxu1 }
 0x742   : > { %9986 = vmatmul.mubr.f32.vlgmr.msra.gmra.mxu0 %v2130_v40 }
 0x743   : > { %v12142_v37 = vpop.f32.mrf.mxu1 }
 0x745   : > { %v4862_v22 = vpop.f32.mrf.mxu1 }
 0x74e   : > { %v4813_v1 = vpop.f32.mrf.mxu0 }
 0x74f   : > { %v12136_v35 = vadd.f32 %v4813_v1, %v4771_v60 }
 0x750   : > { %v4815_v44 = vpop.f32.mrf.mxu0 }
 0x751   : > { %v12140_v53 = vadd.f32 %v4815_v44, %v4773_v15 }
 0x752   : > { %v4817_v51 = vpop.f32.mrf.mxu0 }
 0x753   : > { %v12144_v10 = vadd.f32 %v4817_v51, %v4775_v34 }
 0x754   : > { %v4819_v59 = vpop.f32.mrf.mxu0 }
 0x755   : > { %v4820_v5 = vadd.f32 %v4819_v59, %v12020_v3 }
 0x757   : > { %v4863_v14 = vadd.f32 %v4862_v22, %v4820_v5 }
 0x759   : > { %v12155_v9 = vmul.f32 %v12152_v57, %v4863_v14 }
 0x77f   : > { %v4899_v45 = vpop.f32.mrf.mxu1 }
 0x781   : > { %v4901_v2 = vpop.f32.mrf.mxu1 }
 0x783   : > { %v4903_v36 = vpop.f32.mrf.mxu1 }
 0x785   : > { %v4905_v11 = vpop.f32.mrf.mxu1 }
 0x78e   : > { %v4942_v63 = vpop.f32.mrf.mxu0 }
 0x78f   : > { %v4943_v26 = vadd.f32 %v4942_v63, %v4899_v45 }
 0x790   : > { %v4944_v7 = vpop.f32.mrf.mxu0 }
 0x791   : > { %v4945_v52 = vadd.f32 %v4944_v7, %v4901_v2 }
 0x792   : > { %v4946_v4 = vpop.f32.mrf.mxu0 }
 0x793   : > { %v4947_v39 = vadd.f32 %v4946_v4, %v4903_v36 }
 0x794   : > { %v4948_v3 = vpop.f32.mrf.mxu0 }
 0x795   : > { %v4949_v13 = vadd.f32 %v4948_v3, %v4905_v11 }
 0x7be   : > { %v5028_v20 = vpop.f32.mrf.mxu0 }
 0x7bf   : > { %v4985_v25 = vpop.f32.mrf.mxu1 }
 0x7c0   : > { %v4986_v33 = vadd.f32 %v4985_v25, %v4943_v26  ;;  %v5030_v61 = vpop.f32.mrf.mxu0 }
 0x7c1   : > { %v4987_v38 = vpop.f32.mrf.mxu1 }
 0x7c2   : > { %v12157_v31 = vadd.f32 %v5028_v20, %v4986_v33  ;;  %v4988_v0 = vadd.f32 %v4987_v38, %v4945_v52  ;;  %v5032_v41 = vpop.f32.mrf.mxu0 }
 0x7c3   : > { %v4989_v27 = vpop.f32.mrf.mxu1 }
 0x7c4   : > { %v12159_v21 = vadd.f32 %v5030_v61, %v4988_v0  ;;  %v4990_v42 = vadd.f32 %v4989_v27, %v4947_v39  ;;  %v5034_v18 = vpop.f32.mrf.mxu0 }
 0x7c5   : > { %v4991_v29 = vpop.f32.mrf.mxu1 }
 0x7c6   : > { %v5033_v43 = vadd.f32 %v5032_v41, %v4990_v42  ;;  %v4992_v6 = vadd.f32 %v4991_v29, %v4949_v13  ;;  %v5180_v46 = vpop.f32.mrf.mxu0 }
 0x7c7   : > { %v5185_v30 = vsel %vm5184_vm3, %v5180_v46, -inf }
 0x7c8   : > { %v12171_v40 = vmul.f32 %v12163_v12, %v5033_v43  ;;  %v5035_v60 = vadd.f32 %v5034_v18, %v4992_v6  ;;  %5186 = vmax.xlane.f32.xlu0 %v5185_v30  ;;  %v9837_v1 = vpop.f32.mrf.mxu0 }
 0x7ca   : > { %v12174_v15 = vmul.f32 %v12168_v47, %v5035_v60  ;;  %v5339_v44 = vpop.f32.mrf.mxu0 }
 0x7cb   : > { %v5343_v34 = vsel %vm5184_vm3, %v5339_v44, -inf }
 0x7cc   : > { %5344 = vmax.xlane.f32.xlu1 %v5343_v34  ;;  %v9847_v51 = vpop.f32.mrf.mxu0 }
 0x7ce   : > { %v5497_v59 = vpop.f32.mrf.mxu0 }
 0x7cf   : > { %v5501_v5 = vsel %vm5184_vm3, %v5497_v59, -inf }
 0x7d0   : > { %5502 = vmax.xlane.f32.xlu0 %v5501_v5  ;;  %v9857_v22 = vpop.f32.mrf.mxu0 }
 0x7d2   : > { %v5655_v14 = vpop.f32.mrf.mxu0 }
 0x7d3   : > { %v5659_v45 = vsel %vm5184_vm3, %v5655_v14, -inf }
 0x7d4   : > { %5660 = vmax.xlane.f32.xlu1 %v5659_v45  ;;  %v9867_v2 = vpop.f32.mrf.mxu0 }
 0x7d6   : > { %v5813_v63 = vpop.f32.mrf.mxu0 }
 0x7d7   : > { %v5817_v36 = vsel %vm5184_vm3, %v5813_v63, -inf }
 0x7d8   : > { %5818 = vmax.xlane.f32.xlu0 %v5817_v36  ;;  %v9877_v7 = vpop.f32.mrf.mxu0 }
 0x7da   : > { %v5971_v4 = vpop.f32.mrf.mxu0 }
 0x7db   : > { %v5975_v39 = vsel %vm5184_vm3, %v5971_v4, -inf }
 0x7dc   : > { %5976 = vmax.xlane.f32.xlu1 %v5975_v39  ;;  %v9887_v11 = vpop.f32.mrf.mxu0 }
 0x7de   : > { %v12181_v3 = vpop.f32.mrf.mxu0 }
 0x7df   : > { %v6133_v13 = vsel %vm5184_vm3, %v12181_v3, -inf }
 0x7e0   : > { %6134 = vmax.xlane.f32.xlu0 %v6133_v13  ;;  %v9897_v26 = vpop.f32.mrf.mxu0 }
 0x7e2   : > { %v12185_v20 = vpop.f32.mrf.mxu0 }
 0x7e3   : > { %v6291_v25 = vsel %vm5184_vm3, %v12185_v20, -inf }
 0x7e4   : > { %6292 = vmax.xlane.f32.xlu1 %v6291_v25  ;;  %v9907_v52 = vpop.f32.mrf.mxu0 }
 0x7e6   : > { %v12189_v33 = vpop.f32.mrf.mxu0 }
 0x7e7   : > { %v6449_v61 = vsel %vm5184_vm3, %v12189_v33, -inf }
 0x7e8   : > { %6450 = vmax.xlane.f32.xlu0 %v6449_v61  ;;  %v9917_v38 = vpop.f32.mrf.mxu0 }
 0x7ea   : > { %v12193_v0 = vpop.f32.mrf.mxu0 }
 0x7eb   : > { %v6607_v41 = vsel %vm5184_vm3, %v12193_v0, -inf }
 0x7ec   : > { %6608 = vmax.xlane.f32.xlu1 %v6607_v41  ;;  %v9927_v27 = vpop.f32.mrf.mxu0 }
 0x7ee   : > { %v12197_v42 = vpop.f32.mrf.mxu0 }
 0x7ef   : > { %v6765_v18 = vsel %vm5184_vm3, %v12197_v42, -inf }
 0x7f0   : > { %6766 = vmax.xlane.f32.xlu0 %v6765_v18  ;;  %v9937_v29 = vpop.f32.mrf.mxu0 }
 0x7f2   : > { %v12201_v43 = vpop.f32.mrf.mxu0 }
 0x7f3   : > { %v6923_v6 = vsel %vm5184_vm3, %v12201_v43, -inf }
 0x7f4   : > { %6924 = vmax.xlane.f32.xlu1 %v6923_v6  ;;  %v9947_v30 = vpop.f32.mrf.mxu0 }
 0x7f6   : > { %v12205_v60 = vpop.f32.mrf.mxu0 }
 0x7f8   : > { %v9957_v1 = vpop.f32.mrf.mxu0 }
 0x7fa   : > { %v12207_v34 = vpop.f32.mrf.mxu0 }
 0x7fc   : > { %v9967_v51 = vpop.f32.mrf.mxu0 }
 0x7fe   : > { %v12209_v5 = vpop.f32.mrf.mxu0 }
 0x800   : > { %v9977_v22 = vpop.f32.mrf.mxu0 }
 0x801   : > { %v7081_v22 = vsel %vm5184_vm3, %v12205_v60, -inf }
 0x802   : > { %v12211_v45 = vpop.f32.mrf.mxu0 }
 0x804   : > { %v9987_v2 = vpop.f32.mrf.mxu0 }
 0x851   : > { %v5187_v36 = vpop.xlane.xlu0 %5186 }
 0x852   : > { %v5188_v7 = vsub.f32 %v5180_v46, %v5187_v36 }
 0x854   : > { %v5189_v39 = vmul.f32 1.442695, %v5188_v7 }
 0x855   : > { %v5345_v11 = vpop.xlane.xlu1 %5344 }
 0x856   : > { %10047 = vpow2.f32 %v5189_v39  ;;  %v5346_v13 = vsub.f32 %v5339_v44, %v5345_v11  ;;  %v7239_v39 = vsel %vm5184_vm3, %v12207_v34, -inf }
 0x858   : > { %v5347_v26 = vmul.f32 1.442695, %v5346_v13 }
 0x859   : > { %v5503_v25 = vpop.xlane.xlu0 %5502 }
 0x85a   : > { %10049 = vpow2.f32 %v5347_v26  ;;  %v5504_v52 = vsub.f32 %v5497_v59, %v5503_v25 }
 0x85c   : > { %v5505_v61 = vmul.f32 1.442695, %v5504_v52  ;;  %v7397_v52 = vsel %vm5184_vm3, %v12209_v5, -inf }
 0x85d   : > { %v5661_v38 = vpop.xlane.xlu1 %5660 }
 0x85e   : > { %10051 = vpow2.f32 %v5505_v61  ;;  %v5662_v41 = vsub.f32 %v5655_v14, %v5661_v38 }
 0x860   : > { %v5663_v27 = vmul.f32 1.442695, %v5662_v41 }
 0x861   : > { %v5819_v18 = vpop.xlane.xlu0 %5818 }
 0x862   : > { %10053 = vpow2.f32 %v5663_v27  ;;  %v5820_v29 = vsub.f32 %v5813_v63, %v5819_v18  ;;  %v7555_v18 = vsel %vm5184_vm3, %v12211_v45, -inf }
 0x863   : > { %v12213_v6 = vpop.eup %10047 }
 0x864   : > { %v5821_v30 = vmul.f32 1.442695, %v5820_v29  ;;  %v5191_v46 = vsel %vm5184_vm3, %v12213_v6, 0.0 }
 0x865   : > { %v5977_v1 = vpop.xlane.xlu1 %5976  ;;  %5192 = vadd.xlane.f32.xlu0 %v5191_v46 }
 0x866   : > { %10055 = vpow2.f32 %v5821_v30  ;;  %v5978_v44 = vsub.f32 %v5971_v4, %v5977_v1 }
 0x867   : > { %v12217_v51 = vpop.eup %10049 }
 0x868   : > { %v5979_v59 = vmul.f32 1.442695, %v5978_v44  ;;  %v5349_v14 = vsel %vm5184_vm3, %v12217_v51, 0.0 }
 0x869   : > { %v6135_v63 = vpop.xlane.xlu0 %6134  ;;  %5350 = vadd.xlane.f32.xlu1 %v5349_v14  ;;  %7082 = vmax.xlane.f32.xlu0 %v7081_v22 }
 0x86a   : > { %10057 = vpow2.f32 %v5979_v59  ;;  %v6136_v2 = vsub.f32 %v12181_v3, %v6135_v63 }
 0x86b   : > { %v12224_v36 = vpop.eup %10051 }
 0x86c   : > { %v6137_v7 = vmul.f32 1.442695, %v6136_v2  ;;  %v5507_v4 = vsel %vm5184_vm3, %v12224_v36, 0.0 }
 0x86d   : > { %v6293_v11 = vpop.xlane.xlu1 %6292  ;;  %5508 = vadd.xlane.f32.xlu1 %v5507_v4  ;;  %7240 = vmax.xlane.f32.xlu0 %v7239_v39 }
 0x86e   : > { %10059 = vpow2.f32 %v6137_v7  ;;  %v6294_v13 = vsub.f32 %v12185_v20, %v6293_v11 }
 0x86f   : > { %v12231_v26 = vpop.eup %10053 }
 0x870   : > { %v6295_v25 = vmul.f32 1.442695, %v6294_v13  ;;  %v5665_v3 = vsel %vm5184_vm3, %v12231_v26, 0.0 }
 0x871   : > { %v6451_v61 = vpop.xlane.xlu0 %6450  ;;  %5666 = vadd.xlane.f32.xlu1 %v5665_v3  ;;  %7398 = vmax.xlane.f32.xlu0 %v7397_v52 }
 0x872   : > { %10061 = vpow2.f32 %v6295_v25  ;;  %v6452_v38 = vsub.f32 %v12189_v33, %v6451_v61 }
 0x873   : > { %v12238_v41 = vpop.eup %10055 }
 0x874   : > { %v6453_v27 = vmul.f32 1.442695, %v6452_v38  ;;  %v5823_v20 = vsel %vm5184_vm3, %v12238_v41, 0.0 }
 0x875   : > { %v6609_v29 = vpop.xlane.xlu1 %6608  ;;  %5824 = vadd.xlane.f32.xlu1 %v5823_v20  ;;  %7556 = vmax.xlane.f32.xlu0 %v7555_v18 }
 0x876   : > { %10063 = vpow2.f32 %v6453_v27  ;;  %v6610_v30 = vsub.f32 %v12193_v0, %v6609_v29 }
 0x877   : > { %v12245_v46 = vpop.eup %10057 }
 0x878   : > { %v6611_v1 = vmul.f32 1.442695, %v6610_v30  ;;  %v5981_v33 = vsel %vm5184_vm3, %v12245_v46, 0.0 }
 0x879   : > { %v6767_v44 = vpop.xlane.xlu0 %6766  ;;  %5982 = vadd.xlane.f32.xlu1 %v5981_v33 }
 0x87a   : > { %10065 = vpow2.f32 %v6611_v1  ;;  %v6768_v59 = vsub.f32 %v12197_v42, %v6767_v44 }
 0x87b   : > { %v12250_v14 = vpop.eup %10059 }
 0x87c   : > { %v6769_v22 = vmul.f32 1.442695, %v6768_v59  ;;  %v6139_v63 = vsel %vm5184_vm3, %v12250_v14, 0.0  ;;  %v13165_v59 = vld [vmem:[#allocation68_spill] sm:$0xff] }
 0x87d   : > { %v6925_v2 = vpop.xlane.xlu1 %6924  ;;  %6140 = vadd.xlane.f32.xlu0 %v6139_v63 }
 0x87e   : > { %10067 = vpow2.f32 %v6769_v22  ;;  %v6926_v0 = vsub.f32 %v12201_v43, %v6925_v2  ;;  %v13166_v22 = vld [vmem:[#allocation67_spill] sm:$0xff]  ;;  %v12281_v2 = vrot.slane %v12148_v49, %v10720_v50 }
 0x87f   : > { %v12255_v7 = vpop.eup %10061  ;;  %v4515_v63 = vadd.f32 %v13166_v22, %v13165_v59  ;;  %v4857_v59 = vadd.f32 %v12128_v62, %v12136_v35  ;;  %v12317_v22 = vrot.slane %v12148_v49, %v13110_v23 }
 0x880   : > { %v6927_v4 = vmul.f32 1.442695, %v6926_v0  ;;  %v6297_v39 = vsel %vm5184_vm3, %v12255_v7, 0.0 }
 0x881   : > { %6298 = vadd.xlane.f32.xlu1 %v6297_v39 }
 0x882   : > { %10069 = vpow2.f32 %v6927_v4 }
 0x883   : > { %v12259_v42 = vpop.eup %10063 }
 0x884   : > { %v6455_v11 = vsel %vm5184_vm3, %v12259_v42, 0.0 }
 0x885   : > { %6456 = vadd.xlane.f32.xlu0 %v6455_v11 }
 0x887   : > { %v12263_v13 = vpop.eup %10065 }
 0x888   : > { %v6613_v25 = vsel %vm5184_vm3, %v12263_v13, 0.0 }
 0x889   : > { %6614 = vadd.xlane.f32.xlu1 %v6613_v25 }
 0x88b   : > { %v12267_v43 = vpop.eup %10067 }
 0x88c   : > { %v6771_v3 = vsel %vm5184_vm3, %v12267_v43, 0.0 }
 0x88d   : > { %6772 = vadd.xlane.f32.xlu0 %v6771_v3  ;;  %v12288_v3 = vrot.slane %v12148_v49, %v10732_v56 }
 0x88f   : > { %v12271_v52 = vpop.eup %10069 }
 0x890   : > { %v6929_v61 = vsel %vm5184_vm3, %v12271_v52, 0.0 }
 0x891   : > { %6930 = vadd.xlane.f32.xlu1 %v6929_v61 }
 0x8ee   : > { %v5193_v38 = vpop.xlane.xlu0 %5192 }
 0x8ef   : > { %10071 = vrcp.f32 %v5193_v38 }
 0x8f2   : > { %v5351_v27 = vpop.xlane.xlu1 %5350  ;;  %v7083_v20 = vpop.xlane.xlu0 %7082 }
 0x8f3   : > { %10073 = vrcp.f32 %v5351_v27  ;;  %v7084_v18 = vsub.f32 %v12205_v60, %v7083_v20 }
 0x8f5   : > { %v7085_v29 = vmul.f32 1.442695, %v7084_v18  ;;  %v5081_v18 = vmul.f32 %v12288_v3, %v11851_v16 }
 0x8f6   : > { %v5509_v30 = vpop.xlane.xlu1 %5508  ;;  %v7241_v1 = vpop.xlane.xlu0 %7240 }
 0x8f7   : > { %10075 = vpow2.f32 %v7085_v29  ;;  %v7242_v33 = vsub.f32 %v12207_v34, %v7241_v1  ;;  %v5080_v34 = vmul.f32 %v12281_v2, %v4515_v63 }
 0x8f8   : > { %10077 = vrcp.f32 %v5509_v30 }
 0x8f9   : > { %v7243_v44 = vmul.f32 1.442695, %v7242_v33 }
 0x8fa   : > { %v5667_v0 = vpop.xlane.xlu1 %5666  ;;  %v7399_v4 = vpop.xlane.xlu0 %7398 }
 0x8fb   : > { %10079 = vpow2.f32 %v7243_v44  ;;  %v7400_v60 = vsub.f32 %v12209_v5, %v7399_v4 }
 0x8fc   : > { %v10072_v39 = vpop.eup %10071  ;;  %10081 = vrcp.f32 %v5667_v0 }
 0x8fd   : > { %v7401_v11 = vmul.f32 1.442695, %v7400_v60  ;;  %v5195_v25 = vmul.f32 %v10072_v39, %v12213_v6 }
 0x8fe   : > { %v5825_v61 = vpop.xlane.xlu1 %5824  ;;  %v7557_v38 = vpop.xlane.xlu0 %7556 }
 0x8ff   : > { %10083 = vpow2.f32 %v7401_v11  ;;  %v7558_v27 = vsub.f32 %v12211_v45, %v7557_v38  ;;  %9841 = vmatmul.mubr.msk.f32.vlgmr.msra.gmra.mxu1 %vm5184_vm3, %v5195_v25  ;;  %v12300_v45 = vrot.slane %v12148_v49, %v10726_v54  ;;  %v5083_v49 = vmul.f32 %v12317_v22, %v4857_v59 }
 0x900   : > { %v10074_v20 = vpop.eup %10073  ;;  %10085 = vrcp.f32 %v5825_v61  ;;  %9849 = vmatpush3.msra.mxu1 %v5080_v34  ;;  %9850 = vmatprep.mubr.msk.f32.mxu1 %vm10228_vm2, %v10227_v8 }
 0x901   : > { %v7559_v5 = vmul.f32 1.442695, %v7558_v27  ;;  %9858 = vmatprep.subr.mxu1 %v10227_v8  ;;  %v5353_v6 = vmul.f32 %v10074_v20, %v12217_v51  ;;  %v5082_v44 = vmul.f32 %v12300_v45, %v11853_v17 }
 0x902   : > { %v5983_v29 = vpop.xlane.xlu1 %5982 }
 0x903   : > { %10087 = vpow2.f32 %v7559_v5  ;;  %9851 = vmatmul.mubr.msk.f32.vlgmr.msra.gmra.mxu1 %vm5184_vm3, %v5353_v6  ;;  %v5086_v5 = vmul.f32 %v12168_v47, %v12159_v21  ;;  %v13168_v6 = vld [vmem:[#allocation71_spill] sm:$0xff]  ;;  %v13169_v47 = vld [vmem:[#allocation70_spill] sm:$0xff] }
 0x904   : > { %v12303_v30 = vpop.eup %10075  ;;  %10089 = vrcp.f32 %v5983_v29  ;;  %9859 = vmatpush3.msra.mxu1 %v5081_v18  ;;  %9860 = vmatprep.mubr.msk.f32.mxu1 %vm10228_vm2, %v10227_v8 }
 0x905   : > { %v10078_v1 = vpop.eup %10077  ;;  %9868 = vmatprep.subr.mxu1 %v10227_v8  ;;  %v7087_v16 = vsel %vm5184_vm3, %v12303_v30, 0.0 }
 0x906   : > { %7088 = vadd.xlane.f32.xlu0 %v7087_v16  ;;  %v6141_v51 = vpop.xlane.xlu0 %6140  ;;  %v5511_v33 = vmul.f32 %v10078_v1, %v12224_v36  ;;  %v4859_v36 = vadd.f32 %v12132_v28, %v12140_v53 }
 0x907   : > { %10091 = vrcp.f32 %v6141_v51 }
 0x908   : > { %v12319_v63 = vpop.eup %10079  ;;  %9861 = vmatmul.mubr.msk.f32.vlgmr.msra.gmra.mxu1 %vm5184_vm3, %v5511_v33  ;;  %v5084_v28 = vmul.f32 %v12152_v57, %v4859_v36  ;;  %v5085_v57 = vmul.f32 %v12163_v12, %v12157_v31  ;;  %v4861_v33 = vadd.f32 %v12142_v37, %v12144_v10  ;;  %v7657_v10 = vld [vmem:[%s10370_s16 + $0x88] sm:$0xff] }
 0x909   : > { %v10082_v0 = vpop.eup %10081  ;;  %9869 = vmatpush3.msra.mxu1 %v5082_v44  ;;  %9870 = vmatprep.mubr.msk.f32.mxu1 %vm10228_vm2, %v10227_v8  ;;  %v7245_v17 = vsel %vm5184_vm3, %v12319_v63, 0.0  ;;  %v7664_v44 = vld [vmem:[%s10370_s16 + $0xc0] sm:$0xff] }
 0x90a   : > { %9878 = vmatprep.subr.mxu1 %v10227_v8  ;;  %v6299_v62 = vpop.xlane.xlu1 %6298  ;;  %7246 = vadd.xlane.f32.xlu1 %v7245_v17  ;;  %v5669_v35 = vmul.f32 %v10082_v0, %v12231_v26  ;;  %v7952_v59 = vunpack.c.h.s8.bf16 %v7664_v44  ;;  %v7937_v0 = vunpack.c.h.s8.bf16 %v7657_v10 }
 0x90b   : > { %10093 = vrcp.f32 %v6299_v62  ;;  %v7929_v62 = vunpack.c.l.s8.bf16 %v7657_v10 }
 0x90c   : > { %v12331_v4 = vpop.eup %10083  ;;  %9871 = vmatmul.mubr.msk.f32.vlgmr.msra.gmra.mxu1 %vm5184_vm3, %v5669_v35  ;;  %v7649_v35 = vld [vmem:[%s10370_s16 + $0x48] sm:$0xff] }
 0x90d   : > { %v10086_v60 = vpop.eup %10085  ;;  %9879 = vmatpush3.msra.mxu1 %v5083_v49  ;;  %9880 = vmatprep.mubr.msk.f32.mxu1 %vm10228_vm2, %v10227_v8  ;;  %v7403_v39 = vsel %vm5184_vm3, %v12331_v4, 0.0  ;;  %v7921_v36 = vunpack.c.h.s8.bf16 %v7649_v35 }
 0x90e   : > { %9888 = vmatprep.subr.mxu1 %v10227_v8  ;;  %7404 = vadd.xlane.f32.xlu0 %v7403_v39  ;;  %v6457_v26 = vpop.xlane.xlu0 %6456  ;;  %v5827_v11 = vmul.f32 %v10086_v60, %v12238_v41  ;;  %v7648_v60 = vld [vmem:[%s10370_s16 + $0x40] sm:$0xff] }
 0x90f   : > { %10095 = vrcp.f32 %v6457_v26  ;;  %v7920_v39 = vunpack.c.h.s8.bf16 %v7648_v60  ;;  %v7913_v26 = vunpack.c.l.s8.bf16 %v7649_v35 }
 0x910   : > { %v12341_v53 = vpop.eup %10087  ;;  %9881 = vmatmul.mubr.msk.f32.vlgmr.msra.gmra.mxu1 %vm5184_vm3, %v5827_v11  ;;  %v7912_v11 = vunpack.c.l.s8.bf16 %v7648_v60 }
 0x911   : > { %v10090_v25 = vpop.eup %10089  ;;  %9889 = vmatpush3.msra.mxu1 %v5084_v28  ;;  %9890 = vmatprep.mubr.msk.f32.mxu1 %vm10228_vm2, %v10227_v8  ;;  %v7561_v34 = vsel %vm5184_vm3, %v12341_v53, 0.0  ;;  %v7641_v28 = vld [vmem:[%s10370_s16 + $0x8] sm:$0xff] }
 0x912   : > { %9898 = vmatprep.subr.mxu1 %v10227_v8  ;;  %v6615_v61 = vpop.xlane.xlu1 %6614  ;;  %7562 = vadd.xlane.f32.xlu1 %v7561_v34  ;;  %v5985_v41 = vmul.f32 %v10090_v25, %v12245_v46  ;;  %v7905_v25 = vunpack.c.h.s8.bf16 %v7641_v28  ;;  %v7640_v34 = vld [vmem:[%s10370_s16] sm:$0xff] }
 0x913   : > { %10097 = vrcp.f32 %v6615_v61  ;;  %v7904_v61 = vunpack.c.h.s8.bf16 %v7640_v34 }
 0x914   : > { %v10092_v38 = vpop.eup %10091  ;;  %9891 = vmatmul.mubr.msk.f32.vlgmr.msra.gmra.mxu1 %vm5184_vm3, %v5985_v41  ;;  %v7897_v41 = vunpack.c.l.s8.bf16 %v7641_v28 }
 0x915   : > { %9899 = vmatpush3.msra.mxu1 %v5085_v57  ;;  %9900 = vmatprep.mubr.msk.f32.mxu1 %vm10228_vm2, %v10227_v8  ;;  %v6143_v27 = vmul.f32 %v10092_v38, %v12250_v14  ;;  %v13167_v14 = vld [vmem:[#allocation69_spill] sm:$0xff]  ;;  %v7896_v57 = vunpack.c.l.s8.bf16 %v7640_v34  ;;  %v7697_v38 = vld [vmem:[%s10370_s16 + $0x1c8] sm:$0xff] }
 0x916   : > { %9908 = vmatprep.subr.mxu1 %v10227_v8  ;;  %v6773_v20 = vpop.xlane.xlu0 %6772  ;;  %v4519_v18 = vadd.f32 %v13168_v6, %v13167_v14  ;;  %v7688_v14 = vld [vmem:[%s10370_s16 + $0x180] sm:$0xff] }
 0x917   : > { %10099 = vrcp.f32 %v6773_v20  ;;  %v8017_v20 = vunpack.c.h.s8.bf16 %v7697_v38 }
 0x918   : > { %v10094_v46 = vpop.eup %10093  ;;  %9901 = vmatmul.mubr.msk.f32.vlgmr.msra.gmra.mxu1 %vm5184_vm3, %v6143_v27  ;;  %v7696_v27 = vld [vmem:[%s10370_s16 + $0x1c0] sm:$0xff] }
 0x919   : > { %9909 = vmatpush3.msra.mxu1 %v5086_v5  ;;  %9910 = vmatprep.mubr.msk.f32.mxu1 %vm10228_vm2, %v10227_v8  ;;  %v6301_v31 = vmul.f32 %v10094_v46, %v12255_v7  ;;  %v5088_v7 = vmul.f32 %v12281_v2, %v4519_v18  ;;  %v8016_v5 = vunpack.c.h.s8.bf16 %v7696_v27  ;;  %v8009_v46 = vunpack.c.l.s8.bf16 %v7697_v38  ;;  %v7705_v38 = vld [vmem:[%s10370_s16 + $0x208] sm:$0xff] }
 0x91a   : > { %v6931_v12 = vpop.xlane.xlu1 %6930  ;;  %9918 = vmatprep.subr.mxu1 %v10227_v8  ;;  %v8000_v18 = vunpack.c.h.s8.bf16 %v7688_v14 }
 0x91b   : > { %10101 = vrcp.f32 %v6931_v12  ;;  %v7689_v12 = vld [vmem:[%s10370_s16 + $0x188] sm:$0xff] }
 0x91c   : > { %v10096_v29 = vpop.eup %10095  ;;  %9911 = vmatmul.mubr.msk.f32.vlgmr.msra.gmra.mxu1 %vm5184_vm3, %v6301_v31  ;;  %v8008_v31 = vunpack.c.l.s8.bf16 %v7696_v27  ;;  %v8001_v6 = vunpack.c.h.s8.bf16 %v7689_v12 }
 0x91d   : > { %v6459_v21 = vmul.f32 %v10096_v29, %v12259_v42  ;;  %9919 = vmatpush3.msra.mxu1 %v13169_v47  ;;  %9920 = vmatprep.mubr.msk.f32.mxu1 %vm10228_vm2, %v10227_v8  ;;  %v5089_v42 = vmul.f32 %v12288_v3, %v11856_v24  ;;  %v7993_v29 = vunpack.c.l.s8.bf16 %v7689_v12  ;;  %v7681_v47 = vld [vmem:[%s10370_s16 + $0x148] sm:$0xff] }
 0x91e   : > { %9928 = vmatprep.subr.mxu1 %v10227_v8 }
 0x920   : > { %v10098_v1 = vpop.eup %10097  ;;  %9921 = vmatmul.mubr.msk.f32.vlgmr.msra.gmra.mxu1 %vm5184_vm3, %v6459_v21  ;;  %v7992_v21 = vunpack.c.l.s8.bf16 %v7688_v14  ;;  %v8025_v14 = vunpack.c.l.s8.bf16 %v7705_v38 }
 0x921   : > { %v6617_v16 = vmul.f32 %v10098_v1, %v12263_v13  ;;  %9929 = vmatpush3.msra.mxu1 %v5088_v7  ;;  %9930 = vmatprep.mubr.msk.f32.mxu1 %vm10228_vm2, %v10227_v8  ;;  %v5090_v13 = vmul.f32 %v12300_v45, %v11859_v58  ;;  %v5091_v58 = vmul.f32 %v12317_v22, %v4861_v33  ;;  %v7656_v22 = vld [vmem:[%s10370_s16 + $0x80] sm:$0xff]  ;;  %v7985_v1 = vunpack.c.h.s8.bf16 %v7681_v47 }
 0x922   : > { %9938 = vmatprep.subr.mxu1 %v10227_v8  ;;  %v7936_v17 = vunpack.c.h.s8.bf16 %v7656_v22  ;;  %v7928_v49 = vunpack.c.l.s8.bf16 %v7656_v22  ;;  %v7680_v7 = vld [vmem:[%s10370_s16 + $0x140] sm:$0xff] }
 0x924   : > { %v10100_v51 = vpop.eup %10099  ;;  %9931 = vmatmul.mubr.msk.f32.vlgmr.msra.gmra.mxu1 %vm5184_vm3, %v6617_v16  ;;  %v7984_v16 = vunpack.c.h.s8.bf16 %v7680_v7 }
 0x925   : > { %v6775_v2 = vmul.f32 %v10100_v51, %v12267_v43  ;;  %9939 = vmatpush3.msra.mxu1 %v5089_v42  ;;  %9940 = vmatprep.mubr.msk.f32.mxu1 %vm10228_vm2, %v10227_v8  ;;  %v7665_v43 = vld [vmem:[%s10370_s16 + $0xc8] sm:$0xff]  ;;  %v7977_v42 = vunpack.c.l.s8.bf16 %v7681_v47  ;;  %v7976_v51 = vunpack.c.l.s8.bf16 %v7680_v7  ;;  %v7760_v7 = vld [vmem:[%s10370_s16 + $0x3c0] sm:$0xff] }
 0x926   : > { %9948 = vmatprep.subr.mxu1 %v10227_v8  ;;  %v7953_v45 = vunpack.c.h.s8.bf16 %v7665_v43  ;;  %v7945_v37 = vunpack.c.l.s8.bf16 %v7665_v43 }
 0x928   : > { %v10102_v24 = vpop.eup %10101  ;;  %9941 = vmatmul.mubr.msk.f32.vlgmr.msra.gmra.mxu1 %vm5184_vm3, %v6775_v2  ;;  %8432 = vmatprep.subr.bf16.mxu0 %v7953_v45  ;;  %v7673_v2 = vld [vmem:[%s10370_s16 + $0x108] sm:$0xff] }
 0x929   : > { %v6933_v3 = vmul.f32 %v10102_v24, %v12271_v52  ;;  %9949 = vmatpush3.msra.mxu1 %v5090_v13  ;;  %9950 = vmatprep.mubr.msk.f32.mxu1 %vm10228_vm2, %v10227_v8  ;;  %v7944_v52 = vunpack.c.l.s8.bf16 %v7664_v44  ;;  %v7672_v13 = vld [vmem:[%s10370_s16 + $0x100] sm:$0xff]  ;;  %v7969_v33 = vunpack.c.h.s8.bf16 %v7673_v2  ;;  %v12416_v44 = vld [vmem:[%s10370_s16 + $0x4c8] sm:$0xff] }
 0x92a   : > { %9958 = vmatprep.subr.mxu1 %v10227_v8  ;;  %8433 = vmatpush1.bf16.msra.mxu0 %v7952_v59  ;;  %v7968_v24 = vunpack.c.h.s8.bf16 %v7672_v13  ;;  %v7960_v43 = vunpack.c.l.s8.bf16 %v7672_v13 }
 0x92b   : > { %8434 = vmatprep.subr.bf16.mxu0 %v7945_v37 }
 0x92c   : > { %9951 = vmatmul.mubr.msk.f32.vlgmr.msra.gmra.mxu1 %vm5184_vm3, %v6933_v3  ;;  %v7961_v3 = vunpack.c.l.s8.bf16 %v7673_v2  ;;  %v7753_v2 = vld [vmem:[%s10370_s16 + $0x388] sm:$0xff] }
 0x92d   : > { %9959 = vmatpush3.msra.mxu1 %v5091_v58  ;;  %9960 = vmatprep.mubr.msk.f32.mxu1 %vm10228_vm2, %v10227_v8  ;;  %v8209_v58 = vunpack.c.h.s8.bf16 %v12416_v44 }
 0x92e   : > { %9968 = vmatprep.subr.mxu1 %v10227_v8  ;;  %8435 = vmatpush1.bf16.msra.mxu0 %v7944_v52 }
 0x92f   : > { %8436 = vmatprep.subr.bf16.mxu0 %v7937_v0 }
 0x932   : > { %8437 = vmatpush1.bf16.msra.mxu0 %v7936_v17 }
 0x933   : > { %8438 = vmatprep.subr.bf16.mxu0 %v7929_v62  ;;  %v7729_v62 = vld [vmem:[%s10370_s16 + $0x2c8] sm:$0xff] }
 0x934   : > { %v8073_v60 = vunpack.c.l.s8.bf16 %v7729_v62 }
 0x936   : > { %8439 = vmatpush1.bf16.msra.mxu0 %v7928_v49  ;;  %v7728_v49 = vld [vmem:[%s10370_s16 + $0x2c0] sm:$0xff] }
 0x937   : > { %8440 = vmatprep.subr.bf16.mxu0 %v7921_v36 }
 0x93a   : > { %8441 = vmatpush1.bf16.msra.mxu0 %v7920_v39  ;;  %v8072_v39 = vunpack.c.l.s8.bf16 %v7728_v49 }
 0x93b   : > { %8442 = vmatprep.subr.bf16.mxu0 %v7913_v26 }
 0x93e   : > { %8443 = vmatpush1.bf16.msra.mxu0 %v7912_v11  ;;  %v7720_v11 = vld [vmem:[%s10370_s16 + $0x280] sm:$0xff] }
 0x93f   : > { %8444 = vmatprep.subr.bf16.mxu0 %v7905_v25  ;;  %v7713_v25 = vld [vmem:[%s10370_s16 + $0x248] sm:$0xff] }
 0x940   : > { %v8049_v34 = vunpack.c.h.s8.bf16 %v7713_v25 }
 0x942   : > { %8445 = vmatpush1.bf16.msra.mxu0 %v7904_v61  ;;  %v7712_v61 = vld [vmem:[%s10370_s16 + $0x240] sm:$0xff] }
 0x943   : > { %8446 = vmatprep.subr.bf16.mxu0 %v7897_v41  ;;  %v8048_v41 = vunpack.c.h.s8.bf16 %v7712_v61  ;;  %v8040_v27 = vunpack.c.l.s8.bf16 %v7712_v61 }
 0x946   : > { %8447 = vmatpush1.bf16.msra.mxu0 %v7896_v57  ;;  %v8041_v57 = vunpack.c.l.s8.bf16 %v7713_v25  ;;  %v7792_v25 = vld [vmem:[%s10370_s16 + $0x4c0] sm:$0xff] }
 0x947   : > { %8448 = vmatprep.subr.bf16.mxu0 %v8017_v20  ;;  %v8033_v20 = vunpack.c.h.s8.bf16 %v7705_v38 }
 0x94a   : > { %8449 = vmatpush2.bf16.msra.mxu0 %v8016_v5  ;;  %v7704_v5 = vld [vmem:[%s10370_s16 + $0x200] sm:$0xff] }
 0x94b   : > { %8450 = vmatprep.subr.bf16.mxu0 %v8009_v46  ;;  %v8032_v12 = vunpack.c.h.s8.bf16 %v7704_v5 }
 0x94e   : > { %8451 = vmatpush2.bf16.msra.mxu0 %v8008_v31 }
 0x94f   : > { %8452 = vmatprep.subr.bf16.mxu0 %v8001_v6 }
 0x952   : > { %8453 = vmatpush2.bf16.msra.mxu0 %v8000_v18  ;;  %v7761_v18 = vld [vmem:[%s10370_s16 + $0x3c8] sm:$0xff] }
 0x953   : > { %8454 = vmatprep.subr.bf16.mxu0 %v7993_v29  ;;  %v8145_v47 = vunpack.c.h.s8.bf16 %v7761_v18 }
 0x956   : > { %8455 = vmatpush2.bf16.msra.mxu0 %v7992_v21  ;;  %v8024_v21 = vunpack.c.l.s8.bf16 %v7704_v5 }
 0x957   : > { %8456 = vmatprep.subr.bf16.mxu0 %v7985_v1 }
 0x95a   : > { %8457 = vmatpush2.bf16.msra.mxu0 %v7984_v16  ;;  %v8144_v16 = vunpack.c.h.s8.bf16 %v7760_v7 }
 0x95b   : > { %8458 = vmatprep.subr.bf16.mxu0 %v7977_v42 }
 0x95e   : > { %8459 = vmatpush2.bf16.msra.mxu0 %v7976_v51  ;;  %v8137_v51 = vunpack.c.l.s8.bf16 %v7761_v18  ;;  %v7784_v18 = vld [vmem:[%s10370_s16 + $0x480] sm:$0xff] }
 0x95f   : > { %8460 = vmatprep.subr.bf16.mxu0 %v7969_v33  ;;  %v8136_v33 = vunpack.c.l.s8.bf16 %v7760_v7 }
 0x962   : > { %8461 = vmatpush2.bf16.msra.mxu0 %v7968_v24 }
 0x963   : > { %8462 = vmatprep.subr.bf16.mxu0 %v7961_v3  ;;  %v8129_v3 = vunpack.c.h.s8.bf16 %v7753_v2 }
 0x966   : > { %8463 = vmatpush2.bf16.msra.mxu0 %v7960_v43  ;;  %v7752_v43 = vld [vmem:[%s10370_s16 + $0x380] sm:$0xff] }
 0x967   : > { %8518 = vmatprep.subr.bf16.mxu0 %v8209_v58 }
 0x98f   : > { %v7089_v45 = vpop.xlane.xlu0 %7088 }
 0x990   : > { %10103 = vrcp.f32 %v7089_v45  ;;  %v8128_v45 = vunpack.c.h.s8.bf16 %v7752_v43 }
 0x993   : > { %v7247_v59 = vpop.xlane.xlu1 %7246 }
 0x994   : > { %10105 = vrcp.f32 %v7247_v59 }
 0x997   : > { %v7405_v37 = vpop.xlane.xlu0 %7404 }
 0x998   : > { %10107 = vrcp.f32 %v7405_v37  ;;  %v8121_v37 = vunpack.c.l.s8.bf16 %v7753_v2 }
 0x99b   : > { %v7563_v10 = vpop.xlane.xlu1 %7562 }
 0x99c   : > { %10109 = vrcp.f32 %v7563_v10  ;;  %v7745_v10 = vld [vmem:[%s10370_s16 + $0x348] sm:$0xff] }
 0x99d   : > { %v10104_v52 = vpop.eup %10103 }
 0x99e   : > { %v7091_v0 = vmul.f32 %v10104_v52, %v12303_v30 }
 0x9a0   : > { %9961 = vmatmul.mubr.msk.f32.vlgmr.msra.gmra.mxu1 %vm5184_vm3, %v7091_v0  ;;  %v8120_v0 = vunpack.c.l.s8.bf16 %v7752_v43 }
 0x9a1   : > { %v10106_v22 = vpop.eup %10105  ;;  %9969 = vmatpush3.msra.mxu1 %v12155_v9  ;;  %9970 = vmatprep.mubr.msk.f32.mxu1 %vm10228_vm2, %v10227_v8  ;;  %v8081_v9 = vunpack.c.h.s8.bf16 %v7729_v62  ;;  %v7744_v62 = vld [vmem:[%s10370_s16 + $0x340] sm:$0xff] }
 0x9a2   : > { %v7249_v17 = vmul.f32 %v10106_v22, %v12319_v63  ;;  %9978 = vmatprep.subr.mxu1 %v10227_v8 }
 0x9a4   : > { %9971 = vmatmul.mubr.msk.f32.vlgmr.msra.gmra.mxu1 %vm5184_vm3, %v7249_v17  ;;  %v8113_v17 = vunpack.c.h.s8.bf16 %v7745_v10 }
 0x9a5   : > { %v10108_v35 = vpop.eup %10107  ;;  %9979 = vmatpush3.msra.mxu1 %v12171_v40  ;;  %9980 = vmatprep.mubr.msk.f32.mxu1 %vm10228_vm2, %v10227_v8  ;;  %v8080_v40 = vunpack.c.h.s8.bf16 %v7728_v49  ;;  %v8105_v49 = vunpack.c.l.s8.bf16 %v7745_v10 }
 0x9a6   : > { %v7407_v30 = vmul.f32 %v10108_v35, %v12331_v4  ;;  %9988 = vmatprep.subr.mxu1 %v10227_v8  ;;  %v7721_v4 = vld [vmem:[%s10370_s16 + $0x288] sm:$0xff] }
 0x9a7   : > { %v8065_v26 = vunpack.c.h.s8.bf16 %v7721_v4  ;;  %v8057_v28 = vunpack.c.l.s8.bf16 %v7721_v4 }
 0x9a8   : > { %9981 = vmatmul.mubr.msk.f32.vlgmr.msra.gmra.mxu1 %vm5184_vm3, %v7407_v30  ;;  %v8112_v30 = vunpack.c.h.s8.bf16 %v7744_v62 }
 0x9a9   : > { %v10110_v63 = vpop.eup %10109  ;;  %9989 = vmatpush3.msra.mxu1 %v12174_v15  ;;  %9990 = vmatprep.mubr.msk.f32.mxu1 %vm10228_vm2, %v10227_v8  ;;  %v8064_v15 = vunpack.c.h.s8.bf16 %v7720_v11 }
 0x9aa   : > { %v7565_v36 = vmul.f32 %v10110_v63, %v12341_v53  ;;  %8475 = vmatprep.subr.bf16.mxu1 %v8081_v9  ;;  %v8056_v53 = vunpack.c.l.s8.bf16 %v7720_v11  ;;  %v7737_v63 = vld [vmem:[%s10370_s16 + $0x308] sm:$0xff] }
 0x9ab   : > { %v8097_v4 = vunpack.c.h.s8.bf16 %v7737_v63 }
 0x9ac   : > { %9991 = vmatmul.mubr.msk.f32.vlgmr.msra.gmra.mxu1 %vm5184_vm3, %v7565_v36  ;;  %v8104_v36 = vunpack.c.l.s8.bf16 %v7744_v62  ;;  %v7841_v62 = vld [vmem:[%s10370_s16 + $0x648] sm:$0xff] }
 0x9ad   : > { %8476 = vmatpush1.bf16.msra.mxu1 %v8080_v40 }
 0x9ae   : > { %8477 = vmatprep.subr.bf16.mxu1 %v8073_v60 }
 0x9b1   : > { %8478 = vmatpush1.bf16.msra.mxu1 %v8072_v39  ;;  %v7736_v39 = vld [vmem:[%s10370_s16 + $0x300] sm:$0xff] }
 0x9b2   : > { %8479 = vmatprep.subr.bf16.mxu1 %v8065_v26  ;;  %v8096_v11 = vunpack.c.h.s8.bf16 %v7736_v39 }
 0x9b5   : > { %8480 = vmatpush1.bf16.msra.mxu1 %v8064_v15 }
 0x9b6   : > { %8481 = vmatprep.subr.bf16.mxu1 %v8057_v28  ;;  %v8089_v28 = vunpack.c.l.s8.bf16 %v7737_v63  ;;  %v8305_v63 = vunpack.c.h.s8.bf16 %v7841_v62 }
 0x9b9   : > { %8482 = vmatpush1.bf16.msra.mxu1 %v8056_v53  ;;  %v7857_v53 = vld [vmem:[%s10370_s16 + $0x6c8] sm:$0xff] }
 0x9ba   : > { %8483 = vmatprep.subr.bf16.mxu1 %v8049_v34  ;;  %v8337_v5 = vunpack.c.h.s8.bf16 %v7857_v53  ;;  %v8329_v2 = vunpack.c.l.s8.bf16 %v7857_v53 }
 0x9bd   : > { %8484 = vmatpush1.bf16.msra.mxu1 %v8048_v41  ;;  %v8088_v41 = vunpack.c.l.s8.bf16 %v7736_v39 }
 0x9be   : > { %8485 = vmatprep.subr.bf16.mxu1 %v8041_v57  ;;  %v8208_v57 = vunpack.c.h.s8.bf16 %v7792_v25 }
 0x9bf   : > { %v12446_v46 = vpop.f32.mrf.mxu1 }
 0x9c1   : > { %v9842_v31 = vpop.f32.mrf.mxu1  ;;  %8486 = vmatpush1.bf16.msra.mxu1 %v8040_v27 }
 0x9c2   : > { %8487 = vmatprep.subr.bf16.mxu1 %v8033_v20  ;;  %v8201_v20 = vunpack.c.l.s8.bf16 %v12416_v44  ;;  %v7785_v31 = vld [vmem:[%s10370_s16 + $0x488] sm:$0xff] }
 0x9c3   : > { %v5423_v6 = vpop.f32.mrf.mxu1 }
 0x9c5   : > { %v9852_v29 = vpop.f32.mrf.mxu1  ;;  %8488 = vmatpush1.bf16.msra.mxu1 %v8032_v12 }
 0x9c6   : > { %8489 = vmatprep.subr.bf16.mxu1 %v8025_v14  ;;  %v8200_v14 = vunpack.c.l.s8.bf16 %v7792_v25  ;;  %v7856_v29 = vld [vmem:[%s10370_s16 + $0x6c0] sm:$0xff] }
 0x9c7   : > { %v8336_v7 = vunpack.c.h.s8.bf16 %v7856_v29 }
 0x9c8   : > { %v12450_v1 = vpop.f32.mrf.mxu1 }
 0x9c9   : > { %8490 = vmatpush1.bf16.msra.mxu1 %v8024_v21 }
 0x9ca   : > { %v9862_v42 = vpop.f32.mrf.mxu1  ;;  %8491 = vmatprep.subr.bf16.mxu1 %v8145_v47  ;;  %v8192_v47 = vunpack.c.h.s8.bf16 %v7784_v18 }
 0x9cc   : > { %v12453_v13 = vpop.f32.mrf.mxu1 }
 0x9cd   : > { %8492 = vmatpush2.bf16.msra.mxu1 %v8144_v16 }
 0x9ce   : > { %v9872_v24 = vpop.f32.mrf.mxu1  ;;  %8493 = vmatprep.subr.bf16.mxu1 %v8137_v51  ;;  %v8185_v51 = vunpack.c.l.s8.bf16 %v7785_v31 }
 0x9cf   : > { %v7849_v24 = vld [vmem:[%s10370_s16 + $0x688] sm:$0xff] }
 0x9d0   : > { %v12456_v58 = vpop.f32.mrf.mxu1  ;;  %v8321_v43 = vunpack.c.h.s8.bf16 %v7849_v24 }
 0x9d1   : > { %8494 = vmatpush2.bf16.msra.mxu1 %v8136_v33  ;;  %v7777_v33 = vld [vmem:[%s10370_s16 + $0x448] sm:$0xff] }
 0x9d2   : > { %v9882_v59 = vpop.f32.mrf.mxu1  ;;  %8495 = vmatprep.subr.bf16.mxu1 %v8129_v3  ;;  %v8328_v3 = vunpack.c.l.s8.bf16 %v7856_v29 }
 0x9d3   : > { %v7848_v59 = vld [vmem:[%s10370_s16 + $0x680] sm:$0xff] }
 0x9d4   : > { %v12459_v52 = vpop.f32.mrf.mxu1  ;;  %v8320_v10 = vunpack.c.h.s8.bf16 %v7848_v59 }
 0x9d5   : > { %8496 = vmatpush2.bf16.msra.mxu1 %v8128_v45  ;;  %v7776_v45 = vld [vmem:[%s10370_s16 + $0x440] sm:$0xff] }
 0x9d6   : > { %v9892_v22 = vpop.f32.mrf.mxu1  ;;  %8497 = vmatprep.subr.bf16.mxu1 %v8121_v37  ;;  %v8176_v37 = vunpack.c.h.s8.bf16 %v7776_v45 }
 0x9d7   : > { %v8313_v22 = vunpack.c.l.s8.bf16 %v7849_v24  ;;  %v7809_v24 = vld [vmem:[%s10370_s16 + $0x548] sm:$0xff] }
 0x9d8   : > { %v12462_v35 = vpop.f32.mrf.mxu1 }
 0x9d9   : > { %8498 = vmatpush2.bf16.msra.mxu1 %v8120_v0  ;;  %v8169_v0 = vunpack.c.l.s8.bf16 %v7777_v33 }
 0x9da   : > { %v9902_v9 = vpop.f32.mrf.mxu1  ;;  %8499 = vmatprep.subr.bf16.mxu1 %v8113_v17  ;;  %v7769_v17 = vld [vmem:[%s10370_s16 + $0x408] sm:$0xff] }
 0x9db   : > { %v8312_v9 = vunpack.c.l.s8.bf16 %v7848_v59  ;;  %v7808_v59 = vld [vmem:[%s10370_s16 + $0x540] sm:$0xff] }
 0x9dc   : > { %v12465_v40 = vpop.f32.mrf.mxu1 }
 0x9dd   : > { %8500 = vmatpush2.bf16.msra.mxu1 %v8112_v30  ;;  %v8168_v30 = vunpack.c.l.s8.bf16 %v7776_v45 }
 0x9de   : > { %v9912_v60 = vpop.f32.mrf.mxu1  ;;  %8501 = vmatprep.subr.bf16.mxu1 %v8105_v49  ;;  %v8161_v49 = vunpack.c.h.s8.bf16 %v7769_v17 }
 0x9df   : > { %v7840_v60 = vld [vmem:[%s10370_s16 + $0x640] sm:$0xff] }
 0x9e0   : > { %v6529_v26 = vpop.f32.mrf.mxu1  ;;  %v8304_v39 = vunpack.c.h.s8.bf16 %v7840_v60  ;;  %v8296_v53 = vunpack.c.l.s8.bf16 %v7840_v60  ;;  %v7800_v60 = vld [vmem:[%s10370_s16 + $0x500] sm:$0xff] }
 0x9e1   : > { %8502 = vmatpush2.bf16.msra.mxu1 %v8104_v36  ;;  %v12473_v38 = vpack.c.bf16 %v6529_v26, %v12446_v46  ;;  %v8193_v46 = vunpack.c.h.s8.bf16 %v7785_v31  ;;  %v7768_v36 = vld [vmem:[%s10370_s16 + $0x400] sm:$0xff]  ;;  %v8153_v26 = vunpack.c.l.s8.bf16 %v7769_v17 }
 0x9e2   : > { %v9922_v15 = vpop.f32.mrf.mxu1  ;;  %8503 = vmatprep.subr.bf16.mxu1 %v8097_v4  ;;  %v8160_v4 = vunpack.c.h.s8.bf16 %v7768_v36  ;;  %v8152_v25 = vunpack.c.l.s8.bf16 %v7768_v36 }
 0x9e3   : > { %v7825_v15 = vld [vmem:[%s10370_s16 + $0x5c8] sm:$0xff] }
 0x9e4   : > { %v6687_v34 = vpop.f32.mrf.mxu1  ;;  %v8265_v31 = vunpack.c.l.s8.bf16 %v7825_v15 }
 0x9e5   : > { %v12470_v61 = vpack.c.bf16 %v6687_v34, %v5423_v6  ;;  %8504 = vmatpush2.bf16.msra.mxu1 %v8096_v11  ;;  %v8297_v11 = vunpack.c.l.s8.bf16 %v7841_v62  ;;  %v8273_v34 = vunpack.c.h.s8.bf16 %v7825_v15  ;;  %v7801_v62 = vld [vmem:[%s10370_s16 + $0x508] sm:$0xff] }
 0x9e6   : > { %v9932_v27 = vpop.f32.mrf.mxu1  ;;  %8505 = vmatprep.subr.bf16.mxu1 %v8089_v28  ;;  %v7833_v28 = vld [vmem:[%s10370_s16 + $0x608] sm:$0xff] }
 0x9e7   : > { %8464 = vmatprep.mubr.bf16.mxu0 %v12470_v61  ;;  %v7832_v27 = vld [vmem:[%s10370_s16 + $0x600] sm:$0xff] }
 0x9e8   : > { %v6845_v12 = vpop.f32.mrf.mxu1  ;;  %8465 = vmatmul.mubr.bf16.vlgmr.msra.gmra.mxu0 %v12473_v38 }
 0x9e9   : > { %8506 = vmatpush2.bf16.msra.mxu1 %v8088_v41  ;;  %8519 = vmatpush1.bf16.msra.mxu0 %v8208_v57  ;;  %v12485_v16 = vpack.c.bf16 %v6845_v12, %v12450_v1  ;;  %v8177_v1 = vunpack.c.h.s8.bf16 %v7777_v33  ;;  %v8289_v41 = vunpack.c.h.s8.bf16 %v7833_v28  ;;  %v7824_v57 = vld [vmem:[%s10370_s16 + $0x5c0] sm:$0xff]  ;;  %v8281_v12 = vunpack.c.l.s8.bf16 %v7833_v28  ;;  %v7865_v28 = vld [vmem:[%s10370_s16 + $0x708] sm:$0xff] }
 0x9ea   : > { %v9942_v6 = vpop.f32.mrf.mxu1  ;;  %8520 = vmatprep.subr.bf16.mxu0 %v8201_v20  ;;  %8561 = vmatprep.subr.bf16.mxu1 %v8337_v5  ;;  %v8272_v20 = vunpack.c.h.s8.bf16 %v7824_v57  ;;  %v8288_v5 = vunpack.c.h.s8.bf16 %v7832_v27 }
 0x9eb   : > { %v7889_v6 = vld [vmem:[%s10370_s16 + $0x7c8] sm:$0xff] }
 0x9ec   : > { %v7003_v21 = vpop.f32.mrf.mxu1  ;;  %v8393_v33 = vunpack.c.l.s8.bf16 %v7889_v6 }
 0x9ed   : > { %v12482_v44 = vpack.c.bf16 %v7003_v21, %v12453_v13  ;;  %8521 = vmatpush1.bf16.msra.mxu0 %v8200_v14  ;;  %v8184_v13 = vunpack.c.l.s8.bf16 %v7784_v18  ;;  %v7817_v14 = vld [vmem:[%s10370_s16 + $0x588] sm:$0xff]  ;;  %v8280_v18 = vunpack.c.l.s8.bf16 %v7832_v27  ;;  %v8401_v21 = vunpack.c.h.s8.bf16 %v7889_v6  ;;  %v7864_v27 = vld [vmem:[%s10370_s16 + $0x700] sm:$0xff] }
 0x9ee   : > { %v9952_v42 = vpop.f32.mrf.mxu1  ;;  %8522 = vmatprep.subr.bf16.mxu0 %v8193_v46  ;;  %v8264_v46 = vunpack.c.l.s8.bf16 %v7824_v57  ;;  %v8257_v29 = vunpack.c.h.s8.bf16 %v7817_v14 }
 0x9ef   : > { %8507 = vmatprep.mubr.bf16.mxu1 %v12482_v44 }
 0x9f0   : > { %8508 = vmatmul.mubr.bf16.vlgmr.msra.gmra.mxu1 %v12485_v16 }
 0x9f1   : > { %8523 = vmatpush1.bf16.msra.mxu0 %v8192_v47  ;;  %8562 = vmatpush1.bf16.msra.mxu1 %v8336_v7  ;;  %v7816_v47 = vld [vmem:[%s10370_s16 + $0x580] sm:$0xff] }
 0x9f2   : > { %8524 = vmatprep.subr.bf16.mxu0 %v8185_v51  ;;  %8563 = vmatprep.subr.bf16.mxu1 %v8329_v2  ;;  %v7888_v7 = vld [vmem:[%s10370_s16 + $0x7c0] sm:$0xff]  ;;  %v8256_v42 = vunpack.c.h.s8.bf16 %v7816_v47  ;;  %v8249_v2 = vunpack.c.l.s8.bf16 %v7817_v14 }
 0x9f3   : > { %v8400_v51 = vunpack.c.h.s8.bf16 %v7888_v7 }
 0x9f5   : > { %8525 = vmatpush1.bf16.msra.mxu0 %v8184_v13  ;;  %8564 = vmatpush1.bf16.msra.mxu1 %v8328_v3  ;;  %v7881_v13 = vld [vmem:[%s10370_s16 + $0x788] sm:$0xff]  ;;  %v8248_v3 = vunpack.c.l.s8.bf16 %v7816_v47 }
 0x9f6   : > { %8526 = vmatprep.subr.bf16.mxu0 %v8177_v1  ;;  %8565 = vmatprep.subr.bf16.mxu1 %v8321_v43  ;;  %v8392_v1 = vunpack.c.l.s8.bf16 %v7888_v7  ;;  %v8241_v43 = vunpack.c.h.s8.bf16 %v7809_v24  ;;  %v8385_v45 = vunpack.c.h.s8.bf16 %v7881_v13  ;;  %v8377_v17 = vunpack.c.l.s8.bf16 %v7881_v13 }
 0x9f9   : > { %8527 = vmatpush1.bf16.msra.mxu0 %v8176_v37  ;;  %8566 = vmatpush1.bf16.msra.mxu1 %v8320_v10  ;;  %v7880_v37 = vld [vmem:[%s10370_s16 + $0x780] sm:$0xff]  ;;  %v8240_v10 = vunpack.c.h.s8.bf16 %v7808_v59 }
 0x9fa   : > { %8528 = vmatprep.subr.bf16.mxu0 %v8169_v0  ;;  %8567 = vmatprep.subr.bf16.mxu1 %v8313_v22  ;;  %v8384_v0 = vunpack.c.h.s8.bf16 %v7880_v37  ;;  %v8233_v22 = vunpack.c.l.s8.bf16 %v7809_v24 }
 0x9fd   : > { %8529 = vmatpush1.bf16.msra.mxu0 %v8168_v30  ;;  %8568 = vmatpush1.bf16.msra.mxu1 %v8312_v9  ;;  %v7873_v30 = vld [vmem:[%s10370_s16 + $0x748] sm:$0xff]  ;;  %v8232_v9 = vunpack.c.l.s8.bf16 %v7808_v59 }
 0x9fe   : > { %8530 = vmatprep.subr.bf16.mxu0 %v8161_v49  ;;  %8569 = vmatprep.subr.bf16.mxu1 %v8305_v63  ;;  %v8376_v49 = vunpack.c.l.s8.bf16 %v7880_v37  ;;  %v8225_v63 = vunpack.c.h.s8.bf16 %v7801_v62  ;;  %v8369_v36 = vunpack.c.h.s8.bf16 %v7873_v30  ;;  %v8361_v15 = vunpack.c.l.s8.bf16 %v7873_v30 }
 0xa01   : > { %8531 = vmatpush1.bf16.msra.mxu0 %v8160_v4  ;;  %8570 = vmatpush1.bf16.msra.mxu1 %v8304_v39  ;;  %v7872_v4 = vld [vmem:[%s10370_s16 + $0x740] sm:$0xff]  ;;  %v8224_v39 = vunpack.c.h.s8.bf16 %v7800_v60 }
 0xa02   : > { %8532 = vmatprep.subr.bf16.mxu0 %v8153_v26  ;;  %8571 = vmatprep.subr.bf16.mxu1 %v8297_v11  ;;  %v8368_v26 = vunpack.c.h.s8.bf16 %v7872_v4  ;;  %v8217_v11 = vunpack.c.l.s8.bf16 %v7801_v62  ;;  %v7723_v62 = vld [vmem:[%s10370_s16 + $0x298] sm:$0xff] }
 0xa05   : > { %8533 = vmatpush1.bf16.msra.mxu0 %v8152_v25  ;;  %8572 = vmatpush1.bf16.msra.mxu1 %v8296_v53  ;;  %v7667_v25 = vld [vmem:[%s10370_s16 + $0xd8] sm:$0xff]  ;;  %v8216_v53 = vunpack.c.l.s8.bf16 %v7800_v60 }
 0xa06   : > { %8534 = vmatprep.subr.bf16.mxu0 %v8273_v34  ;;  %8573 = vmatprep.subr.bf16.mxu1 %v8289_v41  ;;  %v8360_v34 = vunpack.c.l.s8.bf16 %v7872_v4  ;;  %v8353_v41 = vunpack.c.h.s8.bf16 %v7865_v28  ;;  %v7955_v57 = vunpack.c.h.s8.bf16 %v7667_v25 }
 0xa09   : > { %8535 = vmatpush2.bf16.msra.mxu0 %v8272_v20  ;;  %8574 = vmatpush1.bf16.msra.mxu1 %v8288_v5  ;;  %v8352_v20 = vunpack.c.h.s8.bf16 %v7864_v27  ;;  %v8345_v5 = vunpack.c.l.s8.bf16 %v7865_v28 }
 0xa0a   : > { %8536 = vmatprep.subr.bf16.mxu0 %v8265_v31  ;;  %8575 = vmatprep.subr.bf16.mxu1 %v8281_v12  ;;  %v7731_v31 = vld [vmem:[%s10370_s16 + $0x2d8] sm:$0xff]  ;;  %v8344_v12 = vunpack.c.l.s8.bf16 %v7864_v27 }
 0xa0b   : > { %v8083_v14 = vunpack.c.h.s8.bf16 %v7731_v31 }
 0xa0d   : > { %8537 = vmatpush2.bf16.msra.mxu0 %v8264_v46  ;;  %8576 = vmatpush1.bf16.msra.mxu1 %v8280_v18  ;;  %v7666_v18 = vld [vmem:[%s10370_s16 + $0xd0] sm:$0xff] }
 0xa0e   : > { %8538 = vmatprep.subr.bf16.mxu0 %v8257_v29  ;;  %8577 = vmatprep.subr.bf16.mxu1 %v8401_v21  ;;  %v7954_v47 = vunpack.c.h.s8.bf16 %v7666_v18  ;;  %v7946_v24 = vunpack.c.l.s8.bf16 %v7666_v18 }
 0xa11   : > { %8539 = vmatpush2.bf16.msra.mxu0 %v8256_v42  ;;  %8578 = vmatpush2.bf16.msra.mxu1 %v8400_v51  ;;  %v7947_v51 = vunpack.c.l.s8.bf16 %v7667_v25 }
 0xa12   : > { %8540 = vmatprep.subr.bf16.mxu0 %v8249_v2  ;;  %8579 = vmatprep.subr.bf16.mxu1 %v8393_v33  ;;  %v7659_v2 = vld [vmem:[%s10370_s16 + $0x98] sm:$0xff] }
 0xa15   : > { %8541 = vmatpush2.bf16.msra.mxu0 %v8248_v3  ;;  %8580 = vmatpush2.bf16.msra.mxu1 %v8392_v1  ;;  %v7658_v3 = vld [vmem:[%s10370_s16 + $0x90] sm:$0xff] }
 0xa16   : > { %8542 = vmatprep.subr.bf16.mxu0 %v8241_v43  ;;  %8581 = vmatprep.subr.bf16.mxu1 %v8385_v45  ;;  %v7938_v45 = vunpack.c.h.s8.bf16 %v7658_v3 }
 0xa19   : > { %8543 = vmatpush2.bf16.msra.mxu0 %v8240_v10  ;;  %8582 = vmatpush2.bf16.msra.mxu1 %v8384_v0  ;;  %v7931_v0 = vunpack.c.l.s8.bf16 %v7659_v2 }
 0xa1a   : > { %8544 = vmatprep.subr.bf16.mxu0 %v8233_v22  ;;  %8583 = vmatprep.subr.bf16.mxu1 %v8377_v17  ;;  %v8075_v22 = vunpack.c.l.s8.bf16 %v7731_v31  ;;  %v7651_v17 = vld [vmem:[%s10370_s16 + $0x58] sm:$0xff] }
 0xa1b   : > { %v7915_v4 = vunpack.c.l.s8.bf16 %v7651_v17  ;;  %v7699_v31 = vld [vmem:[%s10370_s16 + $0x1d8] sm:$0xff] }
 0xa1d   : > { %8545 = vmatpush2.bf16.msra.mxu0 %v8232_v9  ;;  %8584 = vmatpush2.bf16.msra.mxu1 %v8376_v49  ;;  %v8067_v9 = vunpack.c.h.s8.bf16 %v7723_v62  ;;  %v7650_v49 = vld [vmem:[%s10370_s16 + $0x50] sm:$0xff] }
 0xa1e   : > { %8546 = vmatprep.subr.bf16.mxu0 %v8225_v63  ;;  %8585 = vmatprep.subr.bf16.mxu1 %v8369_v36  ;;  %v7722_v63 = vld [vmem:[%s10370_s16 + $0x290] sm:$0xff]  ;;  %v7922_v36 = vunpack.c.h.s8.bf16 %v7650_v49 }
 0xa1f   : > { %v8066_v60 = vunpack.c.h.s8.bf16 %v7722_v63  ;;  %v8058_v28 = vunpack.c.l.s8.bf16 %v7722_v63  ;;  %v7682_v63 = vld [vmem:[%s10370_s16 + $0x150] sm:$0xff] }
 0xa21   : > { %8547 = vmatpush2.bf16.msra.mxu0 %v8224_v39  ;;  %8586 = vmatpush2.bf16.msra.mxu1 %v8368_v26  ;;  %v8059_v39 = vunpack.c.l.s8.bf16 %v7723_v62  ;;  %v7643_v26 = vld [vmem:[%s10370_s16 + $0x18] sm:$0xff] }
 0xa22   : > { %8548 = vmatprep.subr.bf16.mxu0 %v8217_v11  ;;  %8587 = vmatprep.subr.bf16.mxu1 %v8361_v15  ;;  %v7715_v11 = vld [vmem:[%s10370_s16 + $0x258] sm:$0xff]  ;;  %v7914_v15 = vunpack.c.l.s8.bf16 %v7650_v49  ;;  %v7907_v25 = vunpack.c.h.s8.bf16 %v7643_v26 }
 0xa23   : > { %v7683_v62 = vld [vmem:[%s10370_s16 + $0x158] sm:$0xff] }
 0xa25   : > { %8549 = vmatpush2.bf16.msra.mxu0 %v8216_v53  ;;  %8588 = vmatpush2.bf16.msra.mxu1 %v8360_v34  ;;  %v8051_v53 = vunpack.c.h.s8.bf16 %v7715_v11  ;;  %v7642_v34 = vld [vmem:[%s10370_s16 + $0x10] sm:$0xff] }
 0xa26   : > { %8589 = vmatprep.subr.bf16.mxu1 %v8353_v41  ;;  %8604 = vmatprep.subr.bf16.mxu0 %v7955_v57  ;;  %v7714_v41 = vld [vmem:[%s10370_s16 + $0x250] sm:$0xff]  ;;  %v7906_v57 = vunpack.c.h.s8.bf16 %v7642_v34 }
 0xa27   : > { %v8050_v27 = vunpack.c.h.s8.bf16 %v7714_v41 }
 0xa29   : > { %8590 = vmatpush2.bf16.msra.mxu1 %v8352_v20  ;;  %v7899_v20 = vunpack.c.l.s8.bf16 %v7643_v26 }
 0xa2a   : > { %8591 = vmatprep.subr.bf16.mxu1 %v8345_v5  ;;  %v8043_v5 = vunpack.c.l.s8.bf16 %v7715_v11  ;;  %v7675_v11 = vld [vmem:[%s10370_s16 + $0x118] sm:$0xff] }
 0xa2d   : > { %8592 = vmatpush2.bf16.msra.mxu1 %v8344_v12  ;;  %v7707_v12 = vld [vmem:[%s10370_s16 + $0x218] sm:$0xff] }
 0xa2e   : > { %8647 = vmatprep.subr.bf16.mxu1 %v8083_v14  ;;  %v7898_v14 = vunpack.c.l.s8.bf16 %v7642_v34  ;;  %v8035_v18 = vunpack.c.h.s8.bf16 %v7707_v12 }
 0xa60   : > { %v7161_v6 = vpop.f32.mrf.mxu1 }
 0xa61   : > { %v12522_v7 = vpack.c.bf16 %v7161_v6, %v12456_v58  ;;  %v7730_v58 = vld [vmem:[%s10370_s16 + $0x2d0] sm:$0xff]  ;;  %v8042_v6 = vunpack.c.l.s8.bf16 %v7714_v41 }
 0xa62   : > { %v9962_v46 = vpop.f32.mrf.mxu1  ;;  %v8082_v59 = vunpack.c.h.s8.bf16 %v7730_v58  ;;  %v8074_v30 = vunpack.c.l.s8.bf16 %v7730_v58  ;;  %v7674_v41 = vld [vmem:[%s10370_s16 + $0x110] sm:$0xff] }
 0xa63   : > { %v8019_v46 = vunpack.c.h.s8.bf16 %v7699_v31 }
 0xa64   : > { %v7319_v29 = vpop.f32.mrf.mxu1 }
 0xa65   : > { %v12519_v21 = vpack.c.bf16 %v7319_v29, %v12459_v52  ;;  %v7939_v52 = vunpack.c.h.s8.bf16 %v7659_v2  ;;  %v7698_v29 = vld [vmem:[%s10370_s16 + $0x1d0] sm:$0xff]  ;;  %v8011_v2 = vunpack.c.l.s8.bf16 %v7699_v31 }
 0xa66   : > { %v9972_v42 = vpop.f32.mrf.mxu1 }
 0xa67   : > { %8550 = vmatprep.mubr.bf16.mxu0 %v12519_v21  ;;  %v8018_v42 = vunpack.c.h.s8.bf16 %v7698_v29 }
 0xa68   : > { %v7477_v33 = vpop.f32.mrf.mxu1  ;;  %8551 = vmatmul.mubr.bf16.vlgmr.msra.gmra.mxu0 %v12522_v7 }
 0xa69   : > { %8605 = vmatpush1.bf16.msra.mxu0 %v7954_v47  ;;  %8636 = vmatprep.mubr.bf16.mxu0 %v12470_v61  ;;  %v12534_v37 = vpack.c.bf16 %v7477_v33, %v12462_v35  ;;  %v7923_v35 = vunpack.c.h.s8.bf16 %v7651_v17  ;;  %v7706_v47 = vld [vmem:[%s10370_s16 + $0x210] sm:$0xff]  ;;  %v8027_v33 = vunpack.c.l.s8.bf16 %v7707_v12  ;;  %v7739_v12 = vld [vmem:[%s10370_s16 + $0x318] sm:$0xff] }
 0xa6a   : > { %v9982_v13 = vpop.f32.mrf.mxu1  ;;  %8606 = vmatprep.subr.bf16.mxu0 %v7947_v51  ;;  %v8034_v51 = vunpack.c.h.s8.bf16 %v7706_v47 }
 0xa6b   : > { %v7763_v13 = vld [vmem:[%s10370_s16 + $0x3d8] sm:$0xff] }
 0xa6c   : > { %v7635_v1 = vpop.f32.mrf.mxu1  ;;  %v8139_v17 = vunpack.c.l.s8.bf16 %v7763_v13 }
 0xa6d   : > { %v12531_v43 = vpack.c.bf16 %v7635_v1, %v12465_v40  ;;  %8607 = vmatpush1.bf16.msra.mxu0 %v7946_v24  ;;  %v7930_v40 = vunpack.c.l.s8.bf16 %v7658_v3  ;;  %v7691_v24 = vld [vmem:[%s10370_s16 + $0x198] sm:$0xff]  ;;  %v8026_v3 = vunpack.c.l.s8.bf16 %v7706_v47  ;;  %v8147_v1 = vunpack.c.h.s8.bf16 %v7763_v13  ;;  %v7738_v47 = vld [vmem:[%s10370_s16 + $0x310] sm:$0xff] }
 0xa6e   : > { %v9992_v10 = vpop.f32.mrf.mxu1  ;;  %8608 = vmatprep.subr.bf16.mxu0 %v7939_v52  ;;  %v8010_v52 = vunpack.c.l.s8.bf16 %v7698_v29  ;;  %v8003_v58 = vunpack.c.h.s8.bf16 %v7691_v24  ;;  %v7787_v13 = vld [vmem:[%s10370_s16 + $0x498] sm:$0xff] }
 0xa6f   : > { %8593 = vmatprep.mubr.bf16.mxu1 %v12531_v43 }
 0xa70   : > { %8594 = vmatmul.mubr.bf16.vlgmr.msra.gmra.mxu1 %v12534_v37 }
 0xa71   : > { %8609 = vmatpush1.bf16.msra.mxu0 %v7938_v45  ;;  %8648 = vmatpush1.bf16.msra.mxu1 %v8082_v59  ;;  %v7690_v45 = vld [vmem:[%s10370_s16 + $0x190] sm:$0xff] }
 0xa72   : > { %8679 = vmatprep.mubr.bf16.mxu1 %v12482_v44  ;;  %8610 = vmatprep.subr.bf16.mxu0 %v7931_v0  ;;  %v7762_v59 = vld [vmem:[%s10370_s16 + $0x3d0] sm:$0xff]  ;;  %v8002_v10 = vunpack.c.h.s8.bf16 %v7690_v45 }
 0xa73   : > { %8649 = vmatprep.subr.bf16.mxu1 %v8075_v22  ;;  %v8146_v0 = vunpack.c.h.s8.bf16 %v7762_v59  ;;  %v7995_v22 = vunpack.c.l.s8.bf16 %v7691_v24 }
 0xa75   : > { %8611 = vmatpush1.bf16.msra.mxu0 %v7930_v40  ;;  %8650 = vmatpush1.bf16.msra.mxu1 %v8074_v30  ;;  %v7755_v40 = vld [vmem:[%s10370_s16 + $0x398] sm:$0xff]  ;;  %v7994_v30 = vunpack.c.l.s8.bf16 %v7690_v45 }
 0xa76   : > { %8612 = vmatprep.subr.bf16.mxu0 %v7923_v35  ;;  %8651 = vmatprep.subr.bf16.mxu1 %v8067_v9  ;;  %v8138_v35 = vunpack.c.l.s8.bf16 %v7762_v59  ;;  %v7987_v9 = vunpack.c.h.s8.bf16 %v7683_v62  ;;  %v8131_v49 = vunpack.c.h.s8.bf16 %v7755_v40  ;;  %v8123_v26 = vunpack.c.l.s8.bf16 %v7755_v40  ;;  %v7786_v59 = vld [vmem:[%s10370_s16 + $0x490] sm:$0xff]  ;;  %v7779_v40 = vld [vmem:[%s10370_s16 + $0x458] sm:$0xff] }
 0xa79   : > { %8613 = vmatpush1.bf16.msra.mxu0 %v7922_v36  ;;  %8652 = vmatpush1.bf16.msra.mxu1 %v8066_v60  ;;  %v7754_v36 = vld [vmem:[%s10370_s16 + $0x390] sm:$0xff]  ;;  %v7986_v60 = vunpack.c.h.s8.bf16 %v7682_v63 }
 0xa7a   : > { %8614 = vmatprep.subr.bf16.mxu0 %v7915_v4  ;;  %8653 = vmatprep.subr.bf16.mxu1 %v8059_v39  ;;  %v8130_v4 = vunpack.c.h.s8.bf16 %v7754_v36  ;;  %v7979_v39 = vunpack.c.l.s8.bf16 %v7683_v62 }
 0xa7d   : > { %8615 = vmatpush1.bf16.msra.mxu0 %v7914_v15  ;;  %8654 = vmatpush1.bf16.msra.mxu1 %v8058_v28  ;;  %v7747_v15 = vld [vmem:[%s10370_s16 + $0x358] sm:$0xff]  ;;  %v7978_v28 = vunpack.c.l.s8.bf16 %v7682_v63 }
 0xa7e   : > { %8616 = vmatprep.subr.bf16.mxu0 %v7907_v25  ;;  %8655 = vmatprep.subr.bf16.mxu1 %v8051_v53  ;;  %v8122_v25 = vunpack.c.l.s8.bf16 %v7754_v36  ;;  %v7971_v53 = vunpack.c.h.s8.bf16 %v7675_v11  ;;  %v8115_v34 = vunpack.c.h.s8.bf16 %v7747_v15  ;;  %v8107_v31 = vunpack.c.l.s8.bf16 %v7747_v15  ;;  %v7778_v36 = vld [vmem:[%s10370_s16 + $0x450] sm:$0xff]  ;;  %v7771_v15 = vld [vmem:[%s10370_s16 + $0x418] sm:$0xff] }
 0xa81   : > { %8617 = vmatpush1.bf16.msra.mxu0 %v7906_v57  ;;  %8656 = vmatpush1.bf16.msra.mxu1 %v8050_v27  ;;  %v7746_v57 = vld [vmem:[%s10370_s16 + $0x350] sm:$0xff]  ;;  %v7970_v27 = vunpack.c.h.s8.bf16 %v7674_v41 }
 0xa82   : > { %8618 = vmatprep.subr.bf16.mxu0 %v7899_v20  ;;  %8657 = vmatprep.subr.bf16.mxu1 %v8043_v5  ;;  %v8114_v20 = vunpack.c.h.s8.bf16 %v7746_v57  ;;  %v7963_v5 = vunpack.c.l.s8.bf16 %v7675_v11 }
 0xa85   : > { %8619 = vmatpush1.bf16.msra.mxu0 %v7898_v14  ;;  %8658 = vmatpush1.bf16.msra.mxu1 %v8042_v6  ;;  %v7795_v14 = vld [vmem:[%s10370_s16 + $0x4d8] sm:$0xff]  ;;  %v7962_v6 = vunpack.c.l.s8.bf16 %v7674_v41 }
 0xa86   : > { %8620 = vmatprep.subr.bf16.mxu0 %v8019_v46  ;;  %8659 = vmatprep.subr.bf16.mxu1 %v8035_v18  ;;  %v8106_v46 = vunpack.c.l.s8.bf16 %v7746_v57  ;;  %v8099_v18 = vunpack.c.h.s8.bf16 %v7739_v12  ;;  %v8211_v29 = vunpack.c.h.s8.bf16 %v7795_v14  ;;  %v8203_v24 = vunpack.c.l.s8.bf16 %v7795_v14  ;;  %v7770_v57 = vld [vmem:[%s10370_s16 + $0x410] sm:$0xff]  ;;  %v7827_v14 = vld [vmem:[%s10370_s16 + $0x5d8] sm:$0xff] }
 0xa89   : > { %8621 = vmatpush2.bf16.msra.mxu0 %v8018_v42  ;;  %8660 = vmatpush1.bf16.msra.mxu1 %v8034_v51  ;;  %v7794_v42 = vld [vmem:[%s10370_s16 + $0x4d0] sm:$0xff]  ;;  %v8098_v51 = vunpack.c.h.s8.bf16 %v7738_v47 }
 0xa8a   : > { %8622 = vmatprep.subr.bf16.mxu0 %v8011_v2  ;;  %8661 = vmatprep.subr.bf16.mxu1 %v8027_v33  ;;  %v8210_v2 = vunpack.c.h.s8.bf16 %v7794_v42  ;;  %v8091_v33 = vunpack.c.l.s8.bf16 %v7739_v12 }
 0xa8d   : > { %8623 = vmatpush2.bf16.msra.mxu0 %v8010_v52  ;;  %8662 = vmatpush1.bf16.msra.mxu1 %v8026_v3  ;;  %v7859_v52 = vld [vmem:[%s10370_s16 + $0x6d8] sm:$0xff]  ;;  %v8090_v3 = vunpack.c.l.s8.bf16 %v7738_v47 }
 0xa8e   : > { %8624 = vmatprep.subr.bf16.mxu0 %v8003_v58  ;;  %8663 = vmatprep.subr.bf16.mxu1 %v8147_v1  ;;  %v8202_v58 = vunpack.c.l.s8.bf16 %v7794_v42  ;;  %v8195_v1 = vunpack.c.h.s8.bf16 %v7787_v13  ;;  %v8339_v45 = vunpack.c.h.s8.bf16 %v7859_v52  ;;  %v8331_v62 = vunpack.c.l.s8.bf16 %v7859_v52  ;;  %v7826_v42 = vld [vmem:[%s10370_s16 + $0x5d0] sm:$0xff]  ;;  %v7819_v52 = vld [vmem:[%s10370_s16 + $0x598] sm:$0xff] }
 0xa91   : > { %8625 = vmatpush2.bf16.msra.mxu0 %v8002_v10  ;;  %8664 = vmatpush2.bf16.msra.mxu1 %v8146_v0  ;;  %v7858_v10 = vld [vmem:[%s10370_s16 + $0x6d0] sm:$0xff]  ;;  %v8194_v0 = vunpack.c.h.s8.bf16 %v7786_v59 }
 0xa92   : > { %8626 = vmatprep.subr.bf16.mxu0 %v7995_v22  ;;  %8665 = vmatprep.subr.bf16.mxu1 %v8139_v17  ;;  %v8338_v22 = vunpack.c.h.s8.bf16 %v7858_v10  ;;  %v8187_v17 = vunpack.c.l.s8.bf16 %v7787_v13 }
 0xa95   : > { %8627 = vmatpush2.bf16.msra.mxu0 %v7994_v30  ;;  %8666 = vmatpush2.bf16.msra.mxu1 %v8138_v35  ;;  %v7851_v30 = vld [vmem:[%s10370_s16 + $0x698] sm:$0xff]  ;;  %v8186_v35 = vunpack.c.l.s8.bf16 %v7786_v59 }
 0xa96   : > { %8628 = vmatprep.subr.bf16.mxu0 %v7987_v9  ;;  %8667 = vmatprep.subr.bf16.mxu1 %v8131_v49  ;;  %v8330_v9 = vunpack.c.l.s8.bf16 %v7858_v10  ;;  %v8179_v49 = vunpack.c.h.s8.bf16 %v7779_v40  ;;  %v8323_v63 = vunpack.c.h.s8.bf16 %v7851_v30  ;;  %v8315_v11 = vunpack.c.l.s8.bf16 %v7851_v30  ;;  %v7818_v10 = vld [vmem:[%s10370_s16 + $0x590] sm:$0xff]  ;;  %v7811_v30 = vld [vmem:[%s10370_s16 + $0x558] sm:$0xff] }
 0xa99   : > { %8629 = vmatpush2.bf16.msra.mxu0 %v7986_v60  ;;  %8668 = vmatpush2.bf16.msra.mxu1 %v8130_v4  ;;  %v7850_v60 = vld [vmem:[%s10370_s16 + $0x690] sm:$0xff]  ;;  %v8178_v4 = vunpack.c.h.s8.bf16 %v7778_v36 }
 0xa9a   : > { %8630 = vmatprep.subr.bf16.mxu0 %v7979_v39  ;;  %8669 = vmatprep.subr.bf16.mxu1 %v8123_v26  ;;  %v8322_v39 = vunpack.c.h.s8.bf16 %v7850_v60  ;;  %v8171_v26 = vunpack.c.l.s8.bf16 %v7779_v40 }
 0xa9d   : > { %8631 = vmatpush2.bf16.msra.mxu0 %v7978_v28  ;;  %8670 = vmatpush2.bf16.msra.mxu1 %v8122_v25  ;;  %v7843_v28 = vld [vmem:[%s10370_s16 + $0x658] sm:$0xff]  ;;  %v8170_v25 = vunpack.c.l.s8.bf16 %v7778_v36 }
 0xa9e   : > { %8632 = vmatprep.subr.bf16.mxu0 %v7971_v53  ;;  %8671 = vmatprep.subr.bf16.mxu1 %v8115_v34  ;;  %v8314_v53 = vunpack.c.l.s8.bf16 %v7850_v60  ;;  %v8163_v34 = vunpack.c.h.s8.bf16 %v7771_v15  ;;  %v8307_v41 = vunpack.c.h.s8.bf16 %v7843_v28  ;;  %v8299_v12 = vunpack.c.l.s8.bf16 %v7843_v28  ;;  %v7810_v60 = vld [vmem:[%s10370_s16 + $0x550] sm:$0xff]  ;;  %v7803_v28 = vld [vmem:[%s10370_s16 + $0x518] sm:$0xff] }
 0xaa1   : > { %8633 = vmatpush2.bf16.msra.mxu0 %v7970_v27  ;;  %8672 = vmatpush2.bf16.msra.mxu1 %v8114_v20  ;;  %v7842_v27 = vld [vmem:[%s10370_s16 + $0x650] sm:$0xff]  ;;  %v8162_v20 = vunpack.c.h.s8.bf16 %v7770_v57 }
 0xaa2   : > { %8634 = vmatprep.subr.bf16.mxu0 %v7963_v5  ;;  %8673 = vmatprep.subr.bf16.mxu1 %v8107_v31  ;;  %v8306_v5 = vunpack.c.h.s8.bf16 %v7842_v27  ;;  %v8155_v31 = vunpack.c.l.s8.bf16 %v7771_v15 }
 0xaa5   : > { %8635 = vmatpush2.bf16.msra.mxu0 %v7962_v6  ;;  %8674 = vmatpush2.bf16.msra.mxu1 %v8106_v46  ;;  %v7835_v6 = vld [vmem:[%s10370_s16 + $0x618] sm:$0xff]  ;;  %v8154_v46 = vunpack.c.l.s8.bf16 %v7770_v57 }
 0xaa6   : > { %8675 = vmatprep.subr.bf16.mxu1 %v8099_v18  ;;  %8690 = vmatprep.subr.bf16.mxu0 %v8211_v29  ;;  %v8298_v18 = vunpack.c.l.s8.bf16 %v7842_v27  ;;  %v8275_v29 = vunpack.c.h.s8.bf16 %v7827_v14  ;;  %v8291_v47 = vunpack.c.h.s8.bf16 %v7835_v6  ;;  %v8283_v13 = vunpack.c.l.s8.bf16 %v7835_v6  ;;  %v7802_v27 = vld [vmem:[%s10370_s16 + $0x510] sm:$0xff]  ;;  %v7867_v6 = vld [vmem:[%s10370_s16 + $0x718] sm:$0xff] }
 0xaa8   : > { %8637 = vmatmul.mubr.bf16.vlgmr.msra.gmra.mxu0 %v12473_v38 }
 0xaa9   : > { %8676 = vmatpush2.bf16.msra.mxu1 %v8098_v51  ;;  %8691 = vmatpush1.bf16.msra.mxu0 %v8210_v2  ;;  %v7834_v51 = vld [vmem:[%s10370_s16 + $0x610] sm:$0xff]  ;;  %v8274_v2 = vunpack.c.h.s8.bf16 %v7826_v42 }
 0xaaa   : > { %8722 = vmatprep.mubr.bf16.mxu0 %v12519_v21  ;;  %8677 = vmatprep.subr.bf16.mxu1 %v8091_v33  ;;  %v8290_v33 = vunpack.c.h.s8.bf16 %v7834_v51 }
 0xaab   : > { %8692 = vmatprep.subr.bf16.mxu0 %v8203_v24  ;;  %v8267_v24 = vunpack.c.l.s8.bf16 %v7827_v14 }
 0xaad   : > { %8678 = vmatpush2.bf16.msra.mxu1 %v8090_v3  ;;  %8693 = vmatpush1.bf16.msra.mxu0 %v8202_v58  ;;  %v7891_v3 = vld [vmem:[%s10370_s16 + $0x7d8] sm:$0xff]  ;;  %v8266_v58 = vunpack.c.l.s8.bf16 %v7826_v42 }
 0xaae   : > { %8694 = vmatprep.subr.bf16.mxu0 %v8195_v1  ;;  %8733 = vmatprep.subr.bf16.mxu1 %v8339_v45  ;;  %v8282_v1 = vunpack.c.l.s8.bf16 %v7834_v51  ;;  %v8259_v45 = vunpack.c.h.s8.bf16 %v7819_v52  ;;  %v8403_v59 = vunpack.c.h.s8.bf16 %v7891_v3  ;;  %v8395_v40 = vunpack.c.l.s8.bf16 %v7891_v3  ;;  %v7866_v51 = vld [vmem:[%s10370_s16 + $0x710] sm:$0xff]  ;;  %v7661_v3 = vld [vmem:[%s10370_s16 + $0xa8] sm:$0xff] }
 0xab0   : > { %8680 = vmatmul.mubr.bf16.vlgmr.msra.gmra.mxu1 %v12485_v16 }
 0xab1   : > { %8695 = vmatpush1.bf16.msra.mxu0 %v8194_v0  ;;  %8734 = vmatpush1.bf16.msra.mxu1 %v8338_v22  ;;  %v7890_v0 = vld [vmem:[%s10370_s16 + $0x7d0] sm:$0xff]  ;;  %v8258_v22 = vunpack.c.h.s8.bf16 %v7818_v10 }
 0xab2   : > { %8765 = vmatprep.mubr.bf16.mxu1 %v12531_v43  ;;  %8696 = vmatprep.subr.bf16.mxu0 %v8187_v17  ;;  %v8402_v17 = vunpack.c.h.s8.bf16 %v7890_v0 }
 0xab3   : > { %8735 = vmatprep.subr.bf16.mxu1 %v8331_v62  ;;  %v8251_v62 = vunpack.c.l.s8.bf16 %v7819_v52 }
 0xab5   : > { %8697 = vmatpush1.bf16.msra.mxu0 %v8186_v35  ;;  %8736 = vmatpush1.bf16.msra.mxu1 %v8330_v9  ;;  %v7883_v35 = vld [vmem:[%s10370_s16 + $0x798] sm:$0xff]  ;;  %v8250_v9 = vunpack.c.l.s8.bf16 %v7818_v10 }
 0xab6   : > { %8698 = vmatprep.subr.bf16.mxu0 %v8179_v49  ;;  %8737 = vmatprep.subr.bf16.mxu1 %v8323_v63  ;;  %v8394_v49 = vunpack.c.l.s8.bf16 %v7890_v0  ;;  %v8243_v63 = vunpack.c.h.s8.bf16 %v7811_v30  ;;  %v8387_v36 = vunpack.c.h.s8.bf16 %v7883_v35  ;;  %v8379_v15 = vunpack.c.l.s8.bf16 %v7883_v35  ;;  %v7660_v0 = vld [vmem:[%s10370_s16 + $0xa0] sm:$0xff]  ;;  %v7653_v35 = vld [vmem:[%s10370_s16 + $0x68] sm:$0xff] }
 0xab9   : > { %8699 = vmatpush1.bf16.msra.mxu0 %v8178_v4  ;;  %8738 = vmatpush1.bf16.msra.mxu1 %v8322_v39  ;;  %v7882_v4 = vld [vmem:[%s10370_s16 + $0x790] sm:$0xff]  ;;  %v8242_v39 = vunpack.c.h.s8.bf16 %v7810_v60 }
 0xaba   : > { %8700 = vmatprep.subr.bf16.mxu0 %v8171_v26  ;;  %8739 = vmatprep.subr.bf16.mxu1 %v8315_v11  ;;  %v8386_v26 = vunpack.c.h.s8.bf16 %v7882_v4  ;;  %v8235_v11 = vunpack.c.l.s8.bf16 %v7811_v30 }
 0xabd   : > { %8701 = vmatpush1.bf16.msra.mxu0 %v8170_v25  ;;  %8740 = vmatpush1.bf16.msra.mxu1 %v8314_v53  ;;  %v7875_v25 = vld [vmem:[%s10370_s16 + $0x758] sm:$0xff]  ;;  %v8234_v53 = vunpack.c.l.s8.bf16 %v7810_v60 }
 0xabe   : > { %8702 = vmatprep.subr.bf16.mxu0 %v8163_v34  ;;  %8741 = vmatprep.subr.bf16.mxu1 %v8307_v41  ;;  %v8378_v34 = vunpack.c.l.s8.bf16 %v7882_v4  ;;  %v8227_v41 = vunpack.c.h.s8.bf16 %v7803_v28  ;;  %v8371_v57 = vunpack.c.h.s8.bf16 %v7875_v25  ;;  %v8363_v14 = vunpack.c.l.s8.bf16 %v7875_v25  ;;  %v7652_v4 = vld [vmem:[%s10370_s16 + $0x60] sm:$0xff]  ;;  %v7645_v25 = vld [vmem:[%s10370_s16 + $0x28] sm:$0xff] }
 0xac1   : > { %8703 = vmatpush1.bf16.msra.mxu0 %v8162_v20  ;;  %8742 = vmatpush1.bf16.msra.mxu1 %v8306_v5  ;;  %v7874_v20 = vld [vmem:[%s10370_s16 + $0x750] sm:$0xff]  ;;  %v8226_v5 = vunpack.c.h.s8.bf16 %v7802_v27 }
 0xac2   : > { %8704 = vmatprep.subr.bf16.mxu0 %v8155_v31  ;;  %8743 = vmatprep.subr.bf16.mxu1 %v8299_v12  ;;  %v8370_v31 = vunpack.c.h.s8.bf16 %v7874_v20  ;;  %v8219_v12 = vunpack.c.l.s8.bf16 %v7803_v28 }
 0xac5   : > { %8705 = vmatpush1.bf16.msra.mxu0 %v8154_v46  ;;  %8744 = vmatpush1.bf16.msra.mxu1 %v8298_v18  ;;  %v7669_v46 = vld [vmem:[%s10370_s16 + $0xe8] sm:$0xff]  ;;  %v8218_v18 = vunpack.c.l.s8.bf16 %v7802_v27 }
 0xac6   : > { %8706 = vmatprep.subr.bf16.mxu0 %v8275_v29  ;;  %8745 = vmatprep.subr.bf16.mxu1 %v8291_v47  ;;  %v8362_v29 = vunpack.c.l.s8.bf16 %v7874_v20  ;;  %v8355_v47 = vunpack.c.h.s8.bf16 %v7867_v6  ;;  %v7957_v42 = vunpack.c.h.s8.bf16 %v7669_v46  ;;  %v7949_v52 = vunpack.c.l.s8.bf16 %v7669_v46  ;;  %v7644_v20 = vld [vmem:[%s10370_s16 + $0x20] sm:$0xff]  ;;  %v7701_v46 = vld [vmem:[%s10370_s16 + $0x1e8] sm:$0xff] }
 0xac9   : > { %8707 = vmatpush2.bf16.msra.mxu0 %v8274_v2  ;;  %8746 = vmatpush1.bf16.msra.mxu1 %v8290_v33  ;;  %v7668_v2 = vld [vmem:[%s10370_s16 + $0xe0] sm:$0xff]  ;;  %v8354_v33 = vunpack.c.h.s8.bf16 %v7866_v51 }
 0xaca   : > { %8708 = vmatprep.subr.bf16.mxu0 %v8267_v24  ;;  %8747 = vmatprep.subr.bf16.mxu1 %v8283_v13  ;;  %v7956_v24 = vunpack.c.h.s8.bf16 %v7668_v2  ;;  %v8347_v13 = vunpack.c.l.s8.bf16 %v7867_v6 }
 0xacd   : > { %8709 = vmatpush2.bf16.msra.mxu0 %v8266_v58  ;;  %8748 = vmatpush1.bf16.msra.mxu1 %v8282_v1  ;;  %v7733_v58 = vld [vmem:[%s10370_s16 + $0x2e8] sm:$0xff]  ;;  %v8346_v1 = vunpack.c.l.s8.bf16 %v7866_v51 }
 0xace   : > { %8710 = vmatprep.subr.bf16.mxu0 %v8259_v45  ;;  %8749 = vmatprep.subr.bf16.mxu1 %v8403_v59  ;;  %v7948_v45 = vunpack.c.l.s8.bf16 %v7668_v2  ;;  %v7941_v59 = vunpack.c.h.s8.bf16 %v7661_v3  ;;  %v8085_v10 = vunpack.c.h.s8.bf16 %v7733_v58  ;;  %v8077_v30 = vunpack.c.l.s8.bf16 %v7733_v58  ;;  %v7700_v2 = vld [vmem:[%s10370_s16 + $0x1e0] sm:$0xff]  ;;  %v7693_v58 = vld [vmem:[%s10370_s16 + $0x1a8] sm:$0xff] }
 0xad1   : > { %8711 = vmatpush2.bf16.msra.mxu0 %v8258_v22  ;;  %8750 = vmatpush2.bf16.msra.mxu1 %v8402_v17  ;;  %v7732_v22 = vld [vmem:[%s10370_s16 + $0x2e0] sm:$0xff]  ;;  %v7940_v17 = vunpack.c.h.s8.bf16 %v7660_v0 }
 0xad2   : > { %8712 = vmatprep.subr.bf16.mxu0 %v8251_v62  ;;  %8751 = vmatprep.subr.bf16.mxu1 %v8395_v40  ;;  %v8084_v62 = vunpack.c.h.s8.bf16 %v7732_v22  ;;  %v7933_v40 = vunpack.c.l.s8.bf16 %v7661_v3 }
 0xad5   : > { %8713 = vmatpush2.bf16.msra.mxu0 %v8250_v9  ;;  %8752 = vmatpush2.bf16.msra.mxu1 %v8394_v49  ;;  %v7725_v9 = vld [vmem:[%s10370_s16 + $0x2a8] sm:$0xff]  ;;  %v7932_v49 = vunpack.c.l.s8.bf16 %v7660_v0 }
 0xad6   : > { %8714 = vmatprep.subr.bf16.mxu0 %v8243_v63  ;;  %8753 = vmatprep.subr.bf16.mxu1 %v8387_v36  ;;  %v8076_v63 = vunpack.c.l.s8.bf16 %v7732_v22  ;;  %v7925_v36 = vunpack.c.h.s8.bf16 %v7653_v35  ;;  %v8069_v60 = vunpack.c.h.s8.bf16 %v7725_v9  ;;  %v8061_v28 = vunpack.c.l.s8.bf16 %v7725_v9  ;;  %v7692_v22 = vld [vmem:[%s10370_s16 + $0x1a0] sm:$0xff]  ;;  %v7685_v9 = vld [vmem:[%s10370_s16 + $0x168] sm:$0xff] }
 0xad9   : > { %8715 = vmatpush2.bf16.msra.mxu0 %v8242_v39  ;;  %8754 = vmatpush2.bf16.msra.mxu1 %v8386_v26  ;;  %v7724_v39 = vld [vmem:[%s10370_s16 + $0x2a0] sm:$0xff]  ;;  %v7924_v26 = vunpack.c.h.s8.bf16 %v7652_v4 }
 0xada   : > { %8716 = vmatprep.subr.bf16.mxu0 %v8235_v11  ;;  %8755 = vmatprep.subr.bf16.mxu1 %v8379_v15  ;;  %v8068_v11 = vunpack.c.h.s8.bf16 %v7724_v39  ;;  %v7917_v15 = vunpack.c.l.s8.bf16 %v7653_v35 }
 0xadd   : > { %8717 = vmatpush2.bf16.msra.mxu0 %v8234_v53  ;;  %8756 = vmatpush2.bf16.msra.mxu1 %v8378_v34  ;;  %v7717_v53 = vld [vmem:[%s10370_s16 + $0x268] sm:$0xff]  ;;  %v7916_v34 = vunpack.c.l.s8.bf16 %v7652_v4 }
 0xade   : > { %8718 = vmatprep.subr.bf16.mxu0 %v8227_v41  ;;  %8757 = vmatprep.subr.bf16.mxu1 %v8371_v57  ;;  %v8060_v41 = vunpack.c.l.s8.bf16 %v7724_v39  ;;  %v7909_v57 = vunpack.c.h.s8.bf16 %v7645_v25  ;;  %v8053_v27 = vunpack.c.h.s8.bf16 %v7717_v53  ;;  %v8045_v6 = vunpack.c.l.s8.bf16 %v7717_v53  ;;  %v7684_v39 = vld [vmem:[%s10370_s16 + $0x160] sm:$0xff]  ;;  %v7677_v53 = vld [vmem:[%s10370_s16 + $0x128] sm:$0xff] }
 0xae1   : > { %8719 = vmatpush2.bf16.msra.mxu0 %v8226_v5  ;;  %8758 = vmatpush2.bf16.msra.mxu1 %v8370_v31  ;;  %v7716_v5 = vld [vmem:[%s10370_s16 + $0x260] sm:$0xff]  ;;  %v7908_v31 = vunpack.c.h.s8.bf16 %v7644_v20 }
 0xae2   : > { %8720 = vmatprep.subr.bf16.mxu0 %v8219_v12  ;;  %8759 = vmatprep.subr.bf16.mxu1 %v8363_v14  ;;  %v8052_v12 = vunpack.c.h.s8.bf16 %v7716_v5  ;;  %v7901_v14 = vunpack.c.l.s8.bf16 %v7645_v25 }
 0xae5   : > { %8721 = vmatpush2.bf16.msra.mxu0 %v8218_v18  ;;  %8760 = vmatpush2.bf16.msra.mxu1 %v8362_v29  ;;  %v7709_v18 = vld [vmem:[%s10370_s16 + $0x228] sm:$0xff]  ;;  %v7900_v29 = vunpack.c.l.s8.bf16 %v7644_v20 }
 0xae6   : > { %8761 = vmatprep.subr.bf16.mxu1 %v8355_v47  ;;  %8776 = vmatprep.subr.bf16.mxu0 %v7957_v42  ;;  %v8044_v47 = vunpack.c.l.s8.bf16 %v7716_v5  ;;  %v8021_v42 = vunpack.c.h.s8.bf16 %v7701_v46  ;;  %v8037_v51 = vunpack.c.h.s8.bf16 %v7709_v18  ;;  %v8029_v3 = vunpack.c.l.s8.bf16 %v7709_v18  ;;  %v7676_v5 = vld [vmem:[%s10370_s16 + $0x120] sm:$0xff]  ;;  %v7741_v18 = vld [vmem:[%s10370_s16 + $0x328] sm:$0xff] }
 0xae8   : > { %8723 = vmatmul.mubr.bf16.vlgmr.msra.gmra.mxu0 %v12522_v7 }
 0xae9   : > { %8762 = vmatpush2.bf16.msra.mxu1 %v8354_v33  ;;  %8777 = vmatpush1.bf16.msra.mxu0 %v7956_v24  ;;  %v7708_v33 = vld [vmem:[%s10370_s16 + $0x220] sm:$0xff]  ;;  %v8020_v24 = vunpack.c.h.s8.bf16 %v7700_v2 }
 0xaea   : > { %8808 = vmatprep.mubr.bf16.mxu0 %v12470_v61  ;;  %8763 = vmatprep.subr.bf16.mxu1 %v8347_v13  ;;  %v8036_v13 = vunpack.c.h.s8.bf16 %v7708_v33 }
 0xaeb   : > { %8778 = vmatprep.subr.bf16.mxu0 %v7949_v52  ;;  %v8013_v52 = vunpack.c.l.s8.bf16 %v7701_v46 }
 0xaed   : > { %8764 = vmatpush2.bf16.msra.mxu1 %v8346_v1  ;;  %8779 = vmatpush1.bf16.msra.mxu0 %v7948_v45  ;;  %v7765_v1 = vld [vmem:[%s10370_s16 + $0x3e8] sm:$0xff]  ;;  %v8012_v45 = vunpack.c.l.s8.bf16 %v7700_v2 }
 0xaee   : > { %8780 = vmatprep.subr.bf16.mxu0 %v7941_v59  ;;  %8819 = vmatprep.subr.bf16.mxu1 %v8085_v10  ;;  %v8028_v59 = vunpack.c.l.s8.bf16 %v7708_v33  ;;  %v8005_v10 = vunpack.c.h.s8.bf16 %v7693_v58  ;;  %v8149_v0 = vunpack.c.h.s8.bf16 %v7765_v1  ;;  %v8141_v35 = vunpack.c.l.s8.bf16 %v7765_v1  ;;  %v7740_v33 = vld [vmem:[%s10370_s16 + $0x320] sm:$0xff]  ;;  %v7789_v1 = vld [vmem:[%s10370_s16 + $0x4a8] sm:$0xff] }
 0xaf0   : > { %8766 = vmatmul.mubr.bf16.vlgmr.msra.gmra.mxu1 %v12534_v37 }
 0xaf1   : > { %8781 = vmatpush1.bf16.msra.mxu0 %v7940_v17  ;;  %8820 = vmatpush1.bf16.msra.mxu1 %v8084_v62  ;;  %v7764_v17 = vld [vmem:[%s10370_s16 + $0x3e0] sm:$0xff]  ;;  %v8004_v62 = vunpack.c.h.s8.bf16 %v7692_v22 }
 0xaf2   : > { %8851 = vmatprep.mubr.bf16.mxu1 %v12482_v44  ;;  %8782 = vmatprep.subr.bf16.mxu0 %v7933_v40  ;;  %v8148_v40 = vunpack.c.h.s8.bf16 %v7764_v17 }
 0xaf3   : > { %8821 = vmatprep.subr.bf16.mxu1 %v8077_v30  ;;  %v7997_v30 = vunpack.c.l.s8.bf16 %v7693_v58 }
 0xaf5   : > { %8783 = vmatpush1.bf16.msra.mxu0 %v7932_v49  ;;  %8822 = vmatpush1.bf16.msra.mxu1 %v8076_v63  ;;  %v7757_v49 = vld [vmem:[%s10370_s16 + $0x3a8] sm:$0xff]  ;;  %v7996_v63 = vunpack.c.l.s8.bf16 %v7692_v22 }
 0xaf6   : > { %8784 = vmatprep.subr.bf16.mxu0 %v7925_v36  ;;  %8823 = vmatprep.subr.bf16.mxu1 %v8069_v60  ;;  %v8140_v36 = vunpack.c.l.s8.bf16 %v7764_v17  ;;  %v7989_v60 = vunpack.c.h.s8.bf16 %v7685_v9  ;;  %v8133_v4 = vunpack.c.h.s8.bf16 %v7757_v49  ;;  %v8125_v25 = vunpack.c.l.s8.bf16 %v7757_v49  ;;  %v7788_v17 = vld [vmem:[%s10370_s16 + $0x4a0] sm:$0xff]  ;;  %v7781_v49 = vld [vmem:[%s10370_s16 + $0x468] sm:$0xff] }
 0xaf9   : > { %8785 = vmatpush1.bf16.msra.mxu0 %v7924_v26  ;;  %8824 = vmatpush1.bf16.msra.mxu1 %v8068_v11  ;;  %v7756_v26 = vld [vmem:[%s10370_s16 + $0x3a0] sm:$0xff]  ;;  %v7988_v11 = vunpack.c.h.s8.bf16 %v7684_v39 }
 0xafa   : > { %8786 = vmatprep.subr.bf16.mxu0 %v7917_v15  ;;  %8825 = vmatprep.subr.bf16.mxu1 %v8061_v28  ;;  %v8132_v15 = vunpack.c.h.s8.bf16 %v7756_v26  ;;  %v7981_v28 = vunpack.c.l.s8.bf16 %v7685_v9 }
 0xafd   : > { %8787 = vmatpush1.bf16.msra.mxu0 %v7916_v34  ;;  %8826 = vmatpush1.bf16.msra.mxu1 %v8060_v41  ;;  %v7749_v34 = vld [vmem:[%s10370_s16 + $0x368] sm:$0xff]  ;;  %v7980_v41 = vunpack.c.l.s8.bf16 %v7684_v39 }
 0xafe   : > { %8788 = vmatprep.subr.bf16.mxu0 %v7909_v57  ;;  %8827 = vmatprep.subr.bf16.mxu1 %v8053_v27  ;;  %v8124_v57 = vunpack.c.l.s8.bf16 %v7756_v26  ;;  %v7973_v27 = vunpack.c.h.s8.bf16 %v7677_v53  ;;  %v8117_v20 = vunpack.c.h.s8.bf16 %v7749_v34  ;;  %v8109_v46 = vunpack.c.l.s8.bf16 %v7749_v34  ;;  %v7780_v26 = vld [vmem:[%s10370_s16 + $0x460] sm:$0xff]  ;;  %v7773_v34 = vld [vmem:[%s10370_s16 + $0x428] sm:$0xff] }
 0xb01   : > { %8789 = vmatpush1.bf16.msra.mxu0 %v7908_v31  ;;  %8828 = vmatpush1.bf16.msra.mxu1 %v8052_v12  ;;  %v7748_v31 = vld [vmem:[%s10370_s16 + $0x360] sm:$0xff]  ;;  %v7972_v12 = vunpack.c.h.s8.bf16 %v7676_v5 }
 0xb02   : > { %8790 = vmatprep.subr.bf16.mxu0 %v7901_v14  ;;  %8829 = vmatprep.subr.bf16.mxu1 %v8045_v6  ;;  %v8116_v14 = vunpack.c.h.s8.bf16 %v7748_v31  ;;  %v7965_v6 = vunpack.c.l.s8.bf16 %v7677_v53 }
 0xb05   : > { %8791 = vmatpush1.bf16.msra.mxu0 %v7900_v29  ;;  %8830 = vmatpush1.bf16.msra.mxu1 %v8044_v47  ;;  %v7797_v29 = vld [vmem:[%s10370_s16 + $0x4e8] sm:$0xff]  ;;  %v7964_v47 = vunpack.c.l.s8.bf16 %v7676_v5 }
 0xb06   : > { %8792 = vmatprep.subr.bf16.mxu0 %v8021_v42  ;;  %8831 = vmatprep.subr.bf16.mxu1 %v8037_v51  ;;  %v8108_v42 = vunpack.c.l.s8.bf16 %v7748_v31  ;;  %v8101_v51 = vunpack.c.h.s8.bf16 %v7741_v18  ;;  %v8213_v2 = vunpack.c.h.s8.bf16 %v7797_v29  ;;  %v8205_v58 = vunpack.c.l.s8.bf16 %v7797_v29  ;;  %v7772_v31 = vld [vmem:[%s10370_s16 + $0x420] sm:$0xff]  ;;  %v7829_v29 = vld [vmem:[%s10370_s16 + $0x5e8] sm:$0xff] }
 0xb09   : > { %8793 = vmatpush2.bf16.msra.mxu0 %v8020_v24  ;;  %8832 = vmatpush1.bf16.msra.mxu1 %v8036_v13  ;;  %v7796_v24 = vld [vmem:[%s10370_s16 + $0x4e0] sm:$0xff]  ;;  %v8100_v13 = vunpack.c.h.s8.bf16 %v7740_v33 }
 0xb0a   : > { %8794 = vmatprep.subr.bf16.mxu0 %v8013_v52  ;;  %8833 = vmatprep.subr.bf16.mxu1 %v8029_v3  ;;  %v8212_v52 = vunpack.c.h.s8.bf16 %v7796_v24  ;;  %v8093_v3 = vunpack.c.l.s8.bf16 %v7741_v18 }
 0xb0d   : > { %8795 = vmatpush2.bf16.msra.mxu0 %v8012_v45  ;;  %8834 = vmatpush1.bf16.msra.mxu1 %v8028_v59  ;;  %v7861_v45 = vld [vmem:[%s10370_s16 + $0x6e8] sm:$0xff]  ;;  %v8092_v59 = vunpack.c.l.s8.bf16 %v7740_v33 }
 0xb0e   : > { %8796 = vmatprep.subr.bf16.mxu0 %v8005_v10  ;;  %8835 = vmatprep.subr.bf16.mxu1 %v8149_v0  ;;  %v8204_v10 = vunpack.c.l.s8.bf16 %v7796_v24  ;;  %v8197_v0 = vunpack.c.h.s8.bf16 %v7789_v1  ;;  %v8341_v22 = vunpack.c.h.s8.bf16 %v7861_v45  ;;  %v8333_v9 = vunpack.c.l.s8.bf16 %v7861_v45  ;;  %v7828_v24 = vld [vmem:[%s10370_s16 + $0x5e0] sm:$0xff]  ;;  %v7821_v45 = vld [vmem:[%s10370_s16 + $0x5a8] sm:$0xff] }
 0xb11   : > { %8797 = vmatpush2.bf16.msra.mxu0 %v8004_v62  ;;  %8836 = vmatpush2.bf16.msra.mxu1 %v8148_v40  ;;  %v7860_v62 = vld [vmem:[%s10370_s16 + $0x6e0] sm:$0xff]  ;;  %v8196_v40 = vunpack.c.h.s8.bf16 %v7788_v17 }
 0xb12   : > { %8798 = vmatprep.subr.bf16.mxu0 %v7997_v30  ;;  %8837 = vmatprep.subr.bf16.mxu1 %v8141_v35  ;;  %v8340_v30 = vunpack.c.h.s8.bf16 %v7860_v62  ;;  %v8189_v35 = vunpack.c.l.s8.bf16 %v7789_v1 }
 0xb15   : > { %8799 = vmatpush2.bf16.msra.mxu0 %v7996_v63  ;;  %8838 = vmatpush2.bf16.msra.mxu1 %v8140_v36  ;;  %v7853_v63 = vld [vmem:[%s10370_s16 + $0x6a8] sm:$0xff]  ;;  %v8188_v36 = vunpack.c.l.s8.bf16 %v7788_v17 }
 0xb16   : > { %8800 = vmatprep.subr.bf16.mxu0 %v7989_v60  ;;  %8839 = vmatprep.subr.bf16.mxu1 %v8133_v4  ;;  %v8332_v60 = vunpack.c.l.s8.bf16 %v7860_v62  ;;  %v8181_v4 = vunpack.c.h.s8.bf16 %v7781_v49  ;;  %v8325_v39 = vunpack.c.h.s8.bf16 %v7853_v63  ;;  %v8317_v53 = vunpack.c.l.s8.bf16 %v7853_v63  ;;  %v7820_v62 = vld [vmem:[%s10370_s16 + $0x5a0] sm:$0xff]  ;;  %v7813_v63 = vld [vmem:[%s10370_s16 + $0x568] sm:$0xff] }
 0xb19   : > { %8801 = vmatpush2.bf16.msra.mxu0 %v7988_v11  ;;  %8840 = vmatpush2.bf16.msra.mxu1 %v8132_v15  ;;  %v7852_v11 = vld [vmem:[%s10370_s16 + $0x6a0] sm:$0xff]  ;;  %v8180_v15 = vunpack.c.h.s8.bf16 %v7780_v26 }
 0xb1a   : > { %8802 = vmatprep.subr.bf16.mxu0 %v7981_v28  ;;  %8841 = vmatprep.subr.bf16.mxu1 %v8125_v25  ;;  %v8324_v28 = vunpack.c.h.s8.bf16 %v7852_v11  ;;  %v8173_v25 = vunpack.c.l.s8.bf16 %v7781_v49 }
 0xb1d   : > { %8803 = vmatpush2.bf16.msra.mxu0 %v7980_v41  ;;  %8842 = vmatpush2.bf16.msra.mxu1 %v8124_v57  ;;  %v7845_v41 = vld [vmem:[%s10370_s16 + $0x668] sm:$0xff]  ;;  %v8172_v57 = vunpack.c.l.s8.bf16 %v7780_v26 }
 0xb1e   : > { %8804 = vmatprep.subr.bf16.mxu0 %v7973_v27  ;;  %8843 = vmatprep.subr.bf16.mxu1 %v8117_v20  ;;  %v8316_v27 = vunpack.c.l.s8.bf16 %v7852_v11  ;;  %v8165_v20 = vunpack.c.h.s8.bf16 %v7773_v34  ;;  %v8309_v5 = vunpack.c.h.s8.bf16 %v7845_v41  ;;  %v8301_v18 = vunpack.c.l.s8.bf16 %v7845_v41  ;;  %v7812_v11 = vld [vmem:[%s10370_s16 + $0x560] sm:$0xff]  ;;  %v7805_v41 = vld [vmem:[%s10370_s16 + $0x528] sm:$0xff] }
 0xb21   : > { %8805 = vmatpush2.bf16.msra.mxu0 %v7972_v12  ;;  %8844 = vmatpush2.bf16.msra.mxu1 %v8116_v14  ;;  %v7844_v12 = vld [vmem:[%s10370_s16 + $0x660] sm:$0xff]  ;;  %v8164_v14 = vunpack.c.h.s8.bf16 %v7772_v31 }
 0xb22   : > { %8806 = vmatprep.subr.bf16.mxu0 %v7965_v6  ;;  %8845 = vmatprep.subr.bf16.mxu1 %v8109_v46  ;;  %v8308_v6 = vunpack.c.h.s8.bf16 %v7844_v12  ;;  %v8157_v46 = vunpack.c.l.s8.bf16 %v7773_v34 }
 0xb25   : > { %8807 = vmatpush2.bf16.msra.mxu0 %v7964_v47  ;;  %8846 = vmatpush2.bf16.msra.mxu1 %v8108_v42  ;;  %v7837_v47 = vld [vmem:[%s10370_s16 + $0x628] sm:$0xff]  ;;  %v8156_v42 = vunpack.c.l.s8.bf16 %v7772_v31 }
 0xb26   : > { %8847 = vmatprep.subr.bf16.mxu1 %v8101_v51  ;;  %8862 = vmatprep.subr.bf16.mxu0 %v8213_v2  ;;  %v8300_v51 = vunpack.c.l.s8.bf16 %v7844_v12  ;;  %v8277_v2 = vunpack.c.h.s8.bf16 %v7829_v29  ;;  %v8293_v33 = vunpack.c.h.s8.bf16 %v7837_v47  ;;  %v8285_v1 = vunpack.c.l.s8.bf16 %v7837_v47  ;;  %v7804_v12 = vld [vmem:[%s10370_s16 + $0x520] sm:$0xff]  ;;  %v7869_v47 = vld [vmem:[%s10370_s16 + $0x728] sm:$0xff] }
 0xb28   : > { %8809 = vmatmul.mubr.bf16.vlgmr.msra.gmra.mxu0 %v12473_v38 }
 0xb29   : > { %8848 = vmatpush2.bf16.msra.mxu1 %v8100_v13  ;;  %8863 = vmatpush1.bf16.msra.mxu0 %v8212_v52  ;;  %v7836_v13 = vld [vmem:[%s10370_s16 + $0x620] sm:$0xff]  ;;  %v8276_v52 = vunpack.c.h.s8.bf16 %v7828_v24 }
 0xb2a   : > { %8894 = vmatprep.mubr.bf16.mxu0 %v12519_v21  ;;  %8849 = vmatprep.subr.bf16.mxu1 %v8093_v3  ;;  %v8292_v3 = vunpack.c.h.s8.bf16 %v7836_v13 }
 0xb2b   : > { %8864 = vmatprep.subr.bf16.mxu0 %v8205_v58  ;;  %v8269_v58 = vunpack.c.l.s8.bf16 %v7829_v29 }
 0xb2d   : > { %8850 = vmatpush2.bf16.msra.mxu1 %v8092_v59  ;;  %8865 = vmatpush1.bf16.msra.mxu0 %v8204_v10  ;;  %v7893_v59 = vld [vmem:[%s10370_s16 + $0x7e8] sm:$0xff]  ;;  %v8268_v10 = vunpack.c.l.s8.bf16 %v7828_v24 }
 0xb2e   : > { %8866 = vmatprep.subr.bf16.mxu0 %v8197_v0  ;;  %8905 = vmatprep.subr.bf16.mxu1 %v8341_v22  ;;  %v8284_v0 = vunpack.c.l.s8.bf16 %v7836_v13  ;;  %v8261_v22 = vunpack.c.h.s8.bf16 %v7821_v45  ;;  %v8405_v17 = vunpack.c.h.s8.bf16 %v7893_v59  ;;  %v8397_v49 = vunpack.c.l.s8.bf16 %v7893_v59  ;;  %v7868_v13 = vld [vmem:[%s10370_s16 + $0x720] sm:$0xff]  ;;  %v7663_v59 = vld [vmem:[%s10370_s16 + $0xb8] sm:$0xff] }
 0xb30   : > { %8852 = vmatmul.mubr.bf16.vlgmr.msra.gmra.mxu1 %v12485_v16 }
 0xb31   : > { %8867 = vmatpush1.bf16.msra.mxu0 %v8196_v40  ;;  %8906 = vmatpush1.bf16.msra.mxu1 %v8340_v30  ;;  %v7892_v40 = vld [vmem:[%s10370_s16 + $0x7e0] sm:$0xff]  ;;  %v8260_v30 = vunpack.c.h.s8.bf16 %v7820_v62 }
 0xb32   : > { %8937 = vmatprep.mubr.bf16.mxu1 %v12531_v43  ;;  %8868 = vmatprep.subr.bf16.mxu0 %v8189_v35  ;;  %v8404_v35 = vunpack.c.h.s8.bf16 %v7892_v40 }
 0xb33   : > { %8907 = vmatprep.subr.bf16.mxu1 %v8333_v9  ;;  %v8253_v9 = vunpack.c.l.s8.bf16 %v7821_v45 }
 0xb35   : > { %8869 = vmatpush1.bf16.msra.mxu0 %v8188_v36  ;;  %8908 = vmatpush1.bf16.msra.mxu1 %v8332_v60  ;;  %v7885_v36 = vld [vmem:[%s10370_s16 + $0x7a8] sm:$0xff]  ;;  %v8252_v60 = vunpack.c.l.s8.bf16 %v7820_v62 }
 0xb36   : > { %8870 = vmatprep.subr.bf16.mxu0 %v8181_v4  ;;  %8909 = vmatprep.subr.bf16.mxu1 %v8325_v39  ;;  %v8396_v4 = vunpack.c.l.s8.bf16 %v7892_v40  ;;  %v8245_v39 = vunpack.c.h.s8.bf16 %v7813_v63  ;;  %v8389_v26 = vunpack.c.h.s8.bf16 %v7885_v36  ;;  %v8381_v34 = vunpack.c.l.s8.bf16 %v7885_v36  ;;  %v7662_v40 = vld [vmem:[%s10370_s16 + $0xb0] sm:$0xff]  ;;  %v7655_v36 = vld [vmem:[%s10370_s16 + $0x78] sm:$0xff] }
 0xb39   : > { %8871 = vmatpush1.bf16.msra.mxu0 %v8180_v15  ;;  %8910 = vmatpush1.bf16.msra.mxu1 %v8324_v28  ;;  %v7884_v15 = vld [vmem:[%s10370_s16 + $0x7a0] sm:$0xff]  ;;  %v8244_v28 = vunpack.c.h.s8.bf16 %v7812_v11 }
 0xb3a   : > { %8872 = vmatprep.subr.bf16.mxu0 %v8173_v25  ;;  %8911 = vmatprep.subr.bf16.mxu1 %v8317_v53  ;;  %v8388_v25 = vunpack.c.h.s8.bf16 %v7884_v15  ;;  %v8237_v53 = vunpack.c.l.s8.bf16 %v7813_v63 }
 0xb3d   : > { %8873 = vmatpush1.bf16.msra.mxu0 %v8172_v57  ;;  %8912 = vmatpush1.bf16.msra.mxu1 %v8316_v27  ;;  %v7877_v57 = vld [vmem:[%s10370_s16 + $0x768] sm:$0xff]  ;;  %v8236_v27 = vunpack.c.l.s8.bf16 %v7812_v11  ;;  %v7654_v11 = vld [vmem:[%s10370_s16 + $0x70] sm:$0xff] }
 0xb3e   : > { %8874 = vmatprep.subr.bf16.mxu0 %v8165_v20  ;;  %8913 = vmatprep.subr.bf16.mxu1 %v8309_v5  ;;  %v8380_v20 = vunpack.c.l.s8.bf16 %v7884_v15  ;;  %v8229_v5 = vunpack.c.h.s8.bf16 %v7805_v41  ;;  %v8373_v31 = vunpack.c.h.s8.bf16 %v7877_v57  ;;  %v8365_v29 = vunpack.c.l.s8.bf16 %v7877_v57  ;;  %v7726_v15 = vld [vmem:[%s10370_s16 + $0x2b0] sm:$0xff]  ;;  %v7719_v57 = vld [vmem:[%s10370_s16 + $0x278] sm:$0xff] }
 0xb41   : > { %8875 = vmatpush1.bf16.msra.mxu0 %v8164_v14  ;;  %8914 = vmatpush1.bf16.msra.mxu1 %v8308_v6  ;;  %v7876_v14 = vld [vmem:[%s10370_s16 + $0x760] sm:$0xff]  ;;  %v8228_v6 = vunpack.c.h.s8.bf16 %v7804_v12 }
 0xb42   : > { %8876 = vmatprep.subr.bf16.mxu0 %v8157_v46  ;;  %8915 = vmatprep.subr.bf16.mxu1 %v8301_v18  ;;  %v8372_v46 = vunpack.c.h.s8.bf16 %v7876_v14  ;;  %v8221_v18 = vunpack.c.l.s8.bf16 %v7805_v41  ;;  %v7647_v41 = vld [vmem:[%s10370_s16 + $0x38] sm:$0xff] }
 0xb45   : > { %8877 = vmatpush1.bf16.msra.mxu0 %v8156_v42  ;;  %8916 = vmatpush1.bf16.msra.mxu1 %v8300_v51  ;;  %v7671_v42 = vld [vmem:[%s10370_s16 + $0xf8] sm:$0xff]  ;;  %v8220_v51 = vunpack.c.l.s8.bf16 %v7804_v12  ;;  %v7718_v12 = vld [vmem:[%s10370_s16 + $0x270] sm:$0xff] }
 0xb46   : > { %8878 = vmatprep.subr.bf16.mxu0 %v8277_v2  ;;  %8917 = vmatprep.subr.bf16.mxu1 %v8293_v33  ;;  %v8364_v2 = vunpack.c.l.s8.bf16 %v7876_v14  ;;  %v8357_v33 = vunpack.c.h.s8.bf16 %v7869_v47  ;;  %v7959_v24 = vunpack.c.h.s8.bf16 %v7671_v42  ;;  %v7951_v45 = vunpack.c.l.s8.bf16 %v7671_v42 }
 0xb49   : > { %8879 = vmatpush2.bf16.msra.mxu0 %v8276_v52  ;;  %8918 = vmatpush1.bf16.msra.mxu1 %v8292_v3  ;;  %v7670_v52 = vld [vmem:[%s10370_s16 + $0xf0] sm:$0xff]  ;;  %v8356_v3 = vunpack.c.h.s8.bf16 %v7868_v13 }
 0xb4a   : > { %8880 = vmatprep.subr.bf16.mxu0 %v8269_v58  ;;  %8919 = vmatprep.subr.bf16.mxu1 %v8285_v1  ;;  %v7958_v58 = vunpack.c.h.s8.bf16 %v7670_v52  ;;  %v8349_v1 = vunpack.c.l.s8.bf16 %v7869_v47  ;;  %v7711_v47 = vld [vmem:[%s10370_s16 + $0x238] sm:$0xff] }
 0xb4d   : > { %8881 = vmatpush2.bf16.msra.mxu0 %v8268_v10  ;;  %8920 = vmatpush1.bf16.msra.mxu1 %v8284_v0  ;;  %v7735_v10 = vld [vmem:[%s10370_s16 + $0x2f8] sm:$0xff]  ;;  %v8348_v0 = vunpack.c.l.s8.bf16 %v7868_v13  ;;  %v7710_v13 = vld [vmem:[%s10370_s16 + $0x230] sm:$0xff] }
 0xb4e   : > { %8882 = vmatprep.subr.bf16.mxu0 %v8261_v22  ;;  %8921 = vmatprep.subr.bf16.mxu1 %v8405_v17  ;;  %v7950_v22 = vunpack.c.l.s8.bf16 %v7670_v52  ;;  %v7943_v17 = vunpack.c.h.s8.bf16 %v7663_v59  ;;  %v8087_v62 = vunpack.c.h.s8.bf16 %v7735_v10  ;;  %v8079_v63 = vunpack.c.l.s8.bf16 %v7735_v10 }
 0xb51   : > { %8883 = vmatpush2.bf16.msra.mxu0 %v8260_v30  ;;  %8922 = vmatpush2.bf16.msra.mxu1 %v8404_v35  ;;  %v7734_v30 = vld [vmem:[%s10370_s16 + $0x2f0] sm:$0xff]  ;;  %v7942_v35 = vunpack.c.h.s8.bf16 %v7662_v40 }
 0xb52   : > { %8884 = vmatprep.subr.bf16.mxu0 %v8253_v9  ;;  %8923 = vmatprep.subr.bf16.mxu1 %v8397_v49  ;;  %v8086_v9 = vunpack.c.h.s8.bf16 %v7734_v30  ;;  %v7935_v49 = vunpack.c.l.s8.bf16 %v7663_v59  ;;  %v7767_v59 = vld [vmem:[%s10370_s16 + $0x3f8] sm:$0xff] }
 0xb55   : > { %8885 = vmatpush2.bf16.msra.mxu0 %v8252_v60  ;;  %8924 = vmatpush2.bf16.msra.mxu1 %v8396_v4  ;;  %v7727_v60 = vld [vmem:[%s10370_s16 + $0x2b8] sm:$0xff]  ;;  %v8078_v4 = vunpack.c.l.s8.bf16 %v7734_v30 }
 0xb56   : > { %8886 = vmatprep.subr.bf16.mxu0 %v8245_v39  ;;  %8925 = vmatprep.subr.bf16.mxu1 %v8389_v26  ;;  %v7927_v39 = vunpack.c.h.s8.bf16 %v7655_v36  ;;  %v8071_v26 = vunpack.c.h.s8.bf16 %v7727_v60 }
 0xb59   : > { %8887 = vmatpush2.bf16.msra.mxu0 %v8244_v28  ;;  %8926 = vmatpush2.bf16.msra.mxu1 %v8388_v25  ;;  %v7926_v28 = vunpack.c.h.s8.bf16 %v7654_v11  ;;  %v8070_v25 = vunpack.c.h.s8.bf16 %v7726_v15 }
 0xb5a   : > { %8888 = vmatprep.subr.bf16.mxu0 %v8237_v53  ;;  %8927 = vmatprep.subr.bf16.mxu1 %v8381_v34  ;;  %v7919_v53 = vunpack.c.l.s8.bf16 %v7655_v36  ;;  %v8063_v34 = vunpack.c.l.s8.bf16 %v7727_v60  ;;  %v7759_v36 = vld [vmem:[%s10370_s16 + $0x3b8] sm:$0xff] }
 0xb5d   : > { %8889 = vmatpush2.bf16.msra.mxu0 %v8236_v27  ;;  %8928 = vmatpush2.bf16.msra.mxu1 %v8380_v20  ;;  %v8062_v27 = vunpack.c.l.s8.bf16 %v7726_v15  ;;  %v7911_v20 = vunpack.c.h.s8.bf16 %v7647_v41 }
 0xb5e   : > { %8890 = vmatprep.subr.bf16.mxu0 %v8229_v5  ;;  %8929 = vmatprep.subr.bf16.mxu1 %v8373_v31  ;;  %v8055_v5 = vunpack.c.h.s8.bf16 %v7719_v57  ;;  %v7646_v31 = vld [vmem:[%s10370_s16 + $0x30] sm:$0xff] }
 0xb5f   : > { %v7910_v14 = vunpack.c.h.s8.bf16 %v7646_v31  ;;  %v7902_v42 = vunpack.c.l.s8.bf16 %v7646_v31  ;;  %v7750_v31 = vld [vmem:[%s10370_s16 + $0x370] sm:$0xff] }
 0xb61   : > { %8891 = vmatpush2.bf16.msra.mxu0 %v8228_v6  ;;  %8930 = vmatpush2.bf16.msra.mxu1 %v8372_v46  ;;  %v8054_v6 = vunpack.c.h.s8.bf16 %v7718_v12  ;;  %v7903_v46 = vunpack.c.l.s8.bf16 %v7647_v41  ;;  %v7751_v41 = vld [vmem:[%s10370_s16 + $0x378] sm:$0xff] }
 0xb62   : > { %8892 = vmatprep.subr.bf16.mxu0 %v8221_v18  ;;  %8931 = vmatprep.subr.bf16.mxu1 %v8365_v29  ;;  %v8047_v18 = vunpack.c.l.s8.bf16 %v7719_v57  ;;  %v7703_v29 = vld [vmem:[%s10370_s16 + $0x1f8] sm:$0xff] }
 0xb65   : > { %8893 = vmatpush2.bf16.msra.mxu0 %v8220_v51  ;;  %8932 = vmatpush2.bf16.msra.mxu1 %v8364_v2  ;;  %v8046_v51 = vunpack.c.l.s8.bf16 %v7718_v12  ;;  %v8023_v2 = vunpack.c.h.s8.bf16 %v7703_v29 }
 0xb66   : > { %8933 = vmatprep.subr.bf16.mxu1 %v8357_v33  ;;  %8948 = vmatprep.subr.bf16.mxu0 %v7959_v24  ;;  %v8039_v33 = vunpack.c.h.s8.bf16 %v7711_v47  ;;  %v7702_v24 = vld [vmem:[%s10370_s16 + $0x1f0] sm:$0xff] }
 0xb67   : > { %v8022_v52 = vunpack.c.h.s8.bf16 %v7702_v24  ;;  %v8014_v10 = vunpack.c.l.s8.bf16 %v7702_v24  ;;  %v7798_v24 = vld [vmem:[%s10370_s16 + $0x4f0] sm:$0xff] }
 0xb68   : > { %8895 = vmatmul.mubr.bf16.vlgmr.msra.gmra.mxu0 %v12522_v7 }
 0xb69   : > { %8934 = vmatpush2.bf16.msra.mxu1 %v8356_v3  ;;  %8949 = vmatpush1.bf16.msra.mxu0 %v7958_v58  ;;  %v8038_v3 = vunpack.c.h.s8.bf16 %v7710_v13  ;;  %v8015_v58 = vunpack.c.l.s8.bf16 %v7703_v29  ;;  %v7799_v29 = vld [vmem:[%s10370_s16 + $0x4f8] sm:$0xff] }
 0xb6a   : > { %8980 = vmatprep.mubr.bf16.mxu0 %v12470_v61  ;;  %8935 = vmatprep.subr.bf16.mxu1 %v8349_v1  ;;  %v7934_v61 = vunpack.c.l.s8.bf16 %v7662_v40  ;;  %v8031_v1 = vunpack.c.l.s8.bf16 %v7711_v47  ;;  %v7766_v40 = vld [vmem:[%s10370_s16 + $0x3f0] sm:$0xff] }
 0xb6b   : > { %8950 = vmatprep.subr.bf16.mxu0 %v7951_v45  ;;  %v7695_v45 = vld [vmem:[%s10370_s16 + $0x1b8] sm:$0xff] }
 0xb6d   : > { %8936 = vmatpush2.bf16.msra.mxu1 %v8348_v0  ;;  %8951 = vmatpush1.bf16.msra.mxu0 %v7950_v22  ;;  %v8030_v0 = vunpack.c.l.s8.bf16 %v7710_v13  ;;  %v8007_v22 = vunpack.c.h.s8.bf16 %v7695_v45  ;;  %v12711_v13 = vpop.f32.mrf.mxu0 }
 0xb6e   : > { %8952 = vmatprep.subr.bf16.mxu0 %v7943_v17  ;;  %8991 = vmatprep.subr.bf16.mxu1 %v8087_v62  ;;  %v8151_v17 = vunpack.c.h.s8.bf16 %v7767_v59  ;;  %v7694_v62 = vld [vmem:[%s10370_s16 + $0x1b0] sm:$0xff] }
 0xb6f   : > { %v8006_v30 = vunpack.c.h.s8.bf16 %v7694_v62  ;;  %v7998_v60 = vunpack.c.l.s8.bf16 %v7694_v62 }
 0xb70   : > { %8938 = vmatmul.mubr.bf16.vlgmr.msra.gmra.mxu1 %v12534_v37 }
 0xb71   : > { %8953 = vmatpush1.bf16.msra.mxu0 %v7942_v35  ;;  %8992 = vmatpush1.bf16.msra.mxu1 %v8086_v9  ;;  %v8150_v35 = vunpack.c.h.s8.bf16 %v7766_v40  ;;  %v7999_v9 = vunpack.c.l.s8.bf16 %v7695_v45  ;;  %v8207_v45 = vunpack.c.l.s8.bf16 %v7799_v29 }
 0xb72   : > { %9023 = vmatprep.mubr.bf16.mxu1 %v12482_v44  ;;  %8954 = vmatprep.subr.bf16.mxu0 %v7935_v49  ;;  %v7918_v44 = vunpack.c.l.s8.bf16 %v7654_v11  ;;  %v8143_v49 = vunpack.c.l.s8.bf16 %v7767_v59  ;;  %v7758_v11 = vld [vmem:[%s10370_s16 + $0x3b0] sm:$0xff]  ;;  %v7791_v59 = vld [vmem:[%s10370_s16 + $0x4b8] sm:$0xff] }
 0xb73   : > { %8993 = vmatprep.subr.bf16.mxu1 %v8079_v63  ;;  %v7687_v63 = vld [vmem:[%s10370_s16 + $0x178] sm:$0xff]  ;;  %v8199_v62 = vunpack.c.h.s8.bf16 %v7791_v59 }
 0xb75   : > { %8955 = vmatpush1.bf16.msra.mxu0 %v7934_v61  ;;  %8994 = vmatpush1.bf16.msra.mxu1 %v8078_v4  ;;  %v8142_v61 = vunpack.c.l.s8.bf16 %v7766_v40  ;;  %v7991_v4 = vunpack.c.h.s8.bf16 %v7687_v63 }
 0xb76   : > { %8956 = vmatprep.subr.bf16.mxu0 %v7927_v39  ;;  %8995 = vmatprep.subr.bf16.mxu1 %v8071_v26  ;;  %v8135_v39 = vunpack.c.h.s8.bf16 %v7759_v36  ;;  %v7686_v26 = vld [vmem:[%s10370_s16 + $0x170] sm:$0xff] }
 0xb77   : > { %v7990_v15 = vunpack.c.h.s8.bf16 %v7686_v26  ;;  %v7982_v57 = vunpack.c.l.s8.bf16 %v7686_v26 }
 0xb79   : > { %8957 = vmatpush1.bf16.msra.mxu0 %v7926_v28  ;;  %8996 = vmatpush1.bf16.msra.mxu1 %v8070_v25  ;;  %v8134_v28 = vunpack.c.h.s8.bf16 %v7758_v11  ;;  %v7983_v25 = vunpack.c.l.s8.bf16 %v7687_v63 }
 0xb7a   : > { %8958 = vmatprep.subr.bf16.mxu0 %v7919_v53  ;;  %8997 = vmatprep.subr.bf16.mxu1 %v8063_v34  ;;  %v8127_v53 = vunpack.c.l.s8.bf16 %v7759_v36  ;;  %v7679_v34 = vld [vmem:[%s10370_s16 + $0x138] sm:$0xff] }
 0xb7d   : > { %8959 = vmatpush1.bf16.msra.mxu0 %v7918_v44  ;;  %8998 = vmatpush1.bf16.msra.mxu1 %v8062_v27  ;;  %v8126_v44 = vunpack.c.l.s8.bf16 %v7758_v11  ;;  %v7975_v27 = vunpack.c.h.s8.bf16 %v7679_v34 }
 0xb7e   : > { %8960 = vmatprep.subr.bf16.mxu0 %v7911_v20  ;;  %8999 = vmatprep.subr.bf16.mxu1 %v8055_v5  ;;  %v8119_v20 = vunpack.c.h.s8.bf16 %v7751_v41  ;;  %v7678_v5 = vld [vmem:[%s10370_s16 + $0x130] sm:$0xff] }
 0xb7f   : > { %v7974_v12 = vunpack.c.h.s8.bf16 %v7678_v5  ;;  %v7966_v47 = vunpack.c.l.s8.bf16 %v7678_v5  ;;  %v7775_v5 = vld [vmem:[%s10370_s16 + $0x438] sm:$0xff] }
 0xb81   : > { %8961 = vmatpush1.bf16.msra.mxu0 %v7910_v14  ;;  %9000 = vmatpush1.bf16.msra.mxu1 %v8054_v6  ;;  %v8118_v14 = vunpack.c.h.s8.bf16 %v7750_v31  ;;  %v7967_v6 = vunpack.c.l.s8.bf16 %v7679_v34 }
 0xb82   : > { %8962 = vmatprep.subr.bf16.mxu0 %v7903_v46  ;;  %9001 = vmatprep.subr.bf16.mxu1 %v8047_v18  ;;  %v8111_v46 = vunpack.c.l.s8.bf16 %v7751_v41  ;;  %v7743_v18 = vld [vmem:[%s10370_s16 + $0x338] sm:$0xff] }
 0xb85   : > { %8963 = vmatpush1.bf16.msra.mxu0 %v7902_v42  ;;  %9002 = vmatpush1.bf16.msra.mxu1 %v8046_v51  ;;  %v8110_v42 = vunpack.c.l.s8.bf16 %v7750_v31  ;;  %v8103_v51 = vunpack.c.h.s8.bf16 %v7743_v18  ;;  %v7847_v31 = vld [vmem:[%s10370_s16 + $0x678] sm:$0xff] }
 0xb86   : > { %8964 = vmatprep.subr.bf16.mxu0 %v8023_v2  ;;  %9003 = vmatprep.subr.bf16.mxu1 %v8039_v33  ;;  %v8215_v2 = vunpack.c.h.s8.bf16 %v7799_v29  ;;  %v7742_v33 = vld [vmem:[%s10370_s16 + $0x330] sm:$0xff] }
 0xb87   : > { %v7774_v29 = vld [vmem:[%s10370_s16 + $0x430] sm:$0xff] }
 0xb89   : > { %8965 = vmatpush2.bf16.msra.mxu0 %v8022_v52  ;;  %9004 = vmatpush1.bf16.msra.mxu1 %v8038_v3  ;;  %v8102_v52 = vunpack.c.h.s8.bf16 %v7742_v33  ;;  %v8214_v3 = vunpack.c.h.s8.bf16 %v7798_v24 }
 0xb8a   : > { %8966 = vmatprep.subr.bf16.mxu0 %v8015_v58  ;;  %9005 = vmatprep.subr.bf16.mxu1 %v8031_v1  ;;  %v8095_v58 = vunpack.c.l.s8.bf16 %v7743_v18  ;;  %v12713_v1 = vpop.f32.mrf.mxu1  ;;  %v8311_v18 = vunpack.c.h.s8.bf16 %v7847_v31 }
 0xb8d   : > { %8967 = vmatpush2.bf16.msra.mxu0 %v8014_v10  ;;  %9006 = vmatpush1.bf16.msra.mxu1 %v8030_v0  ;;  %v7863_v10 = vld [vmem:[%s10370_s16 + $0x6f8] sm:$0xff]  ;;  %v12718_v0 = vpop.f32.mrf.mxu0 }
 0xb8e   : > { %8968 = vmatprep.subr.bf16.mxu0 %v8007_v22  ;;  %9007 = vmatprep.subr.bf16.mxu1 %v8151_v17  ;;  %v8094_v22 = vunpack.c.l.s8.bf16 %v7742_v33  ;;  %v8206_v17 = vunpack.c.l.s8.bf16 %v7798_v24  ;;  %v8343_v40 = vunpack.c.h.s8.bf16 %v7863_v10  ;;  %v8159_v24 = vunpack.c.l.s8.bf16 %v7775_v5 }
 0xb91   : > { %8969 = vmatpush2.bf16.msra.mxu0 %v8006_v30  ;;  %9008 = vmatpush2.bf16.msra.mxu1 %v8150_v35  ;;  %v7790_v30 = vld [vmem:[%s10370_s16 + $0x4b0] sm:$0xff] }
 0xb92   : > { %8970 = vmatprep.subr.bf16.mxu0 %v7999_v9  ;;  %9009 = vmatprep.subr.bf16.mxu1 %v8143_v49  ;;  %v7862_v35 = vld [vmem:[%s10370_s16 + $0x6f0] sm:$0xff]  ;;  %v12723_v9 = vpop.f32.mrf.mxu1  ;;  %v12725_v49 = vpop.f32.mrf.mxu0  ;;  %v8190_v26 = vunpack.c.l.s8.bf16 %v7790_v30 }
 0xb93   : > { %v8342_v63 = vunpack.c.h.s8.bf16 %v7862_v35  ;;  %v8334_v11 = vunpack.c.l.s8.bf16 %v7862_v35  ;;  %v7838_v35 = vld [vmem:[%s10370_s16 + $0x630] sm:$0xff] }
 0xb94   : > { %v12727_v36 = vpop.f32.mrf.mxu1 }
 0xb95   : > { %8971 = vmatpush2.bf16.msra.mxu0 %v7998_v60  ;;  %9010 = vmatpush2.bf16.msra.mxu1 %v8142_v61  ;;  %v8335_v60 = vunpack.c.l.s8.bf16 %v7863_v10  ;;  %v7783_v61 = vld [vmem:[%s10370_s16 + $0x478] sm:$0xff] }
 0xb96   : > { %8972 = vmatprep.subr.bf16.mxu0 %v7991_v4  ;;  %9011 = vmatprep.subr.bf16.mxu1 %v8135_v39  ;;  %v7855_v4 = vld [vmem:[%s10370_s16 + $0x6b8] sm:$0xff]  ;;  %v12732_v39 = vpop.f32.mrf.mxu0  ;;  %v12737_v34 = vpop.f32.mrf.mxu1 }
 0xb98   : > { %v12739_v41 = vpop.f32.mrf.mxu0 }
 0xb99   : > { %8973 = vmatpush2.bf16.msra.mxu0 %v7990_v15  ;;  %9012 = vmatpush2.bf16.msra.mxu1 %v8134_v28  ;;  %v8183_v15 = vunpack.c.h.s8.bf16 %v7783_v61  ;;  %v8327_v28 = vunpack.c.h.s8.bf16 %v7855_v4 }
 0xb9a   : > { %8974 = vmatprep.subr.bf16.mxu0 %v7983_v25  ;;  %9013 = vmatprep.subr.bf16.mxu1 %v8127_v53  ;;  %v7782_v25 = vld [vmem:[%s10370_s16 + $0x470] sm:$0xff] }
 0xb9b   : > { %v7854_v53 = vld [vmem:[%s10370_s16 + $0x6b0] sm:$0xff] }
 0xb9d   : > { %8975 = vmatpush2.bf16.msra.mxu0 %v7982_v57  ;;  %9014 = vmatpush2.bf16.msra.mxu1 %v8126_v44  ;;  %v8182_v57 = vunpack.c.h.s8.bf16 %v7782_v25  ;;  %v8326_v44 = vunpack.c.h.s8.bf16 %v7854_v53 }
 0xb9e   : > { %8976 = vmatprep.subr.bf16.mxu0 %v7975_v27  ;;  %9015 = vmatprep.subr.bf16.mxu1 %v8119_v20  ;;  %v8319_v27 = vunpack.c.l.s8.bf16 %v7855_v4  ;;  %v12743_v20 = vpop.f32.mrf.mxu0 }
 0xba1   : > { %8977 = vmatpush2.bf16.msra.mxu0 %v7974_v12  ;;  %9016 = vmatpush2.bf16.msra.mxu1 %v8118_v14  ;;  %v8174_v14 = vunpack.c.l.s8.bf16 %v7782_v25 }
 0xba2   : > { %8978 = vmatprep.subr.bf16.mxu0 %v7967_v6  ;;  %9017 = vmatprep.subr.bf16.mxu1 %v8111_v46  ;;  %v8318_v6 = vunpack.c.l.s8.bf16 %v7854_v53  ;;  %v8167_v46 = vunpack.c.h.s8.bf16 %v7775_v5  ;;  %v8286_v53 = vunpack.c.l.s8.bf16 %v7838_v35 }
 0xba5   : > { %8979 = vmatpush2.bf16.msra.mxu0 %v7966_v47  ;;  %9018 = vmatpush2.bf16.msra.mxu1 %v8110_v42  ;;  %v7846_v47 = vld [vmem:[%s10370_s16 + $0x670] sm:$0xff]  ;;  %v12751_v42 = vpop.f32.mrf.mxu0 }
 0xba6   : > { %9019 = vmatprep.subr.bf16.mxu1 %v8103_v51  ;;  %9034 = vmatprep.subr.bf16.mxu0 %v8215_v2  ;;  %v8166_v2 = vunpack.c.h.s8.bf16 %v7774_v29  ;;  %v8310_v33 = vunpack.c.h.s8.bf16 %v7846_v47 }
 0xba8   : > { %8981 = vmatmul.mubr.bf16.vlgmr.msra.gmra.mxu0 %v12473_v38  ;;  %v8198_v38 = vunpack.c.h.s8.bf16 %v7790_v30  ;;  %v7830_v30 = vld [vmem:[%s10370_s16 + $0x5f0] sm:$0xff] }
 0xba9   : > { %9020 = vmatpush2.bf16.msra.mxu1 %v8102_v52  ;;  %9035 = vmatpush1.bf16.msra.mxu0 %v8214_v3  ;;  %v8303_v52 = vunpack.c.l.s8.bf16 %v7847_v31  ;;  %v12755_v3 = vpop.f32.mrf.mxu0  ;;  %v8270_v25 = vunpack.c.l.s8.bf16 %v7830_v30 }
 0xbaa   : > { %9066 = vmatprep.mubr.bf16.mxu0 %v12519_v21  ;;  %9021 = vmatprep.subr.bf16.mxu1 %v8095_v58  ;;  %v8191_v21 = vunpack.c.l.s8.bf16 %v7791_v59  ;;  %v7831_v58 = vld [vmem:[%s10370_s16 + $0x5f8] sm:$0xff] }
 0xbab   : > { %9036 = vmatprep.subr.bf16.mxu0 %v8207_v45  ;;  %v7839_v45 = vld [vmem:[%s10370_s16 + $0x638] sm:$0xff]  ;;  %v12761_v10 = vpop.f32.mrf.mxu0 }
 0xbac   : > { %v8287_v4 = vunpack.c.l.s8.bf16 %v7839_v45 }
 0xbad   : > { %9022 = vmatpush2.bf16.msra.mxu1 %v8094_v22  ;;  %9037 = vmatpush1.bf16.msra.mxu0 %v8206_v17  ;;  %v8158_v22 = vunpack.c.l.s8.bf16 %v7774_v29  ;;  %v8302_v17 = vunpack.c.l.s8.bf16 %v7846_v47 }
 0xbae   : > { %9038 = vmatprep.subr.bf16.mxu0 %v8199_v62  ;;  %9077 = vmatprep.subr.bf16.mxu1 %v8343_v40  ;;  %v8279_v62 = vunpack.c.h.s8.bf16 %v7831_v58  ;;  %v8295_v40 = vunpack.c.h.s8.bf16 %v7839_v45 }
 0xbb0   : > { %9024 = vmatmul.mubr.bf16.vlgmr.msra.gmra.mxu1 %v12485_v16  ;;  %v12741_v16 = vpop.f32.mrf.mxu1 }
 0xbb1   : > { %9039 = vmatpush1.bf16.msra.mxu0 %v8198_v38  ;;  %9078 = vmatpush1.bf16.msra.mxu1 %v8342_v63  ;;  %v12767_v63 = vpop.f32.mrf.mxu0 }
 0xbb2   : > { %9109 = vmatprep.mubr.bf16.mxu1 %v12531_v43  ;;  %9040 = vmatprep.subr.bf16.mxu0 %v8191_v21  ;;  %v8175_v43 = vunpack.c.l.s8.bf16 %v7783_v61  ;;  %v12747_v12 = vpop.f32.mrf.mxu1  ;;  %v8278_v21 = vunpack.c.h.s8.bf16 %v7830_v30  ;;  %v8271_v61 = vunpack.c.l.s8.bf16 %v7831_v58  ;;  %v8516_v30 = vadd.f32 %v12737_v34, %v12732_v39  ;;  %v7807_v34 = vld [vmem:[%s10370_s16 + $0x538] sm:$0xff] }
 0xbb3   : > { %9079 = vmatprep.subr.bf16.mxu1 %v8335_v60  ;;  %v8294_v60 = vunpack.c.h.s8.bf16 %v7838_v35 }
 0xbb4   : > { %v12753_v51 = vpop.f32.mrf.mxu1 }
 0xbb5   : > { %9041 = vmatpush1.bf16.msra.mxu0 %v8190_v26  ;;  %9080 = vmatpush1.bf16.msra.mxu1 %v8334_v11  ;;  %v7823_v11 = vld [vmem:[%s10370_s16 + $0x5b8] sm:$0xff] }
 0xbb6   : > { %9042 = vmatprep.subr.bf16.mxu0 %v8183_v15  ;;  %9081 = vmatprep.subr.bf16.mxu1 %v8327_v28  ;;  %v12759_v59 = vpop.f32.mrf.mxu1  ;;  %v7895_v15 = vld [vmem:[%s10370_s16 + $0x7f8] sm:$0xff]  ;;  %v12773_v28 = vpop.f32.mrf.mxu0 }
 0xbb8   : > { %v12765_v38 = vpop.f32.mrf.mxu1  ;;  %v12779_v31 = vpop.f32.mrf.mxu0 }
 0xbb9   : > { %9043 = vmatpush1.bf16.msra.mxu0 %v8182_v57  ;;  %9082 = vmatpush1.bf16.msra.mxu1 %v8326_v44  ;;  %v8263_v57 = vunpack.c.h.s8.bf16 %v7823_v11  ;;  %v8407_v44 = vunpack.c.h.s8.bf16 %v7895_v15 }
 0xbba   : > { %9044 = vmatprep.subr.bf16.mxu0 %v8175_v43  ;;  %9083 = vmatprep.subr.bf16.mxu1 %v8319_v27  ;;  %v12769_v26 = vpop.f32.mrf.mxu1  ;;  %v7822_v43 = vld [vmem:[%s10370_s16 + $0x5b0] sm:$0xff]  ;;  %v12781_v47 = vpop.f32.mrf.mxu0 }
 0xbbb   : > { %v7894_v27 = vld [vmem:[%s10370_s16 + $0x7f0] sm:$0xff] }
 0xbbc   : > { %v12777_v5 = vpop.f32.mrf.mxu1  ;;  %v8398_v58 = vunpack.c.l.s8.bf16 %v7894_v27 }
 0xbbd   : > { %9045 = vmatpush1.bf16.msra.mxu0 %v8174_v14  ;;  %9084 = vmatpush1.bf16.msra.mxu1 %v8318_v6  ;;  %v8262_v14 = vunpack.c.h.s8.bf16 %v7822_v43  ;;  %v8406_v6 = vunpack.c.h.s8.bf16 %v7894_v27 }
 0xbbe   : > { %9046 = vmatprep.subr.bf16.mxu0 %v8167_v46  ;;  %9085 = vmatprep.subr.bf16.mxu1 %v8311_v18  ;;  %v8255_v46 = vunpack.c.l.s8.bf16 %v7823_v11  ;;  %v8399_v18 = vunpack.c.l.s8.bf16 %v7895_v15  ;;  %v8687_v29 = vpop.f32.mrf.mxu1  ;;  %v8510_v15 = vadd.f32 %v12713_v1, %v12711_v13 }
 0xbc1   : > { %9047 = vmatpush1.bf16.msra.mxu0 %v8166_v2  ;;  %9086 = vmatpush1.bf16.msra.mxu1 %v8310_v33  ;;  %v7815_v2 = vld [vmem:[%s10370_s16 + $0x578] sm:$0xff] }
 0xbc2   : > { %9048 = vmatprep.subr.bf16.mxu0 %v8159_v24  ;;  %9087 = vmatprep.subr.bf16.mxu1 %v8303_v52  ;;  %v7887_v33 = vld [vmem:[%s10370_s16 + $0x7b8] sm:$0xff]  ;;  %v12785_v24 = vpop.f32.mrf.mxu1  ;;  %v8254_v52 = vunpack.c.l.s8.bf16 %v7822_v43  ;;  %v8247_v45 = vunpack.c.h.s8.bf16 %v7815_v2  ;;  %v8553_v43 = vadd.f32 %v12739_v41, %v8510_v15 }
 0xbc3   : > { %v8383_v11 = vunpack.c.l.s8.bf16 %v7887_v33 }
 0xbc4   : > { %v12793_v35 = vpop.f32.mrf.mxu1  ;;  %v8596_v41 = vadd.f32 %v12741_v16, %v8553_v43 }
 0xbc5   : > { %9049 = vmatpush1.bf16.msra.mxu0 %v8158_v22  ;;  %9088 = vmatpush1.bf16.msra.mxu1 %v8302_v17  ;;  %v8391_v22 = vunpack.c.h.s8.bf16 %v7887_v33  ;;  %v7814_v17 = vld [vmem:[%s10370_s16 + $0x570] sm:$0xff] }
 0xbc6   : > { %9050 = vmatprep.subr.bf16.mxu0 %v8279_v62  ;;  %9089 = vmatprep.subr.bf16.mxu1 %v8295_v40  ;;  %v7886_v62 = vld [vmem:[%s10370_s16 + $0x7b0] sm:$0xff]  ;;  %v12789_v40 = vpop.f32.mrf.mxu0  ;;  %v8771_v13 = vpop.f32.mrf.mxu1  ;;  %v8238_v1 = vunpack.c.l.s8.bf16 %v7814_v17 }
 0xbc8   : > { %v8728_v39 = vpop.f32.mrf.mxu0 }
 0xbc9   : > { %9051 = vmatpush2.bf16.msra.mxu0 %v8278_v21  ;;  %9090 = vmatpush1.bf16.msra.mxu1 %v8294_v60  ;;  %v8246_v21 = vunpack.c.h.s8.bf16 %v7814_v17  ;;  %v8390_v60 = vunpack.c.h.s8.bf16 %v7886_v62 }
 0xbca   : > { %9052 = vmatprep.subr.bf16.mxu0 %v8271_v61  ;;  %9091 = vmatprep.subr.bf16.mxu1 %v8287_v4  ;;  %v8559_v61 = vadd.f32 %v12755_v3, %v8516_v30  ;;  %v8239_v4 = vunpack.c.l.s8.bf16 %v7815_v2  ;;  %v12820_v2 = vld [vmem:[%s10360_s30 + $0x2] ss:$4 sm:$0xff] }
 0xbcb   : > { %v9185_v16 = vrot.slane %v12820_v2, %v10720_v50 }
 0xbcc   : > { %v8602_v3 = vadd.f32 %v12759_v59, %v8559_v61  ;;  %v7806_v59 = vld [vmem:[%s10370_s16 + $0x530] sm:$0xff] }
 0xbcd   : > { %9053 = vmatpush2.bf16.msra.mxu0 %v8270_v25  ;;  %9092 = vmatpush1.bf16.msra.mxu1 %v8286_v53  ;;  %v8514_v25 = vadd.f32 %v12727_v36, %v12725_v49  ;;  %v7879_v53 = vld [vmem:[%s10370_s16 + $0x778] sm:$0xff]  ;;  %v8382_v49 = vunpack.c.l.s8.bf16 %v7886_v62 }
 0xbce   : > { %9054 = vmatprep.subr.bf16.mxu0 %v8263_v57  ;;  %9093 = vmatprep.subr.bf16.mxu1 %v8407_v44  ;;  %v8512_v57 = vadd.f32 %v12723_v9, %v12718_v0  ;;  %v12805_v44 = vld [vmem:[%s10360_s30 + $0x3] ss:$4 sm:$0xff]  ;;  %v8231_v9 = vunpack.c.h.s8.bf16 %v7807_v34  ;;  %v8367_v62 = vunpack.c.l.s8.bf16 %v7879_v53 }
 0xbcf   : > { %v8557_v27 = vadd.f32 %v12751_v42, %v8514_v25  ;;  %v9128_v0 = vrot.slane %v12805_v44, %v10720_v50  ;;  %v9124_v42 = vrot.slane %v12805_v44, %v10729_v55  ;;  %v8684_v50 = vadd.f32 %v12769_v26, %v12767_v63 }
 0xbd0   : > { %v8555_v36 = vadd.f32 %v12743_v20, %v8512_v57  ;;  %v8222_v25 = vunpack.c.l.s8.bf16 %v7806_v59 }
 0xbd1   : > { %9055 = vmatpush2.bf16.msra.mxu0 %v8262_v14  ;;  %9094 = vmatpush2.bf16.msra.mxu1 %v8406_v6  ;;  %v8375_v14 = vunpack.c.h.s8.bf16 %v7879_v53  ;;  %v7878_v6 = vld [vmem:[%s10370_s16 + $0x770] sm:$0xff]  ;;  %v9170_v33 = vmul.f32 %v9128_v0, %v8602_v3  ;;  %v9161_v30 = vmul.f32 %v9124_v42, %v8596_v41 }
 0xbd2   : > { %9056 = vmatprep.subr.bf16.mxu0 %v8255_v46  ;;  %9095 = vmatprep.subr.bf16.mxu1 %v8399_v18  ;;  %v8600_v46 = vadd.f32 %v12753_v51, %v8557_v27  ;;  %v8730_v18 = vpop.f32.mrf.mxu0  ;;  %v8598_v20 = vadd.f32 %v12747_v12, %v8555_v36  ;;  %v8223_v51 = vunpack.c.l.s8.bf16 %v7807_v34  ;;  %v9181_v12 = vrot.slane %v12820_v2, %v10729_v55  ;;  %v7870_v53 = vld [vmem:[%s10370_s16 + $0x730] sm:$0xff] }
 0xbd3   : > { %v9227_v61 = vadd.f32 %v9185_v16, %v9170_v33  ;;  %v8366_v55 = vunpack.c.l.s8.bf16 %v7878_v6  ;;  %v8727_v34 = vadd.f32 %v12789_v40, %v8684_v50 }
 0xbd4   : > { %v9218_v43 = vadd.f32 %v9181_v12, %v9161_v30 }
 0xbd5   : > { %9057 = vmatpush2.bf16.msra.mxu0 %v8254_v52  ;;  %9096 = vmatpush2.bf16.msra.mxu1 %v8398_v58  ;;  %v8688_v52 = vadd.f32 %v8687_v29, %v12779_v31  ;;  %v8773_v58 = vpop.f32.mrf.mxu1  ;;  %v8686_v31 = vadd.f32 %v12777_v5, %v12773_v28  ;;  %v7871_v29 = vld [vmem:[%s10370_s16 + $0x738] sm:$0xff]  ;;  %v9136_v28 = vrot.slane %v12805_v44, %v10726_v54 }
 0xbd6   : > { %9058 = vmatprep.subr.bf16.mxu0 %v8247_v45  ;;  %9097 = vmatprep.subr.bf16.mxu1 %v8391_v22  ;;  %v8230_v45 = vunpack.c.h.s8.bf16 %v7806_v59  ;;  %v8374_v22 = vunpack.c.h.s8.bf16 %v7878_v6  ;;  %v8359_v5 = vunpack.c.h.s8.bf16 %v7871_v29 }
 0xbd7   : > { %v8731_v17 = vadd.f32 %v8730_v18, %v8688_v52  ;;  %v8729_v15 = vadd.f32 %v8728_v39, %v8686_v31  ;;  %v10144_v39 = vld [vmem:[%s13026_s7 + $0x48] sm:$0xff] }
 0xbd8   : > { %v9243_v40 = vadd.f32 %v10144_v39, %v9227_v61 }
 0xbd9   : > { %9059 = vmatpush2.bf16.msra.mxu0 %v8246_v21  ;;  %9098 = vmatpush2.bf16.msra.mxu1 %v8390_v60  ;;  %v9169_v21 = vmul.f32 %v9124_v42, %v8600_v46  ;;  %v9162_v60 = vmul.f32 %v9128_v0, %v8598_v20  ;;  %v8772_v26 = vadd.f32 %v8771_v13, %v8729_v15  ;;  %v10145_v13 = vld [vmem:[%s13026_s7 + $0x40] sm:$0xff]  ;;  %v8350_v46 = vunpack.c.l.s8.bf16 %v7870_v53  ;;  %v10148_v20 = vld [vmem:[%s13026_s7 + $0x58] sm:$0xff] }
 0xbda   : > { %9060 = vmatprep.subr.bf16.mxu0 %v8239_v4  ;;  %9099 = vmatprep.subr.bf16.mxu1 %v8383_v11  ;;  %v8774_v4 = vadd.f32 %v8773_v58, %v8731_v17  ;;  %v8682_v11 = vadd.f32 %v12765_v38, %v12761_v10  ;;  %v8770_v10 = vadd.f32 %v12793_v35, %v8727_v34  ;;  %v8351_v35 = vunpack.c.l.s8.bf16 %v7871_v29  ;;  %v12866_v58 = vld [vmem:[%s10375_s23] sm:$0xff]  ;;  %v10151_v17 = vld [vmem:[%s13026_s7 + $0x10] sm:$0xff] }
 0xbdb   : > { %v9226_v57 = vadd.f32 %v9181_v12, %v9169_v21  ;;  %v9219_v3 = vadd.f32 %v9185_v16, %v9162_v60  ;;  %v9189_v42 = vrot.slane %v12820_v2, %v10732_v56 }
 0xbdc   : > { %v8725_v63 = vadd.f32 %v12781_v47, %v8682_v11  ;;  %v9172_v38 = vmul.f32 %v9136_v28, %v8774_v4  ;;  %v9193_v47 = vrot.slane %v12820_v2, %v10726_v54  ;;  %v10147_v54 = vld [vmem:[%s13026_s7] sm:$0xff] }
 0xbdd   : > { %9061 = vmatpush2.bf16.msra.mxu0 %v8238_v1  ;;  %9100 = vmatpush2.bf16.msra.mxu1 %v8382_v49  ;;  %v9132_v1 = vrot.slane %v12805_v44, %v10732_v56  ;;  %v8358_v49 = vunpack.c.h.s8.bf16 %v7870_v53  ;;  %v9242_v36 = vadd.f32 %v10145_v13, %v9226_v57  ;;  %v9234_v6 = vadd.f32 %v10147_v54, %v9218_v43  ;;  %v10149_v56 = vld [vmem:[%s13026_s7 + $0x50] sm:$0xff]  ;;  %v10152_v54 = vld [vmem:[%s13026_s7 + $0x68] sm:$0xff] }
 0xbde   : > { %9062 = vmatprep.subr.bf16.mxu0 %v8231_v9  ;;  %9101 = vmatprep.subr.bf16.mxu1 %v8375_v14  ;;  %v8768_v27 = vadd.f32 %v12785_v24, %v8725_v63  ;;  %v9164_v9 = vmul.f32 %v9136_v28, %v8770_v10  ;;  %v9229_v24 = vadd.f32 %v9193_v47, %v9172_v38  ;;  %v10146_v14 = vld [vmem:[%s13026_s7 + $0x8] sm:$0xff] }
 0xbdf   : > { %v9171_v0 = vmul.f32 %v9132_v1, %v8772_v26  ;;  %v9235_v59 = vadd.f32 %v10146_v14, %v9219_v3  ;;  %v9144_v3 = vrot.slane %v12805_v44, %v13115_v19  ;;  %v9140_v38 = vrot.slane %v12805_v44, %v13110_v23 }
 0xbe0   : > { %v9163_v41 = vmul.f32 %v9132_v1, %v8768_v27  ;;  %v9221_v18 = vadd.f32 %v9193_v47, %v9164_v9  ;;  %v9245_v33 = vadd.f32 %v10148_v20, %v9229_v24  ;;  %v9252_v20 = vld [vmem:[%s10380_s20] sm:$0xff] }
 0xbe1   : > { %9063 = vmatpush2.bf16.msra.mxu0 %v8230_v45  ;;  %9102 = vmatpush2.bf16.msra.mxu1 %v8374_v22  ;;  %v10150_v22 = vld [vmem:[%s13026_s7 + $0x18] sm:$0xff] }
 0xbe2   : > { %9064 = vmatprep.subr.bf16.mxu0 %v8223_v51  ;;  %9103 = vmatprep.subr.bf16.mxu1 %v8367_v62  ;;  %v9220_v52 = vadd.f32 %v9189_v42, %v9163_v41  ;;  %v9237_v16 = vadd.f32 %v10150_v22, %v9221_v18  ;;  %v12906_v18 = vld [vmem:[%s10375_s23 + $0x8] sm:$0xff] }
 0xbe4   : > { %v9236_v51 = vadd.f32 %v10151_v17, %v9220_v52  ;;  %v10229_v52 = vmov 0  }
 0xbe5   : > { %9065 = vmatpush2.bf16.msra.mxu0 %v8222_v25  ;;  %9104 = vmatpush2.bf16.msra.mxu1 %v8366_v55 }
 0xbe6   : > { %9299 = vmatprep.subr.mxu0 %v9243_v40  ;;  %9105 = vmatprep.subr.bf16.mxu1 %v8359_v5 }
 0xbe7   : > { %10041 = vset.pattern.permute.xlu0 %v10229_v52  ;;  %10042 = vset.pattern.permute.xlu1 %v10229_v52 }
 0xbe8   : > { %9067 = vmatmul.mubr.bf16.vlgmr.msra.gmra.mxu0 %v12522_v7  ;;  %v9228_v7 = vadd.f32 %v9189_v42, %v9171_v0  ;;  %9256 = vperm.xlu0 %10041, %v9252_v20  }
 0xbe9   : > { %9106 = vmatpush2.bf16.msra.mxu1 %v8358_v49  ;;  %9300 = vmatpush1.msra.mxu0 %v9242_v36  ;;  %v9201_v49 = vrot.slane %v12820_v2, %v13115_v19  ;;  %v9197_v36 = vrot.slane %v12820_v2, %v13110_v23  ;;  %v10153_v19 = vld [vmem:[%s13026_s7 + $0x60] sm:$0xff]  ;;  %v10154_v23 = vld [vmem:[%s13026_s7 + $0x28] sm:$0xff] }
 0xbea   : > { %9301 = vmatprep.subr.mxu0 %v9235_v59  ;;  %9107 = vmatprep.subr.bf16.mxu1 %v8351_v35  ;;  %v9244_v45 = vadd.f32 %v10149_v56, %v9228_v7 }
 0xbeb   : > { %9302 = vmatpush1.msra.mxu0 %v9234_v6  ;;  %9335 = vmatprep.mubr.f32.mxu0 %v10227_v8 }
 0xbed   : > { %9108 = vmatpush2.bf16.msra.mxu1 %v8350_v46  ;;  %v10155_v46 = vld [vmem:[%s13026_s7 + $0x20] sm:$0xff] }
 0xbee   : > { %9376 = vmatprep.subr.mxu1 %v9245_v33  ;;  %v9253_v33 = vld [vmem:[%s10380_s20 + $0x8] sm:$0xff] }
 0xbef   : > { %9261 = vperm.xlu1 %10042, %v9253_v33  }
 0xbf0   : > { %9110 = vmatmul.mubr.bf16.vlgmr.msra.gmra.mxu1 %v12534_v37  ;;  %9755 = vmatmul.mubr.msk.f32.vlgmr.msra.gmra.mxu0 %vm9264_vm4, %v12866_v58  ;;  %v8810_v37 = vpop.f32.mrf.mxu0  ;;  %v8853_v12 = vpop.f32.mrf.mxu1 }
 0xbf1   : > { %9377 = vmatpush1.msra.mxu1 %v9244_v45  ;;  %9412 = vmatprep.mubr.f32.mxu1 %v10227_v8  ;;  %v8854_v15 = vadd.f32 %v8853_v12, %v8810_v37 }
 0xbf2   : > { %9378 = vmatprep.subr.mxu1 %v9237_v16  ;;  %9341 = vmatprep.mubr.f32.mxu0 %v10227_v8  ;;  %v8812_v62 = vpop.f32.mrf.mxu0  ;;  %v8855_v31 = vpop.f32.mrf.mxu1 }
 0xbf3   : > { %9379 = vmatpush1.msra.mxu1 %v9236_v51  ;;  %v8856_v11 = vadd.f32 %v8855_v31, %v8812_v62 }
 0xbf4   : > { %v8814_v30 = vpop.f32.mrf.mxu0  ;;  %v8857_v60 = vpop.f32.mrf.mxu1  ;;  %9756 = vmatmul.mubr.msk.f32.gmra.mxu0 %vm9264_vm4, %v12906_v18 }
 0xbf5   : > { %v8858_v55 = vadd.f32 %v8857_v60, %v8814_v30  ;;  %9489 = vmatprep.mubr.f32.mxu0 %v10227_v8 }
 0xbf6   : > { %v8816_v21 = vpop.f32.mrf.mxu0  ;;  %v8859_v50 = vpop.f32.mrf.mxu1 }
 0xbf7   : > { %v8860_v57 = vadd.f32 %v8859_v50, %v8816_v21 }
 0xbf8   : > { %9757 = vmatmul.mubr.msk.f32.vlgmr.msra.gmra.mxu1 %vm9264_vm4, %v12866_v58 }
 0xbf9   : > { %9418 = vmatprep.mubr.f32.mxu1 %v10227_v8 }
 0xbfc   : > { %9758 = vmatmul.mubr.msk.f32.gmra.mxu1 %vm9264_vm4, %v12906_v18 }
 0xbfd   : > { %9566 = vmatprep.mubr.f32.mxu1 %v10227_v8 }
 0xc28   : > { %v8896_v29 = vpop.f32.mrf.mxu0 }
 0xc29   : > { %v8897_v28 = vadd.f32 %v8896_v29, %v8854_v15 }
 0xc2a   : > { %v8898_v61 = vpop.f32.mrf.mxu0 }
 0xc2b   : > { %v8899_v34 = vadd.f32 %v8898_v61, %v8856_v11 }
 0xc2c   : > { %v8900_v4 = vpop.f32.mrf.mxu0 }
 0xc2d   : > { %v8901_v63 = vadd.f32 %v8900_v4, %v8858_v55 }
 0xc2e   : > { %v8902_v5 = vpop.f32.mrf.mxu0 }
 0xc2f   : > { %v8903_v40 = vadd.f32 %v8902_v5, %v8860_v57 }
 0xc30   : > { %v8939_v25 = vpop.f32.mrf.mxu1 }
 0xc31   : > { %v8940_v10 = vadd.f32 %v8939_v25, %v8897_v28  ;;  %v9152_v28 = vrot.slane %v12805_v44, %v13125_v48 }
 0xc32   : > { %v8941_v53 = vpop.f32.mrf.mxu1 }
 0xc33   : > { %v8942_v26 = vadd.f32 %v8941_v53, %v8899_v34  ;;  %v9165_v13 = vmul.f32 %v9140_v38, %v8940_v10  ;;  %v9148_v53 = vrot.slane %v12805_v44, %v13121_v32  ;;  %v10156_v44 = vld [vmem:[%s13026_s7 + $0x78] sm:$0xff] }
 0xc34   : > { %v8943_v39 = vpop.f32.mrf.mxu1 }
 0xc35   : > { %v8944_v43 = vadd.f32 %v8943_v39, %v8901_v63  ;;  %v9166_v1 = vmul.f32 %v9144_v3, %v8942_v26  ;;  %v9222_v59 = vadd.f32 %v9197_v36, %v9165_v13 }
 0xc36   : > { %v8945_v27 = vpop.f32.mrf.mxu1 }
 0xc37   : > { %v9173_v47 = vmul.f32 %v9140_v38, %v8944_v43  ;;  %v8946_v35 = vadd.f32 %v8945_v27, %v8903_v40  ;;  %v9223_v24 = vadd.f32 %v9201_v49, %v9166_v1  ;;  %v9238_v7 = vadd.f32 %v10155_v46, %v9222_v59 }
 0xc38   : > { %v9209_v38 = vrot.slane %v12820_v2, %v13125_v48  ;;  %v9205_v27 = vrot.slane %v12820_v2, %v13121_v32  ;;  %v10157_v48 = vld [vmem:[%s13026_s7 + $0x70] sm:$0xff]  ;;  %v10158_v32 = vld [vmem:[%s13026_s7 + $0x38] sm:$0xff] }
 0xc39   : > { %v9174_v0 = vmul.f32 %v9144_v3, %v8946_v35  ;;  %v9230_v9 = vadd.f32 %v9197_v36, %v9173_v47  ;;  %v9239_v42 = vadd.f32 %v10154_v23, %v9223_v24 }
 0xc3b   : > { %v9231_v14 = vadd.f32 %v9201_v49, %v9174_v0  ;;  %v9246_v41 = vadd.f32 %v10153_v19, %v9230_v9 }
 0xc3d   : > { %v9247_v6 = vadd.f32 %v10152_v54, %v9231_v14  ;;  %v10159_v14 = vld [vmem:[%s13026_s7 + $0x30] sm:$0xff] }
 0xc3f   : > { %9453 = vmatprep.subr.mxu0 %v9247_v6 }
 0xc40   : > { %9454 = vmatpush1.msra.mxu0 %v9246_v41 }
 0xc41   : > { %9455 = vmatprep.subr.mxu0 %v9239_v42 }
 0xc42   : > { %9456 = vmatpush1.msra.mxu0 %v9238_v7 }
 0xc43   : > { %9759 = vmatmul.mubr.msk.f32.vlgmr.msra.gmra.mxu0 %vm9264_vm4, %v12866_v58 }
 0xc44   : > { %9495 = vmatprep.mubr.f32.mxu0 %v10227_v8 }
 0xc47   : > { %9760 = vmatmul.mubr.msk.f32.gmra.mxu0 %vm9264_vm4, %v12906_v18 }
 0xc63   : > { %v12944_v19 = vpop.permute.xlu0 %9256 }
 0xc68   : > { %v8982_v56 = vpop.f32.mrf.mxu0 }
 0xc6a   : > { %v8984_v45 = vpop.f32.mrf.mxu0 }
 0xc6c   : > { %v8986_v22 = vpop.f32.mrf.mxu0 }
 0xc6e   : > { %v8988_v17 = vpop.f32.mrf.mxu0 }
 0xc70   : > { %v9025_v16 = vpop.f32.mrf.mxu1 }
 0xc71   : > { %v9026_v29 = vadd.f32 %v9025_v16, %v8982_v56 }
 0xc72   : > { %v9027_v51 = vpop.f32.mrf.mxu1 }
 0xc73   : > { %v9028_v31 = vadd.f32 %v9027_v51, %v8984_v45 }
 0xc74   : > { %v9029_v62 = vpop.f32.mrf.mxu1 }
 0xc75   : > { %v9030_v61 = vadd.f32 %v9029_v62, %v8986_v22 }
 0xc76   : > { %v9031_v12 = vpop.f32.mrf.mxu1 }
 0xc77   : > { %v9032_v25 = vadd.f32 %v9031_v12, %v8988_v17 }
 0xca8   : > { %v9068_v37 = vpop.f32.mrf.mxu0 }
 0xca9   : > { %v9069_v4 = vadd.f32 %v9068_v37, %v9026_v29 }
 0xcaa   : > { %v9070_v30 = vpop.f32.mrf.mxu0 }
 0xcab   : > { %v9071_v50 = vadd.f32 %v9070_v30, %v9028_v31 }
 0xcac   : > { %v9072_v21 = vpop.f32.mrf.mxu0 }
 0xcad   : > { %v9073_v55 = vadd.f32 %v9072_v21, %v9030_v61 }
 0xcae   : > { %v9074_v11 = vpop.f32.mrf.mxu0 }
 0xcaf   : > { %v9075_v63 = vadd.f32 %v9074_v11, %v9032_v25 }
 0xcb0   : > { %v9111_v60 = vpop.f32.mrf.mxu1  ;;  %v9337_v9 = vpop.f32.mrf.mxu0 }
 0xcb1   : > { %v9112_v5 = vadd.f32 %v9111_v60, %v9069_v4  ;;  %v9338_v41 = vadd.f32 %v9337_v9, %v12944_v19 }
 0xcb2   : > { %v9113_v15 = vpop.f32.mrf.mxu1  ;;  %v9339_v54 = vpop.f32.mrf.mxu0 }
 0xcb3   : > { %v9114_v34 = vadd.f32 %v9113_v15, %v9071_v50  ;;  %v9167_v43 = vmul.f32 %v9148_v53, %v9112_v5  ;;  %v9340_v42 = vadd.f32 %v9339_v54, %v12944_v19  ;;  %10111 = vtanh.f32 %v9338_v41 }
 0xcb4   : > { %v9115_v57 = vpop.f32.mrf.mxu1  ;;  %v9343_v52 = vpop.f32.mrf.mxu0 }
 0xcb5   : > { %v9116_v26 = vadd.f32 %v9115_v57, %v9073_v55  ;;  %v9168_v10 = vmul.f32 %v9152_v28, %v9114_v34  ;;  %v9224_v13 = vadd.f32 %v9205_v27, %v9167_v43 }
 0xcb6   : > { %v9117_v3 = vpop.f32.mrf.mxu1  ;;  %v9345_v16 = vpop.f32.mrf.mxu0 }
 0xcb7   : > { %v9175_v39 = vmul.f32 %v9148_v53, %v9116_v26  ;;  %v9118_v40 = vadd.f32 %v9117_v3, %v9075_v63  ;;  %v9225_v47 = vadd.f32 %v9209_v38, %v9168_v10  ;;  %v9240_v59 = vadd.f32 %v10159_v14, %v9224_v13 }
 0xcb8   : > { %v9414_v24 = vpop.f32.mrf.mxu1 }
 0xcb9   : > { %v9176_v1 = vmul.f32 %v9152_v28, %v9118_v40  ;;  %v9232_v49 = vadd.f32 %v9205_v27, %v9175_v39  ;;  %v9241_v2 = vadd.f32 %v10158_v32, %v9225_v47  ;;  %v9415_v23 = vadd.f32 %v9414_v24, %v12944_v19 }
 0xcba   : > { %v9416_v6 = vpop.f32.mrf.mxu1 }
 0xcbb   : > { %v9233_v35 = vadd.f32 %v9209_v38, %v9176_v1  ;;  %v9248_v0 = vadd.f32 %v10157_v48, %v9232_v49  ;;  %v9417_v46 = vadd.f32 %v9416_v6, %v12944_v19  ;;  %10113 = vtanh.f32 %v9415_v23 }
 0xcbc   : > { %10115 = vtanh.f32 %v9340_v42  ;;  %v9420_v33 = vpop.f32.mrf.mxu1 }
 0xcbd   : > { %v9249_v36 = vadd.f32 %v10156_v44, %v9233_v35  ;;  %10117 = vtanh.f32 %v9417_v46 }
 0xcbe   : > { %v9422_v22 = vpop.f32.mrf.mxu1 }
 0xcbf   : > { %9530 = vmatprep.subr.mxu1 %v9249_v36 }
 0xcc0   : > { %9531 = vmatpush1.msra.mxu1 %v9248_v0 }
 0xcc1   : > { %9532 = vmatprep.subr.mxu1 %v9241_v2 }
 0xcc2   : > { %9533 = vmatpush1.msra.mxu1 %v9240_v59 }
 0xcc3   : > { %9761 = vmatmul.mubr.msk.f32.vlgmr.msra.gmra.mxu1 %vm9264_vm4, %v12866_v58  ;;  %v10112_v58 = vpop.eup %10111 }
 0xcc4   : > { %9572 = vmatprep.mubr.f32.mxu1 %v10227_v8  ;;  %9595 = vst [vmem:[%s13026_s7] sm:$0xff] %v10112_v58 }
 0xcc7   : > { %9762 = vmatmul.mubr.msk.f32.gmra.mxu1 %vm9264_vm4, %v12906_v18  ;;  %v9262_v18 = vpop.permute.xlu1 %9261 }
 0xcc8   : > { %v10114_v7 = vpop.eup %10113  ;;  %v9421_v56 = vadd.f32 %v9420_v33, %v9262_v18  ;;  %v9344_v45 = vadd.f32 %v9343_v52, %v9262_v18  ;;  %v9423_v17 = vadd.f32 %v9422_v22, %v9262_v18  ;;  %v9346_v51 = vadd.f32 %v9345_v16, %v9262_v18 }
 0xcc9   : > { %v10116_v8 = vpop.eup %10115  ;;  %9597 = vst [vmem:[%s13026_s7 + $0x10] sm:$0xff] %v10114_v7 }
 0xcca   : > { %v10118_v20 = vpop.eup %10117  ;;  %9596 = vst [vmem:[%s13026_s7 + $0x8] sm:$0xff] %v10116_v8  ;;  %10119 = vtanh.f32 %v9421_v56 }
 0xccb   : > { %9598 = vst [vmem:[%s13026_s7 + $0x18] sm:$0xff] %v10118_v20  ;;  %10121 = vtanh.f32 %v9344_v45 }
 0xccc   : > { %10123 = vtanh.f32 %v9423_v17 }
 0xccd   : > { %10125 = vtanh.f32 %v9346_v51 }
 0xcd7   : > { %v10120_v61 = vpop.eup %10119 }
 0xcd8   : > { %v10122_v50 = vpop.eup %10121  ;;  %9605 = vst [vmem:[%s13026_s7 + $0x50] sm:$0xff] %v10120_v61 }
 0xcd9   : > { %v10124_v4 = vpop.eup %10123  ;;  %9603 = vst [vmem:[%s13026_s7 + $0x40] sm:$0xff] %v10122_v50 }
 0xcda   : > { %v10126_v11 = vpop.eup %10125  ;;  %9606 = vst [vmem:[%s13026_s7 + $0x58] sm:$0xff] %v10124_v4 }
 0xcdb   : > { %9604 = vst [vmem:[%s13026_s7 + $0x48] sm:$0xff] %v10126_v11 }
 0xd03   : > { %v9491_v37 = vpop.f32.mrf.mxu0 }
 0xd04   : > { %v9492_v62 = vadd.f32 %v9491_v37, %v12944_v19 }
 0xd05   : > { %v9493_v30 = vpop.f32.mrf.mxu0 }
 0xd06   : > { %10127 = vtanh.f32 %v9492_v62  ;;  %v9494_v12 = vadd.f32 %v9493_v30, %v12944_v19 }
 0xd07   : > { %v9497_v21 = vpop.f32.mrf.mxu0 }
 0xd08   : > { %10129 = vtanh.f32 %v9494_v12  ;;  %v9498_v29 = vadd.f32 %v9497_v21, %v9262_v18 }
 0xd09   : > { %v9499_v31 = vpop.f32.mrf.mxu0 }
 0xd0a   : > { %v9500_v60 = vadd.f32 %v9499_v31, %v9262_v18  ;;  %10131 = vtanh.f32 %v9498_v29 }
 0xd0c   : > { %10133 = vtanh.f32 %v9500_v60 }
 0xd13   : > { %v10128_v15 = vpop.eup %10127 }
 0xd14   : > { %9599 = vst [vmem:[%s13026_s7 + $0x20] sm:$0xff] %v10128_v15 }
 0xd15   : > { %v10130_v25 = vpop.eup %10129 }
 0xd16   : > { %9600 = vst [vmem:[%s13026_s7 + $0x28] sm:$0xff] %v10130_v25 }
 0xd17   : > { %v10132_v55 = vpop.eup %10131 }
 0xd18   : > { %9607 = vst [vmem:[%s13026_s7 + $0x60] sm:$0xff] %v10132_v55 }
 0xd19   : > { %v10134_v34 = vpop.eup %10133 }
 0xd1a   : > { %9608 = vst [vmem:[%s13026_s7 + $0x68] sm:$0xff] %v10134_v34 }
 0xd83   : > { %v9568_v28 = vpop.f32.mrf.mxu1 }
 0xd84   : > { %v9569_v5 = vadd.f32 %v9568_v28, %v12944_v19 }
 0xd85   : > { %v9570_v53 = vpop.f32.mrf.mxu1 }
 0xd86   : > { %10135 = vtanh.f32 %v9569_v5  ;;  %v9571_v57 = vadd.f32 %v9570_v53, %v12944_v19 }
 0xd87   : > { %v9574_v63 = vpop.f32.mrf.mxu1 }
 0xd88   : > { %10137 = vtanh.f32 %v9571_v57  ;;  %v9575_v26 = vadd.f32 %v9574_v63, %v9262_v18 }
 0xd89   : > { %v9576_v3 = vpop.f32.mrf.mxu1 }
 0xd8a   : > { %10139 = vtanh.f32 %v9575_v26  ;;  %v9577_v10 = vadd.f32 %v9576_v3, %v9262_v18 }
 0xd8c   : > { %10141 = vtanh.f32 %v9577_v10 }
 0xd93   : > { %v10136_v38 = vpop.eup %10135 }
 0xd94   : > { %9601 = vst [vmem:[%s13026_s7 + $0x30] sm:$0xff] %v10136_v38 }
 0xd95   : > { %v10138_v39 = vpop.eup %10137 }
 0xd96   : > { %9602 = vst.msk [vmem:[%s13026_s7 + $0x38] sm:$0xff] %vm448_vm1, %v10138_v39 }
 0xd97   : > { %v10140_v40 = vpop.eup %10139 }
 0xd98   : > { %9609 = vst [vmem:[%s13026_s7 + $0x70] sm:$0xff] %v10140_v40 }
 0xd99   : > { %v10142_v43 = vpop.eup %10141 }
 0xd9a   : > { %9610 = vst.msk [vmem:[%s13026_s7 + $0x78] sm:$0xff] %vm448_vm1, %v10142_v43 }
 0xd9b PF: > { %p17_p1 = scmp.ge.s32.totalorder %s10292_s29, 4   ;;  %s13170_s24 = smov %s10214_s25 }
 0xd9c   : > { %s13171_s25 = smov %s10218_s26  ;;  %s13172_s26 = smov %s10302_s9 }
 0xd9d   : > { %s13173_s27 = smov %s10292_s29  ;;  %19 = sbr.rel (!%p17_p1) target bundleno = 3 (0x3), region = 106 }
 0xda2   :  { %9622 = vsyncpa [#allocation5], 1 }
 0xda3   :  { %9624 = vsyncpa [#allocation5 + $0x1], 1 }

</bundles_post_ra>
